<compile_context>
chip_gen: v6e
topology: v6e:2x2x1
jax: 0.10.0
libtpu: 0.0.40
codegen_flags: <defaults>
</compile_context>

<pallas_src>
import functools

import jax
import jax.numpy as jnp
from jax import lax
from jax.experimental import pallas as pl
from jax.experimental.pallas import tpu as pltpu


def _round_up(v, m):
    return (v + m - 1) // m * m


# ----------------------------------------------------------------------------
# Tiled Linear (+ optional fused ReLU): y = x @ W.T + b
#   * grid = (M tiles, N tiles, K tiles); M/N "parallel", K serial reduction.
#   * The output block is VMEM-resident across K (same block index), so it is
#     used directly as the f32 accumulator; bias + ReLU fused in the epilogue.
#   * Weights may be bf16; accumulation is always f32 on the MXU.
# ----------------------------------------------------------------------------
def _linear_kernel(x_ref, w_ref, b_ref, o_ref, *, relu):
    k = pl.program_id(2)

    @pl.when(k == 0)
    def _():
        o_ref[...] = jnp.zeros_like(o_ref)

    o_ref[...] += lax.dot_general(
        x_ref[...], w_ref[...],
        (((1,), (1,)), ((), ())),
        preferred_element_type=jnp.float32)

    @pl.when(k == pl.num_programs(2) - 1)
    def _():
        y = o_ref[...] + b_ref[...]
        if relu:
            y = jnp.maximum(y, 0.0)
        o_ref[...] = y


def linear(x, w, b, *, relu=False, tm=256, tn=1024, tk=2048):
    R, K = x.shape
    N = w.shape[0]
    # Tile sizes: multiples of (8, 128), never larger than the (padded) dims.
    tk = min(tk, _round_up(K, 128))
    tn = min(tn, _round_up(N, 128))
    tm = min(tm, _round_up(R, 8))
    Kp = _round_up(K, tk)
    Np = _round_up(N, tn)
    Rp = _round_up(R, tm)

    xp = x.astype(w.dtype)                      # cast once in the wrapper
    if (Rp, Kp) != (R, K):
        xp = jnp.pad(xp, ((0, Rp - R), (0, Kp - K)))
    wp = w if (Np, Kp) == (N, K) else jnp.pad(w, ((0, Np - N), (0, Kp - K)))
    bp = b if Np == N else jnp.pad(b, (0, Np - N))
    bp = bp.astype(jnp.float32).reshape(1, Np)

    y = pl.pallas_call(
        functools.partial(_linear_kernel, relu=relu),
        out_shape=jax.ShapeDtypeStruct((Rp, Np), jnp.float32),
        grid_spec=pltpu.PrefetchScalarGridSpec(
            num_scalar_prefetch=0,
            grid=(Rp // tm, Np // tn, Kp // tk),
            in_specs=[
                pl.BlockSpec((tm, tk), lambda m, n, k: (m, k)),   # activations
                pl.BlockSpec((tn, tk), lambda m, n, k: (n, k)),   # weight stream
                pl.BlockSpec((1, tn), lambda m, n, k: (0, n)),    # bias
            ],
            out_specs=pl.BlockSpec((tm, tn), lambda m, n, k: (m, n)),
        ),
        compiler_params=pltpu.CompilerParams(
            dimension_semantics=("parallel", "parallel", "arbitrary"),
            vmem_limit_bytes=48 * 1024 * 1024),
    )(xp, wp, bp)
    return y[:R, :N]


# ----------------------------------------------------------------------------
# LSTM recurrence kernel. The input projection (x @ W_ih.T + b) is precomputed
# for ALL timesteps as `gx` with lane-packed layout (S, Bp, 4*Hp). Per step the
# kernel does ONE fused (Bp, Hp) x (Hp, 4*Hp) MXU dot, the gate nonlinearity,
# and a lane-dense store. The grid iterates over time chunks; within a chunk a
# bounded-unroll fori_loop runs the serial recurrence with h/c in VMEM scratch.
# ----------------------------------------------------------------------------
def _lstm_recurrent_kernel(gx_ref, whh_ref, out_ref, h_scr, c_scr, *, hp, unroll):
    @pl.when(pl.program_id(0) == 0)
    def _():
        h_scr[...] = jnp.zeros_like(h_scr)
        c_scr[...] = jnp.zeros_like(c_scr)

    w = whh_ref[...]                                    # (Hp, 4*Hp)

    def step(t, carry):
        h = h_scr[...]                                  # (Bp, Hp)
        pre = gx_ref[t] + jnp.dot(h, w, preferred_element_type=jnp.float32)
        i = jax.nn.sigmoid(pre[:, 0 * hp:1 * hp])
        f = jax.nn.sigmoid(pre[:, 1 * hp:2 * hp])
        g = jnp.tanh(pre[:, 2 * hp:3 * hp])
        o = jax.nn.sigmoid(pre[:, 3 * hp:4 * hp])
        c = f * c_scr[...] + i * g
        h_new = o * jnp.tanh(c)
        c_scr[...] = c
        h_scr[...] = h_new
        out_ref[t] = h_new.astype(out_ref.dtype)
        return carry

    lax.fori_loop(0, out_ref.shape[0], step, 0, unroll=unroll)


def _pack_lstm_layer(w_ih, w_hh, bias, d_in_eff, hp):
    """Pack PyTorch-layout LSTM weights into lane-dense, gate-packed layouts.

    Returns:
      w_ih_p: (4*hp, d_in_eff)  so that x @ w_ih_p.T gives gate-packed gx.
      w_hh_p: (hp, 4*hp)        so that h @ w_hh_p == gate-packed h @ W_hh.T.
      b_p:    (4*hp,)
    Padded rows/cols are zero, which keeps the padded lanes of h/c exactly 0.
    """
    four_h, d_in_raw = w_ih.shape
    H = four_h // 4
    w_ih4 = w_ih.reshape(4, H, d_in_raw)
    w_ih_p = jnp.zeros((4, hp, d_in_eff), w_ih.dtype)
    w_ih_p = w_ih_p.at[:, :H, :d_in_raw].set(w_ih4).reshape(4 * hp, d_in_eff)
    b_p = jnp.zeros((4, hp), bias.dtype).at[:, :H].set(bias.reshape(4, H))
    b_p = b_p.reshape(4 * hp)
    w_hh_t = jnp.transpose(w_hh.reshape(4, H, H), (2, 0, 1))     # (H_in, 4, H_out)
    w_hh_p = jnp.zeros((hp, 4, hp), w_hh.dtype)
    w_hh_p = w_hh_p.at[:H, :, :H].set(w_hh_t).reshape(hp, 4 * hp)
    return w_ih_p, w_hh_p, b_p


def lstm_layer_tm(x_tm, w_ih_p, w_hh_p, b_p, *, tchunk=32, unroll=8):
    """One LSTM layer over a time-major, batch-padded input.

    x_tm: (S, Bp, D_in) f32 -> returns (S, Bp, Hp) f32 (padded lanes are zero).
    """
    S, Bp, d_in = x_tm.shape
    hp = w_hh_p.shape[0]

    # Hoisted input projection: ONE (S*Bp, D_in) x (D_in, 4*Hp) matmul, already
    # gate-packed along lanes -> no transpose pass over gx.
    gx = linear(x_tm.reshape(S * Bp, d_in), w_ih_p, b_p)          # (S*Bp, 4*Hp)
    gx = gx.reshape(S, Bp, 4 * hp)

    tch = min(tchunk, S)
    Sp = _round_up(S, tch)                    # pad time instead of shrinking tch
    if Sp != S:
        gx = jnp.pad(gx, ((0, Sp - S), (0, 0), (0, 0)))   # tail-chunk gx = 0

    out = pl.pallas_call(
        functools.partial(_lstm_recurrent_kernel, hp=hp, unroll=min(unroll, tch)),
        out_shape=jax.ShapeDtypeStruct((Sp, Bp, hp), jnp.float32),
        grid_spec=pltpu.PrefetchScalarGridSpec(
            num_scalar_prefetch=0,
            grid=(Sp // tch,),
            in_specs=[
                pl.BlockSpec((tch, Bp, 4 * hp), lambda c: (c, 0, 0)),
                pl.BlockSpec((hp, 4 * hp), lambda c: (0, 0)),
            ],
            out_specs=pl.BlockSpec((tch, Bp, hp), lambda c: (c, 0, 0)),
            scratch_shapes=[pltpu.VMEM((Bp, hp), jnp.float32),
                            pltpu.VMEM((Bp, hp), jnp.float32)],
        ),
        # True recurrence (h/c carried in scratch): time axis must stay serial.
        compiler_params=pltpu.CompilerParams(
            dimension_semantics=("arbitrary",)),
    )(gx, w_hh_p)
    return out[:S]


# ----------------------------------------------------------------------------
# Model: LSTM(input_dim, hidden_dim, layer_dim) -> flatten -> FC head
# ----------------------------------------------------------------------------
def init_params(key, input_dim, hidden_dim, layer_dim, output_dim, seq_len,
                fc_h1=8192, fc_h2=2048, fc_weight_dtype=jnp.bfloat16):
    hp = _round_up(hidden_dim, 128)            # lane-padded hidden dim
    params = {"lstm": [], "lstm_packed": []}
    fc_in = seq_len * hidden_dim               # stands in for the hardcoded 17500
    stdv = 1.0 / float(hidden_dim) ** 0.5
    for layer in range(layer_dim):
        d_in = input_dim if layer == 0 else hidden_dim
        d_in_eff = input_dim if layer == 0 else hp   # layer >0 input arrives lane-padded
        key, k1, k2, k3, k4 = jax.random.split(key, 5)
        w_ih = jax.random.uniform(k1, (4 * hidden_dim, d_in), jnp.float32, -stdv, stdv)
        w_hh = jax.random.uniform(k2, (4 * hidden_dim, hidden_dim), jnp.float32, -stdv, stdv)
        b_ih = jax.random.uniform(k3, (4 * hidden_dim,), jnp.float32, -stdv, stdv)
        b_hh = jax.random.uniform(k4, (4 * hidden_dim,), jnp.float32, -stdv, stdv)
        params["lstm"].append((w_ih, w_hh, b_ih + b_hh))
        # Pre-pack / transpose ONCE at init (no per-forward transpose).
        params["lstm_packed"].append(
            _pack_lstm_layer(w_ih, w_hh, b_ih + b_hh, d_in_eff, hp))

    def lin_init(k, n_out, n_in):
        k1, k2 = jax.random.split(k)
        s = 1.0 / float(n_in) ** 0.5
        # TODO(synk): fp8 weights (v7x) / int8 + per-tile scale (v5e/v6e) would
        # halve the dominant HBM weight stream of the FC head; kept bf16 here
        # for cross-generation portability.
        w = jax.random.uniform(k1, (n_out, n_in), jnp.float32, -s, s).astype(fc_weight_dtype)
        b = jax.random.uniform(k2, (n_out,), jnp.float32, -s, s)
        return w, b

    key, k1, k2, k3 = jax.random.split(key, 4)
    params["fc1_w"], params["fc1_b"] = lin_init(k1, fc_h1, fc_in)
    params["fc2_w"], params["fc2_b"] = lin_init(k2, fc_h2, fc_h1)
    params["fc3_w"], params["fc3_b"] = lin_init(k3, output_dim, fc_h2)
    return params


def lstm_model_forward(x, params):
    B, S, _ = x.shape
    Bp = _round_up(max(B, 8), 8)               # sublane-dense batch
    x_tm = jnp.transpose(x, (1, 0, 2))         # time-major (S, B, Din)
    if Bp != B:
        x_tm = jnp.pad(x_tm, ((0, 0), (0, Bp - B), (0, 0)))
    h_tm = x_tm
    for (w_ih_p, w_hh_p, b_p) in params["lstm_packed"]:
        h_tm = lstm_layer_tm(h_tm, w_ih_p, w_hh_p, b_p)          # (S, Bp, Hp)
    hidden = params["fc1_w"].shape[1] // S      # unpadded hidden dim (static)
    out = jnp.transpose(h_tm[:, :B, :hidden], (1, 0, 2)).reshape(B, S * hidden)
    # TODO(synk): nn.Dropout is identity in inference mode (no RNG mask applied).
    out = linear(out, params["fc1_w"], params["fc1_b"], relu=True)
    out = linear(out, params["fc2_w"], params["fc2_b"], relu=True)
    out = linear(out, params["fc3_w"], params["fc3_b"], relu=False)
    return out


# ----------------------------------------------------------------------------
# Pure-JAX reference (mirrors the in-kernel bf16 weight/activation casts).
# ----------------------------------------------------------------------------
def _ref_linear(x, w, b, relu):
    x32 = x.astype(w.dtype).astype(jnp.float32)
    y = x32 @ w.astype(jnp.float32).T + b.astype(jnp.float32)
    return jnp.maximum(y, 0.0) if relu else y


def _ref_lstm_layer(x, w_ih, w_hh, b):
    B, S, _ = x.shape
    H = w_hh.shape[1]
    h = jnp.zeros((B, H), jnp.float32)
    c = jnp.zeros((B, H), jnp.float32)
    outs = []
    for t in range(S):
        gates = x[:, t, :] @ w_ih.T + h @ w_hh.T + b
        i = jax.nn.sigmoid(gates[:, :H])
        f = jax.nn.sigmoid(gates[:, H:2 * H])
        g = jnp.tanh(gates[:, 2 * H:3 * H])
        o = jax.nn.sigmoid(gates[:, 3 * H:])
        c = f * c + i * g
        h = o * jnp.tanh(c)
        outs.append(h)
    return jnp.stack(outs, axis=1)


def _ref_forward(x, params):
    h = x
    for (w_ih, w_hh, b) in params["lstm"]:
        h = _ref_lstm_layer(h, w_ih, w_hh, b)
    out = h.reshape(h.shape[0], -1)
    out = _ref_linear(out, params["fc1_w"], params["fc1_b"], True)
    out = _ref_linear(out, params["fc2_w"], params["fc2_b"], True)
    out = _ref_linear(out, params["fc3_w"], params["fc3_b"], False)
    return out


if __name__ == "__main__":
    batch = 2
    seq_len = 8
    input_dim = 4
    hidden_dim = 32
    layer_dim = 2
    output_dim = 16

    key = jax.random.PRNGKey(0)
    key, kx = jax.random.split(key)
    x = jax.random.normal(kx, (batch, seq_len, input_dim), jnp.float32)

    params = init_params(key, input_dim, hidden_dim, layer_dim, output_dim,
                         seq_len)

    y = jax.jit(lstm_model_forward)(x, params)
    jax.block_until_ready(y)
    assert y.shape == (batch, output_dim)

    y_ref = _ref_forward(x, params)
    err = float(jnp.max(jnp.abs(y - y_ref)))
    assert err < 5e-3, f"max abs error vs reference: {err}"
    print("KERNEL_OK")
</pallas_src>

<mosaic_0001>
module attributes {stable_mosaic.version = 11 : i64} {
  func.func @_linear_kernel(%arg0: i32, %arg1: i32, %arg2: i32, %arg3: memref<64x128xf32, #tpu.memory_space<vmem>>, %arg4: memref<512x128xf32, #tpu.memory_space<vmem>>, %arg5: memref<1x512xf32, #tpu.memory_space<vmem>>, %arg6: memref<64x512xf32, #tpu.memory_space<vmem>>) attributes {dimension_semantics = [#tpu.dimension_semantics<parallel>, #tpu.dimension_semantics<parallel>, #tpu.dimension_semantics<arbitrary>], iteration_bounds = array<i64: 1, 1, 1>, scalar_prefetch = 0 : i64, scratch_operands = 0 : i64, tpu.core_type = #tpu.core_type<tc>, window_params = [{transform_indices = @transform_0, window_bounds = array<i64: 64, 128>}, {transform_indices = @transform_1, window_bounds = array<i64: 512, 128>}, {transform_indices = @transform_2, window_bounds = array<i64: 1, 512>}, {transform_indices = @transform_3, window_bounds = array<i64: 64, 512>}]} {
    %c0_i32 = arith.constant 0 : i32
    %0 = arith.cmpi eq, %arg2, %c0_i32 : i32
    %1 = arith.extui %0 : i1 to i32
    %c0_i32_0 = arith.constant 0 : i32
    %2 = arith.cmpi ne, %1, %c0_i32_0 : i32
    scf.if %2 {
      %cst_10 = arith.constant 0.000000e+00 : f32
      %12 = vector.broadcast %cst_10 : f32 to vector<64x512xf32>
      %c0_11 = arith.constant 0 : index
      %c0_12 = arith.constant 0 : index
      %13 = vector.load %arg6[%c0_11, %c0_12] : memref<64x512xf32, #tpu.memory_space<vmem>>, vector<64x512xf32>
      tpu.vector_store %arg6[%c0_11, %c0_12], %12 {strides = array<i32>} : memref<64x512xf32, #tpu.memory_space<vmem>>, vector<64x512xf32>,
    } else {
    }
    %c0 = arith.constant 0 : index
    %c0_1 = arith.constant 0 : index
    %3 = vector.load %arg6[%c0, %c0_1] : memref<64x512xf32, #tpu.memory_space<vmem>>, vector<64x512xf32>
    %c0_2 = arith.constant 0 : index
    %c0_3 = arith.constant 0 : index
    %4 = vector.load %arg3[%c0_2, %c0_3] : memref<64x128xf32, #tpu.memory_space<vmem>>, vector<64x128xf32>
    %c0_4 = arith.constant 0 : index
    %c0_5 = arith.constant 0 : index
    %5 = vector.load %arg4[%c0_4, %c0_5] : memref<512x128xf32, #tpu.memory_space<vmem>>, vector<512x128xf32>
    %cst = arith.constant dense<0.000000e+00> : vector<64x512xf32>
    %6 = tpu.matmul %4, %5, %cst {dimension_numbers = #tpu.dot_dimension_numbers<[1], [1], [0], [0], [0, 0, 1, 0], [], []>} : vector<64x128xf32>, vector<512x128xf32>, vector<64x512xf32> -> vector<64x512xf32>
    %7 = arith.addf %3, %6 : vector<64x512xf32>
    %c0_6 = arith.constant 0 : index
    %c0_7 = arith.constant 0 : index
    %8 = vector.load %arg6[%c0_6, %c0_7] : memref<64x512xf32, #tpu.memory_space<vmem>>, vector<64x512xf32>
    tpu.vector_store %arg6[%c0_6, %c0_7], %7 {strides = array<i32>} : memref<64x512xf32, #tpu.memory_space<vmem>>, vector<64x512xf32>,
    %c0_i32_8 = arith.constant 0 : i32
    %9 = arith.cmpi eq, %arg2, %c0_i32_8 : i32
    %10 = arith.extui %9 : i1 to i32
    %c0_i32_9 = arith.constant 0 : i32
    %11 = arith.cmpi ne, %10, %c0_i32_9 : i32
    scf.if %11 {
      %c0_10 = arith.constant 0 : index
      %c0_11 = arith.constant 0 : index
      %12 = vector.load %arg6[%c0_10, %c0_11] : memref<64x512xf32, #tpu.memory_space<vmem>>, vector<64x512xf32>
      %c0_12 = arith.constant 0 : index
      %c0_13 = arith.constant 0 : index
      %13 = vector.load %arg5[%c0_12, %c0_13] : memref<1x512xf32, #tpu.memory_space<vmem>>, vector<1x512xf32>
      %14 = vector.broadcast %13 : vector<1x512xf32> to vector<64x512xf32>
      %15 = arith.addf %12, %14 : vector<64x512xf32>
      %c0_14 = arith.constant 0 : index
      %c0_15 = arith.constant 0 : index
      %16 = vector.load %arg6[%c0_14, %c0_15] : memref<64x512xf32, #tpu.memory_space<vmem>>, vector<64x512xf32>
      tpu.vector_store %arg6[%c0_14, %c0_15], %15 {strides = array<i32>} : memref<64x512xf32, #tpu.memory_space<vmem>>, vector<64x512xf32>,
    } else {
    }
    return
  }
  func.func @transform_0(%arg0: i32, %arg1: i32, %arg2: i32) -> (i32, i32) {
    %c0_i32 = arith.constant 0 : i32
    return %arg0, %arg2 : i32, i32
  }
  func.func @transform_1(%arg0: i32, %arg1: i32, %arg2: i32) -> (i32, i32) {
    %c0_i32 = arith.constant 0 : i32
    return %arg1, %arg2 : i32, i32
  }
  func.func @transform_2(%arg0: i32, %arg1: i32, %arg2: i32) -> (i32, i32) {
    %c0_i32 = arith.constant 0 : i32
    %c0_i32_0 = arith.constant 0 : i32
    return %c0_i32, %arg1 : i32, i32
  }
  func.func @transform_3(%arg0: i32, %arg1: i32, %arg2: i32) -> (i32, i32) {
    %c0_i32 = arith.constant 0 : i32
    return %arg0, %arg1 : i32, i32
  }
}

module attributes {stable_mosaic.version = 11 : i64} {
  func.func @_lstm_recurrent_kernel(%arg0: i32, %arg1: memref<8x8x512xf32, #tpu.memory_space<vmem>>, %arg2: memref<128x512xf32, #tpu.memory_space<vmem>>, %arg3: memref<8x8x128xf32, #tpu.memory_space<vmem>>, %arg4: memref<8x128xf32, #tpu.memory_space<vmem>>, %arg5: memref<8x128xf32, #tpu.memory_space<vmem>>) attributes {dimension_semantics = [#tpu.dimension_semantics<arbitrary>], iteration_bounds = array<i64: 1>, scalar_prefetch = 0 : i64, scratch_operands = 2 : i64, tpu.core_type = #tpu.core_type<tc>, window_params = [{transform_indices = @transform_0, window_bounds = array<i64: 8, 8, 512>}, {pipeline_mode = #tpu.pipeline_mode<synchronous>, transform_indices = @transform_1, window_bounds = array<i64: 128, 512>}, {transform_indices = @transform_2, window_bounds = array<i64: 8, 8, 128>}]} {
    %c0_i32 = arith.constant 0 : i32
    %0 = arith.cmpi eq, %arg0, %c0_i32 : i32
    %1 = arith.extui %0 : i1 to i32
    %c0_i32_0 = arith.constant 0 : i32
    %2 = arith.cmpi ne, %1, %c0_i32_0 : i32
    scf.if %2 {
      %cst_130 = arith.constant 0.000000e+00 : f32
      %308 = vector.broadcast %cst_130 : f32 to vector<8x128xf32>
      %c0_131 = arith.constant 0 : index
      %c0_132 = arith.constant 0 : index
      %309 = vector.load %arg4[%c0_131, %c0_132] : memref<8x128xf32, #tpu.memory_space<vmem>>, vector<8x128xf32>
      tpu.vector_store %arg4[%c0_131, %c0_132], %308 {strides = array<i32>} : memref<8x128xf32, #tpu.memory_space<vmem>>, vector<8x128xf32>,
      %cst_133 = arith.constant 0.000000e+00 : f32
      %310 = vector.broadcast %cst_133 : f32 to vector<8x128xf32>
      %c0_134 = arith.constant 0 : index
      %c0_135 = arith.constant 0 : index
      %311 = vector.load %arg5[%c0_134, %c0_135] : memref<8x128xf32, #tpu.memory_space<vmem>>, vector<8x128xf32>
      tpu.vector_store %arg5[%c0_134, %c0_135], %310 {strides = array<i32>} : memref<8x128xf32, #tpu.memory_space<vmem>>, vector<8x128xf32>,
    } else {
    }
    %c0 = arith.constant 0 : index
    %c0_1 = arith.constant 0 : index
    %3 = vector.load %arg2[%c0, %c0_1] : memref<128x512xf32, #tpu.memory_space<vmem>>, vector<128x512xf32>
    %c0_i32_2 = arith.constant 0 : i32
    %c0_3 = arith.constant 0 : index
    %c0_4 = arith.constant 0 : index
    %4 = vector.load %arg4[%c0_3, %c0_4] : memref<8x128xf32, #tpu.memory_space<vmem>>, vector<8x128xf32>
    %5 = arith.index_cast %c0_i32_2 : i32 to index
    %c0_5 = arith.constant 0 : index
    %c0_6 = arith.constant 0 : index
    %6 = vector.load %arg1[%5, %c0_5, %c0_6] : memref<8x8x512xf32, #tpu.memory_space<vmem>>, vector<1x8x512xf32>
    %7 = vector.shape_cast %6 : vector<1x8x512xf32> to vector<8x512xf32>
    %cst = arith.constant dense<0.000000e+00> : vector<8x512xf32>
    %8 = tpu.matmul %4, %3, %cst {dimension_numbers = #tpu.dot_dimension_numbers<[1], [0], [0], [1], [0, 0, 1, 1], [], []>} : vector<8x128xf32>, vector<128x512xf32>, vector<8x512xf32> -> vector<8x512xf32>
    %9 = arith.addf %7, %8 : vector<8x512xf32>
    %10 = vector.extract_strided_slice %9 {offsets = [0, 0], sizes = [8, 128], strides = [1, 1]} : vector<8x512xf32> to vector<8x128xf32>
    %11 = arith.negf %10 : vector<8x128xf32>
    %12 = math.exp %11 : vector<8x128xf32>
    %cst_7 = arith.constant 1.000000e+00 : f32
    %13 = vector.broadcast %cst_7 : f32 to vector<8x128xf32>
    %14 = arith.addf %13, %12 : vector<8x128xf32>
    %15 = arith.divf %13, %14 : vector<8x128xf32>
    %16 = vector.extract_strided_slice %9 {offsets = [0, 128], sizes = [8, 128], strides = [1, 1]} : vector<8x512xf32> to vector<8x128xf32>
    %17 = arith.negf %16 : vector<8x128xf32>
    %18 = math.exp %17 : vector<8x128xf32>
    %cst_8 = arith.constant 1.000000e+00 : f32
    %19 = vector.broadcast %cst_8 : f32 to vector<8x128xf32>
    %20 = arith.addf %19, %18 : vector<8x128xf32>
    %21 = arith.divf %19, %20 : vector<8x128xf32>
    %22 = vector.extract_strided_slice %9 {offsets = [0, 256], sizes = [8, 128], strides = [1, 1]} : vector<8x512xf32> to vector<8x128xf32>
    %23 = math.tanh %22 : vector<8x128xf32>
    %24 = vector.extract_strided_slice %9 {offsets = [0, 384], sizes = [8, 128], strides = [1, 1]} : vector<8x512xf32> to vector<8x128xf32>
    %25 = arith.negf %24 : vector<8x128xf32>
    %26 = math.exp %25 : vector<8x128xf32>
    %cst_9 = arith.constant 1.000000e+00 : f32
    %27 = vector.broadcast %cst_9 : f32 to vector<8x128xf32>
    %28 = arith.addf %27, %26 : vector<8x128xf32>
    %29 = arith.divf %27, %28 : vector<8x128xf32>
    %c0_10 = arith.constant 0 : index
    %c0_11 = arith.constant 0 : index
    %30 = vector.load %arg5[%c0_10, %c0_11] : memref<8x128xf32, #tpu.memory_space<vmem>>, vector<8x128xf32>
    %31 = arith.mulf %21, %30 : vector<8x128xf32>
    %32 = arith.mulf %15, %23 : vector<8x128xf32>
    %33 = arith.addf %31, %32 : vector<8x128xf32>
    %34 = math.tanh %33 : vector<8x128xf32>
    %35 = arith.mulf %29, %34 : vector<8x128xf32>
    %c0_12 = arith.constant 0 : index
    %c0_13 = arith.constant 0 : index
    %36 = vector.load %arg5[%c0_12, %c0_13] : memref<8x128xf32, #tpu.memory_space<vmem>>, vector<8x128xf32>
    tpu.vector_store %arg5[%c0_12, %c0_13], %33 {strides = array<i32>} : memref<8x128xf32, #tpu.memory_space<vmem>>, vector<8x128xf32>,
    %c0_14 = arith.constant 0 : index
    %c0_15 = arith.constant 0 : index
    %37 = vector.load %arg4[%c0_14, %c0_15] : memref<8x128xf32, #tpu.memory_space<vmem>>, vector<8x128xf32>
    tpu.vector_store %arg4[%c0_14, %c0_15], %35 {strides = array<i32>} : memref<8x128xf32, #tpu.memory_space<vmem>>, vector<8x128xf32>,
    %38 = arith.index_cast %c0_i32_2 : i32 to index
    %c0_16 = arith.constant 0 : index
    %c0_17 = arith.constant 0 : index
    %39 = vector.load %arg3[%38, %c0_16, %c0_17] : memref<8x8x128xf32, #tpu.memory_space<vmem>>, vector<1x8x128xf32>
    %40 = vector.shape_cast %39 : vector<1x8x128xf32> to vector<8x128xf32>
    %41 = vector.shape_cast %35 : vector<8x128xf32> to vector<1x8x128xf32>
    tpu.vector_store %arg3[%38, %c0_16, %c0_17], %41 {strides = array<i32>} : memref<8x8x128xf32, #tpu.memory_space<vmem>>, vector<1x8x128xf32>,
    %c1_i32 = arith.constant 1 : i32
    %c0_18 = arith.constant 0 : index
    %c0_19 = arith.constant 0 : index
    %42 = vector.load %arg4[%c0_18, %c0_19] : memref<8x128xf32, #tpu.memory_space<vmem>>, vector<8x128xf32>
    %43 = arith.index_cast %c1_i32 : i32 to index
    %c0_20 = arith.constant 0 : index
    %c0_21 = arith.constant 0 : index
    %44 = vector.load %arg1[%43, %c0_20, %c0_21] : memref<8x8x512xf32, #tpu.memory_space<vmem>>, vector<1x8x512xf32>
    %45 = vector.shape_cast %44 : vector<1x8x512xf32> to vector<8x512xf32>
    %cst_22 = arith.constant dense<0.000000e+00> : vector<8x512xf32>
    %46 = tpu.matmul %42, %3, %cst_22 {dimension_numbers = #tpu.dot_dimension_numbers<[1], [0], [0], [1], [0, 0, 1, 1], [], []>} : vector<8x128xf32>, vector<128x512xf32>, vector<8x512xf32> -> vector<8x512xf32>
    %47 = arith.addf %45, %46 : vector<8x512xf32>
    %48 = vector.extract_strided_slice %47 {offsets = [0, 0], sizes = [8, 128], strides = [1, 1]} : vector<8x512xf32> to vector<8x128xf32>
    %49 = arith.negf %48 : vector<8x128xf32>
    %50 = math.exp %49 : vector<8x128xf32>
    %cst_23 = arith.constant 1.000000e+00 : f32
    %51 = vector.broadcast %cst_23 : f32 to vector<8x128xf32>
    %52 = arith.addf %51, %50 : vector<8x128xf32>
    %53 = arith.divf %51, %52 : vector<8x128xf32>
    %54 = vector.extract_strided_slice %47 {offsets = [0, 128], sizes = [8, 128], strides = [1, 1]} : vector<8x512xf32> to vector<8x128xf32>
    %55 = arith.negf %54 : vector<8x128xf32>
    %56 = math.exp %55 : vector<8x128xf32>
    %cst_24 = arith.constant 1.000000e+00 : f32
    %57 = vector.broadcast %cst_24 : f32 to vector<8x128xf32>
    %58 = arith.addf %57, %56 : vector<8x128xf32>
    %59 = arith.divf %57, %58 : vector<8x128xf32>
    %60 = vector.extract_strided_slice %47 {offsets = [0, 256], sizes = [8, 128], strides = [1, 1]} : vector<8x512xf32> to vector<8x128xf32>
    %61 = math.tanh %60 : vector<8x128xf32>
    %62 = vector.extract_strided_slice %47 {offsets = [0, 384], sizes = [8, 128], strides = [1, 1]} : vector<8x512xf32> to vector<8x128xf32>
    %63 = arith.negf %62 : vector<8x128xf32>
    %64 = math.exp %63 : vector<8x128xf32>
    %cst_25 = arith.constant 1.000000e+00 : f32
    %65 = vector.broadcast %cst_25 : f32 to vector<8x128xf32>
    %66 = arith.addf %65, %64 : vector<8x128xf32>
    %67 = arith.divf %65, %66 : vector<8x128xf32>
    %c0_26 = arith.constant 0 : index
    %c0_27 = arith.constant 0 : index
    %68 = vector.load %arg5[%c0_26, %c0_27] : memref<8x128xf32, #tpu.memory_space<vmem>>, vector<8x128xf32>
    %69 = arith.mulf %59, %68 : vector<8x128xf32>
    %70 = arith.mulf %53, %61 : vector<8x128xf32>
    %71 = arith.addf %69, %70 : vector<8x128xf32>
    %72 = math.tanh %71 : vector<8x128xf32>
    %73 = arith.mulf %67, %72 : vector<8x128xf32>
    %c0_28 = arith.constant 0 : index
    %c0_29 = arith.constant 0 : index
    %74 = vector.load %arg5[%c0_28, %c0_29] : memref<8x128xf32, #tpu.memory_space<vmem>>, vector<8x128xf32>
    tpu.vector_store %arg5[%c0_28, %c0_29], %71 {strides = array<i32>} : memref<8x128xf32, #tpu.memory_space<vmem>>, vector<8x128xf32>,
    %c0_30 = arith.constant 0 : index
    %c0_31 = arith.constant 0 : index
    %75 = vector.load %arg4[%c0_30, %c0_31] : memref<8x128xf32, #tpu.memory_space<vmem>>, vector<8x128xf32>
    tpu.vector_store %arg4[%c0_30, %c0_31], %73 {strides = array<i32>} : memref<8x128xf32, #tpu.memory_space<vmem>>, vector<8x128xf32>,
    %76 = arith.index_cast %c1_i32 : i32 to index
    %c0_32 = arith.constant 0 : index
    %c0_33 = arith.constant 0 : index
    %77 = vector.load %arg3[%76, %c0_32, %c0_33] : memref<8x8x128xf32, #tpu.memory_space<vmem>>, vector<1x8x128xf32>
    %78 = vector.shape_cast %77 : vector<1x8x128xf32> to vector<8x128xf32>
    %79 = vector.shape_cast %73 : vector<8x128xf32> to vector<1x8x128xf32>
    tpu.vector_store %arg3[%76, %c0_32, %c0_33], %79 {strides = array<i32>} : memref<8x8x128xf32, #tpu.memory_space<vmem>>, vector<1x8x128xf32>,
    %c2_i32 = arith.constant 2 : i32
    %c0_34 = arith.constant 0 : index
    %c0_35 = arith.constant 0 : index
    %80 = vector.load %arg4[%c0_34, %c0_35] : memref<8x128xf32, #tpu.memory_space<vmem>>, vector<8x128xf32>
    %81 = arith.index_cast %c2_i32 : i32 to index
    %c0_36 = arith.constant 0 : index
    %c0_37 = arith.constant 0 : index
    %82 = vector.load %arg1[%81, %c0_36, %c0_37] : memref<8x8x512xf32, #tpu.memory_space<vmem>>, vector<1x8x512xf32>
    %83 = vector.shape_cast %82 : vector<1x8x512xf32> to vector<8x512xf32>
    %cst_38 = arith.constant dense<0.000000e+00> : vector<8x512xf32>
    %84 = tpu.matmul %80, %3, %cst_38 {dimension_numbers = #tpu.dot_dimension_numbers<[1], [0], [0], [1], [0, 0, 1, 1], [], []>} : vector<8x128xf32>, vector<128x512xf32>, vector<8x512xf32> -> vector<8x512xf32>
    %85 = arith.addf %83, %84 : vector<8x512xf32>
    %86 = vector.extract_strided_slice %85 {offsets = [0, 0], sizes = [8, 128], strides = [1, 1]} : vector<8x512xf32> to vector<8x128xf32>
    %87 = arith.negf %86 : vector<8x128xf32>
    %88 = math.exp %87 : vector<8x128xf32>
    %cst_39 = arith.constant 1.000000e+00 : f32
    %89 = vector.broadcast %cst_39 : f32 to vector<8x128xf32>
    %90 = arith.addf %89, %88 : vector<8x128xf32>
    %91 = arith.divf %89, %90 : vector<8x128xf32>
    %92 = vector.extract_strided_slice %85 {offsets = [0, 128], sizes = [8, 128], strides = [1, 1]} : vector<8x512xf32> to vector<8x128xf32>
    %93 = arith.negf %92 : vector<8x128xf32>
    %94 = math.exp %93 : vector<8x128xf32>
    %cst_40 = arith.constant 1.000000e+00 : f32
    %95 = vector.broadcast %cst_40 : f32 to vector<8x128xf32>
    %96 = arith.addf %95, %94 : vector<8x128xf32>
    %97 = arith.divf %95, %96 : vector<8x128xf32>
    %98 = vector.extract_strided_slice %85 {offsets = [0, 256], sizes = [8, 128], strides = [1, 1]} : vector<8x512xf32> to vector<8x128xf32>
    %99 = math.tanh %98 : vector<8x128xf32>
    %100 = vector.extract_strided_slice %85 {offsets = [0, 384], sizes = [8, 128], strides = [1, 1]} : vector<8x512xf32> to vector<8x128xf32>
    %101 = arith.negf %100 : vector<8x128xf32>
    %102 = math.exp %101 : vector<8x128xf32>
    %cst_41 = arith.constant 1.000000e+00 : f32
    %103 = vector.broadcast %cst_41 : f32 to vector<8x128xf32>
    %104 = arith.addf %103, %102 : vector<8x128xf32>
    %105 = arith.divf %103, %104 : vector<8x128xf32>
    %c0_42 = arith.constant 0 : index
    %c0_43 = arith.constant 0 : index
    %106 = vector.load %arg5[%c0_42, %c0_43] : memref<8x128xf32, #tpu.memory_space<vmem>>, vector<8x128xf32>
    %107 = arith.mulf %97, %106 : vector<8x128xf32>
    %108 = arith.mulf %91, %99 : vector<8x128xf32>
    %109 = arith.addf %107, %108 : vector<8x128xf32>
    %110 = math.tanh %109 : vector<8x128xf32>
    %111 = arith.mulf %105, %110 : vector<8x128xf32>
    %c0_44 = arith.constant 0 : index
    %c0_45 = arith.constant 0 : index
    %112 = vector.load %arg5[%c0_44, %c0_45] : memref<8x128xf32, #tpu.memory_space<vmem>>, vector<8x128xf32>
    tpu.vector_store %arg5[%c0_44, %c0_45], %109 {strides = array<i32>} : memref<8x128xf32, #tpu.memory_space<vmem>>, vector<8x128xf32>,
    %c0_46 = arith.constant 0 : index
    %c0_47 = arith.constant 0 : index
    %113 = vector.load %arg4[%c0_46, %c0_47] : memref<8x128xf32, #tpu.memory_space<vmem>>, vector<8x128xf32>
    tpu.vector_store %arg4[%c0_46, %c0_47], %111 {strides = array<i32>} : memref<8x128xf32, #tpu.memory_space<vmem>>, vector<8x128xf32>,
    %114 = arith.index_cast %c2_i32 : i32 to index
    %c0_48 = arith.constant 0 : index
    %c0_49 = arith.constant 0 : index
    %115 = vector.load %arg3[%114, %c0_48, %c0_49] : memref<8x8x128xf32, #tpu.memory_space<vmem>>, vector<1x8x128xf32>
    %116 = vector.shape_cast %115 : vector<1x8x128xf32> to vector<8x128xf32>
    %117 = vector.shape_cast %111 : vector<8x128xf32> to vector<1x8x128xf32>
    tpu.vector_store %arg3[%114, %c0_48, %c0_49], %117 {strides = array<i32>} : memref<8x8x128xf32, #tpu.memory_space<vmem>>, vector<1x8x128xf32>,
    %c3_i32 = arith.constant 3 : i32
    %c0_50 = arith.constant 0 : index
    %c0_51 = arith.constant 0 : index
    %118 = vector.load %arg4[%c0_50, %c0_51] : memref<8x128xf32, #tpu.memory_space<vmem>>, vector<8x128xf32>
    %119 = arith.index_cast %c3_i32 : i32 to index
    %c0_52 = arith.constant 0 : index
    %c0_53 = arith.constant 0 : index
    %120 = vector.load %arg1[%119, %c0_52, %c0_53] : memref<8x8x512xf32, #tpu.memory_space<vmem>>, vector<1x8x512xf32>
    %121 = vector.shape_cast %120 : vector<1x8x512xf32> to vector<8x512xf32>
    %cst_54 = arith.constant dense<0.000000e+00> : vector<8x512xf32>
    %122 = tpu.matmul %118, %3, %cst_54 {dimension_numbers = #tpu.dot_dimension_numbers<[1], [0], [0], [1], [0, 0, 1, 1], [], []>} : vector<8x128xf32>, vector<128x512xf32>, vector<8x512xf32> -> vector<8x512xf32>
    %123 = arith.addf %121, %122 : vector<8x512xf32>
    %124 = vector.extract_strided_slice %123 {offsets = [0, 0], sizes = [8, 128], strides = [1, 1]} : vector<8x512xf32> to vector<8x128xf32>
    %125 = arith.negf %124 : vector<8x128xf32>
    %126 = math.exp %125 : vector<8x128xf32>
    %cst_55 = arith.constant 1.000000e+00 : f32
    %127 = vector.broadcast %cst_55 : f32 to vector<8x128xf32>
    %128 = arith.addf %127, %126 : vector<8x128xf32>
    %129 = arith.divf %127, %128 : vector<8x128xf32>
    %130 = vector.extract_strided_slice %123 {offsets = [0, 128], sizes = [8, 128], strides = [1, 1]} : vector<8x512xf32> to vector<8x128xf32>
    %131 = arith.negf %130 : vector<8x128xf32>
    %132 = math.exp %131 : vector<8x128xf32>
    %cst_56 = arith.constant 1.000000e+00 : f32
    %133 = vector.broadcast %cst_56 : f32 to vector<8x128xf32>
    %134 = arith.addf %133, %132 : vector<8x128xf32>
    %135 = arith.divf %133, %134 : vector<8x128xf32>
    %136 = vector.extract_strided_slice %123 {offsets = [0, 256], sizes = [8, 128], strides = [1, 1]} : vector<8x512xf32> to vector<8x128xf32>
    %137 = math.tanh %136 : vector<8x128xf32>
    %138 = vector.extract_strided_slice %123 {offsets = [0, 384], sizes = [8, 128], strides = [1, 1]} : vector<8x512xf32> to vector<8x128xf32>
    %139 = arith.negf %138 : vector<8x128xf32>
    %140 = math.exp %139 : vector<8x128xf32>
    %cst_57 = arith.constant 1.000000e+00 : f32
    %141 = vector.broadcast %cst_57 : f32 to vector<8x128xf32>
    %142 = arith.addf %141, %140 : vector<8x128xf32>
    %143 = arith.divf %141, %142 : vector<8x128xf32>
    %c0_58 = arith.constant 0 : index
    %c0_59 = arith.constant 0 : index
    %144 = vector.load %arg5[%c0_58, %c0_59] : memref<8x128xf32, #tpu.memory_space<vmem>>, vector<8x128xf32>
    %145 = arith.mulf %135, %144 : vector<8x128xf32>
    %146 = arith.mulf %129, %137 : vector<8x128xf32>
    %147 = arith.addf %145, %146 : vector<8x128xf32>
    %148 = math.tanh %147 : vector<8x128xf32>
    %149 = arith.mulf %143, %148 : vector<8x128xf32>
    %c0_60 = arith.constant 0 : index
    %c0_61 = arith.constant 0 : index
    %150 = vector.load %arg5[%c0_60, %c0_61] : memref<8x128xf32, #tpu.memory_space<vmem>>, vector<8x128xf32>
    tpu.vector_store %arg5[%c0_60, %c0_61], %147 {strides = array<i32>} : memref<8x128xf32, #tpu.memory_space<vmem>>, vector<8x128xf32>,
    %c0_62 = arith.constant 0 : index
    %c0_63 = arith.constant 0 : index
    %151 = vector.load %arg4[%c0_62, %c0_63] : memref<8x128xf32, #tpu.memory_space<vmem>>, vector<8x128xf32>
    tpu.vector_store %arg4[%c0_62, %c0_63], %149 {strides = array<i32>} : memref<8x128xf32, #tpu.memory_space<vmem>>, vector<8x128xf32>,
    %152 = arith.index_cast %c3_i32 : i32 to index
    %c0_64 = arith.constant 0 : index
    %c0_65 = arith.constant 0 : index
    %153 = vector.load %arg3[%152, %c0_64, %c0_65] : memref<8x8x128xf32, #tpu.memory_space<vmem>>, vector<1x8x128xf32>
    %154 = vector.shape_cast %153 : vector<1x8x128xf32> to vector<8x128xf32>
    %155 = vector.shape_cast %149 : vector<8x128xf32> to vector<1x8x128xf32>
    tpu.vector_store %arg3[%152, %c0_64, %c0_65], %155 {strides = array<i32>} : memref<8x8x128xf32, #tpu.memory_space<vmem>>, vector<1x8x128xf32>,
    %c4_i32 = arith.constant 4 : i32
    %c0_66 = arith.constant 0 : index
    %c0_67 = arith.constant 0 : index
    %156 = vector.load %arg4[%c0_66, %c0_67] : memref<8x128xf32, #tpu.memory_space<vmem>>, vector<8x128xf32>
    %157 = arith.index_cast %c4_i32 : i32 to index
    %c0_68 = arith.constant 0 : index
    %c0_69 = arith.constant 0 : index
    %158 = vector.load %arg1[%157, %c0_68, %c0_69] : memref<8x8x512xf32, #tpu.memory_space<vmem>>, vector<1x8x512xf32>
    %159 = vector.shape_cast %158 : vector<1x8x512xf32> to vector<8x512xf32>
    %cst_70 = arith.constant dense<0.000000e+00> : vector<8x512xf32>
    %160 = tpu.matmul %156, %3, %cst_70 {dimension_numbers = #tpu.dot_dimension_numbers<[1], [0], [0], [1], [0, 0, 1, 1], [], []>} : vector<8x128xf32>, vector<128x512xf32>, vector<8x512xf32> -> vector<8x512xf32>
    %161 = arith.addf %159, %160 : vector<8x512xf32>
    %162 = vector.extract_strided_slice %161 {offsets = [0, 0], sizes = [8, 128], strides = [1, 1]} : vector<8x512xf32> to vector<8x128xf32>
    %163 = arith.negf %162 : vector<8x128xf32>
    %164 = math.exp %163 : vector<8x128xf32>
    %cst_71 = arith.constant 1.000000e+00 : f32
    %165 = vector.broadcast %cst_71 : f32 to vector<8x128xf32>
    %166 = arith.addf %165, %164 : vector<8x128xf32>
    %167 = arith.divf %165, %166 : vector<8x128xf32>
    %168 = vector.extract_strided_slice %161 {offsets = [0, 128], sizes = [8, 128], strides = [1, 1]} : vector<8x512xf32> to vector<8x128xf32>
    %169 = arith.negf %168 : vector<8x128xf32>
    %170 = math.exp %169 : vector<8x128xf32>
    %cst_72 = arith.constant 1.000000e+00 : f32
    %171 = vector.broadcast %cst_72 : f32 to vector<8x128xf32>
    %172 = arith.addf %171, %170 : vector<8x128xf32>
    %173 = arith.divf %171, %172 : vector<8x128xf32>
    %174 = vector.extract_strided_slice %161 {offsets = [0, 256], sizes = [8, 128], strides = [1, 1]} : vector<8x512xf32> to vector<8x128xf32>
    %175 = math.tanh %174 : vector<8x128xf32>
    %176 = vector.extract_strided_slice %161 {offsets = [0, 384], sizes = [8, 128], strides = [1, 1]} : vector<8x512xf32> to vector<8x128xf32>
    %177 = arith.negf %176 : vector<8x128xf32>
    %178 = math.exp %177 : vector<8x128xf32>
    %cst_73 = arith.constant 1.000000e+00 : f32
    %179 = vector.broadcast %cst_73 : f32 to vector<8x128xf32>
    %180 = arith.addf %179, %178 : vector<8x128xf32>
    %181 = arith.divf %179, %180 : vector<8x128xf32>
    %c0_74 = arith.constant 0 : index
    %c0_75 = arith.constant 0 : index
    %182 = vector.load %arg5[%c0_74, %c0_75] : memref<8x128xf32, #tpu.memory_space<vmem>>, vector<8x128xf32>
    %183 = arith.mulf %173, %182 : vector<8x128xf32>
    %184 = arith.mulf %167, %175 : vector<8x128xf32>
    %185 = arith.addf %183, %184 : vector<8x128xf32>
    %186 = math.tanh %185 : vector<8x128xf32>
    %187 = arith.mulf %181, %186 : vector<8x128xf32>
    %c0_76 = arith.constant 0 : index
    %c0_77 = arith.constant 0 : index
    %188 = vector.load %arg5[%c0_76, %c0_77] : memref<8x128xf32, #tpu.memory_space<vmem>>, vector<8x128xf32>
    tpu.vector_store %arg5[%c0_76, %c0_77], %185 {strides = array<i32>} : memref<8x128xf32, #tpu.memory_space<vmem>>, vector<8x128xf32>,
    %c0_78 = arith.constant 0 : index
    %c0_79 = arith.constant 0 : index
    %189 = vector.load %arg4[%c0_78, %c0_79] : memref<8x128xf32, #tpu.memory_space<vmem>>, vector<8x128xf32>
    tpu.vector_store %arg4[%c0_78, %c0_79], %187 {strides = array<i32>} : memref<8x128xf32, #tpu.memory_space<vmem>>, vector<8x128xf32>,
    %190 = arith.index_cast %c4_i32 : i32 to index
    %c0_80 = arith.constant 0 : index
    %c0_81 = arith.constant 0 : index
    %191 = vector.load %arg3[%190, %c0_80, %c0_81] : memref<8x8x128xf32, #tpu.memory_space<vmem>>, vector<1x8x128xf32>
    %192 = vector.shape_cast %191 : vector<1x8x128xf32> to vector<8x128xf32>
    %193 = vector.shape_cast %187 : vector<8x128xf32> to vector<1x8x128xf32>
    tpu.vector_store %arg3[%190, %c0_80, %c0_81], %193 {strides = array<i32>} : memref<8x8x128xf32, #tpu.memory_space<vmem>>, vector<1x8x128xf32>,
    %c5_i32 = arith.constant 5 : i32
    %c0_82 = arith.constant 0 : index
    %c0_83 = arith.constant 0 : index
    %194 = vector.load %arg4[%c0_82, %c0_83] : memref<8x128xf32, #tpu.memory_space<vmem>>, vector<8x128xf32>
    %195 = arith.index_cast %c5_i32 : i32 to index
    %c0_84 = arith.constant 0 : index
    %c0_85 = arith.constant 0 : index
    %196 = vector.load %arg1[%195, %c0_84, %c0_85] : memref<8x8x512xf32, #tpu.memory_space<vmem>>, vector<1x8x512xf32>
    %197 = vector.shape_cast %196 : vector<1x8x512xf32> to vector<8x512xf32>
    %cst_86 = arith.constant dense<0.000000e+00> : vector<8x512xf32>
    %198 = tpu.matmul %194, %3, %cst_86 {dimension_numbers = #tpu.dot_dimension_numbers<[1], [0], [0], [1], [0, 0, 1, 1], [], []>} : vector<8x128xf32>, vector<128x512xf32>, vector<8x512xf32> -> vector<8x512xf32>
    %199 = arith.addf %197, %198 : vector<8x512xf32>
    %200 = vector.extract_strided_slice %199 {offsets = [0, 0], sizes = [8, 128], strides = [1, 1]} : vector<8x512xf32> to vector<8x128xf32>
    %201 = arith.negf %200 : vector<8x128xf32>
    %202 = math.exp %201 : vector<8x128xf32>
    %cst_87 = arith.constant 1.000000e+00 : f32
    %203 = vector.broadcast %cst_87 : f32 to vector<8x128xf32>
    %204 = arith.addf %203, %202 : vector<8x128xf32>
    %205 = arith.divf %203, %204 : vector<8x128xf32>
    %206 = vector.extract_strided_slice %199 {offsets = [0, 128], sizes = [8, 128], strides = [1, 1]} : vector<8x512xf32> to vector<8x128xf32>
    %207 = arith.negf %206 : vector<8x128xf32>
    %208 = math.exp %207 : vector<8x128xf32>
    %cst_88 = arith.constant 1.000000e+00 : f32
    %209 = vector.broadcast %cst_88 : f32 to vector<8x128xf32>
    %210 = arith.addf %209, %208 : vector<8x128xf32>
    %211 = arith.divf %209, %210 : vector<8x128xf32>
    %212 = vector.extract_strided_slice %199 {offsets = [0, 256], sizes = [8, 128], strides = [1, 1]} : vector<8x512xf32> to vector<8x128xf32>
    %213 = math.tanh %212 : vector<8x128xf32>
    %214 = vector.extract_strided_slice %199 {offsets = [0, 384], sizes = [8, 128], strides = [1, 1]} : vector<8x512xf32> to vector<8x128xf32>
    %215 = arith.negf %214 : vector<8x128xf32>
    %216 = math.exp %215 : vector<8x128xf32>
    %cst_89 = arith.constant 1.000000e+00 : f32
    %217 = vector.broadcast %cst_89 : f32 to vector<8x128xf32>
    %218 = arith.addf %217, %216 : vector<8x128xf32>
    %219 = arith.divf %217, %218 : vector<8x128xf32>
    %c0_90 = arith.constant 0 : index
    %c0_91 = arith.constant 0 : index
    %220 = vector.load %arg5[%c0_90, %c0_91] : memref<8x128xf32, #tpu.memory_space<vmem>>, vector<8x128xf32>
    %221 = arith.mulf %211, %220 : vector<8x128xf32>
    %222 = arith.mulf %205, %213 : vector<8x128xf32>
    %223 = arith.addf %221, %222 : vector<8x128xf32>
    %224 = math.tanh %223 : vector<8x128xf32>
    %225 = arith.mulf %219, %224 : vector<8x128xf32>
    %c0_92 = arith.constant 0 : index
    %c0_93 = arith.constant 0 : index
    %226 = vector.load %arg5[%c0_92, %c0_93] : memref<8x128xf32, #tpu.memory_space<vmem>>, vector<8x128xf32>
    tpu.vector_store %arg5[%c0_92, %c0_93], %223 {strides = array<i32>} : memref<8x128xf32, #tpu.memory_space<vmem>>, vector<8x128xf32>,
    %c0_94 = arith.constant 0 : index
    %c0_95 = arith.constant 0 : index
    %227 = vector.load %arg4[%c0_94, %c0_95] : memref<8x128xf32, #tpu.memory_space<vmem>>, vector<8x128xf32>
    tpu.vector_store %arg4[%c0_94, %c0_95], %225 {strides = array<i32>} : memref<8x128xf32, #tpu.memory_space<vmem>>, vector<8x128xf32>,
    %228 = arith.index_cast %c5_i32 : i32 to index
    %c0_96 = arith.constant 0 : index
    %c0_97 = arith.constant 0 : index
    %229 = vector.load %arg3[%228, %c0_96, %c0_97] : memref<8x8x128xf32, #tpu.memory_space<vmem>>, vector<1x8x128xf32>
    %230 = vector.shape_cast %229 : vector<1x8x128xf32> to vector<8x128xf32>
    %231 = vector.shape_cast %225 : vector<8x128xf32> to vector<1x8x128xf32>
    tpu.vector_store %arg3[%228, %c0_96, %c0_97], %231 {strides = array<i32>} : memref<8x8x128xf32, #tpu.memory_space<vmem>>, vector<1x8x128xf32>,
    %c6_i32 = arith.constant 6 : i32
    %c0_98 = arith.constant 0 : index
    %c0_99 = arith.constant 0 : index
    %232 = vector.load %arg4[%c0_98, %c0_99] : memref<8x128xf32, #tpu.memory_space<vmem>>, vector<8x128xf32>
    %233 = arith.index_cast %c6_i32 : i32 to index
    %c0_100 = arith.constant 0 : index
    %c0_101 = arith.constant 0 : index
    %234 = vector.load %arg1[%233, %c0_100, %c0_101] : memref<8x8x512xf32, #tpu.memory_space<vmem>>, vector<1x8x512xf32>
    %235 = vector.shape_cast %234 : vector<1x8x512xf32> to vector<8x512xf32>
    %cst_102 = arith.constant dense<0.000000e+00> : vector<8x512xf32>
    %236 = tpu.matmul %232, %3, %cst_102 {dimension_numbers = #tpu.dot_dimension_numbers<[1], [0], [0], [1], [0, 0, 1, 1], [], []>} : vector<8x128xf32>, vector<128x512xf32>, vector<8x512xf32> -> vector<8x512xf32>
    %237 = arith.addf %235, %236 : vector<8x512xf32>
    %238 = vector.extract_strided_slice %237 {offsets = [0, 0], sizes = [8, 128], strides = [1, 1]} : vector<8x512xf32> to vector<8x128xf32>
    %239 = arith.negf %238 : vector<8x128xf32>
    %240 = math.exp %239 : vector<8x128xf32>
    %cst_103 = arith.constant 1.000000e+00 : f32
    %241 = vector.broadcast %cst_103 : f32 to vector<8x128xf32>
    %242 = arith.addf %241, %240 : vector<8x128xf32>
    %243 = arith.divf %241, %242 : vector<8x128xf32>
    %244 = vector.extract_strided_slice %237 {offsets = [0, 128], sizes = [8, 128], strides = [1, 1]} : vector<8x512xf32> to vector<8x128xf32>
    %245 = arith.negf %244 : vector<8x128xf32>
    %246 = math.exp %245 : vector<8x128xf32>
    %cst_104 = arith.constant 1.000000e+00 : f32
    %247 = vector.broadcast %cst_104 : f32 to vector<8x128xf32>
    %248 = arith.addf %247, %246 : vector<8x128xf32>
    %249 = arith.divf %247, %248 : vector<8x128xf32>
    %250 = vector.extract_strided_slice %237 {offsets = [0, 256], sizes = [8, 128], strides = [1, 1]} : vector<8x512xf32> to vector<8x128xf32>
    %251 = math.tanh %250 : vector<8x128xf32>
    %252 = vector.extract_strided_slice %237 {offsets = [0, 384], sizes = [8, 128], strides = [1, 1]} : vector<8x512xf32> to vector<8x128xf32>
    %253 = arith.negf %252 : vector<8x128xf32>
    %254 = math.exp %253 : vector<8x128xf32>
    %cst_105 = arith.constant 1.000000e+00 : f32
    %255 = vector.broadcast %cst_105 : f32 to vector<8x128xf32>
    %256 = arith.addf %255, %254 : vector<8x128xf32>
    %257 = arith.divf %255, %256 : vector<8x128xf32>
    %c0_106 = arith.constant 0 : index
    %c0_107 = arith.constant 0 : index
    %258 = vector.load %arg5[%c0_106, %c0_107] : memref<8x128xf32, #tpu.memory_space<vmem>>, vector<8x128xf32>
    %259 = arith.mulf %249, %258 : vector<8x128xf32>
    %260 = arith.mulf %243, %251 : vector<8x128xf32>
    %261 = arith.addf %259, %260 : vector<8x128xf32>
    %262 = math.tanh %261 : vector<8x128xf32>
    %263 = arith.mulf %257, %262 : vector<8x128xf32>
    %c0_108 = arith.constant 0 : index
    %c0_109 = arith.constant 0 : index
    %264 = vector.load %arg5[%c0_108, %c0_109] : memref<8x128xf32, #tpu.memory_space<vmem>>, vector<8x128xf32>
    tpu.vector_store %arg5[%c0_108, %c0_109], %261 {strides = array<i32>} : memref<8x128xf32, #tpu.memory_space<vmem>>, vector<8x128xf32>,
    %c0_110 = arith.constant 0 : index
    %c0_111 = arith.constant 0 : index
    %265 = vector.load %arg4[%c0_110, %c0_111] : memref<8x128xf32, #tpu.memory_space<vmem>>, vector<8x128xf32>
    tpu.vector_store %arg4[%c0_110, %c0_111], %263 {strides = array<i32>} : memref<8x128xf32, #tpu.memory_space<vmem>>, vector<8x128xf32>,
    %266 = arith.index_cast %c6_i32 : i32 to index
    %c0_112 = arith.constant 0 : index
    %c0_113 = arith.constant 0 : index
    %267 = vector.load %arg3[%266, %c0_112, %c0_113] : memref<8x8x128xf32, #tpu.memory_space<vmem>>, vector<1x8x128xf32>
    %268 = vector.shape_cast %267 : vector<1x8x128xf32> to vector<8x128xf32>
    %269 = vector.shape_cast %263 : vector<8x128xf32> to vector<1x8x128xf32>
    tpu.vector_store %arg3[%266, %c0_112, %c0_113], %269 {strides = array<i32>} : memref<8x8x128xf32, #tpu.memory_space<vmem>>, vector<1x8x128xf32>,
    %c7_i32 = arith.constant 7 : i32
    %c0_114 = arith.constant 0 : index
    %c0_115 = arith.constant 0 : index
    %270 = vector.load %arg4[%c0_114, %c0_115] : memref<8x128xf32, #tpu.memory_space<vmem>>, vector<8x128xf32>
    %271 = arith.index_cast %c7_i32 : i32 to index
    %c0_116 = arith.constant 0 : index
    %c0_117 = arith.constant 0 : index
    %272 = vector.load %arg1[%271, %c0_116, %c0_117] : memref<8x8x512xf32, #tpu.memory_space<vmem>>, vector<1x8x512xf32>
    %273 = vector.shape_cast %272 : vector<1x8x512xf32> to vector<8x512xf32>
    %cst_118 = arith.constant dense<0.000000e+00> : vector<8x512xf32>
    %274 = tpu.matmul %270, %3, %cst_118 {dimension_numbers = #tpu.dot_dimension_numbers<[1], [0], [0], [1], [0, 0, 1, 1], [], []>} : vector<8x128xf32>, vector<128x512xf32>, vector<8x512xf32> -> vector<8x512xf32>
    %275 = arith.addf %273, %274 : vector<8x512xf32>
    %276 = vector.extract_strided_slice %275 {offsets = [0, 0], sizes = [8, 128], strides = [1, 1]} : vector<8x512xf32> to vector<8x128xf32>
    %277 = arith.negf %276 : vector<8x128xf32>
    %278 = math.exp %277 : vector<8x128xf32>
    %cst_119 = arith.constant 1.000000e+00 : f32
    %279 = vector.broadcast %cst_119 : f32 to vector<8x128xf32>
    %280 = arith.addf %279, %278 : vector<8x128xf32>
    %281 = arith.divf %279, %280 : vector<8x128xf32>
    %282 = vector.extract_strided_slice %275 {offsets = [0, 128], sizes = [8, 128], strides = [1, 1]} : vector<8x512xf32> to vector<8x128xf32>
    %283 = arith.negf %282 : vector<8x128xf32>
    %284 = math.exp %283 : vector<8x128xf32>
    %cst_120 = arith.constant 1.000000e+00 : f32
    %285 = vector.broadcast %cst_120 : f32 to vector<8x128xf32>
    %286 = arith.addf %285, %284 : vector<8x128xf32>
    %287 = arith.divf %285, %286 : vector<8x128xf32>
    %288 = vector.extract_strided_slice %275 {offsets = [0, 256], sizes = [8, 128], strides = [1, 1]} : vector<8x512xf32> to vector<8x128xf32>
    %289 = math.tanh %288 : vector<8x128xf32>
    %290 = vector.extract_strided_slice %275 {offsets = [0, 384], sizes = [8, 128], strides = [1, 1]} : vector<8x512xf32> to vector<8x128xf32>
    %291 = arith.negf %290 : vector<8x128xf32>
    %292 = math.exp %291 : vector<8x128xf32>
    %cst_121 = arith.constant 1.000000e+00 : f32
    %293 = vector.broadcast %cst_121 : f32 to vector<8x128xf32>
    %294 = arith.addf %293, %292 : vector<8x128xf32>
    %295 = arith.divf %293, %294 : vector<8x128xf32>
    %c0_122 = arith.constant 0 : index
    %c0_123 = arith.constant 0 : index
    %296 = vector.load %arg5[%c0_122, %c0_123] : memref<8x128xf32, #tpu.memory_space<vmem>>, vector<8x128xf32>
    %297 = arith.mulf %287, %296 : vector<8x128xf32>
    %298 = arith.mulf %281, %289 : vector<8x128xf32>
    %299 = arith.addf %297, %298 : vector<8x128xf32>
    %300 = math.tanh %299 : vector<8x128xf32>
    %301 = arith.mulf %295, %300 : vector<8x128xf32>
    %c0_124 = arith.constant 0 : index
    %c0_125 = arith.constant 0 : index
    %302 = vector.load %arg5[%c0_124, %c0_125] : memref<8x128xf32, #tpu.memory_space<vmem>>, vector<8x128xf32>
    tpu.vector_store %arg5[%c0_124, %c0_125], %299 {strides = array<i32>} : memref<8x128xf32, #tpu.memory_space<vmem>>, vector<8x128xf32>,
    %c0_126 = arith.constant 0 : index
    %c0_127 = arith.constant 0 : index
    %303 = vector.load %arg4[%c0_126, %c0_127] : memref<8x128xf32, #tpu.memory_space<vmem>>, vector<8x128xf32>
    tpu.vector_store %arg4[%c0_126, %c0_127], %301 {strides = array<i32>} : memref<8x128xf32, #tpu.memory_space<vmem>>, vector<8x128xf32>,
    %304 = arith.index_cast %c7_i32 : i32 to index
    %c0_128 = arith.constant 0 : index
    %c0_129 = arith.constant 0 : index
    %305 = vector.load %arg3[%304, %c0_128, %c0_129] : memref<8x8x128xf32, #tpu.memory_space<vmem>>, vector<1x8x128xf32>
    %306 = vector.shape_cast %305 : vector<1x8x128xf32> to vector<8x128xf32>
    %307 = vector.shape_cast %301 : vector<8x128xf32> to vector<1x8x128xf32>
    tpu.vector_store %arg3[%304, %c0_128, %c0_129], %307 {strides = array<i32>} : memref<8x8x128xf32, #tpu.memory_space<vmem>>, vector<1x8x128xf32>,
    %c8_i32 = arith.constant 8 : i32
    return
  }
  func.func @transform_0(%arg0: i32) -> (i32, i32, i32) {
    %c0_i32 = arith.constant 0 : i32
    %c0_i32_0 = arith.constant 0 : i32
    %c0_i32_1 = arith.constant 0 : i32
    return %arg0, %c0_i32, %c0_i32_0 : i32, i32, i32
  }
  func.func @transform_1(%arg0: i32) -> (i32, i32) {
    %c0_i32 = arith.constant 0 : i32
    %c0_i32_0 = arith.constant 0 : i32
    %c0_i32_1 = arith.constant 0 : i32
    return %c0_i32, %c0_i32_0 : i32, i32
  }
  func.func @transform_2(%arg0: i32) -> (i32, i32, i32) {
    %c0_i32 = arith.constant 0 : i32
    %c0_i32_0 = arith.constant 0 : i32
    %c0_i32_1 = arith.constant 0 : i32
    return %arg0, %c0_i32, %c0_i32_0 : i32, i32, i32
  }
}

module attributes {stable_mosaic.version = 11 : i64} {
  func.func @_linear_kernel(%arg0: i32, %arg1: i32, %arg2: i32, %arg3: memref<64x128xf32, #tpu.memory_space<vmem>>, %arg4: memref<512x128xf32, #tpu.memory_space<vmem>>, %arg5: memref<1x512xf32, #tpu.memory_space<vmem>>, %arg6: memref<64x512xf32, #tpu.memory_space<vmem>>) attributes {dimension_semantics = [#tpu.dimension_semantics<parallel>, #tpu.dimension_semantics<parallel>, #tpu.dimension_semantics<arbitrary>], iteration_bounds = array<i64: 1, 1, 1>, scalar_prefetch = 0 : i64, scratch_operands = 0 : i64, tpu.core_type = #tpu.core_type<tc>, window_params = [{transform_indices = @transform_0, window_bounds = array<i64: 64, 128>}, {transform_indices = @transform_1, window_bounds = array<i64: 512, 128>}, {transform_indices = @transform_2, window_bounds = array<i64: 1, 512>}, {transform_indices = @transform_3, window_bounds = array<i64: 64, 512>}]} {
    %c0_i32 = arith.constant 0 : i32
    %0 = arith.cmpi eq, %arg2, %c0_i32 : i32
    %1 = arith.extui %0 : i1 to i32
    %c0_i32_0 = arith.constant 0 : i32
    %2 = arith.cmpi ne, %1, %c0_i32_0 : i32
    scf.if %2 {
      %cst_10 = arith.constant 0.000000e+00 : f32
      %12 = vector.broadcast %cst_10 : f32 to vector<64x512xf32>
      %c0_11 = arith.constant 0 : index
      %c0_12 = arith.constant 0 : index
      %13 = vector.load %arg6[%c0_11, %c0_12] : memref<64x512xf32, #tpu.memory_space<vmem>>, vector<64x512xf32>
      tpu.vector_store %arg6[%c0_11, %c0_12], %12 {strides = array<i32>} : memref<64x512xf32, #tpu.memory_space<vmem>>, vector<64x512xf32>,
    } else {
    }
    %c0 = arith.constant 0 : index
    %c0_1 = arith.constant 0 : index
    %3 = vector.load %arg6[%c0, %c0_1] : memref<64x512xf32, #tpu.memory_space<vmem>>, vector<64x512xf32>
    %c0_2 = arith.constant 0 : index
    %c0_3 = arith.constant 0 : index
    %4 = vector.load %arg3[%c0_2, %c0_3] : memref<64x128xf32, #tpu.memory_space<vmem>>, vector<64x128xf32>
    %c0_4 = arith.constant 0 : index
    %c0_5 = arith.constant 0 : index
    %5 = vector.load %arg4[%c0_4, %c0_5] : memref<512x128xf32, #tpu.memory_space<vmem>>, vector<512x128xf32>
    %cst = arith.constant dense<0.000000e+00> : vector<64x512xf32>
    %6 = tpu.matmul %4, %5, %cst {dimension_numbers = #tpu.dot_dimension_numbers<[1], [1], [0], [0], [0, 0, 1, 0], [], []>} : vector<64x128xf32>, vector<512x128xf32>, vector<64x512xf32> -> vector<64x512xf32>
    %7 = arith.addf %3, %6 : vector<64x512xf32>
    %c0_6 = arith.constant 0 : index
    %c0_7 = arith.constant 0 : index
    %8 = vector.load %arg6[%c0_6, %c0_7] : memref<64x512xf32, #tpu.memory_space<vmem>>, vector<64x512xf32>
    tpu.vector_store %arg6[%c0_6, %c0_7], %7 {strides = array<i32>} : memref<64x512xf32, #tpu.memory_space<vmem>>, vector<64x512xf32>,
    %c0_i32_8 = arith.constant 0 : i32
    %9 = arith.cmpi eq, %arg2, %c0_i32_8 : i32
    %10 = arith.extui %9 : i1 to i32
    %c0_i32_9 = arith.constant 0 : i32
    %11 = arith.cmpi ne, %10, %c0_i32_9 : i32
    scf.if %11 {
      %c0_10 = arith.constant 0 : index
      %c0_11 = arith.constant 0 : index
      %12 = vector.load %arg6[%c0_10, %c0_11] : memref<64x512xf32, #tpu.memory_space<vmem>>, vector<64x512xf32>
      %c0_12 = arith.constant 0 : index
      %c0_13 = arith.constant 0 : index
      %13 = vector.load %arg5[%c0_12, %c0_13] : memref<1x512xf32, #tpu.memory_space<vmem>>, vector<1x512xf32>
      %14 = vector.broadcast %13 : vector<1x512xf32> to vector<64x512xf32>
      %15 = arith.addf %12, %14 : vector<64x512xf32>
      %c0_14 = arith.constant 0 : index
      %c0_15 = arith.constant 0 : index
      %16 = vector.load %arg6[%c0_14, %c0_15] : memref<64x512xf32, #tpu.memory_space<vmem>>, vector<64x512xf32>
      tpu.vector_store %arg6[%c0_14, %c0_15], %15 {strides = array<i32>} : memref<64x512xf32, #tpu.memory_space<vmem>>, vector<64x512xf32>,
    } else {
    }
    return
  }
  func.func @transform_0(%arg0: i32, %arg1: i32, %arg2: i32) -> (i32, i32) {
    %c0_i32 = arith.constant 0 : i32
    return %arg0, %arg2 : i32, i32
  }
  func.func @transform_1(%arg0: i32, %arg1: i32, %arg2: i32) -> (i32, i32) {
    %c0_i32 = arith.constant 0 : i32
    return %arg1, %arg2 : i32, i32
  }
  func.func @transform_2(%arg0: i32, %arg1: i32, %arg2: i32) -> (i32, i32) {
    %c0_i32 = arith.constant 0 : i32
    %c0_i32_0 = arith.constant 0 : i32
    return %c0_i32, %arg1 : i32, i32
  }
  func.func @transform_3(%arg0: i32, %arg1: i32, %arg2: i32) -> (i32, i32) {
    %c0_i32 = arith.constant 0 : i32
    return %arg0, %arg1 : i32, i32
  }
}

module attributes {stable_mosaic.version = 11 : i64} {
  func.func @_linear_kernel(%arg0: i32, %arg1: i32, %arg2: i32, %arg3: memref<8x256xbf16, #tpu.memory_space<vmem>>, %arg4: memref<1024x256xbf16, #tpu.memory_space<vmem>>, %arg5: memref<1x1024xf32, #tpu.memory_space<vmem>>, %arg6: memref<8x1024xf32, #tpu.memory_space<vmem>>) attributes {dimension_semantics = [#tpu.dimension_semantics<parallel>, #tpu.dimension_semantics<parallel>, #tpu.dimension_semantics<arbitrary>], iteration_bounds = array<i64: 1, 8, 1>, scalar_prefetch = 0 : i64, scratch_operands = 0 : i64, tpu.core_type = #tpu.core_type<tc>, window_params = [{transform_indices = @transform_0, window_bounds = array<i64: 8, 256>}, {transform_indices = @transform_1, window_bounds = array<i64: 1024, 256>}, {transform_indices = @transform_2, window_bounds = array<i64: 1, 1024>}, {transform_indices = @transform_3, window_bounds = array<i64: 8, 1024>}]} {
    %c0_i32 = arith.constant 0 : i32
    %0 = arith.cmpi eq, %arg2, %c0_i32 : i32
    %1 = arith.extui %0 : i1 to i32
    %c0_i32_0 = arith.constant 0 : i32
    %2 = arith.cmpi ne, %1, %c0_i32_0 : i32
    scf.if %2 {
      %cst_10 = arith.constant 0.000000e+00 : f32
      %12 = vector.broadcast %cst_10 : f32 to vector<8x1024xf32>
      %c0_11 = arith.constant 0 : index
      %c0_12 = arith.constant 0 : index
      %13 = vector.load %arg6[%c0_11, %c0_12] : memref<8x1024xf32, #tpu.memory_space<vmem>>, vector<8x1024xf32>
      tpu.vector_store %arg6[%c0_11, %c0_12], %12 {strides = array<i32>} : memref<8x1024xf32, #tpu.memory_space<vmem>>, vector<8x1024xf32>,
    } else {
    }
    %c0 = arith.constant 0 : index
    %c0_1 = arith.constant 0 : index
    %3 = vector.load %arg6[%c0, %c0_1] : memref<8x1024xf32, #tpu.memory_space<vmem>>, vector<8x1024xf32>
    %c0_2 = arith.constant 0 : index
    %c0_3 = arith.constant 0 : index
    %4 = vector.load %arg3[%c0_2, %c0_3] : memref<8x256xbf16, #tpu.memory_space<vmem>>, vector<8x256xbf16>
    %c0_4 = arith.constant 0 : index
    %c0_5 = arith.constant 0 : index
    %5 = vector.load %arg4[%c0_4, %c0_5] : memref<1024x256xbf16, #tpu.memory_space<vmem>>, vector<1024x256xbf16>
    %cst = arith.constant dense<0.000000e+00> : vector<8x1024xf32>
    %6 = tpu.matmul %4, %5, %cst {dimension_numbers = #tpu.dot_dimension_numbers<[1], [1], [0], [0], [0, 0, 1, 0], [], []>} : vector<8x256xbf16>, vector<1024x256xbf16>, vector<8x1024xf32> -> vector<8x1024xf32>
    %7 = arith.addf %3, %6 : vector<8x1024xf32>
    %c0_6 = arith.constant 0 : index
    %c0_7 = arith.constant 0 : index
    %8 = vector.load %arg6[%c0_6, %c0_7] : memref<8x1024xf32, #tpu.memory_space<vmem>>, vector<8x1024xf32>
    tpu.vector_store %arg6[%c0_6, %c0_7], %7 {strides = array<i32>} : memref<8x1024xf32, #tpu.memory_space<vmem>>, vector<8x1024xf32>,
    %c0_i32_8 = arith.constant 0 : i32
    %9 = arith.cmpi eq, %arg2, %c0_i32_8 : i32
    %10 = arith.extui %9 : i1 to i32
    %c0_i32_9 = arith.constant 0 : i32
    %11 = arith.cmpi ne, %10, %c0_i32_9 : i32
    scf.if %11 {
      %c0_10 = arith.constant 0 : index
      %c0_11 = arith.constant 0 : index
      %12 = vector.load %arg6[%c0_10, %c0_11] : memref<8x1024xf32, #tpu.memory_space<vmem>>, vector<8x1024xf32>
      %c0_12 = arith.constant 0 : index
      %c0_13 = arith.constant 0 : index
      %13 = vector.load %arg5[%c0_12, %c0_13] : memref<1x1024xf32, #tpu.memory_space<vmem>>, vector<1x1024xf32>
      %14 = vector.broadcast %13 : vector<1x1024xf32> to vector<8x1024xf32>
      %15 = arith.addf %12, %14 : vector<8x1024xf32>
      %cst_14 = arith.constant 0.000000e+00 : f32
      %16 = vector.broadcast %cst_14 : f32 to vector<8x1024xf32>
      %17 = arith.maximumf %15, %16 : vector<8x1024xf32>
      %c0_15 = arith.constant 0 : index
      %c0_16 = arith.constant 0 : index
      %18 = vector.load %arg6[%c0_15, %c0_16] : memref<8x1024xf32, #tpu.memory_space<vmem>>, vector<8x1024xf32>
      tpu.vector_store %arg6[%c0_15, %c0_16], %17 {strides = array<i32>} : memref<8x1024xf32, #tpu.memory_space<vmem>>, vector<8x1024xf32>,
    } else {
    }
    return
  }
  func.func @transform_0(%arg0: i32, %arg1: i32, %arg2: i32) -> (i32, i32) {
    %c0_i32 = arith.constant 0 : i32
    return %arg0, %arg2 : i32, i32
  }
  func.func @transform_1(%arg0: i32, %arg1: i32, %arg2: i32) -> (i32, i32) {
    %c0_i32 = arith.constant 0 : i32
    return %arg1, %arg2 : i32, i32
  }
  func.func @transform_2(%arg0: i32, %arg1: i32, %arg2: i32) -> (i32, i32) {
    %c0_i32 = arith.constant 0 : i32
    %c0_i32_0 = arith.constant 0 : i32
    return %c0_i32, %arg1 : i32, i32
  }
  func.func @transform_3(%arg0: i32, %arg1: i32, %arg2: i32) -> (i32, i32) {
    %c0_i32 = arith.constant 0 : i32
    return %arg0, %arg1 : i32, i32
  }
}

module attributes {stable_mosaic.version = 11 : i64} {
  func.func @_linear_kernel(%arg0: i32, %arg1: i32, %arg2: i32, %arg3: memref<8x2048xbf16, #tpu.memory_space<vmem>>, %arg4: memref<1024x2048xbf16, #tpu.memory_space<vmem>>, %arg5: memref<1x1024xf32, #tpu.memory_space<vmem>>, %arg6: memref<8x1024xf32, #tpu.memory_space<vmem>>) attributes {dimension_semantics = [#tpu.dimension_semantics<parallel>, #tpu.dimension_semantics<parallel>, #tpu.dimension_semantics<arbitrary>], iteration_bounds = array<i64: 1, 2, 4>, scalar_prefetch = 0 : i64, scratch_operands = 0 : i64, tpu.core_type = #tpu.core_type<tc>, window_params = [{transform_indices = @transform_0, window_bounds = array<i64: 8, 2048>}, {transform_indices = @transform_1, window_bounds = array<i64: 1024, 2048>}, {transform_indices = @transform_2, window_bounds = array<i64: 1, 1024>}, {transform_indices = @transform_3, window_bounds = array<i64: 8, 1024>}]} {
    %c0_i32 = arith.constant 0 : i32
    %0 = arith.cmpi eq, %arg2, %c0_i32 : i32
    %1 = arith.extui %0 : i1 to i32
    %c0_i32_0 = arith.constant 0 : i32
    %2 = arith.cmpi ne, %1, %c0_i32_0 : i32
    scf.if %2 {
      %cst_9 = arith.constant 0.000000e+00 : f32
      %12 = vector.broadcast %cst_9 : f32 to vector<8x1024xf32>
      %c0_10 = arith.constant 0 : index
      %c0_11 = arith.constant 0 : index
      %13 = vector.load %arg6[%c0_10, %c0_11] : memref<8x1024xf32, #tpu.memory_space<vmem>>, vector<8x1024xf32>
      tpu.vector_store %arg6[%c0_10, %c0_11], %12 {strides = array<i32>} : memref<8x1024xf32, #tpu.memory_space<vmem>>, vector<8x1024xf32>,
    } else {
    }
    %c0 = arith.constant 0 : index
    %c0_1 = arith.constant 0 : index
    %3 = vector.load %arg6[%c0, %c0_1] : memref<8x1024xf32, #tpu.memory_space<vmem>>, vector<8x1024xf32>
    %c0_2 = arith.constant 0 : index
    %c0_3 = arith.constant 0 : index
    %4 = vector.load %arg3[%c0_2, %c0_3] : memref<8x2048xbf16, #tpu.memory_space<vmem>>, vector<8x2048xbf16>
    %c0_4 = arith.constant 0 : index
    %c0_5 = arith.constant 0 : index
    %5 = vector.load %arg4[%c0_4, %c0_5] : memref<1024x2048xbf16, #tpu.memory_space<vmem>>, vector<1024x2048xbf16>
    %cst = arith.constant dense<0.000000e+00> : vector<8x1024xf32>
    %6 = tpu.matmul %4, %5, %cst {dimension_numbers = #tpu.dot_dimension_numbers<[1], [1], [0], [0], [0, 0, 1, 0], [], []>} : vector<8x2048xbf16>, vector<1024x2048xbf16>, vector<8x1024xf32> -> vector<8x1024xf32>
    %7 = arith.addf %3, %6 : vector<8x1024xf32>
    %c0_6 = arith.constant 0 : index
    %c0_7 = arith.constant 0 : index
    %8 = vector.load %arg6[%c0_6, %c0_7] : memref<8x1024xf32, #tpu.memory_space<vmem>>, vector<8x1024xf32>
    tpu.vector_store %arg6[%c0_6, %c0_7], %7 {strides = array<i32>} : memref<8x1024xf32, #tpu.memory_space<vmem>>, vector<8x1024xf32>,
    %c3_i32 = arith.constant 3 : i32
    %9 = arith.cmpi eq, %arg2, %c3_i32 : i32
    %10 = arith.extui %9 : i1 to i32
    %c0_i32_8 = arith.constant 0 : i32
    %11 = arith.cmpi ne, %10, %c0_i32_8 : i32
    scf.if %11 {
      %c0_9 = arith.constant 0 : index
      %c0_10 = arith.constant 0 : index
      %12 = vector.load %arg6[%c0_9, %c0_10] : memref<8x1024xf32, #tpu.memory_space<vmem>>, vector<8x1024xf32>
      %c0_11 = arith.constant 0 : index
      %c0_12 = arith.constant 0 : index
      %13 = vector.load %arg5[%c0_11, %c0_12] : memref<1x1024xf32, #tpu.memory_space<vmem>>, vector<1x1024xf32>
      %14 = vector.broadcast %13 : vector<1x1024xf32> to vector<8x1024xf32>
      %15 = arith.addf %12, %14 : vector<8x1024xf32>
      %cst_13 = arith.constant 0.000000e+00 : f32
      %16 = vector.broadcast %cst_13 : f32 to vector<8x1024xf32>
      %17 = arith.maximumf %15, %16 : vector<8x1024xf32>
      %c0_14 = arith.constant 0 : index
      %c0_15 = arith.constant 0 : index
      %18 = vector.load %arg6[%c0_14, %c0_15] : memref<8x1024xf32, #tpu.memory_space<vmem>>, vector<8x1024xf32>
      tpu.vector_store %arg6[%c0_14, %c0_15], %17 {strides = array<i32>} : memref<8x1024xf32, #tpu.memory_space<vmem>>, vector<8x1024xf32>,
    } else {
    }
    return
  }
  func.func @transform_0(%arg0: i32, %arg1: i32, %arg2: i32) -> (i32, i32) {
    %c0_i32 = arith.constant 0 : i32
    return %arg0, %arg2 : i32, i32
  }
  func.func @transform_1(%arg0: i32, %arg1: i32, %arg2: i32) -> (i32, i32) {
    %c0_i32 = arith.constant 0 : i32
    return %arg1, %arg2 : i32, i32
  }
  func.func @transform_2(%arg0: i32, %arg1: i32, %arg2: i32) -> (i32, i32) {
    %c0_i32 = arith.constant 0 : i32
    %c0_i32_0 = arith.constant 0 : i32
    return %c0_i32, %arg1 : i32, i32
  }
  func.func @transform_3(%arg0: i32, %arg1: i32, %arg2: i32) -> (i32, i32) {
    %c0_i32 = arith.constant 0 : i32
    return %arg0, %arg1 : i32, i32
  }
}

module attributes {stable_mosaic.version = 11 : i64} {
  func.func @_linear_kernel(%arg0: i32, %arg1: i32, %arg2: i32, %arg3: memref<8x2048xbf16, #tpu.memory_space<vmem>>, %arg4: memref<128x2048xbf16, #tpu.memory_space<vmem>>, %arg5: memref<1x128xf32, #tpu.memory_space<vmem>>, %arg6: memref<8x128xf32, #tpu.memory_space<vmem>>) attributes {dimension_semantics = [#tpu.dimension_semantics<parallel>, #tpu.dimension_semantics<parallel>, #tpu.dimension_semantics<arbitrary>], iteration_bounds = array<i64: 1, 1, 1>, scalar_prefetch = 0 : i64, scratch_operands = 0 : i64, tpu.core_type = #tpu.core_type<tc>, window_params = [{transform_indices = @transform_0, window_bounds = array<i64: 8, 2048>}, {transform_indices = @transform_1, window_bounds = array<i64: 128, 2048>}, {transform_indices = @transform_2, window_bounds = array<i64: 1, 128>}, {transform_indices = @transform_3, window_bounds = array<i64: 8, 128>}]} {
    %c0_i32 = arith.constant 0 : i32
    %0 = arith.cmpi eq, %arg2, %c0_i32 : i32
    %1 = arith.extui %0 : i1 to i32
    %c0_i32_0 = arith.constant 0 : i32
    %2 = arith.cmpi ne, %1, %c0_i32_0 : i32
    scf.if %2 {
      %cst_10 = arith.constant 0.000000e+00 : f32
      %12 = vector.broadcast %cst_10 : f32 to vector<8x128xf32>
      %c0_11 = arith.constant 0 : index
      %c0_12 = arith.constant 0 : index
      %13 = vector.load %arg6[%c0_11, %c0_12] : memref<8x128xf32, #tpu.memory_space<vmem>>, vector<8x128xf32>
      tpu.vector_store %arg6[%c0_11, %c0_12], %12 {strides = array<i32>} : memref<8x128xf32, #tpu.memory_space<vmem>>, vector<8x128xf32>,
    } else {
    }
    %c0 = arith.constant 0 : index
    %c0_1 = arith.constant 0 : index
    %3 = vector.load %arg6[%c0, %c0_1] : memref<8x128xf32, #tpu.memory_space<vmem>>, vector<8x128xf32>
    %c0_2 = arith.constant 0 : index
    %c0_3 = arith.constant 0 : index
    %4 = vector.load %arg3[%c0_2, %c0_3] : memref<8x2048xbf16, #tpu.memory_space<vmem>>, vector<8x2048xbf16>
    %c0_4 = arith.constant 0 : index
    %c0_5 = arith.constant 0 : index
    %5 = vector.load %arg4[%c0_4, %c0_5] : memref<128x2048xbf16, #tpu.memory_space<vmem>>, vector<128x2048xbf16>
    %cst = arith.constant dense<0.000000e+00> : vector<8x128xf32>
    %6 = tpu.matmul %4, %5, %cst {dimension_numbers = #tpu.dot_dimension_numbers<[1], [1], [0], [0], [0, 0, 1, 0], [], []>} : vector<8x2048xbf16>, vector<128x2048xbf16>, vector<8x128xf32> -> vector<8x128xf32>
    %7 = arith.addf %3, %6 : vector<8x128xf32>
    %c0_6 = arith.constant 0 : index
    %c0_7 = arith.constant 0 : index
    %8 = vector.load %arg6[%c0_6, %c0_7] : memref<8x128xf32, #tpu.memory_space<vmem>>, vector<8x128xf32>
    tpu.vector_store %arg6[%c0_6, %c0_7], %7 {strides = array<i32>} : memref<8x128xf32, #tpu.memory_space<vmem>>, vector<8x128xf32>,
    %c0_i32_8 = arith.constant 0 : i32
    %9 = arith.cmpi eq, %arg2, %c0_i32_8 : i32
    %10 = arith.extui %9 : i1 to i32
    %c0_i32_9 = arith.constant 0 : i32
    %11 = arith.cmpi ne, %10, %c0_i32_9 : i32
    scf.if %11 {
      %c0_10 = arith.constant 0 : index
      %c0_11 = arith.constant 0 : index
      %12 = vector.load %arg6[%c0_10, %c0_11] : memref<8x128xf32, #tpu.memory_space<vmem>>, vector<8x128xf32>
      %c0_12 = arith.constant 0 : index
      %c0_13 = arith.constant 0 : index
      %13 = vector.load %arg5[%c0_12, %c0_13] : memref<1x128xf32, #tpu.memory_space<vmem>>, vector<1x128xf32>
      %14 = vector.broadcast %13 : vector<1x128xf32> to vector<8x128xf32>
      %15 = arith.addf %12, %14 : vector<8x128xf32>
      %c0_14 = arith.constant 0 : index
      %c0_15 = arith.constant 0 : index
      %16 = vector.load %arg6[%c0_14, %c0_15] : memref<8x128xf32, #tpu.memory_space<vmem>>, vector<8x128xf32>
      tpu.vector_store %arg6[%c0_14, %c0_15], %15 {strides = array<i32>} : memref<8x128xf32, #tpu.memory_space<vmem>>, vector<8x128xf32>,
    } else {
    }
    return
  }
  func.func @transform_0(%arg0: i32, %arg1: i32, %arg2: i32) -> (i32, i32) {
    %c0_i32 = arith.constant 0 : i32
    return %arg0, %arg2 : i32, i32
  }
  func.func @transform_1(%arg0: i32, %arg1: i32, %arg2: i32) -> (i32, i32) {
    %c0_i32 = arith.constant 0 : i32
    return %arg1, %arg2 : i32, i32
  }
  func.func @transform_2(%arg0: i32, %arg1: i32, %arg2: i32) -> (i32, i32) {
    %c0_i32 = arith.constant 0 : i32
    %c0_i32_0 = arith.constant 0 : i32
    return %c0_i32, %arg1 : i32, i32
  }
  func.func @transform_3(%arg0: i32, %arg1: i32, %arg2: i32) -> (i32, i32) {
    %c0_i32 = arith.constant 0 : i32
    return %arg0, %arg1 : i32, i32
  }
}

</mosaic_0001>

<bundles_post_ra>
// kernel: lstm_model_forward.9
= control target key start
LH: loop header
LB: loop body
LE: loop exit
PB: predicated region body
PF: predicated region fallthrough
CT: control target
= control target key end

     0   :  { %8 = vsyncpa [#allocation3], 0  ;;  %s938_s0 = inlined_call_operand.vmem [shape: f32[64,128], index: 0, kind: input, shape index: {}]   ;;  %s939_s1 = inlined_call_operand.hbm [shape: f32[512,128], index: 1, kind: input, shape index: {}]   ;;  %s940_s2 = inlined_call_operand.hbm [shape: f32[1,512], index: 2, kind: input, shape index: {}]   ;;  %s941_s3 = inlined_call_operand.vmem [shape: f32[64,512], index: 3, kind: output, shape index: {}]  }
   0x1   :  { %9 = vsyncpa [#allocation5], 0  ;;  %s742_s12 = smov [#allocation2]  }
   0x2   :  { %s17_s13 = sshll.u32 %s742_s12, 4  ;;  %s18_s13 = int_to_ptr.vmem [resolvable:$true] %s17_s13 }
   0x3   :  { %s706_s14 = scalar_lea.vmem %s18_s13, 8192  ;;  %p711_p1 = scmp.lt.s32.totalorder %s18_s13, %s18_s13 }
   0x4   :  { %p707_p0 = scmp.ne.s32.totalorder %s18_s13, %s706_s14  ;;  %p712_p2 = scmp.lt.s32.totalorder %s706_s14, %s706_s14 }
   0x6   :  { %p713_p3 = por %p712_p2, %p711_p1 }
   0x8   :  { %p714_p4 = pnand %p713_p3, %p707_p0 }
   0xa   :  { %717 = shalt.err (!%p714_p4)
}
   0xb   :  { %s743_s15 = smov 128   ;;  %s744_s16 = smov 8  }
   0xc   :  { %23 = dma.hbm_to_vmem [thread:$0]  %s939_s1, 8192, %s18_s13, [#allocation3], %s743_s15, %s743_s15, %s744_s16  }
   0xd   :  { %s745_s19 = smov [#allocation4]  }
   0xe   :  { %s30_s20 = sshll.u32 %s745_s19, 4  ;;  %s31_s20 = int_to_ptr.vmem [resolvable:$true] %s30_s20 }
   0xf   :  { %s726_s21 = scalar_lea.vmem %s31_s20, 64  ;;  %p731_p6 = scmp.lt.s32.totalorder %s31_s20, %s31_s20 }
  0x10   :  { %p727_p5 = scmp.ne.s32.totalorder %s31_s20, %s726_s21  ;;  %p732_p7 = scmp.lt.s32.totalorder %s726_s21, %s726_s21 }
  0x12   :  { %p733_p8 = por %p732_p7, %p731_p6 }
  0x14   :  { %p734_p9 = pnand %p733_p8, %p727_p5 }
  0x16   :  { %737 = shalt.err (!%p734_p9)
}
  0x17   :  { %33 = dma.hbm_to_vmem [thread:$0]  %s940_s2, 64, %s31_s20, [#allocation5]  }
  0x18   :  { %738 = dma.done.wait [#allocation3], 8192  }
  0x19   :  { %739 = vsyncadd [#allocation3], 4294959104 }
  0x1a   :  { %740 = dma.done.wait [#allocation5], 64  }
  0x1b   :  { %741 = vsyncadd [#allocation5], 4294967232  ;;  %v147_v0 = vld [vmem:[#allocation2 + $0xf8] sm:$0xff]  ;;  %v146_v4 = vld [vmem:[#allocation2 + $0xf0] sm:$0xff] }
  0x1c   :  { %v179_v1 = vld [vmem:[#allocation2 + $0x1f8] sm:$0xff]  ;;  %597 = vmatprep.subr.mxu0 %v147_v0  ;;  %v178_v5 = vld [vmem:[#allocation2 + $0x1f0] sm:$0xff]  ;;  %v145_v8 = vld [vmem:[#allocation2 + $0xe8] sm:$0xff] }
  0x1d   :  { %v131_v2 = vld [vmem:[#allocation2 + $0x78] sm:$0xff]  ;;  %645 = vmatprep.subr.mxu1 %v179_v1  ;;  %v130_v6 = vld [vmem:[#allocation2 + $0x70] sm:$0xff]  ;;  %v177_v9 = vld [vmem:[#allocation2 + $0x1e8] sm:$0xff] }
  0x1e   :  { %v163_v3 = vld [vmem:[#allocation2 + $0x178] sm:$0xff]  ;;  %598 = vmatpush3.xpose.msra.mxu0 %v131_v2  ;;  %v162_v7 = vld [vmem:[#allocation2 + $0x170] sm:$0xff]  ;;  %v129_v10 = vld [vmem:[#allocation2 + $0x68] sm:$0xff] }
  0x1f   :  { %646 = vmatpush3.xpose.msra.mxu1 %v163_v3  ;;  %599 = vmatprep.subr.mxu0 %v146_v4  ;;  %v161_v11 = vld [vmem:[#allocation2 + $0x168] sm:$0xff]  ;;  %v144_v12 = vld [vmem:[#allocation2 + $0xe0] sm:$0xff]  ;;  %v143_v16 = vld [vmem:[#allocation2 + $0xd8] sm:$0xff] }
  0x20   :  { %647 = vmatprep.subr.mxu1 %v178_v5  ;;  %v176_v13 = vld [vmem:[#allocation2 + $0x1e0] sm:$0xff]  ;;  %v175_v17 = vld [vmem:[#allocation2 + $0x1d8] sm:$0xff]  ;;  %v142_v20 = vld [vmem:[#allocation2 + $0xd0] sm:$0xff] }
  0x21   :  { %v128_v14 = vld [vmem:[#allocation2 + $0x60] sm:$0xff]  ;;  %v127_v18 = vld [vmem:[#allocation2 + $0x58] sm:$0xff]  ;;  %v174_v21 = vld [vmem:[#allocation2 + $0x1d0] sm:$0xff] }
  0x22   :  { %600 = vmatpush3.xpose.msra.mxu0 %v130_v6  ;;  %v160_v15 = vld [vmem:[#allocation2 + $0x160] sm:$0xff]  ;;  %v159_v19 = vld [vmem:[#allocation2 + $0x158] sm:$0xff]  ;;  %v126_v22 = vld [vmem:[#allocation2 + $0x50] sm:$0xff] }
  0x23   :  { %648 = vmatpush3.xpose.msra.mxu1 %v162_v7  ;;  %601 = vmatprep.subr.mxu0 %v145_v8  ;;  %v158_v23 = vld [vmem:[#allocation2 + $0x150] sm:$0xff]  ;;  %v141_v24 = vld [vmem:[#allocation2 + $0xc8] sm:$0xff]  ;;  %v775_v26 = vld [vmem:[%s938_s0] sm:$0xff]  ;;  %v507_v8 = vlaneseq }
  0x24   :  { %649 = vmatprep.subr.mxu1 %v177_v9  ;;  %v173_v25 = vld [vmem:[#allocation2 + $0x1c8] sm:$0xff]  ;;  %v140_v29 = vld [vmem:[#allocation2 + $0xc0] sm:$0xff]  ;;  %629 = vmatprep.mubr.f32.mxu0 %v775_v26  ;;  %v139_v33 = vld [vmem:[#allocation2 + $0xb8] sm:$0xff] }
  0x25   :  { %v125_v27 = vld [vmem:[#allocation2 + $0x48] sm:$0xff]  ;;  %v172_v30 = vld [vmem:[#allocation2 + $0x1c0] sm:$0xff]  ;;  %677 = vmatprep.mubr.f32.mxu1 %v775_v26  ;;  %v171_v34 = vld [vmem:[#allocation2 + $0x1b8] sm:$0xff]  ;;  %v508_v9 = vshrl.u32 %v507_v8, 7 }
  0x26   :  { %602 = vmatpush3.xpose.msra.mxu0 %v129_v10  ;;  %v157_v28 = vld [vmem:[#allocation2 + $0x148] sm:$0xff]  ;;  %v124_v31 = vld [vmem:[#allocation2 + $0x40] sm:$0xff]  ;;  %v123_v35 = vld [vmem:[#allocation2 + $0x38] sm:$0xff] }
  0x27   :  { %650 = vmatpush3.xpose.msra.mxu1 %v161_v11  ;;  %603 = vmatprep.subr.mxu0 %v144_v12  ;;  %v156_v32 = vld [vmem:[#allocation2 + $0x140] sm:$0xff]  ;;  %v155_v36 = vld [vmem:[#allocation2 + $0x138] sm:$0xff]  ;;  %v138_v37 = vld [vmem:[#allocation2 + $0xb0] sm:$0xff]  ;;  %v509_v10 = vsub.s32 0, %v508_v9  ;;  %v517_v11 = vsub.s32 2, %v508_v9 }
  0x28   :  { %651 = vmatprep.subr.mxu1 %v176_v13  ;;  %v170_v38 = vld [vmem:[#allocation2 + $0x1b0] sm:$0xff]  ;;  %v137_v41 = vld [vmem:[#allocation2 + $0xa8] sm:$0xff]  ;;  %v136_v45 = vld [vmem:[#allocation2 + $0xa0] sm:$0xff]  ;;  %v513_v13 = vsub.s32 1, %v508_v9 }
  0x29   :  { %v122_v39 = vld [vmem:[#allocation2 + $0x30] sm:$0xff]  ;;  %v169_v42 = vld [vmem:[#allocation2 + $0x1a8] sm:$0xff]  ;;  %v168_v46 = vld [vmem:[#allocation2 + $0x1a0] sm:$0xff] }
  0x2a   :  { %604 = vmatpush3.xpose.msra.mxu0 %v128_v14  ;;  %v154_v40 = vld [vmem:[#allocation2 + $0x130] sm:$0xff]  ;;  %v121_v43 = vld [vmem:[#allocation2 + $0x28] sm:$0xff]  ;;  %v120_v47 = vld [vmem:[#allocation2 + $0x20] sm:$0xff]  ;;  %v521_v14 = vsub.s32 3, %v508_v9 }
  0x2b   :  { %652 = vmatpush3.xpose.msra.mxu1 %v160_v15  ;;  %605 = vmatprep.subr.mxu0 %v143_v16  ;;  %v153_v44 = vld [vmem:[#allocation2 + $0x128] sm:$0xff]  ;;  %v152_v48 = vld [vmem:[#allocation2 + $0x120] sm:$0xff]  ;;  %v135_v49 = vld [vmem:[#allocation2 + $0x98] sm:$0xff] }
  0x2c   :  { %653 = vmatprep.subr.mxu1 %v175_v17  ;;  %v167_v50 = vld [vmem:[#allocation2 + $0x198] sm:$0xff]  ;;  %v134_v53 = vld [vmem:[#allocation2 + $0x90] sm:$0xff]  ;;  %v133_v57 = vld [vmem:[#allocation2 + $0x88] sm:$0xff] }
  0x2d   :  { %v119_v51 = vld [vmem:[#allocation2 + $0x18] sm:$0xff]  ;;  %v166_v54 = vld [vmem:[#allocation2 + $0x190] sm:$0xff]  ;;  %v165_v58 = vld [vmem:[#allocation2 + $0x188] sm:$0xff] }
  0x2e   :  { %606 = vmatpush3.xpose.msra.mxu0 %v127_v18  ;;  %v151_v52 = vld [vmem:[#allocation2 + $0x118] sm:$0xff]  ;;  %v118_v55 = vld [vmem:[#allocation2 + $0x10] sm:$0xff]  ;;  %v117_v59 = vld [vmem:[#allocation2 + $0x8] sm:$0xff] }
  0x2f   :  { %654 = vmatpush3.xpose.msra.mxu1 %v159_v19  ;;  %607 = vmatprep.subr.mxu0 %v142_v20  ;;  %v150_v56 = vld [vmem:[#allocation2 + $0x110] sm:$0xff]  ;;  %v149_v60 = vld [vmem:[#allocation2 + $0x108] sm:$0xff]  ;;  %v132_v61 = vld [vmem:[#allocation2 + $0x80] sm:$0xff] }
  0x30   :  { %655 = vmatprep.subr.mxu1 %v174_v21  ;;  %v164_v62 = vld [vmem:[#allocation2 + $0x180] sm:$0xff]  ;;  %v109_v1 = vld [vmem:[%s938_s0 + $0x8] sm:$0xff]  ;;  %v110_v2 = vld [vmem:[%s938_s0 + $0x10] sm:$0xff] }
  0x31   :  { %v116_v63 = vld [vmem:[#allocation2] sm:$0xff]  ;;  %v111_v3 = vld [vmem:[%s938_s0 + $0x18] sm:$0xff]  ;;  %v113_v5 = vld [vmem:[%s938_s0 + $0x28] sm:$0xff] }
  0x32   :  { %608 = vmatpush3.xpose.msra.mxu0 %v126_v22  ;;  %v148_v0 = vld [vmem:[#allocation2 + $0x100] sm:$0xff]  ;;  %v114_v6 = vld [vmem:[%s938_s0 + $0x30] sm:$0xff]  ;;  %v115_v7 = vld [vmem:[%s938_s0 + $0x38] sm:$0xff] }
  0x33   :  { %656 = vmatpush3.xpose.msra.mxu1 %v158_v23  ;;  %609 = vmatprep.subr.mxu0 %v141_v24  ;;  %v112_v4 = vld [vmem:[%s938_s0 + $0x20] sm:$0xff] }
  0x34   :  { %657 = vmatprep.subr.mxu1 %v173_v25  ;;  %v505_v12 = vld [vmem:[#allocation4] sm:$0xf] }
  0x35   :  { %v802_v15 = vrot.slane %v505_v12, %v509_v10  ;;  %v804_v16 = vrot.slane %v505_v12, %v517_v11  ;;  %v806_v19 = vrot.slane %v505_v12, %v513_v13  ;;  %v808_v20 = vrot.slane %v505_v12, %v521_v14 }
  0x36   :  { %610 = vmatpush3.xpose.msra.mxu0 %v125_v27 }
  0x37   :  { %658 = vmatpush3.xpose.msra.mxu1 %v157_v28  ;;  %611 = vmatprep.subr.mxu0 %v140_v29 }
  0x38   :  { %659 = vmatprep.subr.mxu1 %v172_v30 }
  0x3a   :  { %612 = vmatpush3.xpose.msra.mxu0 %v124_v31 }
  0x3b   :  { %660 = vmatpush3.xpose.msra.mxu1 %v156_v32  ;;  %613 = vmatprep.subr.mxu0 %v139_v33 }
  0x3c   :  { %661 = vmatprep.subr.mxu1 %v171_v34 }
  0x3e   :  { %614 = vmatpush3.xpose.msra.mxu0 %v123_v35 }
  0x3f   :  { %662 = vmatpush3.xpose.msra.mxu1 %v155_v36  ;;  %615 = vmatprep.subr.mxu0 %v138_v37 }
  0x40   :  { %663 = vmatprep.subr.mxu1 %v170_v38 }
  0x42   :  { %616 = vmatpush3.xpose.msra.mxu0 %v122_v39 }
  0x43   :  { %664 = vmatpush3.xpose.msra.mxu1 %v154_v40  ;;  %617 = vmatprep.subr.mxu0 %v137_v41 }
  0x44   :  { %665 = vmatprep.subr.mxu1 %v169_v42 }
  0x46   :  { %618 = vmatpush3.xpose.msra.mxu0 %v121_v43 }
  0x47   :  { %666 = vmatpush3.xpose.msra.mxu1 %v153_v44  ;;  %619 = vmatprep.subr.mxu0 %v136_v45 }
  0x48   :  { %667 = vmatprep.subr.mxu1 %v168_v46 }
  0x4a   :  { %620 = vmatpush3.xpose.msra.mxu0 %v120_v47 }
  0x4b   :  { %668 = vmatpush3.xpose.msra.mxu1 %v152_v48  ;;  %621 = vmatprep.subr.mxu0 %v135_v49 }
  0x4c   :  { %669 = vmatprep.subr.mxu1 %v167_v50 }
  0x4e   :  { %622 = vmatpush3.xpose.msra.mxu0 %v119_v51 }
  0x4f   :  { %670 = vmatpush3.xpose.msra.mxu1 %v151_v52  ;;  %623 = vmatprep.subr.mxu0 %v134_v53 }
  0x50   :  { %671 = vmatprep.subr.mxu1 %v166_v54 }
  0x52   :  { %624 = vmatpush3.xpose.msra.mxu0 %v118_v55 }
  0x53   :  { %672 = vmatpush3.xpose.msra.mxu1 %v150_v56  ;;  %625 = vmatprep.subr.mxu0 %v133_v57 }
  0x54   :  { %673 = vmatprep.subr.mxu1 %v165_v58 }
  0x56   :  { %626 = vmatpush3.xpose.msra.mxu0 %v117_v59 }
  0x57   :  { %674 = vmatpush3.xpose.msra.mxu1 %v149_v60  ;;  %627 = vmatprep.subr.mxu0 %v132_v61 }
  0x58   :  { %675 = vmatprep.subr.mxu1 %v164_v62 }
  0x5a   :  { %628 = vmatpush3.xpose.msra.mxu0 %v116_v63 }
  0x5b   :  { %676 = vmatpush3.xpose.msra.mxu1 %v148_v0 }
  0x5d   :  { %630 = vmatmul.mubr.f32.vlgmr.msra.gmra.mxu0 %v775_v26 }
  0x5e   :  { %678 = vmatmul.mubr.f32.vlgmr.msra.gmra.mxu1 %v775_v26  ;;  %631 = vmatprep.mubr.f32.mxu0 %v109_v1 }
  0x5f   :  { %679 = vmatprep.mubr.f32.mxu1 %v109_v1 }
  0x61   :  { %632 = vmatmul.mubr.f32.gmra.mxu0 %v109_v1 }
  0x62   :  { %680 = vmatmul.mubr.f32.gmra.mxu1 %v109_v1  ;;  %633 = vmatprep.mubr.f32.mxu0 %v110_v2 }
  0x63   :  { %681 = vmatprep.mubr.f32.mxu1 %v110_v2 }
  0x65   :  { %634 = vmatmul.mubr.f32.gmra.mxu0 %v110_v2 }
  0x66   :  { %682 = vmatmul.mubr.f32.gmra.mxu1 %v110_v2  ;;  %635 = vmatprep.mubr.f32.mxu0 %v111_v3 }
  0x67   :  { %683 = vmatprep.mubr.f32.mxu1 %v111_v3 }
  0x69   :  { %636 = vmatmul.mubr.f32.gmra.mxu0 %v111_v3 }
  0x6a   :  { %684 = vmatmul.mubr.f32.gmra.mxu1 %v111_v3  ;;  %637 = vmatprep.mubr.f32.mxu0 %v112_v4 }
  0x6b   :  { %685 = vmatprep.mubr.f32.mxu1 %v112_v4 }
  0x6d   :  { %638 = vmatmul.mubr.f32.gmra.mxu0 %v112_v4 }
  0x6e   :  { %686 = vmatmul.mubr.f32.gmra.mxu1 %v112_v4  ;;  %639 = vmatprep.mubr.f32.mxu0 %v113_v5 }
  0x6f   :  { %687 = vmatprep.mubr.f32.mxu1 %v113_v5 }
  0x71   :  { %640 = vmatmul.mubr.f32.gmra.mxu0 %v113_v5 }
  0x72   :  { %688 = vmatmul.mubr.f32.gmra.mxu1 %v113_v5  ;;  %641 = vmatprep.mubr.f32.mxu0 %v114_v6 }
  0x73   :  { %689 = vmatprep.mubr.f32.mxu1 %v114_v6 }
  0x75   :  { %642 = vmatmul.mubr.f32.gmra.mxu0 %v114_v6 }
  0x76   :  { %690 = vmatmul.mubr.f32.gmra.mxu1 %v114_v6  ;;  %643 = vmatprep.mubr.f32.mxu0 %v115_v7 }
  0x77   :  { %691 = vmatprep.mubr.f32.mxu1 %v115_v7 }
  0x79   :  { %644 = vmatmul.mubr.f32.gmra.mxu0 %v115_v7 }
  0x7a   :  { %692 = vmatmul.mubr.f32.gmra.mxu1 %v115_v7 }
 0x11d   :  { %v246_v17 = vpop.f32.mrf.mxu0 }
 0x11e   :  { %v359_v18 = vpop.f32.mrf.mxu1  ;;  %v527_v23 = vadd.f32 %v802_v15, %v246_v17 }
 0x11f   :  { %v248_v21 = vpop.f32.mrf.mxu0  ;;  %v529_v24 = vadd.f32 %v804_v16, %v359_v18 }
 0x120   :  { %v361_v22 = vpop.f32.mrf.mxu1  ;;  %559 = vst [vmem:[%s941_s3] sm:$0xff] %v527_v23  ;;  %v528_v27 = vadd.f32 %v806_v19, %v248_v21 }
 0x121   :  { %v252_v25 = vpop.f32.mrf.mxu0  ;;  %561 = vst [vmem:[%s941_s3 + $0x10] sm:$0xff] %v529_v24  ;;  %v530_v28 = vadd.f32 %v808_v20, %v361_v22 }
 0x122   :  { %v365_v26 = vpop.f32.mrf.mxu1  ;;  %560 = vst [vmem:[%s941_s3 + $0x8] sm:$0xff] %v528_v27  ;;  %v531_v31 = vadd.f32 %v802_v15, %v252_v25 }
 0x123   :  { %v254_v29 = vpop.f32.mrf.mxu0  ;;  %562 = vst [vmem:[%s941_s3 + $0x18] sm:$0xff] %v530_v28  ;;  %v533_v32 = vadd.f32 %v804_v16, %v365_v26 }
 0x124   :  { %v367_v30 = vpop.f32.mrf.mxu1  ;;  %563 = vst [vmem:[%s941_s3 + $0x20] sm:$0xff] %v531_v31  ;;  %v532_v35 = vadd.f32 %v806_v19, %v254_v29 }
 0x125   :  { %v258_v33 = vpop.f32.mrf.mxu0  ;;  %565 = vst [vmem:[%s941_s3 + $0x30] sm:$0xff] %v533_v32  ;;  %v534_v36 = vadd.f32 %v808_v20, %v367_v30 }
 0x126   :  { %v371_v34 = vpop.f32.mrf.mxu1  ;;  %564 = vst [vmem:[%s941_s3 + $0x28] sm:$0xff] %v532_v35  ;;  %v535_v39 = vadd.f32 %v802_v15, %v258_v33 }
 0x127   :  { %v260_v37 = vpop.f32.mrf.mxu0  ;;  %566 = vst [vmem:[%s941_s3 + $0x38] sm:$0xff] %v534_v36  ;;  %v537_v40 = vadd.f32 %v804_v16, %v371_v34 }
 0x128   :  { %v373_v38 = vpop.f32.mrf.mxu1  ;;  %567 = vst [vmem:[%s941_s3 + $0x40] sm:$0xff] %v535_v39  ;;  %v536_v43 = vadd.f32 %v806_v19, %v260_v37 }
 0x129   :  { %v264_v41 = vpop.f32.mrf.mxu0  ;;  %569 = vst [vmem:[%s941_s3 + $0x50] sm:$0xff] %v537_v40  ;;  %v538_v44 = vadd.f32 %v808_v20, %v373_v38 }
 0x12a   :  { %v377_v42 = vpop.f32.mrf.mxu1  ;;  %568 = vst [vmem:[%s941_s3 + $0x48] sm:$0xff] %v536_v43  ;;  %v539_v47 = vadd.f32 %v802_v15, %v264_v41 }
 0x12b   :  { %v266_v45 = vpop.f32.mrf.mxu0  ;;  %570 = vst [vmem:[%s941_s3 + $0x58] sm:$0xff] %v538_v44  ;;  %v541_v48 = vadd.f32 %v804_v16, %v377_v42 }
 0x12c   :  { %v379_v46 = vpop.f32.mrf.mxu1  ;;  %571 = vst [vmem:[%s941_s3 + $0x60] sm:$0xff] %v539_v47  ;;  %v540_v51 = vadd.f32 %v806_v19, %v266_v45 }
 0x12d   :  { %v270_v49 = vpop.f32.mrf.mxu0  ;;  %573 = vst [vmem:[%s941_s3 + $0x70] sm:$0xff] %v541_v48  ;;  %v542_v52 = vadd.f32 %v808_v20, %v379_v46 }
 0x12e   :  { %v383_v50 = vpop.f32.mrf.mxu1  ;;  %572 = vst [vmem:[%s941_s3 + $0x68] sm:$0xff] %v540_v51  ;;  %v543_v55 = vadd.f32 %v802_v15, %v270_v49 }
 0x12f   :  { %v272_v53 = vpop.f32.mrf.mxu0  ;;  %574 = vst [vmem:[%s941_s3 + $0x78] sm:$0xff] %v542_v52  ;;  %v545_v56 = vadd.f32 %v804_v16, %v383_v50 }
 0x130   :  { %v385_v54 = vpop.f32.mrf.mxu1  ;;  %575 = vst [vmem:[%s941_s3 + $0x80] sm:$0xff] %v543_v55  ;;  %v544_v59 = vadd.f32 %v806_v19, %v272_v53 }
 0x131   :  { %v276_v57 = vpop.f32.mrf.mxu0  ;;  %577 = vst [vmem:[%s941_s3 + $0x90] sm:$0xff] %v545_v56  ;;  %v546_v60 = vadd.f32 %v808_v20, %v385_v54 }
 0x132   :  { %v389_v58 = vpop.f32.mrf.mxu1  ;;  %576 = vst [vmem:[%s941_s3 + $0x88] sm:$0xff] %v544_v59  ;;  %v547_v63 = vadd.f32 %v802_v15, %v276_v57 }
 0x133   :  { %v278_v61 = vpop.f32.mrf.mxu0  ;;  %578 = vst [vmem:[%s941_s3 + $0x98] sm:$0xff] %v546_v60  ;;  %v549_v0 = vadd.f32 %v804_v16, %v389_v58 }
 0x134   :  { %v391_v62 = vpop.f32.mrf.mxu1  ;;  %579 = vst [vmem:[%s941_s3 + $0xa0] sm:$0xff] %v547_v63  ;;  %v548_v3 = vadd.f32 %v806_v19, %v278_v61 }
 0x135   :  { %v282_v1 = vpop.f32.mrf.mxu0  ;;  %581 = vst [vmem:[%s941_s3 + $0xb0] sm:$0xff] %v549_v0  ;;  %v550_v4 = vadd.f32 %v808_v20, %v391_v62 }
 0x136   :  { %v395_v2 = vpop.f32.mrf.mxu1  ;;  %580 = vst [vmem:[%s941_s3 + $0xa8] sm:$0xff] %v548_v3  ;;  %v551_v7 = vadd.f32 %v802_v15, %v282_v1 }
 0x137   :  { %v284_v5 = vpop.f32.mrf.mxu0  ;;  %582 = vst [vmem:[%s941_s3 + $0xb8] sm:$0xff] %v550_v4  ;;  %v553_v8 = vadd.f32 %v804_v16, %v395_v2 }
 0x138   :  { %v397_v6 = vpop.f32.mrf.mxu1  ;;  %583 = vst [vmem:[%s941_s3 + $0xc0] sm:$0xff] %v551_v7  ;;  %v552_v11 = vadd.f32 %v806_v19, %v284_v5 }
 0x139   :  { %v288_v9 = vpop.f32.mrf.mxu0  ;;  %585 = vst [vmem:[%s941_s3 + $0xd0] sm:$0xff] %v553_v8  ;;  %v554_v12 = vadd.f32 %v808_v20, %v397_v6 }
 0x13a   :  { %v401_v10 = vpop.f32.mrf.mxu1  ;;  %584 = vst [vmem:[%s941_s3 + $0xc8] sm:$0xff] %v552_v11  ;;  %v555_v17 = vadd.f32 %v802_v15, %v288_v9 }
 0x13b   :  { %v290_v13 = vpop.f32.mrf.mxu0  ;;  %586 = vst [vmem:[%s941_s3 + $0xd8] sm:$0xff] %v554_v12  ;;  %v557_v18 = vadd.f32 %v804_v16, %v401_v10 }
 0x13c   :  { %v403_v14 = vpop.f32.mrf.mxu1  ;;  %587 = vst [vmem:[%s941_s3 + $0xe0] sm:$0xff] %v555_v17  ;;  %v556_v21 = vadd.f32 %v806_v19, %v290_v13 }
 0x13d   :  { %589 = vst [vmem:[%s941_s3 + $0xf0] sm:$0xff] %v557_v18  ;;  %v558_v22 = vadd.f32 %v808_v20, %v403_v14 }
 0x13e   :  { %588 = vst [vmem:[%s941_s3 + $0xe8] sm:$0xff] %v556_v21 }
 0x13f   :  { %590 = vst [vmem:[%s941_s3 + $0xf8] sm:$0xff] %v558_v22 }
 0x140   :  { %595 = vsyncpa [#allocation3], 1 }
 0x141   :  { %596 = vsyncpa [#allocation5], 1 }

// kernel: lstm_model_forward.7
= control target key start
LH: loop header
LB: loop body
LE: loop exit
PB: predicated region body
PF: predicated region fallthrough
CT: control target
= control target key end

     0   :  { %8 = vsyncpa [#allocation3], 0  ;;  %s702_s12 = smov [#allocation2]   ;;  %s1084_s0 = inlined_call_operand.vmem [shape: f32[64,128], index: 0, kind: input, shape index: {}]   ;;  %s1085_s1 = inlined_call_operand.vmem [shape: f32[512,128], index: 1, kind: input, shape index: {}]   ;;  %s1086_s2 = inlined_call_operand.hbm [shape: f32[1,512], index: 2, kind: input, shape index: {}]   ;;  %s1087_s3 = inlined_call_operand.vmem [shape: f32[64,512], index: 3, kind: output, shape index: {}]  }
   0x1   :  { %s19_s13 = sshll.u32 %s702_s12, 4  ;;  %s20_s13 = int_to_ptr.vmem [resolvable:$true] %s19_s13 }
   0x2   :  { %s688_s14 = scalar_lea.vmem %s20_s13, 64  ;;  %p693_p1 = scmp.lt.s32.totalorder %s20_s13, %s20_s13 }
   0x3   :  { %p689_p0 = scmp.ne.s32.totalorder %s20_s13, %s688_s14  ;;  %p694_p2 = scmp.lt.s32.totalorder %s688_s14, %s688_s14 }
   0x5   :  { %p695_p3 = por %p694_p2, %p693_p1 }
   0x7   :  { %p696_p4 = pnand %p695_p3, %p689_p0 }
   0x9   :  { %699 = shalt.err (!%p696_p4)
}
   0xa   :  { %22 = dma.hbm_to_vmem [thread:$0]  %s1086_s2, 64, %s20_s13, [#allocation3]  }
   0xb   :  { %700 = dma.done.wait [#allocation3], 64  }
   0xc   :  { %701 = vsyncadd [#allocation3], 4294967232  ;;  %v133_v0 = vld [vmem:[%s1085_s1 + $0xf8] sm:$0xff]  ;;  %v132_v4 = vld [vmem:[%s1085_s1 + $0xf0] sm:$0xff] }
   0xd   :  { %v165_v1 = vld [vmem:[%s1085_s1 + $0x1f8] sm:$0xff]  ;;  %582 = vmatprep.subr.mxu0 %v133_v0  ;;  %v164_v5 = vld [vmem:[%s1085_s1 + $0x1f0] sm:$0xff]  ;;  %v131_v8 = vld [vmem:[%s1085_s1 + $0xe8] sm:$0xff] }
   0xe   :  { %v117_v2 = vld [vmem:[%s1085_s1 + $0x78] sm:$0xff]  ;;  %630 = vmatprep.subr.mxu1 %v165_v1  ;;  %v116_v6 = vld [vmem:[%s1085_s1 + $0x70] sm:$0xff]  ;;  %v163_v9 = vld [vmem:[%s1085_s1 + $0x1e8] sm:$0xff] }
   0xf   :  { %v149_v3 = vld [vmem:[%s1085_s1 + $0x178] sm:$0xff]  ;;  %583 = vmatpush3.xpose.msra.mxu0 %v117_v2  ;;  %v148_v7 = vld [vmem:[%s1085_s1 + $0x170] sm:$0xff]  ;;  %v115_v10 = vld [vmem:[%s1085_s1 + $0x68] sm:$0xff] }
  0x10   :  { %631 = vmatpush3.xpose.msra.mxu1 %v149_v3  ;;  %584 = vmatprep.subr.mxu0 %v132_v4  ;;  %v147_v11 = vld [vmem:[%s1085_s1 + $0x168] sm:$0xff]  ;;  %v130_v12 = vld [vmem:[%s1085_s1 + $0xe0] sm:$0xff]  ;;  %v129_v16 = vld [vmem:[%s1085_s1 + $0xd8] sm:$0xff] }
  0x11   :  { %632 = vmatprep.subr.mxu1 %v164_v5  ;;  %v162_v13 = vld [vmem:[%s1085_s1 + $0x1e0] sm:$0xff]  ;;  %v161_v17 = vld [vmem:[%s1085_s1 + $0x1d8] sm:$0xff]  ;;  %v128_v20 = vld [vmem:[%s1085_s1 + $0xd0] sm:$0xff] }
  0x12   :  { %v114_v14 = vld [vmem:[%s1085_s1 + $0x60] sm:$0xff]  ;;  %v113_v18 = vld [vmem:[%s1085_s1 + $0x58] sm:$0xff]  ;;  %v160_v21 = vld [vmem:[%s1085_s1 + $0x1d0] sm:$0xff] }
  0x13   :  { %585 = vmatpush3.xpose.msra.mxu0 %v116_v6  ;;  %v146_v15 = vld [vmem:[%s1085_s1 + $0x160] sm:$0xff]  ;;  %v145_v19 = vld [vmem:[%s1085_s1 + $0x158] sm:$0xff]  ;;  %v112_v22 = vld [vmem:[%s1085_s1 + $0x50] sm:$0xff] }
  0x14   :  { %633 = vmatpush3.xpose.msra.mxu1 %v148_v7  ;;  %586 = vmatprep.subr.mxu0 %v131_v8  ;;  %v144_v23 = vld [vmem:[%s1085_s1 + $0x150] sm:$0xff]  ;;  %v127_v24 = vld [vmem:[%s1085_s1 + $0xc8] sm:$0xff]  ;;  %v807_v26 = vld [vmem:[%s1084_s0] sm:$0xff]  ;;  %v493_v8 = vlaneseq }
  0x15   :  { %634 = vmatprep.subr.mxu1 %v163_v9  ;;  %v159_v25 = vld [vmem:[%s1085_s1 + $0x1c8] sm:$0xff]  ;;  %v126_v29 = vld [vmem:[%s1085_s1 + $0xc0] sm:$0xff]  ;;  %614 = vmatprep.mubr.f32.mxu0 %v807_v26  ;;  %v125_v33 = vld [vmem:[%s1085_s1 + $0xb8] sm:$0xff] }
  0x16   :  { %v111_v27 = vld [vmem:[%s1085_s1 + $0x48] sm:$0xff]  ;;  %v158_v30 = vld [vmem:[%s1085_s1 + $0x1c0] sm:$0xff]  ;;  %662 = vmatprep.mubr.f32.mxu1 %v807_v26  ;;  %v157_v34 = vld [vmem:[%s1085_s1 + $0x1b8] sm:$0xff]  ;;  %v494_v9 = vshrl.u32 %v493_v8, 7 }
  0x17   :  { %587 = vmatpush3.xpose.msra.mxu0 %v115_v10  ;;  %v143_v28 = vld [vmem:[%s1085_s1 + $0x148] sm:$0xff]  ;;  %v110_v31 = vld [vmem:[%s1085_s1 + $0x40] sm:$0xff]  ;;  %v109_v35 = vld [vmem:[%s1085_s1 + $0x38] sm:$0xff] }
  0x18   :  { %635 = vmatpush3.xpose.msra.mxu1 %v147_v11  ;;  %588 = vmatprep.subr.mxu0 %v130_v12  ;;  %v142_v32 = vld [vmem:[%s1085_s1 + $0x140] sm:$0xff]  ;;  %v141_v36 = vld [vmem:[%s1085_s1 + $0x138] sm:$0xff]  ;;  %v124_v37 = vld [vmem:[%s1085_s1 + $0xb0] sm:$0xff]  ;;  %v495_v10 = vsub.s32 0, %v494_v9  ;;  %v503_v11 = vsub.s32 2, %v494_v9 }
  0x19   :  { %636 = vmatprep.subr.mxu1 %v162_v13  ;;  %v156_v38 = vld [vmem:[%s1085_s1 + $0x1b0] sm:$0xff]  ;;  %v123_v41 = vld [vmem:[%s1085_s1 + $0xa8] sm:$0xff]  ;;  %v122_v45 = vld [vmem:[%s1085_s1 + $0xa0] sm:$0xff]  ;;  %v499_v13 = vsub.s32 1, %v494_v9 }
  0x1a   :  { %v108_v39 = vld [vmem:[%s1085_s1 + $0x30] sm:$0xff]  ;;  %v155_v42 = vld [vmem:[%s1085_s1 + $0x1a8] sm:$0xff]  ;;  %v154_v46 = vld [vmem:[%s1085_s1 + $0x1a0] sm:$0xff] }
  0x1b   :  { %589 = vmatpush3.xpose.msra.mxu0 %v114_v14  ;;  %v140_v40 = vld [vmem:[%s1085_s1 + $0x130] sm:$0xff]  ;;  %v107_v43 = vld [vmem:[%s1085_s1 + $0x28] sm:$0xff]  ;;  %v106_v47 = vld [vmem:[%s1085_s1 + $0x20] sm:$0xff]  ;;  %v507_v14 = vsub.s32 3, %v494_v9 }
  0x1c   :  { %637 = vmatpush3.xpose.msra.mxu1 %v146_v15  ;;  %590 = vmatprep.subr.mxu0 %v129_v16  ;;  %v139_v44 = vld [vmem:[%s1085_s1 + $0x128] sm:$0xff]  ;;  %v138_v48 = vld [vmem:[%s1085_s1 + $0x120] sm:$0xff]  ;;  %v121_v49 = vld [vmem:[%s1085_s1 + $0x98] sm:$0xff] }
  0x1d   :  { %638 = vmatprep.subr.mxu1 %v161_v17  ;;  %v153_v50 = vld [vmem:[%s1085_s1 + $0x198] sm:$0xff]  ;;  %v120_v53 = vld [vmem:[%s1085_s1 + $0x90] sm:$0xff]  ;;  %v119_v57 = vld [vmem:[%s1085_s1 + $0x88] sm:$0xff] }
  0x1e   :  { %v105_v51 = vld [vmem:[%s1085_s1 + $0x18] sm:$0xff]  ;;  %v152_v54 = vld [vmem:[%s1085_s1 + $0x190] sm:$0xff]  ;;  %v151_v58 = vld [vmem:[%s1085_s1 + $0x188] sm:$0xff] }
  0x1f   :  { %591 = vmatpush3.xpose.msra.mxu0 %v113_v18  ;;  %v137_v52 = vld [vmem:[%s1085_s1 + $0x118] sm:$0xff]  ;;  %v104_v55 = vld [vmem:[%s1085_s1 + $0x10] sm:$0xff]  ;;  %v103_v59 = vld [vmem:[%s1085_s1 + $0x8] sm:$0xff] }
  0x20   :  { %639 = vmatpush3.xpose.msra.mxu1 %v145_v19  ;;  %592 = vmatprep.subr.mxu0 %v128_v20  ;;  %v136_v56 = vld [vmem:[%s1085_s1 + $0x110] sm:$0xff]  ;;  %v135_v60 = vld [vmem:[%s1085_s1 + $0x108] sm:$0xff]  ;;  %v118_v61 = vld [vmem:[%s1085_s1 + $0x80] sm:$0xff] }
  0x21   :  { %640 = vmatprep.subr.mxu1 %v160_v21  ;;  %v150_v62 = vld [vmem:[%s1085_s1 + $0x180] sm:$0xff]  ;;  %v95_v1 = vld [vmem:[%s1084_s0 + $0x8] sm:$0xff]  ;;  %v96_v2 = vld [vmem:[%s1084_s0 + $0x10] sm:$0xff] }
  0x22   :  { %v102_v63 = vld [vmem:[%s1085_s1] sm:$0xff]  ;;  %v97_v3 = vld [vmem:[%s1084_s0 + $0x18] sm:$0xff]  ;;  %v99_v5 = vld [vmem:[%s1084_s0 + $0x28] sm:$0xff] }
  0x23   :  { %593 = vmatpush3.xpose.msra.mxu0 %v112_v22  ;;  %v134_v0 = vld [vmem:[%s1085_s1 + $0x100] sm:$0xff]  ;;  %v100_v6 = vld [vmem:[%s1084_s0 + $0x30] sm:$0xff]  ;;  %v101_v7 = vld [vmem:[%s1084_s0 + $0x38] sm:$0xff] }
  0x24   :  { %641 = vmatpush3.xpose.msra.mxu1 %v144_v23  ;;  %594 = vmatprep.subr.mxu0 %v127_v24  ;;  %v98_v4 = vld [vmem:[%s1084_s0 + $0x20] sm:$0xff] }
  0x25   :  { %642 = vmatprep.subr.mxu1 %v159_v25  ;;  %v491_v12 = vld [vmem:[#allocation2] sm:$0xf] }
  0x26   :  { %v948_v15 = vrot.slane %v491_v12, %v495_v10  ;;  %v950_v16 = vrot.slane %v491_v12, %v503_v11  ;;  %v952_v19 = vrot.slane %v491_v12, %v499_v13  ;;  %v954_v20 = vrot.slane %v491_v12, %v507_v14 }
  0x27   :  { %595 = vmatpush3.xpose.msra.mxu0 %v111_v27 }
  0x28   :  { %643 = vmatpush3.xpose.msra.mxu1 %v143_v28  ;;  %596 = vmatprep.subr.mxu0 %v126_v29 }
  0x29   :  { %644 = vmatprep.subr.mxu1 %v158_v30 }
  0x2b   :  { %597 = vmatpush3.xpose.msra.mxu0 %v110_v31 }
  0x2c   :  { %645 = vmatpush3.xpose.msra.mxu1 %v142_v32  ;;  %598 = vmatprep.subr.mxu0 %v125_v33 }
  0x2d   :  { %646 = vmatprep.subr.mxu1 %v157_v34 }
  0x2f   :  { %599 = vmatpush3.xpose.msra.mxu0 %v109_v35 }
  0x30   :  { %647 = vmatpush3.xpose.msra.mxu1 %v141_v36  ;;  %600 = vmatprep.subr.mxu0 %v124_v37 }
  0x31   :  { %648 = vmatprep.subr.mxu1 %v156_v38 }
  0x33   :  { %601 = vmatpush3.xpose.msra.mxu0 %v108_v39 }
  0x34   :  { %649 = vmatpush3.xpose.msra.mxu1 %v140_v40  ;;  %602 = vmatprep.subr.mxu0 %v123_v41 }
  0x35   :  { %650 = vmatprep.subr.mxu1 %v155_v42 }
  0x37   :  { %603 = vmatpush3.xpose.msra.mxu0 %v107_v43 }
  0x38   :  { %651 = vmatpush3.xpose.msra.mxu1 %v139_v44  ;;  %604 = vmatprep.subr.mxu0 %v122_v45 }
  0x39   :  { %652 = vmatprep.subr.mxu1 %v154_v46 }
  0x3b   :  { %605 = vmatpush3.xpose.msra.mxu0 %v106_v47 }
  0x3c   :  { %653 = vmatpush3.xpose.msra.mxu1 %v138_v48  ;;  %606 = vmatprep.subr.mxu0 %v121_v49 }
  0x3d   :  { %654 = vmatprep.subr.mxu1 %v153_v50 }
  0x3f   :  { %607 = vmatpush3.xpose.msra.mxu0 %v105_v51 }
  0x40   :  { %655 = vmatpush3.xpose.msra.mxu1 %v137_v52  ;;  %608 = vmatprep.subr.mxu0 %v120_v53 }
  0x41   :  { %656 = vmatprep.subr.mxu1 %v152_v54 }
  0x43   :  { %609 = vmatpush3.xpose.msra.mxu0 %v104_v55 }
  0x44   :  { %657 = vmatpush3.xpose.msra.mxu1 %v136_v56  ;;  %610 = vmatprep.subr.mxu0 %v119_v57 }
  0x45   :  { %658 = vmatprep.subr.mxu1 %v151_v58 }
  0x47   :  { %611 = vmatpush3.xpose.msra.mxu0 %v103_v59 }
  0x48   :  { %659 = vmatpush3.xpose.msra.mxu1 %v135_v60  ;;  %612 = vmatprep.subr.mxu0 %v118_v61 }
  0x49   :  { %660 = vmatprep.subr.mxu1 %v150_v62 }
  0x4b   :  { %613 = vmatpush3.xpose.msra.mxu0 %v102_v63 }
  0x4c   :  { %661 = vmatpush3.xpose.msra.mxu1 %v134_v0 }
  0x4e   :  { %615 = vmatmul.mubr.f32.vlgmr.msra.gmra.mxu0 %v807_v26 }
  0x4f   :  { %663 = vmatmul.mubr.f32.vlgmr.msra.gmra.mxu1 %v807_v26  ;;  %616 = vmatprep.mubr.f32.mxu0 %v95_v1 }
  0x50   :  { %664 = vmatprep.mubr.f32.mxu1 %v95_v1 }
  0x52   :  { %617 = vmatmul.mubr.f32.gmra.mxu0 %v95_v1 }
  0x53   :  { %665 = vmatmul.mubr.f32.gmra.mxu1 %v95_v1  ;;  %618 = vmatprep.mubr.f32.mxu0 %v96_v2 }
  0x54   :  { %666 = vmatprep.mubr.f32.mxu1 %v96_v2 }
  0x56   :  { %619 = vmatmul.mubr.f32.gmra.mxu0 %v96_v2 }
  0x57   :  { %667 = vmatmul.mubr.f32.gmra.mxu1 %v96_v2  ;;  %620 = vmatprep.mubr.f32.mxu0 %v97_v3 }
  0x58   :  { %668 = vmatprep.mubr.f32.mxu1 %v97_v3 }
  0x5a   :  { %621 = vmatmul.mubr.f32.gmra.mxu0 %v97_v3 }
  0x5b   :  { %669 = vmatmul.mubr.f32.gmra.mxu1 %v97_v3  ;;  %622 = vmatprep.mubr.f32.mxu0 %v98_v4 }
  0x5c   :  { %670 = vmatprep.mubr.f32.mxu1 %v98_v4 }
  0x5e   :  { %623 = vmatmul.mubr.f32.gmra.mxu0 %v98_v4 }
  0x5f   :  { %671 = vmatmul.mubr.f32.gmra.mxu1 %v98_v4  ;;  %624 = vmatprep.mubr.f32.mxu0 %v99_v5 }
  0x60   :  { %672 = vmatprep.mubr.f32.mxu1 %v99_v5 }
  0x62   :  { %625 = vmatmul.mubr.f32.gmra.mxu0 %v99_v5 }
  0x63   :  { %673 = vmatmul.mubr.f32.gmra.mxu1 %v99_v5  ;;  %626 = vmatprep.mubr.f32.mxu0 %v100_v6 }
  0x64   :  { %674 = vmatprep.mubr.f32.mxu1 %v100_v6 }
  0x66   :  { %627 = vmatmul.mubr.f32.gmra.mxu0 %v100_v6 }
  0x67   :  { %675 = vmatmul.mubr.f32.gmra.mxu1 %v100_v6  ;;  %628 = vmatprep.mubr.f32.mxu0 %v101_v7 }
  0x68   :  { %676 = vmatprep.mubr.f32.mxu1 %v101_v7 }
  0x6a   :  { %629 = vmatmul.mubr.f32.gmra.mxu0 %v101_v7 }
  0x6b   :  { %677 = vmatmul.mubr.f32.gmra.mxu1 %v101_v7 }
 0x10e   :  { %v232_v17 = vpop.f32.mrf.mxu0 }
 0x10f   :  { %v345_v18 = vpop.f32.mrf.mxu1  ;;  %v513_v23 = vadd.f32 %v948_v15, %v232_v17 }
 0x110   :  { %v234_v21 = vpop.f32.mrf.mxu0  ;;  %v515_v24 = vadd.f32 %v950_v16, %v345_v18 }
 0x111   :  { %v347_v22 = vpop.f32.mrf.mxu1  ;;  %545 = vst [vmem:[%s1087_s3] sm:$0xff] %v513_v23  ;;  %v514_v27 = vadd.f32 %v952_v19, %v234_v21 }
 0x112   :  { %v238_v25 = vpop.f32.mrf.mxu0  ;;  %547 = vst [vmem:[%s1087_s3 + $0x10] sm:$0xff] %v515_v24  ;;  %v516_v28 = vadd.f32 %v954_v20, %v347_v22 }
 0x113   :  { %v351_v26 = vpop.f32.mrf.mxu1  ;;  %546 = vst [vmem:[%s1087_s3 + $0x8] sm:$0xff] %v514_v27  ;;  %v517_v31 = vadd.f32 %v948_v15, %v238_v25 }
 0x114   :  { %v240_v29 = vpop.f32.mrf.mxu0  ;;  %548 = vst [vmem:[%s1087_s3 + $0x18] sm:$0xff] %v516_v28  ;;  %v519_v32 = vadd.f32 %v950_v16, %v351_v26 }
 0x115   :  { %v353_v30 = vpop.f32.mrf.mxu1  ;;  %549 = vst [vmem:[%s1087_s3 + $0x20] sm:$0xff] %v517_v31  ;;  %v518_v35 = vadd.f32 %v952_v19, %v240_v29 }
 0x116   :  { %v244_v33 = vpop.f32.mrf.mxu0  ;;  %551 = vst [vmem:[%s1087_s3 + $0x30] sm:$0xff] %v519_v32  ;;  %v520_v36 = vadd.f32 %v954_v20, %v353_v30 }
 0x117   :  { %v357_v34 = vpop.f32.mrf.mxu1  ;;  %550 = vst [vmem:[%s1087_s3 + $0x28] sm:$0xff] %v518_v35  ;;  %v521_v39 = vadd.f32 %v948_v15, %v244_v33 }
 0x118   :  { %v246_v37 = vpop.f32.mrf.mxu0  ;;  %552 = vst [vmem:[%s1087_s3 + $0x38] sm:$0xff] %v520_v36  ;;  %v523_v40 = vadd.f32 %v950_v16, %v357_v34 }
 0x119   :  { %v359_v38 = vpop.f32.mrf.mxu1  ;;  %553 = vst [vmem:[%s1087_s3 + $0x40] sm:$0xff] %v521_v39  ;;  %v522_v43 = vadd.f32 %v952_v19, %v246_v37 }
 0x11a   :  { %v250_v41 = vpop.f32.mrf.mxu0  ;;  %555 = vst [vmem:[%s1087_s3 + $0x50] sm:$0xff] %v523_v40  ;;  %v524_v44 = vadd.f32 %v954_v20, %v359_v38 }
 0x11b   :  { %v363_v42 = vpop.f32.mrf.mxu1  ;;  %554 = vst [vmem:[%s1087_s3 + $0x48] sm:$0xff] %v522_v43  ;;  %v525_v47 = vadd.f32 %v948_v15, %v250_v41 }
 0x11c   :  { %v252_v45 = vpop.f32.mrf.mxu0  ;;  %556 = vst [vmem:[%s1087_s3 + $0x58] sm:$0xff] %v524_v44  ;;  %v527_v48 = vadd.f32 %v950_v16, %v363_v42 }
 0x11d   :  { %v365_v46 = vpop.f32.mrf.mxu1  ;;  %557 = vst [vmem:[%s1087_s3 + $0x60] sm:$0xff] %v525_v47  ;;  %v526_v51 = vadd.f32 %v952_v19, %v252_v45 }
 0x11e   :  { %v256_v49 = vpop.f32.mrf.mxu0  ;;  %559 = vst [vmem:[%s1087_s3 + $0x70] sm:$0xff] %v527_v48  ;;  %v528_v52 = vadd.f32 %v954_v20, %v365_v46 }
 0x11f   :  { %v369_v50 = vpop.f32.mrf.mxu1  ;;  %558 = vst [vmem:[%s1087_s3 + $0x68] sm:$0xff] %v526_v51  ;;  %v529_v55 = vadd.f32 %v948_v15, %v256_v49 }
 0x120   :  { %v258_v53 = vpop.f32.mrf.mxu0  ;;  %560 = vst [vmem:[%s1087_s3 + $0x78] sm:$0xff] %v528_v52  ;;  %v531_v56 = vadd.f32 %v950_v16, %v369_v50 }
 0x121   :  { %v371_v54 = vpop.f32.mrf.mxu1  ;;  %561 = vst [vmem:[%s1087_s3 + $0x80] sm:$0xff] %v529_v55  ;;  %v530_v59 = vadd.f32 %v952_v19, %v258_v53 }
 0x122   :  { %v262_v57 = vpop.f32.mrf.mxu0  ;;  %563 = vst [vmem:[%s1087_s3 + $0x90] sm:$0xff] %v531_v56  ;;  %v532_v60 = vadd.f32 %v954_v20, %v371_v54 }
 0x123   :  { %v375_v58 = vpop.f32.mrf.mxu1  ;;  %562 = vst [vmem:[%s1087_s3 + $0x88] sm:$0xff] %v530_v59  ;;  %v533_v63 = vadd.f32 %v948_v15, %v262_v57 }
 0x124   :  { %v264_v61 = vpop.f32.mrf.mxu0  ;;  %564 = vst [vmem:[%s1087_s3 + $0x98] sm:$0xff] %v532_v60  ;;  %v535_v0 = vadd.f32 %v950_v16, %v375_v58 }
 0x125   :  { %v377_v62 = vpop.f32.mrf.mxu1  ;;  %565 = vst [vmem:[%s1087_s3 + $0xa0] sm:$0xff] %v533_v63  ;;  %v534_v3 = vadd.f32 %v952_v19, %v264_v61 }
 0x126   :  { %v268_v1 = vpop.f32.mrf.mxu0  ;;  %567 = vst [vmem:[%s1087_s3 + $0xb0] sm:$0xff] %v535_v0  ;;  %v536_v4 = vadd.f32 %v954_v20, %v377_v62 }
 0x127   :  { %v381_v2 = vpop.f32.mrf.mxu1  ;;  %566 = vst [vmem:[%s1087_s3 + $0xa8] sm:$0xff] %v534_v3  ;;  %v537_v7 = vadd.f32 %v948_v15, %v268_v1 }
 0x128   :  { %v270_v5 = vpop.f32.mrf.mxu0  ;;  %568 = vst [vmem:[%s1087_s3 + $0xb8] sm:$0xff] %v536_v4  ;;  %v539_v8 = vadd.f32 %v950_v16, %v381_v2 }
 0x129   :  { %v383_v6 = vpop.f32.mrf.mxu1  ;;  %569 = vst [vmem:[%s1087_s3 + $0xc0] sm:$0xff] %v537_v7  ;;  %v538_v11 = vadd.f32 %v952_v19, %v270_v5 }
 0x12a   :  { %v274_v9 = vpop.f32.mrf.mxu0  ;;  %571 = vst [vmem:[%s1087_s3 + $0xd0] sm:$0xff] %v539_v8  ;;  %v540_v12 = vadd.f32 %v954_v20, %v383_v6 }
 0x12b   :  { %v387_v10 = vpop.f32.mrf.mxu1  ;;  %570 = vst [vmem:[%s1087_s3 + $0xc8] sm:$0xff] %v538_v11  ;;  %v541_v17 = vadd.f32 %v948_v15, %v274_v9 }
 0x12c   :  { %v276_v13 = vpop.f32.mrf.mxu0  ;;  %572 = vst [vmem:[%s1087_s3 + $0xd8] sm:$0xff] %v540_v12  ;;  %v543_v18 = vadd.f32 %v950_v16, %v387_v10 }
 0x12d   :  { %v389_v14 = vpop.f32.mrf.mxu1  ;;  %573 = vst [vmem:[%s1087_s3 + $0xe0] sm:$0xff] %v541_v17  ;;  %v542_v21 = vadd.f32 %v952_v19, %v276_v13 }
 0x12e   :  { %575 = vst [vmem:[%s1087_s3 + $0xf0] sm:$0xff] %v543_v18  ;;  %v544_v22 = vadd.f32 %v954_v20, %v389_v14 }
 0x12f   :  { %574 = vst [vmem:[%s1087_s3 + $0xe8] sm:$0xff] %v542_v21 }
 0x130   :  { %576 = vst [vmem:[%s1087_s3 + $0xf8] sm:$0xff] %v544_v22 }
 0x131   :  { %581 = vsyncpa [#allocation3], 1 }

// kernel: lstm_model_forward.8
= control target key start
LH: loop header
LB: loop body
LE: loop exit
PB: predicated region body
PF: predicated region fallthrough
CT: control target
= control target key end

     0   :  { %7 = vsyncpa [#allocation5], 0  ;;  %s1823_s9 = smov [#allocation4]   ;;  %s2775_s0 = inlined_call_operand.vmem [shape: f32[8,8,512], index: 0, kind: input, shape index: {}]   ;;  %s2776_s1 = inlined_call_operand.hbm [shape: f32[128,512], index: 1, kind: input, shape index: {}]   ;;  %s2777_s2 = inlined_call_operand.vmem [shape: f32[8,8,128], index: 2, kind: output, shape index: {}]  }
   0x1   :  { %s15_s10 = sshll.u32 %s1823_s9, 4  ;;  %s16_s10 = int_to_ptr.vmem [resolvable:$true] %s15_s10 }
   0x2   :  { %s1809_s11 = scalar_lea.vmem %s16_s10, 8192  ;;  %p1814_p1 = scmp.lt.s32.totalorder %s16_s10, %s16_s10 }
   0x3   :  { %p1810_p0 = scmp.ne.s32.totalorder %s16_s10, %s1809_s11  ;;  %p1815_p2 = scmp.lt.s32.totalorder %s1809_s11, %s1809_s11 }
   0x5   :  { %p1816_p3 = por %p1815_p2, %p1814_p1 }
   0x7   :  { %p1817_p4 = pnand %p1816_p3, %p1810_p0 }
   0x9   :  { %1820 = shalt.err (!%p1817_p4)
}
   0xa   :  { %s1824_s12 = smov 512   ;;  %s1825_s13 = smov 32  }
   0xb   :  { %21 = dma.hbm_to_vmem [thread:$0]  %s2776_s1, 8192, %s16_s10, [#allocation5], %s1824_s12, %s1824_s12, %s1825_s13  }
   0xc   :  { %1821 = dma.done.wait [#allocation5], 8192  }
   0xd   :  { %1822 = vsyncadd [#allocation5], 4294959104  ;;  %v2780_v0 = vmov 0.0   ;;  %v1847_v1 = vld [vmem:[#allocation4 + $0x1e8] sm:$0xff]  ;;  %v1849_v2 = vld [vmem:[#allocation4 + $0x1e0] sm:$0xff] }
   0xe   :  { %164 = vmatprep.mubr.f32.mxu0 %v2780_v0  ;;  %235 = vmatprep.mubr.f32.mxu1 %v2780_v0  ;;  %2845 = vst [vmem:[#allocation7_spill] sm:$0xff] %v1847_v1  ;;  %v1851_v3 = vld [vmem:[#allocation4 + $0x1c8] sm:$0xff]  ;;  %v1854_v4 = vld [vmem:[#allocation4 + $0x1c0] sm:$0xff]  ;;  %v1868_v9 = vld [vmem:[#allocation4 + $0x1f8] sm:$0xff] }
   0xf   :  { %100 = vmatprep.subr.mxu0 %v1847_v1  ;;  %v1857_v5 = vld [vmem:[#allocation4 + $0x1a8] sm:$0xff]  ;;  %v1860_v6 = vld [vmem:[#allocation4 + $0x1a0] sm:$0xff]  ;;  %2846 = vst [vmem:[#allocation8_spill] sm:$0xff] %v1868_v9  ;;  %171 = vmatprep.subr.mxu1 %v1868_v9  ;;  %v1874_v11 = vld [vmem:[#allocation4 + $0x1f0] sm:$0xff] }
  0x10   :  { %101 = vmatpush1.msra.mxu0 %v1849_v2  ;;  %v1863_v7 = vld [vmem:[#allocation4 + $0x188] sm:$0xff]  ;;  %v1866_v8 = vld [vmem:[#allocation4 + $0x180] sm:$0xff]  ;;  %172 = vmatpush1.msra.mxu1 %v1874_v11  ;;  %v1880_v13 = vld [vmem:[#allocation4 + $0x1d8] sm:$0xff] }
  0x11   :  { %102 = vmatprep.subr.mxu0 %v1851_v3  ;;  %v1871_v10 = vld [vmem:[#allocation4 + $0x168] sm:$0xff]  ;;  %v1877_v12 = vld [vmem:[#allocation4 + $0x160] sm:$0xff]  ;;  %v1882_v14 = vld [vmem:[#allocation4 + $0x1d0] sm:$0xff]  ;;  %173 = vmatprep.subr.mxu1 %v1880_v13 }
  0x12   :  { %103 = vmatpush1.msra.mxu0 %v1854_v4  ;;  %v1885_v15 = vld [vmem:[#allocation4 + $0x148] sm:$0xff]  ;;  %v1888_v16 = vld [vmem:[#allocation4 + $0x1b8] sm:$0xff]  ;;  %v1891_v17 = vld [vmem:[#allocation4 + $0x140] sm:$0xff]  ;;  %174 = vmatpush1.msra.mxu1 %v1882_v14 }
  0x13   :  { %104 = vmatprep.subr.mxu0 %v1857_v5  ;;  %v1894_v18 = vld [vmem:[#allocation4 + $0x1b0] sm:$0xff]  ;;  %v1896_v19 = vld [vmem:[#allocation4 + $0x198] sm:$0xff]  ;;  %v1899_v20 = vld [vmem:[#allocation4 + $0x128] sm:$0xff]  ;;  %175 = vmatprep.subr.mxu1 %v1888_v16 }
  0x14   :  { %105 = vmatpush1.msra.mxu0 %v1860_v6  ;;  %v1902_v21 = vld [vmem:[#allocation4 + $0x190] sm:$0xff]  ;;  %v1905_v22 = vld [vmem:[#allocation4 + $0x120] sm:$0xff]  ;;  %176 = vmatpush1.msra.mxu1 %v1894_v18  ;;  %v1908_v23 = vld [vmem:[#allocation4 + $0x178] sm:$0xff] }
  0x15   :  { %106 = vmatprep.subr.mxu0 %v1863_v7  ;;  %v1911_v24 = vld [vmem:[#allocation4 + $0x108] sm:$0xff]  ;;  %177 = vmatprep.subr.mxu1 %v1896_v19  ;;  %v1914_v25 = vld [vmem:[#allocation4 + $0x170] sm:$0xff]  ;;  %v1917_v26 = vld [vmem:[#allocation4 + $0x100] sm:$0xff] }
  0x16   :  { %107 = vmatpush1.msra.mxu0 %v1866_v8  ;;  %178 = vmatpush1.msra.mxu1 %v1902_v21  ;;  %v1920_v27 = vld [vmem:[#allocation4 + $0x158] sm:$0xff]  ;;  %v1923_v28 = vld [vmem:[#allocation4 + $0xe8] sm:$0xff]  ;;  %v1926_v29 = vld [vmem:[#allocation4 + $0x150] sm:$0xff] }
  0x17   :  { %108 = vmatprep.subr.mxu0 %v1871_v10  ;;  %179 = vmatprep.subr.mxu1 %v1908_v23  ;;  %v1929_v30 = vld [vmem:[#allocation4 + $0xe0] sm:$0xff]  ;;  %v1932_v31 = vld [vmem:[#allocation4 + $0x138] sm:$0xff]  ;;  %v1935_v32 = vld [vmem:[#allocation4 + $0xc8] sm:$0xff] }
  0x18   :  { %109 = vmatpush1.msra.mxu0 %v1877_v12  ;;  %180 = vmatpush1.msra.mxu1 %v1914_v25  ;;  %v1938_v33 = vld [vmem:[#allocation4 + $0x130] sm:$0xff]  ;;  %v1941_v34 = vld [vmem:[#allocation4 + $0xc0] sm:$0xff]  ;;  %v1944_v35 = vld [vmem:[#allocation4 + $0x118] sm:$0xff] }
  0x19   :  { %110 = vmatprep.subr.mxu0 %v1885_v15  ;;  %181 = vmatprep.subr.mxu1 %v1920_v27  ;;  %v1947_v36 = vld [vmem:[#allocation4 + $0xa8] sm:$0xff]  ;;  %v1950_v37 = vld [vmem:[#allocation4 + $0x110] sm:$0xff]  ;;  %v1953_v38 = vld [vmem:[#allocation4 + $0xa0] sm:$0xff] }
  0x1a   :  { %111 = vmatpush1.msra.mxu0 %v1891_v17  ;;  %182 = vmatpush1.msra.mxu1 %v1926_v29  ;;  %v1956_v39 = vld [vmem:[#allocation4 + $0xf8] sm:$0xff]  ;;  %v1959_v40 = vld [vmem:[#allocation4 + $0x88] sm:$0xff]  ;;  %v1962_v41 = vld [vmem:[#allocation4 + $0xf0] sm:$0xff] }
  0x1b   :  { %112 = vmatprep.subr.mxu0 %v1899_v20  ;;  %183 = vmatprep.subr.mxu1 %v1932_v31  ;;  %v1965_v42 = vld [vmem:[#allocation4 + $0x80] sm:$0xff]  ;;  %v1968_v43 = vld [vmem:[#allocation4 + $0xd8] sm:$0xff]  ;;  %v1971_v44 = vld [vmem:[#allocation4 + $0x68] sm:$0xff] }
  0x1c   :  { %113 = vmatpush1.msra.mxu0 %v1905_v22  ;;  %184 = vmatpush1.msra.mxu1 %v1938_v33  ;;  %2847 = vst [vmem:[#allocation9_spill] sm:$0xff] %v1971_v44  ;;  %v1974_v45 = vld [vmem:[#allocation4 + $0xd0] sm:$0xff]  ;;  %v1977_v46 = vld [vmem:[#allocation4 + $0x60] sm:$0xff]  ;;  %v1980_v47 = vld [vmem:[#allocation4 + $0xb8] sm:$0xff] }
  0x1d   :  { %114 = vmatprep.subr.mxu0 %v1911_v24  ;;  %185 = vmatprep.subr.mxu1 %v1944_v35  ;;  %2848 = vst [vmem:[#allocation10_spill] sm:$0xff] %v1977_v46  ;;  %v1983_v48 = vld [vmem:[#allocation4 + $0x48] sm:$0xff]  ;;  %v1986_v49 = vld [vmem:[#allocation4 + $0xb0] sm:$0xff]  ;;  %v1989_v50 = vld [vmem:[#allocation4 + $0x40] sm:$0xff] }
  0x1e   :  { %115 = vmatpush1.msra.mxu0 %v1917_v26  ;;  %186 = vmatpush1.msra.mxu1 %v1950_v37  ;;  %2849 = vst [vmem:[#allocation11_spill] sm:$0xff] %v1983_v48  ;;  %2850 = vst [vmem:[#allocation12_spill] sm:$0xff] %v1989_v50  ;;  %v1992_v51 = vld [vmem:[#allocation4 + $0x98] sm:$0xff]  ;;  %v1995_v52 = vld [vmem:[#allocation4 + $0x28] sm:$0xff] }
  0x1f   :  { %116 = vmatprep.subr.mxu0 %v1923_v28  ;;  %187 = vmatprep.subr.mxu1 %v1956_v39  ;;  %2851 = vst [vmem:[#allocation13_spill] sm:$0xff] %v1995_v52  ;;  %v1998_v53 = vld [vmem:[#allocation4 + $0x90] sm:$0xff]  ;;  %v2001_v54 = vld [vmem:[#allocation4 + $0x20] sm:$0xff]  ;;  %v2004_v55 = vld [vmem:[#allocation4 + $0x78] sm:$0xff] }
  0x20   :  { %117 = vmatpush1.msra.mxu0 %v1929_v30  ;;  %188 = vmatpush1.msra.mxu1 %v1962_v41  ;;  %2852 = vst [vmem:[#allocation14_spill] sm:$0xff] %v1998_v53  ;;  %2853 = vst [vmem:[#allocation15_spill] sm:$0xff] %v2001_v54  ;;  %v2007_v56 = vld [vmem:[#allocation4 + $0x8] sm:$0xff]  ;;  %v2010_v57 = vld [vmem:[#allocation4 + $0x70] sm:$0xff] }
  0x21   :  { %118 = vmatprep.subr.mxu0 %v1935_v32  ;;  %189 = vmatprep.subr.mxu1 %v1968_v43  ;;  %2854 = vst [vmem:[#allocation16_spill] sm:$0xff] %v2004_v55  ;;  %2855 = vst [vmem:[#allocation17_spill] sm:$0xff] %v2007_v56  ;;  %v2013_v58 = vld [vmem:[#allocation4] sm:$0xff]  ;;  %v2016_v59 = vld [vmem:[#allocation4 + $0x58] sm:$0xff] }
  0x22   :  { %119 = vmatpush1.msra.mxu0 %v1941_v34  ;;  %190 = vmatpush1.msra.mxu1 %v1974_v45  ;;  %2856 = vst [vmem:[#allocation18_spill] sm:$0xff] %v2010_v57  ;;  %2857 = vst [vmem:[#allocation19_spill] sm:$0xff] %v2013_v58  ;;  %v2020_v60 = vld [vmem:[#allocation4 + $0x50] sm:$0xff]  ;;  %v2024_v61 = vld [vmem:[#allocation4 + $0x38] sm:$0xff] }
  0x23   :  { %120 = vmatprep.subr.mxu0 %v1947_v36  ;;  %191 = vmatprep.subr.mxu1 %v1980_v47  ;;  %2858 = vst [vmem:[#allocation20_spill] sm:$0xff] %v2016_v59  ;;  %2859 = vst [vmem:[#allocation21_spill] sm:$0xff] %v2020_v60  ;;  %v2028_v62 = vld [vmem:[#allocation4 + $0x30] sm:$0xff]  ;;  %v2032_v63 = vld [vmem:[#allocation4 + $0x18] sm:$0xff] }
  0x24   :  { %121 = vmatpush1.msra.mxu0 %v1953_v38  ;;  %192 = vmatpush1.msra.mxu1 %v1986_v49  ;;  %2860 = vst [vmem:[#allocation22_spill] sm:$0xff] %v2024_v61  ;;  %2861 = vst [vmem:[#allocation23_spill] sm:$0xff] %v2028_v62 }
  0x25   :  { %122 = vmatprep.subr.mxu0 %v1959_v40  ;;  %193 = vmatprep.subr.mxu1 %v1992_v51  ;;  %2862 = vst [vmem:[#allocation24_spill] sm:$0xff] %v2032_v63 }
  0x26   :  { %123 = vmatpush1.msra.mxu0 %v1965_v42  ;;  %194 = vmatpush1.msra.mxu1 %v1998_v53 }
  0x27   :  { %124 = vmatprep.subr.mxu0 %v1971_v44  ;;  %195 = vmatprep.subr.mxu1 %v2004_v55 }
  0x28   :  { %125 = vmatpush1.msra.mxu0 %v1977_v46  ;;  %196 = vmatpush1.msra.mxu1 %v2010_v57 }
  0x29   :  { %126 = vmatprep.subr.mxu0 %v1983_v48  ;;  %197 = vmatprep.subr.mxu1 %v2016_v59 }
  0x2a   :  { %127 = vmatpush1.msra.mxu0 %v1989_v50  ;;  %198 = vmatpush1.msra.mxu1 %v2020_v60 }
  0x2b   :  { %128 = vmatprep.subr.mxu0 %v1995_v52  ;;  %199 = vmatprep.subr.mxu1 %v2024_v61 }
  0x2c   :  { %129 = vmatpush1.msra.mxu0 %v2001_v54  ;;  %v2035_v54 = vld [vmem:[#allocation4 + $0x10] sm:$0xff]  ;;  %200 = vmatpush1.msra.mxu1 %v2028_v62 }
  0x2d   :  { %130 = vmatprep.subr.mxu0 %v2007_v56  ;;  %2863 = vst [vmem:[#allocation25_spill] sm:$0xff] %v2035_v54  ;;  %201 = vmatprep.subr.mxu1 %v2032_v63 }
  0x2e   :  { %131 = vmatpush1.msra.mxu0 %v2013_v58  ;;  %202 = vmatpush1.msra.mxu1 %v2035_v54 }
  0x2f   :  { %165 = vmatmul.mubr.f32.vlgmr.msra.gmra.mxu0 %v2780_v0  ;;  %280 = vmatprep.subr.mxu0 %v1847_v1 }
  0x30   :  { %281 = vmatpush1.msra.mxu0 %v1849_v2  ;;  %236 = vmatmul.mubr.f32.vlgmr.msra.gmra.mxu1 %v2780_v0  ;;  %v2864_v0 = vld [vmem:[#allocation15_spill] sm:$0xff] }
  0x31   :  { %282 = vmatprep.subr.mxu0 %v1851_v3  ;;  %351 = vmatprep.subr.mxu1 %v1868_v9 }
  0x32   :  { %283 = vmatpush1.msra.mxu0 %v1854_v4  ;;  %352 = vmatpush1.msra.mxu1 %v1874_v11 }
  0x33   :  { %284 = vmatprep.subr.mxu0 %v1857_v5  ;;  %353 = vmatprep.subr.mxu1 %v1880_v13 }
  0x34   :  { %285 = vmatpush1.msra.mxu0 %v1860_v6  ;;  %354 = vmatpush1.msra.mxu1 %v1882_v14 }
  0x35   :  { %286 = vmatprep.subr.mxu0 %v1863_v7  ;;  %355 = vmatprep.subr.mxu1 %v1888_v16 }
  0x36   :  { %287 = vmatpush1.msra.mxu0 %v1866_v8  ;;  %356 = vmatpush1.msra.mxu1 %v1894_v18 }
  0x37   :  { %288 = vmatprep.subr.mxu0 %v1871_v10  ;;  %357 = vmatprep.subr.mxu1 %v1896_v19 }
  0x38   :  { %289 = vmatpush1.msra.mxu0 %v1877_v12  ;;  %358 = vmatpush1.msra.mxu1 %v1902_v21 }
  0x39   :  { %290 = vmatprep.subr.mxu0 %v1885_v15  ;;  %359 = vmatprep.subr.mxu1 %v1908_v23 }
  0x3a   :  { %291 = vmatpush1.msra.mxu0 %v1891_v17  ;;  %360 = vmatpush1.msra.mxu1 %v1914_v25 }
  0x3b   :  { %292 = vmatprep.subr.mxu0 %v1899_v20  ;;  %361 = vmatprep.subr.mxu1 %v1920_v27 }
  0x3c   :  { %293 = vmatpush1.msra.mxu0 %v1905_v22  ;;  %362 = vmatpush1.msra.mxu1 %v1926_v29 }
  0x3d   :  { %294 = vmatprep.subr.mxu0 %v1911_v24  ;;  %363 = vmatprep.subr.mxu1 %v1932_v31 }
  0x3e   :  { %295 = vmatpush1.msra.mxu0 %v1917_v26  ;;  %364 = vmatpush1.msra.mxu1 %v1938_v33 }
  0x3f   :  { %296 = vmatprep.subr.mxu0 %v1923_v28  ;;  %365 = vmatprep.subr.mxu1 %v1944_v35 }
  0x40   :  { %297 = vmatpush1.msra.mxu0 %v1929_v30  ;;  %366 = vmatpush1.msra.mxu1 %v1950_v37 }
  0x41   :  { %298 = vmatprep.subr.mxu0 %v1935_v32  ;;  %367 = vmatprep.subr.mxu1 %v1956_v39 }
  0x42   :  { %299 = vmatpush1.msra.mxu0 %v1941_v34  ;;  %368 = vmatpush1.msra.mxu1 %v1962_v41 }
  0x43   :  { %300 = vmatprep.subr.mxu0 %v1947_v36  ;;  %369 = vmatprep.subr.mxu1 %v1968_v43 }
  0x44   :  { %301 = vmatpush1.msra.mxu0 %v1953_v38  ;;  %370 = vmatpush1.msra.mxu1 %v1974_v45 }
  0x45   :  { %302 = vmatprep.subr.mxu0 %v1959_v40  ;;  %371 = vmatprep.subr.mxu1 %v1980_v47 }
  0x46   :  { %303 = vmatpush1.msra.mxu0 %v1965_v42  ;;  %372 = vmatpush1.msra.mxu1 %v1986_v49 }
  0x47   :  { %304 = vmatprep.subr.mxu0 %v1971_v44  ;;  %373 = vmatprep.subr.mxu1 %v1992_v51 }
  0x48   :  { %305 = vmatpush1.msra.mxu0 %v1977_v46  ;;  %374 = vmatpush1.msra.mxu1 %v1998_v53 }
  0x49   :  { %306 = vmatprep.subr.mxu0 %v1983_v48  ;;  %375 = vmatprep.subr.mxu1 %v2004_v55  ;;  %v2865_v48 = vmov 0.0  }
  0x4a   :  { %307 = vmatpush1.msra.mxu0 %v1989_v50  ;;  %376 = vmatpush1.msra.mxu1 %v2010_v57 }
  0x4b   :  { %308 = vmatprep.subr.mxu0 %v1995_v52  ;;  %377 = vmatprep.subr.mxu1 %v2016_v59 }
  0x4c   :  { %309 = vmatpush1.msra.mxu0 %v2864_v0  ;;  %378 = vmatpush1.msra.mxu1 %v2020_v60  ;;  %v98_v60 = vld [vmem:[%s2775_s0 + $0x10] sm:$0xff] }
  0x4d   :  { %310 = vmatprep.subr.mxu0 %v2007_v56  ;;  %379 = vmatprep.subr.mxu1 %v2024_v61  ;;  %v96_v56 = vld [vmem:[%s2775_s0] sm:$0xff] }
  0x4e   :  { %311 = vmatpush1.msra.mxu0 %v2013_v58  ;;  %380 = vmatpush1.msra.mxu1 %v2028_v62  ;;  %v97_v58 = vld [vmem:[%s2775_s0 + $0x8] sm:$0xff] }
  0x4f   :  { %344 = vmatprep.mubr.f32.mxu0 %v2865_v48  ;;  %381 = vmatprep.subr.mxu1 %v2032_v63 }
  0x50   :  { %415 = vmatprep.mubr.f32.mxu1 %v2865_v48  ;;  %382 = vmatpush1.msra.mxu1 %v2035_v54 }
  0x51   :  { %461 = vmatprep.subr.mxu0 %v1847_v1  ;;  %532 = vmatprep.subr.mxu1 %v1868_v9  ;;  %v99_v9 = vld [vmem:[%s2775_s0 + $0x18] sm:$0xff] }
  0xef   :  { %v166_v0 = vpop.f32.mrf.mxu0 }
  0xf0   :  { %v242_v62 = vadd.f32 %v166_v0, %v96_v56  ;;  %v237_v54 = vpop.f32.mrf.mxu1 }
  0xf1   :  { %v168_v61 = vpop.f32.mrf.mxu0  ;;  %v244_v59 = vadd.f32 %v237_v54, %v98_v60  ;;  %v2868_v54 = vld [vmem:[#allocation16_spill] sm:$0xff] }
  0xf2   :  { %v1546_v63 = vmul.f32 -1.442695, %v242_v62  ;;  %v243_v52 = vadd.f32 %v168_v61, %v97_v58  ;;  %v239_v1 = vpop.f32.mrf.mxu1  ;;  %v2872_v60 = vld [vmem:[#allocation20_spill] sm:$0xff] }
  0xf3   :  { %v245_v50 = vadd.f32 %v239_v1, %v99_v9 }
  0xf4   :  { %1609 = vpow2.f32 %v1546_v63  ;;  %v1547_v48 = vmul.f32 -1.442695, %v243_v52 }
  0xf5   :  { %v1548_v57 = vmul.f32 -1.442695, %v245_v50 }
  0xf6   :  { %1611 = vpow2.f32 %v1547_v48 }
  0xf7   :  { %1613 = vtanh.f32 %v244_v59  ;;  %v2871_v59 = vld [vmem:[#allocation11_spill] sm:$0xff] }
  0xf8   :  { %1615 = vpow2.f32 %v1548_v57  ;;  %v2870_v57 = vld [vmem:[#allocation18_spill] sm:$0xff] }
 0x101   :  { %v1610_v0 = vpop.eup %1609 }
 0x102   :  { %v249_v56 = vadd.f32 1.0, %v1610_v0  ;;  %v2873_v0 = vld [vmem:[#allocation12_spill] sm:$0xff] }
 0x103   :  { %v1612_v58 = vpop.eup %1611 }
 0x104   :  { %1617 = vrcp.f32 %v249_v56  ;;  %v255_v52 = vadd.f32 1.0, %v1612_v58  ;;  %v1614_v48 = vpop.eup %1613  ;;  %v2874_v56 = vld [vmem:[#allocation21_spill] sm:$0xff] }
 0x105   :  { %v1616_v61 = vpop.eup %1615  ;;  %v2875_v58 = vld [vmem:[#allocation13_spill] sm:$0xff] }
 0x106   :  { %1619 = vrcp.f32 %v255_v52  ;;  %v262_v46 = vadd.f32 1.0, %v1616_v61  ;;  %v2876_v52 = vld [vmem:[#allocation22_spill] sm:$0xff]  ;;  %v2878_v61 = vld [vmem:[#allocation23_spill] sm:$0xff] }
 0x108   :  { %1621 = vrcp.f32 %v262_v46  ;;  %v2867_v46 = vld [vmem:[#allocation9_spill] sm:$0xff] }
 0x111   :  { %v1618_v62 = vpop.eup %1617 }
 0x112   :  { %v267_v44 = vmul.f32 %v1618_v62, %v1614_v48  ;;  %v2877_v48 = vld [vmem:[#allocation15_spill] sm:$0xff]  ;;  %v2879_v62 = vld [vmem:[#allocation17_spill] sm:$0xff] }
 0x113   :  { %v1620_v63 = vpop.eup %1619 }
 0x114   :  { %v266_v55 = vmul.f32 0.0, %v1620_v63  ;;  %v2880_v63 = vld [vmem:[#allocation24_spill] sm:$0xff] }
 0x115   :  { %v1622_v1 = vpop.eup %1621 }
 0x116   :  { %v2121_v53 = vadd.f32 %v267_v44, %v266_v55  ;;  %v2866_v44 = vld [vmem:[#allocation14_spill] sm:$0xff] }
 0x117   :  { %v2869_v55 = vld [vmem:[#allocation10_spill] sm:$0xff] }
 0x118   :  { %1623 = vtanh.f32 %v2121_v53 }
 0x125   :  { %v1624_v9 = vpop.eup %1623 }
 0x126   :  { %v270_v50 = vmul.f32 %v1624_v9, %v1622_v1  ;;  %v2881_v1 = vld [vmem:[#allocation19_spill] sm:$0xff]  ;;  %v2882_v9 = vmov 0.0  }
 0x128   :  { %273 = vst [vmem:[%s2777_s2] sm:$0xff] %v270_v50  ;;  %345 = vmatmul.mubr.f32.vlgmr.msra.gmra.mxu0 %v270_v50  ;;  %416 = vmatmul.mubr.f32.vlgmr.msra.gmra.mxu1 %v270_v50  ;;  %v2883_v50 = vld [vmem:[#allocation25_spill] sm:$0xff] }
 0x129   :  { %462 = vmatpush1.msra.mxu0 %v1849_v2  ;;  %533 = vmatpush1.msra.mxu1 %v1874_v11 }
 0x12a   :  { %463 = vmatprep.subr.mxu0 %v1851_v3  ;;  %534 = vmatprep.subr.mxu1 %v1880_v13 }
 0x12b   :  { %464 = vmatpush1.msra.mxu0 %v1854_v4  ;;  %535 = vmatpush1.msra.mxu1 %v1882_v14 }
 0x12c   :  { %465 = vmatprep.subr.mxu0 %v1857_v5  ;;  %536 = vmatprep.subr.mxu1 %v1888_v16 }
 0x12d   :  { %466 = vmatpush1.msra.mxu0 %v1860_v6  ;;  %537 = vmatpush1.msra.mxu1 %v1894_v18 }
 0x12e   :  { %467 = vmatprep.subr.mxu0 %v1863_v7  ;;  %538 = vmatprep.subr.mxu1 %v1896_v19 }
 0x12f   :  { %468 = vmatpush1.msra.mxu0 %v1866_v8  ;;  %539 = vmatpush1.msra.mxu1 %v1902_v21 }
 0x130   :  { %469 = vmatprep.subr.mxu0 %v1871_v10  ;;  %540 = vmatprep.subr.mxu1 %v1908_v23 }
 0x131   :  { %470 = vmatpush1.msra.mxu0 %v1877_v12  ;;  %541 = vmatpush1.msra.mxu1 %v1914_v25 }
 0x132   :  { %471 = vmatprep.subr.mxu0 %v1885_v15  ;;  %542 = vmatprep.subr.mxu1 %v1920_v27 }
 0x133   :  { %472 = vmatpush1.msra.mxu0 %v1891_v17  ;;  %543 = vmatpush1.msra.mxu1 %v1926_v29 }
 0x134   :  { %473 = vmatprep.subr.mxu0 %v1899_v20  ;;  %544 = vmatprep.subr.mxu1 %v1932_v31 }
 0x135   :  { %474 = vmatpush1.msra.mxu0 %v1905_v22  ;;  %545 = vmatpush1.msra.mxu1 %v1938_v33 }
 0x136   :  { %475 = vmatprep.subr.mxu0 %v1911_v24  ;;  %546 = vmatprep.subr.mxu1 %v1944_v35 }
 0x137   :  { %476 = vmatpush1.msra.mxu0 %v1917_v26  ;;  %547 = vmatpush1.msra.mxu1 %v1950_v37 }
 0x138   :  { %477 = vmatprep.subr.mxu0 %v1923_v28  ;;  %548 = vmatprep.subr.mxu1 %v1956_v39 }
 0x139   :  { %478 = vmatpush1.msra.mxu0 %v1929_v30  ;;  %549 = vmatpush1.msra.mxu1 %v1962_v41 }
 0x13a   :  { %479 = vmatprep.subr.mxu0 %v1935_v32  ;;  %550 = vmatprep.subr.mxu1 %v1968_v43 }
 0x13b   :  { %480 = vmatpush1.msra.mxu0 %v1941_v34  ;;  %551 = vmatpush1.msra.mxu1 %v1974_v45 }
 0x13c   :  { %481 = vmatprep.subr.mxu0 %v1947_v36  ;;  %552 = vmatprep.subr.mxu1 %v1980_v47 }
 0x13d   :  { %482 = vmatpush1.msra.mxu0 %v1953_v38  ;;  %553 = vmatpush1.msra.mxu1 %v1986_v49 }
 0x13e   :  { %483 = vmatprep.subr.mxu0 %v1959_v40  ;;  %554 = vmatprep.subr.mxu1 %v1992_v51 }
 0x13f   :  { %484 = vmatpush1.msra.mxu0 %v1965_v42  ;;  %555 = vmatpush1.msra.mxu1 %v2866_v44 }
 0x140   :  { %485 = vmatprep.subr.mxu0 %v2867_v46  ;;  %556 = vmatprep.subr.mxu1 %v2868_v54 }
 0x141   :  { %486 = vmatpush1.msra.mxu0 %v2869_v55  ;;  %557 = vmatpush1.msra.mxu1 %v2870_v57 }
 0x142   :  { %487 = vmatprep.subr.mxu0 %v2871_v59  ;;  %558 = vmatprep.subr.mxu1 %v2872_v60  ;;  %v1551_v59 = vld [vmem:[%s2775_s0 + $0x30] sm:$0xff] }
 0x143   :  { %488 = vmatpush1.msra.mxu0 %v2873_v0  ;;  %559 = vmatpush1.msra.mxu1 %v2874_v56  ;;  %v2884_v56 = vld [vmem:[#allocation7_spill] sm:$0xff] }
 0x144   :  { %489 = vmatprep.subr.mxu0 %v2875_v58  ;;  %560 = vmatprep.subr.mxu1 %v2876_v52  ;;  %v2885_v58 = vld [vmem:[#allocation8_spill] sm:$0xff] }
 0x145   :  { %490 = vmatpush1.msra.mxu0 %v2877_v48  ;;  %561 = vmatpush1.msra.mxu1 %v2878_v61  ;;  %v1549_v61 = vld [vmem:[%s2775_s0 + $0x20] sm:$0xff] }
 0x146   :  { %491 = vmatprep.subr.mxu0 %v2879_v62  ;;  %562 = vmatprep.subr.mxu1 %v2880_v63  ;;  %v1550_v63 = vld [vmem:[%s2775_s0 + $0x28] sm:$0xff] }
 0x147   :  { %492 = vmatpush1.msra.mxu0 %v2881_v1  ;;  %525 = vmatprep.mubr.f32.mxu0 %v2882_v9 }
 0x148   :  { %563 = vmatpush1.msra.mxu1 %v2883_v50  ;;  %596 = vmatprep.mubr.f32.mxu1 %v2882_v9 }
 0x149   :  { %642 = vmatprep.subr.mxu0 %v2884_v56  ;;  %713 = vmatprep.subr.mxu1 %v2885_v58  ;;  %v1552_v58 = vld [vmem:[%s2775_s0 + $0x38] sm:$0xff] }
 0x1e8   :  { %v346_v48 = vpop.f32.mrf.mxu0  ;;  %v417_v50 = vpop.f32.mrf.mxu1 }
 0x1e9   :  { %v422_v1 = vadd.f32 %v1549_v61, %v346_v48  ;;  %v424_v48 = vadd.f32 %v1551_v59, %v417_v50  ;;  %v2889_v50 = vld [vmem:[#allocation18_spill] sm:$0xff] }
 0x1ea   :  { %v348_v62 = vpop.f32.mrf.mxu0  ;;  %v419_v56 = vpop.f32.mrf.mxu1 }
 0x1eb   :  { %v1553_v52 = vmul.f32 -1.442695, %v422_v1  ;;  %v423_v0 = vadd.f32 %v1550_v63, %v348_v62  ;;  %v425_v60 = vadd.f32 %v1552_v58, %v419_v56 }
 0x1ed   :  { %1625 = vpow2.f32 %v1553_v52  ;;  %v1554_v9 = vmul.f32 -1.442695, %v423_v0  ;;  %v1555_v57 = vmul.f32 -1.442695, %v425_v60  ;;  %v2888_v60 = vld [vmem:[#allocation10_spill] sm:$0xff] }
 0x1ef   :  { %1627 = vpow2.f32 %v1554_v9 }
 0x1f0   :  { %1629 = vpow2.f32 %v1555_v57 }
 0x1fa   :  { %v1626_v55 = vpop.eup %1625 }
 0x1fb   :  { %v429_v61 = vadd.f32 1.0, %v1626_v55 }
 0x1fc   :  { %v1628_v1 = vpop.eup %1627 }
 0x1fd   :  { %1631 = vrcp.f32 %v429_v61  ;;  %v435_v52 = vadd.f32 1.0, %v1628_v1  ;;  %v1630_v0 = vpop.eup %1629  ;;  %v2891_v61 = vld [vmem:[#allocation20_spill] sm:$0xff] }
 0x1fe   :  { %1633 = vtanh.f32 %v424_v48  ;;  %v442_v54 = vadd.f32 1.0, %v1630_v0  ;;  %v2890_v48 = vld [vmem:[#allocation11_spill] sm:$0xff]  ;;  %v2892_v1 = vld [vmem:[#allocation12_spill] sm:$0xff]  ;;  %v2894_v0 = vld [vmem:[#allocation13_spill] sm:$0xff] }
 0x1ff   :  { %1635 = vrcp.f32 %v435_v52  ;;  %v2893_v52 = vld [vmem:[#allocation21_spill] sm:$0xff] }
 0x200   :  { %1637 = vrcp.f32 %v442_v54  ;;  %v2887_v54 = vld [vmem:[#allocation16_spill] sm:$0xff] }
 0x20a   :  { %v1632_v62 = vpop.eup %1631 }
 0x20b   :  { %v1634_v63 = vpop.eup %1633 }
 0x20c   :  { %v1636_v9 = vpop.eup %1635  ;;  %v447_v56 = vmul.f32 %v1634_v63, %v1632_v62  ;;  %v2895_v62 = vld [vmem:[#allocation22_spill] sm:$0xff]  ;;  %v2896_v63 = vld [vmem:[#allocation15_spill] sm:$0xff] }
 0x20d   :  { %v446_v58 = vmul.f32 %v1636_v9, %v2121_v53  ;;  %v1638_v55 = vpop.eup %1637  ;;  %v2886_v53 = vld [vmem:[#allocation9_spill] sm:$0xff]  ;;  %v2897_v9 = vld [vmem:[#allocation23_spill] sm:$0xff] }
 0x20f   :  { %v2206_v46 = vadd.f32 %v447_v56, %v446_v58  ;;  %v2898_v56 = vld [vmem:[#allocation17_spill] sm:$0xff]  ;;  %v2899_v58 = vld [vmem:[#allocation24_spill] sm:$0xff] }
 0x211   :  { %1639 = vtanh.f32 %v2206_v46 }
 0x21e   :  { %v1640_v59 = vpop.eup %1639 }
 0x21f   :  { %v450_v57 = vmul.f32 %v1640_v59, %v1638_v55  ;;  %v2900_v55 = vld [vmem:[#allocation19_spill] sm:$0xff]  ;;  %v2901_v59 = vmov 0.0  }
 0x221   :  { %1556 = vst [vmem:[%s2777_s2 + $0x8] sm:$0xff] %v450_v57  ;;  %526 = vmatmul.mubr.f32.vlgmr.msra.gmra.mxu0 %v450_v57  ;;  %597 = vmatmul.mubr.f32.vlgmr.msra.gmra.mxu1 %v450_v57  ;;  %v2902_v57 = vld [vmem:[#allocation25_spill] sm:$0xff] }
 0x222   :  { %643 = vmatpush1.msra.mxu0 %v1849_v2  ;;  %714 = vmatpush1.msra.mxu1 %v1874_v11 }
 0x223   :  { %644 = vmatprep.subr.mxu0 %v1851_v3  ;;  %715 = vmatprep.subr.mxu1 %v1880_v13 }
 0x224   :  { %645 = vmatpush1.msra.mxu0 %v1854_v4  ;;  %716 = vmatpush1.msra.mxu1 %v1882_v14 }
 0x225   :  { %646 = vmatprep.subr.mxu0 %v1857_v5  ;;  %717 = vmatprep.subr.mxu1 %v1888_v16 }
 0x226   :  { %647 = vmatpush1.msra.mxu0 %v1860_v6  ;;  %718 = vmatpush1.msra.mxu1 %v1894_v18 }
 0x227   :  { %648 = vmatprep.subr.mxu0 %v1863_v7  ;;  %719 = vmatprep.subr.mxu1 %v1896_v19 }
 0x228   :  { %649 = vmatpush1.msra.mxu0 %v1866_v8  ;;  %720 = vmatpush1.msra.mxu1 %v1902_v21 }
 0x229   :  { %650 = vmatprep.subr.mxu0 %v1871_v10  ;;  %721 = vmatprep.subr.mxu1 %v1908_v23 }
 0x22a   :  { %651 = vmatpush1.msra.mxu0 %v1877_v12  ;;  %722 = vmatpush1.msra.mxu1 %v1914_v25 }
 0x22b   :  { %652 = vmatprep.subr.mxu0 %v1885_v15  ;;  %723 = vmatprep.subr.mxu1 %v1920_v27 }
 0x22c   :  { %653 = vmatpush1.msra.mxu0 %v1891_v17  ;;  %724 = vmatpush1.msra.mxu1 %v1926_v29 }
 0x22d   :  { %654 = vmatprep.subr.mxu0 %v1899_v20  ;;  %725 = vmatprep.subr.mxu1 %v1932_v31 }
 0x22e   :  { %655 = vmatpush1.msra.mxu0 %v1905_v22  ;;  %726 = vmatpush1.msra.mxu1 %v1938_v33 }
 0x22f   :  { %656 = vmatprep.subr.mxu0 %v1911_v24  ;;  %727 = vmatprep.subr.mxu1 %v1944_v35 }
 0x230   :  { %657 = vmatpush1.msra.mxu0 %v1917_v26  ;;  %728 = vmatpush1.msra.mxu1 %v1950_v37 }
 0x231   :  { %658 = vmatprep.subr.mxu0 %v1923_v28  ;;  %729 = vmatprep.subr.mxu1 %v1956_v39 }
 0x232   :  { %659 = vmatpush1.msra.mxu0 %v1929_v30  ;;  %730 = vmatpush1.msra.mxu1 %v1962_v41 }
 0x233   :  { %660 = vmatprep.subr.mxu0 %v1935_v32  ;;  %731 = vmatprep.subr.mxu1 %v1968_v43 }
 0x234   :  { %661 = vmatpush1.msra.mxu0 %v1941_v34  ;;  %732 = vmatpush1.msra.mxu1 %v1974_v45 }
 0x235   :  { %662 = vmatprep.subr.mxu0 %v1947_v36  ;;  %733 = vmatprep.subr.mxu1 %v1980_v47 }
 0x236   :  { %663 = vmatpush1.msra.mxu0 %v1953_v38  ;;  %734 = vmatpush1.msra.mxu1 %v1986_v49 }
 0x237   :  { %664 = vmatprep.subr.mxu0 %v1959_v40  ;;  %735 = vmatprep.subr.mxu1 %v1992_v51 }
 0x238   :  { %665 = vmatpush1.msra.mxu0 %v1965_v42  ;;  %736 = vmatpush1.msra.mxu1 %v2866_v44 }
 0x239   :  { %666 = vmatprep.subr.mxu0 %v2886_v53  ;;  %737 = vmatprep.subr.mxu1 %v2887_v54 }
 0x23a   :  { %667 = vmatpush1.msra.mxu0 %v2888_v60  ;;  %738 = vmatpush1.msra.mxu1 %v2889_v50 }
 0x23b   :  { %668 = vmatprep.subr.mxu0 %v2890_v48  ;;  %739 = vmatprep.subr.mxu1 %v2891_v61  ;;  %v1559_v48 = vld [vmem:[%s2775_s0 + $0x50] sm:$0xff] }
 0x23c   :  { %669 = vmatpush1.msra.mxu0 %v2892_v1  ;;  %740 = vmatpush1.msra.mxu1 %v2893_v52  ;;  %v2903_v52 = vld [vmem:[#allocation7_spill] sm:$0xff] }
 0x23d   :  { %670 = vmatprep.subr.mxu0 %v2894_v0  ;;  %741 = vmatprep.subr.mxu1 %v2895_v62  ;;  %v2904_v0 = vld [vmem:[#allocation8_spill] sm:$0xff] }
 0x23e   :  { %671 = vmatpush1.msra.mxu0 %v2896_v63  ;;  %742 = vmatpush1.msra.mxu1 %v2897_v9  ;;  %v1557_v9 = vld [vmem:[%s2775_s0 + $0x40] sm:$0xff] }
 0x23f   :  { %672 = vmatprep.subr.mxu0 %v2898_v56  ;;  %743 = vmatprep.subr.mxu1 %v2899_v58  ;;  %v1558_v58 = vld [vmem:[%s2775_s0 + $0x48] sm:$0xff] }
 0x240   :  { %673 = vmatpush1.msra.mxu0 %v2900_v55  ;;  %706 = vmatprep.mubr.f32.mxu0 %v2901_v59 }
 0x241   :  { %744 = vmatpush1.msra.mxu1 %v2902_v57  ;;  %777 = vmatprep.mubr.f32.mxu1 %v2901_v59 }
 0x242   :  { %823 = vmatprep.subr.mxu0 %v2903_v52  ;;  %894 = vmatprep.subr.mxu1 %v2904_v0  ;;  %v1560_v52 = vld [vmem:[%s2775_s0 + $0x58] sm:$0xff] }
 0x2e1   :  { %v527_v63 = vpop.f32.mrf.mxu0  ;;  %v598_v57 = vpop.f32.mrf.mxu1 }
 0x2e2   :  { %v603_v55 = vadd.f32 %v1557_v9, %v527_v63  ;;  %v605_v63 = vadd.f32 %v1559_v48, %v598_v57 }
 0x2e3   :  { %v529_v56 = vpop.f32.mrf.mxu0  ;;  %v600_v0 = vpop.f32.mrf.mxu1 }
 0x2e4   :  { %v1561_v62 = vmul.f32 -1.442695, %v603_v55  ;;  %v604_v1 = vadd.f32 %v1558_v58, %v529_v56  ;;  %v606_v61 = vadd.f32 %v1560_v52, %v600_v0 }
 0x2e6   :  { %1641 = vpow2.f32 %v1561_v62  ;;  %v1562_v59 = vmul.f32 -1.442695, %v604_v1  ;;  %v1563_v50 = vmul.f32 -1.442695, %v606_v61 }
 0x2e8   :  { %1643 = vpow2.f32 %v1562_v59 }
 0x2e9   :  { %1645 = vpow2.f32 %v1563_v50 }
 0x2f3   :  { %v1642_v60 = vpop.eup %1641 }
 0x2f4   :  { %v610_v9 = vadd.f32 1.0, %v1642_v60 }
 0x2f5   :  { %v1644_v55 = vpop.eup %1643 }
 0x2f6   :  { %1647 = vrcp.f32 %v610_v9  ;;  %v616_v62 = vadd.f32 1.0, %v1644_v55  ;;  %v1646_v1 = vpop.eup %1645  ;;  %v2384_v55 = vld [vmem:[#allocation4 + $0x1e0] sm:$0xff] }
 0x2f7   :  { %1649 = vtanh.f32 %v605_v63  ;;  %v623_v54 = vadd.f32 1.0, %v1646_v1  ;;  %v2393_v1 = vld [vmem:[#allocation4 + $0x1d8] sm:$0xff] }
 0x2f8   :  { %1651 = vrcp.f32 %v616_v62  ;;  %v2387_v62 = vld [vmem:[#allocation4 + $0x1f0] sm:$0xff] }
 0x2f9   :  { %1653 = vrcp.f32 %v623_v54 }
 0x303   :  { %v1648_v56 = vpop.eup %1647 }
 0x304   :  { %v1650_v58 = vpop.eup %1649 }
 0x305   :  { %v1652_v59 = vpop.eup %1651  ;;  %v628_v0 = vmul.f32 %v1650_v58, %v1648_v56  ;;  %v2396_v56 = vld [vmem:[#allocation4 + $0x1c0] sm:$0xff]  ;;  %v2399_v58 = vld [vmem:[#allocation4 + $0x1d0] sm:$0xff] }
 0x306   :  { %v627_v52 = vmul.f32 %v1652_v59, %v2206_v46  ;;  %v1654_v60 = vpop.eup %1653  ;;  %v2402_v59 = vld [vmem:[#allocation4 + $0x1a8] sm:$0xff] }
 0x308   :  { %v2291_v53 = vadd.f32 %v628_v0, %v627_v52  ;;  %v2405_v0 = vld [vmem:[#allocation4 + $0x1b8] sm:$0xff]  ;;  %v2408_v52 = vld [vmem:[#allocation4 + $0x1a0] sm:$0xff] }
 0x30a   :  { %1655 = vtanh.f32 %v2291_v53 }
 0x317   :  { %v1656_v48 = vpop.eup %1655 }
 0x318   :  { %v631_v50 = vmul.f32 %v1656_v48, %v1654_v60  ;;  %v2411_v60 = vld [vmem:[#allocation4 + $0x1b0] sm:$0xff]  ;;  %v2414_v48 = vld [vmem:[#allocation4 + $0x188] sm:$0xff] }
 0x31a   :  { %1564 = vst [vmem:[%s2777_s2 + $0x10] sm:$0xff] %v631_v50  ;;  %707 = vmatmul.mubr.f32.vlgmr.msra.gmra.mxu0 %v631_v50  ;;  %778 = vmatmul.mubr.f32.vlgmr.msra.gmra.mxu1 %v631_v50  ;;  %v2417_v50 = vld [vmem:[#allocation4 + $0x198] sm:$0xff] }
 0x31b   :  { %824 = vmatpush1.msra.mxu0 %v1849_v2  ;;  %895 = vmatpush1.msra.mxu1 %v1874_v11  ;;  %v2905_v2 = vld [vmem:[#allocation9_spill] sm:$0xff] }
 0x31c   :  { %825 = vmatprep.subr.mxu0 %v1851_v3  ;;  %896 = vmatprep.subr.mxu1 %v1880_v13  ;;  %v2906_v3 = vld [vmem:[#allocation16_spill] sm:$0xff]  ;;  %v2913_v11 = vld [vmem:[#allocation13_spill] sm:$0xff]  ;;  %v2915_v13 = vld [vmem:[#allocation15_spill] sm:$0xff] }
 0x31d   :  { %826 = vmatpush1.msra.mxu0 %v1854_v4  ;;  %897 = vmatpush1.msra.mxu1 %v1882_v14  ;;  %v2907_v4 = vld [vmem:[#allocation10_spill] sm:$0xff]  ;;  %v2916_v14 = vld [vmem:[#allocation23_spill] sm:$0xff] }
 0x31e   :  { %827 = vmatprep.subr.mxu0 %v1857_v5  ;;  %898 = vmatprep.subr.mxu1 %v1888_v16  ;;  %v2908_v5 = vld [vmem:[#allocation18_spill] sm:$0xff]  ;;  %v2918_v16 = vld [vmem:[#allocation24_spill] sm:$0xff] }
 0x31f   :  { %828 = vmatpush1.msra.mxu0 %v1860_v6  ;;  %899 = vmatpush1.msra.mxu1 %v1894_v18  ;;  %v2909_v6 = vld [vmem:[#allocation11_spill] sm:$0xff]  ;;  %v2920_v18 = vmov 0.0  }
 0x320   :  { %829 = vmatprep.subr.mxu0 %v1863_v7  ;;  %900 = vmatprep.subr.mxu1 %v1896_v19  ;;  %v2910_v7 = vld [vmem:[#allocation20_spill] sm:$0xff]  ;;  %v2921_v19 = vld [vmem:[#allocation25_spill] sm:$0xff] }
 0x321   :  { %830 = vmatpush1.msra.mxu0 %v1866_v8  ;;  %901 = vmatpush1.msra.mxu1 %v1902_v21  ;;  %v2911_v8 = vld [vmem:[#allocation12_spill] sm:$0xff] }
 0x322   :  { %831 = vmatprep.subr.mxu0 %v1871_v10  ;;  %902 = vmatprep.subr.mxu1 %v1908_v23  ;;  %v2912_v10 = vld [vmem:[#allocation21_spill] sm:$0xff]  ;;  %v2923_v21 = vld [vmem:[#allocation8_spill] sm:$0xff] }
 0x323   :  { %832 = vmatpush1.msra.mxu0 %v1877_v12  ;;  %903 = vmatpush1.msra.mxu1 %v1914_v25  ;;  %v2914_v12 = vld [vmem:[#allocation22_spill] sm:$0xff] }
 0x324   :  { %833 = vmatprep.subr.mxu0 %v1885_v15  ;;  %904 = vmatprep.subr.mxu1 %v1920_v27  ;;  %v2917_v15 = vld [vmem:[#allocation17_spill] sm:$0xff] }
 0x325   :  { %834 = vmatpush1.msra.mxu0 %v1891_v17  ;;  %905 = vmatpush1.msra.mxu1 %v1926_v29  ;;  %v2919_v17 = vld [vmem:[#allocation19_spill] sm:$0xff] }
 0x326   :  { %835 = vmatprep.subr.mxu0 %v1899_v20  ;;  %906 = vmatprep.subr.mxu1 %v1932_v31  ;;  %v2361_v20 = vld [vmem:[#allocation4 + $0x1e8] sm:$0xff]  ;;  %v1568_v31 = vld [vmem:[%s2775_s0 + $0x78] sm:$0xff] }
 0x327   :  { %836 = vmatpush1.msra.mxu0 %v1905_v22  ;;  %907 = vmatpush1.msra.mxu1 %v1938_v33  ;;  %2922 = vst [vmem:[#allocation14_spill] sm:$0xff] %v2361_v20  ;;  %v1565_v22 = vld [vmem:[%s2775_s0 + $0x60] sm:$0xff] }
 0x328   :  { %837 = vmatprep.subr.mxu0 %v1911_v24  ;;  %908 = vmatprep.subr.mxu1 %v1944_v35  ;;  %v1566_v24 = vld [vmem:[%s2775_s0 + $0x68] sm:$0xff] }
 0x329   :  { %838 = vmatpush1.msra.mxu0 %v1917_v26  ;;  %909 = vmatpush1.msra.mxu1 %v1950_v37 }
 0x32a   :  { %839 = vmatprep.subr.mxu0 %v1923_v28  ;;  %910 = vmatprep.subr.mxu1 %v1956_v39 }
 0x32b   :  { %840 = vmatpush1.msra.mxu0 %v1929_v30  ;;  %911 = vmatpush1.msra.mxu1 %v1962_v41 }
 0x32c   :  { %841 = vmatprep.subr.mxu0 %v1935_v32  ;;  %912 = vmatprep.subr.mxu1 %v1968_v43 }
 0x32d   :  { %842 = vmatpush1.msra.mxu0 %v1941_v34  ;;  %913 = vmatpush1.msra.mxu1 %v1974_v45  ;;  %v1567_v34 = vld [vmem:[%s2775_s0 + $0x70] sm:$0xff] }
 0x32e   :  { %843 = vmatprep.subr.mxu0 %v1947_v36  ;;  %914 = vmatprep.subr.mxu1 %v1980_v47 }
 0x32f   :  { %844 = vmatpush1.msra.mxu0 %v1953_v38  ;;  %915 = vmatpush1.msra.mxu1 %v1986_v49 }
 0x330   :  { %845 = vmatprep.subr.mxu0 %v1959_v40  ;;  %916 = vmatprep.subr.mxu1 %v1992_v51 }
 0x331   :  { %846 = vmatpush1.msra.mxu0 %v1965_v42  ;;  %917 = vmatpush1.msra.mxu1 %v2866_v44 }
 0x332   :  { %847 = vmatprep.subr.mxu0 %v2905_v2  ;;  %918 = vmatprep.subr.mxu1 %v2906_v3  ;;  %v2420_v2 = vld [vmem:[#allocation4 + $0x180] sm:$0xff] }
 0x333   :  { %848 = vmatpush1.msra.mxu0 %v2907_v4  ;;  %919 = vmatpush1.msra.mxu1 %v2908_v5  ;;  %v2423_v4 = vld [vmem:[#allocation4 + $0x190] sm:$0xff] }
 0x334   :  { %849 = vmatprep.subr.mxu0 %v2909_v6  ;;  %920 = vmatprep.subr.mxu1 %v2910_v7  ;;  %v2426_v6 = vld [vmem:[#allocation4 + $0x168] sm:$0xff] }
 0x335   :  { %850 = vmatpush1.msra.mxu0 %v2911_v8  ;;  %921 = vmatpush1.msra.mxu1 %v2912_v10  ;;  %v2429_v8 = vld [vmem:[#allocation4 + $0x178] sm:$0xff] }
 0x336   :  { %851 = vmatprep.subr.mxu0 %v2913_v11  ;;  %922 = vmatprep.subr.mxu1 %v2914_v12  ;;  %v2432_v11 = vld [vmem:[#allocation4 + $0x160] sm:$0xff] }
 0x337   :  { %852 = vmatpush1.msra.mxu0 %v2915_v13  ;;  %923 = vmatpush1.msra.mxu1 %v2916_v14  ;;  %v2435_v13 = vld [vmem:[#allocation4 + $0x170] sm:$0xff] }
 0x338   :  { %853 = vmatprep.subr.mxu0 %v2917_v15  ;;  %924 = vmatprep.subr.mxu1 %v2918_v16  ;;  %v2438_v15 = vld [vmem:[#allocation4 + $0x148] sm:$0xff] }
 0x339   :  { %854 = vmatpush1.msra.mxu0 %v2919_v17  ;;  %887 = vmatprep.mubr.f32.mxu0 %v2920_v18 }
 0x33a   :  { %925 = vmatpush1.msra.mxu1 %v2921_v19  ;;  %958 = vmatprep.mubr.f32.mxu1 %v2920_v18 }
 0x33b   :  { %1004 = vmatprep.subr.mxu0 %v2361_v20  ;;  %1075 = vmatprep.subr.mxu1 %v2923_v21  ;;  %v2441_v21 = vld [vmem:[#allocation4 + $0x158] sm:$0xff] }
 0x3da   :  { %v708_v23 = vpop.f32.mrf.mxu0  ;;  %v779_v29 = vpop.f32.mrf.mxu1 }
 0x3db   :  { %v784_v25 = vadd.f32 %v1565_v22, %v708_v23  ;;  %v786_v37 = vadd.f32 %v1567_v34, %v779_v29  ;;  %v2444_v22 = vld [vmem:[#allocation4 + $0x140] sm:$0xff]  ;;  %v2447_v23 = vld [vmem:[#allocation4 + $0x150] sm:$0xff]  ;;  %v2465_v29 = vld [vmem:[#allocation4 + $0x118] sm:$0xff] }
 0x3dc   :  { %v710_v26 = vpop.f32.mrf.mxu0  ;;  %v781_v32 = vpop.f32.mrf.mxu1  ;;  %v2480_v34 = vld [vmem:[#allocation4 + $0xe0] sm:$0xff] }
 0x3dd   :  { %v1569_v27 = vmul.f32 -1.442695, %v784_v25  ;;  %v785_v28 = vadd.f32 %v1566_v24, %v710_v26  ;;  %v787_v33 = vadd.f32 %v1568_v31, %v781_v32  ;;  %v2450_v24 = vld [vmem:[#allocation4 + $0x128] sm:$0xff]  ;;  %v2453_v25 = vld [vmem:[#allocation4 + $0x138] sm:$0xff]  ;;  %v2456_v26 = vld [vmem:[#allocation4 + $0x120] sm:$0xff] }
 0x3de   :  { %v2471_v31 = vld [vmem:[#allocation4 + $0x110] sm:$0xff]  ;;  %v2474_v32 = vld [vmem:[#allocation4 + $0xe8] sm:$0xff] }
 0x3df   :  { %1657 = vpow2.f32 %v1569_v27  ;;  %v1570_v30 = vmul.f32 -1.442695, %v785_v28  ;;  %v1571_v35 = vmul.f32 -1.442695, %v787_v33  ;;  %v2459_v27 = vld [vmem:[#allocation4 + $0x130] sm:$0xff]  ;;  %v2462_v28 = vld [vmem:[#allocation4 + $0x108] sm:$0xff] }
 0x3e0   :  { %v2477_v33 = vld [vmem:[#allocation4 + $0xf8] sm:$0xff] }
 0x3e1   :  { %1659 = vpow2.f32 %v1570_v30  ;;  %v2468_v30 = vld [vmem:[#allocation4 + $0x100] sm:$0xff] }
 0x3e2   :  { %1661 = vpow2.f32 %v1571_v35  ;;  %v2483_v35 = vld [vmem:[#allocation4 + $0xf0] sm:$0xff] }
 0x3ec   :  { %v1658_v36 = vpop.eup %1657 }
 0x3ed   :  { %v791_v38 = vadd.f32 1.0, %v1658_v36  ;;  %v2486_v36 = vld [vmem:[#allocation4 + $0xc8] sm:$0xff] }
 0x3ee   :  { %v1660_v39 = vpop.eup %1659 }
 0x3ef   :  { %1663 = vrcp.f32 %v791_v38  ;;  %v797_v40 = vadd.f32 1.0, %v1660_v39  ;;  %v1662_v41 = vpop.eup %1661  ;;  %v2492_v38 = vld [vmem:[#allocation4 + $0xc0] sm:$0xff]  ;;  %v2495_v39 = vld [vmem:[#allocation4 + $0xd0] sm:$0xff] }
 0x3f0   :  { %1665 = vtanh.f32 %v786_v37  ;;  %v804_v47 = vadd.f32 1.0, %v1662_v41  ;;  %v2489_v37 = vld [vmem:[#allocation4 + $0xd8] sm:$0xff] }
 0x3f1   :  { %1667 = vrcp.f32 %v797_v40  ;;  %v2498_v40 = vld [vmem:[#allocation4 + $0xa8] sm:$0xff]  ;;  %v2501_v41 = vld [vmem:[#allocation4 + $0xb8] sm:$0xff] }
 0x3f2   :  { %1669 = vrcp.f32 %v804_v47  ;;  %v2516_v47 = vld [vmem:[#allocation4 + $0x68] sm:$0xff] }
 0x3f3   :  { %2924 = vst [vmem:[#allocation7_spill] sm:$0xff] %v2516_v47 }
 0x3fc   :  { %v1664_v42 = vpop.eup %1663 }
 0x3fd   :  { %v1666_v43 = vpop.eup %1665 }
 0x3fe   :  { %v1668_v45 = vpop.eup %1667  ;;  %v809_v46 = vmul.f32 %v1666_v43, %v1664_v42  ;;  %v2504_v42 = vld [vmem:[#allocation4 + $0xa0] sm:$0xff]  ;;  %v2508_v43 = vld [vmem:[#allocation4 + $0x88] sm:$0xff] }
 0x3ff   :  { %v808_v54 = vmul.f32 %v1668_v45, %v2291_v53  ;;  %v1670_v57 = vpop.eup %1669  ;;  %v2390_v53 = vld [vmem:[#allocation4 + $0x1c8] sm:$0xff]  ;;  %v2512_v45 = vld [vmem:[#allocation4 + $0x80] sm:$0xff] }
 0x401   :  { %v2378_v61 = vadd.f32 %v809_v46, %v808_v54  ;;  %v2520_v46 = vld [vmem:[#allocation4 + $0x60] sm:$0xff] }
 0x402   :  { %2925 = vst [vmem:[#allocation9_spill] sm:$0xff] %v2520_v46 }
 0x403   :  { %1671 = vtanh.f32 %v2378_v61 }
 0x410   :  { %v1672_v63 = vpop.eup %1671 }
 0x411   :  { %v812_v9 = vmul.f32 %v1672_v63, %v1670_v57 }
 0x413   :  { %1572 = vst [vmem:[%s2777_s2 + $0x18] sm:$0xff] %v812_v9  ;;  %888 = vmatmul.mubr.f32.vlgmr.msra.gmra.mxu0 %v812_v9  ;;  %959 = vmatmul.mubr.f32.vlgmr.msra.gmra.mxu1 %v812_v9  ;;  %v1576_v9 = vld [vmem:[%s2775_s0 + $0x98] sm:$0xff] }
 0x414   :  { %1005 = vmatpush1.msra.mxu0 %v2384_v55  ;;  %1076 = vmatpush1.msra.mxu1 %v2387_v62 }
 0x415   :  { %1006 = vmatprep.subr.mxu0 %v2390_v53  ;;  %1077 = vmatprep.subr.mxu1 %v2393_v1 }
 0x416   :  { %1007 = vmatpush1.msra.mxu0 %v2396_v56  ;;  %1078 = vmatpush1.msra.mxu1 %v2399_v58 }
 0x417   :  { %1008 = vmatprep.subr.mxu0 %v2402_v59  ;;  %1079 = vmatprep.subr.mxu1 %v2405_v0 }
 0x418   :  { %1009 = vmatpush1.msra.mxu0 %v2408_v52  ;;  %1080 = vmatpush1.msra.mxu1 %v2411_v60 }
 0x419   :  { %1010 = vmatprep.subr.mxu0 %v2414_v48  ;;  %1081 = vmatprep.subr.mxu1 %v2417_v50 }
 0x41a   :  { %1011 = vmatpush1.msra.mxu0 %v2420_v2  ;;  %1082 = vmatpush1.msra.mxu1 %v2423_v4 }
 0x41b   :  { %1012 = vmatprep.subr.mxu0 %v2426_v6  ;;  %1083 = vmatprep.subr.mxu1 %v2429_v8 }
 0x41c   :  { %1013 = vmatpush1.msra.mxu0 %v2432_v11  ;;  %1084 = vmatpush1.msra.mxu1 %v2435_v13 }
 0x41d   :  { %1014 = vmatprep.subr.mxu0 %v2438_v15  ;;  %1085 = vmatprep.subr.mxu1 %v2441_v21 }
 0x41e   :  { %1015 = vmatpush1.msra.mxu0 %v2444_v22  ;;  %1086 = vmatpush1.msra.mxu1 %v2447_v23 }
 0x41f   :  { %1016 = vmatprep.subr.mxu0 %v2450_v24  ;;  %1087 = vmatprep.subr.mxu1 %v2453_v25 }
 0x420   :  { %1017 = vmatpush1.msra.mxu0 %v2456_v26  ;;  %1088 = vmatpush1.msra.mxu1 %v2459_v27 }
 0x421   :  { %1018 = vmatprep.subr.mxu0 %v2462_v28  ;;  %1089 = vmatprep.subr.mxu1 %v2465_v29 }
 0x422   :  { %1019 = vmatpush1.msra.mxu0 %v2468_v30  ;;  %1090 = vmatpush1.msra.mxu1 %v2471_v31 }
 0x423   :  { %1020 = vmatprep.subr.mxu0 %v2474_v32  ;;  %1091 = vmatprep.subr.mxu1 %v2477_v33 }
 0x424   :  { %1021 = vmatpush1.msra.mxu0 %v2480_v34  ;;  %1092 = vmatpush1.msra.mxu1 %v2483_v35 }
 0x425   :  { %1022 = vmatprep.subr.mxu0 %v2486_v36  ;;  %1093 = vmatprep.subr.mxu1 %v2489_v37 }
 0x426   :  { %1023 = vmatpush1.msra.mxu0 %v2492_v38  ;;  %1094 = vmatpush1.msra.mxu1 %v2495_v39 }
 0x427   :  { %1024 = vmatprep.subr.mxu0 %v2498_v40  ;;  %1095 = vmatprep.subr.mxu1 %v2501_v41 }
 0x428   :  { %1025 = vmatpush1.msra.mxu0 %v2504_v42  ;;  %1096 = vmatpush1.msra.mxu1 %v1986_v49  ;;  %v2524_v49 = vld [vmem:[#allocation4 + $0x48] sm:$0xff] }
 0x429   :  { %1026 = vmatprep.subr.mxu0 %v2508_v43  ;;  %1097 = vmatprep.subr.mxu1 %v1992_v51  ;;  %2926 = vst [vmem:[#allocation16_spill] sm:$0xff] %v2524_v49  ;;  %v2528_v51 = vld [vmem:[#allocation4 + $0x40] sm:$0xff] }
 0x42a   :  { %1027 = vmatpush1.msra.mxu0 %v2512_v45  ;;  %1098 = vmatpush1.msra.mxu1 %v2866_v44  ;;  %2927 = vst [vmem:[#allocation10_spill] sm:$0xff] %v2528_v51  ;;  %v2532_v44 = vld [vmem:[#allocation4 + $0x28] sm:$0xff] }
 0x42b   :  { %1028 = vmatprep.subr.mxu0 %v2516_v47  ;;  %1099 = vmatprep.subr.mxu1 %v2906_v3  ;;  %2928 = vst [vmem:[#allocation18_spill] sm:$0xff] %v2532_v44  ;;  %v2536_v3 = vld [vmem:[#allocation4 + $0x20] sm:$0xff] }
 0x42c   :  { %1029 = vmatpush1.msra.mxu0 %v2520_v46  ;;  %1100 = vmatpush1.msra.mxu1 %v2908_v5  ;;  %2929 = vst [vmem:[#allocation11_spill] sm:$0xff] %v2536_v3  ;;  %v2540_v5 = vld [vmem:[#allocation4 + $0x8] sm:$0xff] }
 0x42d   :  { %1030 = vmatprep.subr.mxu0 %v2524_v49  ;;  %1101 = vmatprep.subr.mxu1 %v2910_v7  ;;  %2930 = vst [vmem:[#allocation20_spill] sm:$0xff] %v2540_v5  ;;  %v2549_v7 = vld [vmem:[#allocation4 + $0x1f8] sm:$0xff] }
 0x42e   :  { %1031 = vmatpush1.msra.mxu0 %v2528_v51  ;;  %1102 = vmatpush1.msra.mxu1 %v2912_v10  ;;  %2931 = vst [vmem:[#allocation12_spill] sm:$0xff] %v2549_v7  ;;  %v1573_v10 = vld [vmem:[%s2775_s0 + $0x80] sm:$0xff] }
 0x42f   :  { %1032 = vmatprep.subr.mxu0 %v2532_v44  ;;  %1103 = vmatprep.subr.mxu1 %v2914_v12 }
 0x430   :  { %1033 = vmatpush1.msra.mxu0 %v2536_v3  ;;  %1104 = vmatpush1.msra.mxu1 %v2916_v14  ;;  %v1574_v14 = vld [vmem:[%s2775_s0 + $0x88] sm:$0xff] }
 0x431   :  { %1034 = vmatprep.subr.mxu0 %v2540_v5  ;;  %1105 = vmatprep.subr.mxu1 %v2918_v16 }
 0x432   :  { %1035 = vmatpush1.msra.mxu0 %v2919_v17  ;;  %1068 = vmatprep.mubr.f32.mxu0 %v2920_v18 }
 0x433   :  { %1106 = vmatpush1.msra.mxu1 %v2921_v19  ;;  %1139 = vmatprep.mubr.f32.mxu1 %v2920_v18  ;;  %v1575_v18 = vld [vmem:[%s2775_s0 + $0x90] sm:$0xff] }
 0x434   :  { %1185 = vmatprep.subr.mxu0 %v2361_v20  ;;  %1256 = vmatprep.subr.mxu1 %v2549_v7 }
 0x4d3   :  { %v889_v12 = vpop.f32.mrf.mxu0  ;;  %v960_v57 = vpop.f32.mrf.mxu1 }
 0x4d4   :  { %v965_v16 = vadd.f32 %v1573_v10, %v889_v12  ;;  %v967_v10 = vadd.f32 %v1575_v18, %v960_v57  ;;  %v2624_v57 = vld [vmem:[#allocation4 + $0x78] sm:$0xff] }
 0x4d5   :  { %v891_v17 = vpop.f32.mrf.mxu0  ;;  %v962_v7 = vpop.f32.mrf.mxu1  ;;  %2932 = vst [vmem:[#allocation21_spill] sm:$0xff] %v2624_v57 }
 0x4d6   :  { %v1577_v19 = vmul.f32 -1.442695, %v965_v16  ;;  %v966_v54 = vadd.f32 %v1574_v14, %v891_v17  ;;  %v968_v20 = vadd.f32 %v1576_v9, %v962_v7 }
 0x4d8   :  { %1673 = vpow2.f32 %v1577_v19  ;;  %v1578_v63 = vmul.f32 -1.442695, %v966_v54  ;;  %v1579_v5 = vmul.f32 -1.442695, %v968_v20 }
 0x4da   :  { %1675 = vpow2.f32 %v1578_v63 }
 0x4db   :  { %1677 = vpow2.f32 %v1579_v5  ;;  %v2620_v5 = vld [vmem:[#allocation4 + $0x90] sm:$0xff] }
 0x4e5   :  { %v1674_v3 = vpop.eup %1673 }
 0x4e6   :  { %v972_v12 = vadd.f32 1.0, %v1674_v3 }
 0x4e7   :  { %v1676_v16 = vpop.eup %1675 }
 0x4e8   :  { %1679 = vrcp.f32 %v972_v12  ;;  %v978_v14 = vadd.f32 1.0, %v1676_v16  ;;  %v1678_v17 = vpop.eup %1677  ;;  %v2632_v12 = vld [vmem:[#allocation4 + $0x58] sm:$0xff] }
 0x4e9   :  { %1681 = vtanh.f32 %v967_v10  ;;  %v985_v44 = vadd.f32 1.0, %v1678_v17  ;;  %v2628_v10 = vld [vmem:[#allocation4 + $0x70] sm:$0xff]  ;;  %2934 = vst [vmem:[#allocation22_spill] sm:$0xff] %v2632_v12  ;;  %v2935_v16 = vld [vmem:[#allocation10_spill] sm:$0xff] }
 0x4ea   :  { %1683 = vrcp.f32 %v978_v14  ;;  %2933 = vst [vmem:[#allocation13_spill] sm:$0xff] %v2628_v10  ;;  %v2636_v14 = vld [vmem:[#allocation4 + $0x50] sm:$0xff]  ;;  %v2937_v17 = vld [vmem:[#allocation18_spill] sm:$0xff] }
 0x4eb   :  { %1685 = vrcp.f32 %v985_v44  ;;  %v2616_v44 = vld [vmem:[#allocation4 + $0x98] sm:$0xff]  ;;  %2936 = vst [vmem:[#allocation15_spill] sm:$0xff] %v2636_v14 }
 0x4f5   :  { %v1680_v19 = vpop.eup %1679 }
 0x4f6   :  { %v1682_v54 = vpop.eup %1681 }
 0x4f7   :  { %v1684_v63 = vpop.eup %1683  ;;  %v990_v7 = vmul.f32 %v1682_v54, %v1680_v19  ;;  %v2640_v19 = vld [vmem:[#allocation4 + $0x38] sm:$0xff]  ;;  %v2939_v54 = vld [vmem:[#allocation11_spill] sm:$0xff] }
 0x4f8   :  { %v989_v9 = vmul.f32 %v1684_v63, %v2378_v61  ;;  %v1686_v18 = vpop.eup %1685  ;;  %v2612_v61 = vld [vmem:[#allocation4 + $0xb0] sm:$0xff]  ;;  %2938 = vst [vmem:[#allocation23_spill] sm:$0xff] %v2640_v19 }
 0x4f9   :  { %v2644_v63 = vld [vmem:[#allocation4 + $0x30] sm:$0xff] }
 0x4fa   :  { %v2565_v51 = vadd.f32 %v990_v7, %v989_v9  ;;  %2940 = vst [vmem:[#allocation17_spill] sm:$0xff] %v2644_v63  ;;  %v2941_v7 = vld [vmem:[#allocation20_spill] sm:$0xff]  ;;  %v2648_v9 = vld [vmem:[#allocation4 + $0x18] sm:$0xff] }
 0x4fb   :  { %2942 = vst [vmem:[#allocation24_spill] sm:$0xff] %v2648_v9 }
 0x4fc   :  { %1687 = vtanh.f32 %v2565_v51 }
 0x509   :  { %v1688_v20 = vpop.eup %1687 }
 0x50a   :  { %v993_v3 = vmul.f32 %v1688_v20, %v1686_v18  ;;  %v2651_v18 = vld [vmem:[#allocation4] sm:$0xff]  ;;  %v2944_v20 = vmov 0.0  }
 0x50b   :  { %2943 = vst [vmem:[#allocation19_spill] sm:$0xff] %v2651_v18 }
 0x50c   :  { %1580 = vst [vmem:[%s2777_s2 + $0x20] sm:$0xff] %v993_v3  ;;  %1069 = vmatmul.mubr.f32.vlgmr.msra.gmra.mxu0 %v993_v3  ;;  %1140 = vmatmul.mubr.f32.vlgmr.msra.gmra.mxu1 %v993_v3  ;;  %v2655_v3 = vld [vmem:[#allocation4 + $0x10] sm:$0xff] }
 0x50d   :  { %1186 = vmatpush1.msra.mxu0 %v2384_v55  ;;  %1257 = vmatpush1.msra.mxu1 %v2387_v62  ;;  %2945 = vst [vmem:[#allocation25_spill] sm:$0xff] %v2655_v3 }
 0x50e   :  { %1187 = vmatprep.subr.mxu0 %v2390_v53  ;;  %1258 = vmatprep.subr.mxu1 %v2393_v1 }
 0x50f   :  { %1188 = vmatpush1.msra.mxu0 %v2396_v56  ;;  %1259 = vmatpush1.msra.mxu1 %v2399_v58 }
 0x510   :  { %1189 = vmatprep.subr.mxu0 %v2402_v59  ;;  %1260 = vmatprep.subr.mxu1 %v2405_v0 }
 0x511   :  { %1190 = vmatpush1.msra.mxu0 %v2408_v52  ;;  %1261 = vmatpush1.msra.mxu1 %v2411_v60 }
 0x512   :  { %1191 = vmatprep.subr.mxu0 %v2414_v48  ;;  %1262 = vmatprep.subr.mxu1 %v2417_v50 }
 0x513   :  { %1192 = vmatpush1.msra.mxu0 %v2420_v2  ;;  %1263 = vmatpush1.msra.mxu1 %v2423_v4 }
 0x514   :  { %1193 = vmatprep.subr.mxu0 %v2426_v6  ;;  %1264 = vmatprep.subr.mxu1 %v2429_v8 }
 0x515   :  { %1194 = vmatpush1.msra.mxu0 %v2432_v11  ;;  %1265 = vmatpush1.msra.mxu1 %v2435_v13 }
 0x516   :  { %1195 = vmatprep.subr.mxu0 %v2438_v15  ;;  %1266 = vmatprep.subr.mxu1 %v2441_v21 }
 0x517   :  { %1196 = vmatpush1.msra.mxu0 %v2444_v22  ;;  %1267 = vmatpush1.msra.mxu1 %v2447_v23 }
 0x518   :  { %1197 = vmatprep.subr.mxu0 %v2450_v24  ;;  %1268 = vmatprep.subr.mxu1 %v2453_v25 }
 0x519   :  { %1198 = vmatpush1.msra.mxu0 %v2456_v26  ;;  %1269 = vmatpush1.msra.mxu1 %v2459_v27 }
 0x51a   :  { %1199 = vmatprep.subr.mxu0 %v2462_v28  ;;  %1270 = vmatprep.subr.mxu1 %v2465_v29 }
 0x51b   :  { %1200 = vmatpush1.msra.mxu0 %v2468_v30  ;;  %1271 = vmatpush1.msra.mxu1 %v2471_v31 }
 0x51c   :  { %1201 = vmatprep.subr.mxu0 %v2474_v32  ;;  %1272 = vmatprep.subr.mxu1 %v2477_v33 }
 0x51d   :  { %1202 = vmatpush1.msra.mxu0 %v2480_v34  ;;  %1273 = vmatpush1.msra.mxu1 %v2483_v35 }
 0x51e   :  { %1203 = vmatprep.subr.mxu0 %v2486_v36  ;;  %1274 = vmatprep.subr.mxu1 %v2489_v37 }
 0x51f   :  { %1204 = vmatpush1.msra.mxu0 %v2492_v38  ;;  %1275 = vmatpush1.msra.mxu1 %v2495_v39 }
 0x520   :  { %1205 = vmatprep.subr.mxu0 %v2498_v40  ;;  %1276 = vmatprep.subr.mxu1 %v2501_v41 }
 0x521   :  { %1206 = vmatpush1.msra.mxu0 %v2504_v42  ;;  %1277 = vmatpush1.msra.mxu1 %v2612_v61 }
 0x522   :  { %1207 = vmatprep.subr.mxu0 %v2508_v43  ;;  %1278 = vmatprep.subr.mxu1 %v2616_v44 }
 0x523   :  { %1208 = vmatpush1.msra.mxu0 %v2512_v45  ;;  %1279 = vmatpush1.msra.mxu1 %v2620_v5 }
 0x524   :  { %1209 = vmatprep.subr.mxu0 %v2516_v47  ;;  %1280 = vmatprep.subr.mxu1 %v2624_v57 }
 0x525   :  { %1210 = vmatpush1.msra.mxu0 %v2520_v46  ;;  %1281 = vmatpush1.msra.mxu1 %v2628_v10 }
 0x526   :  { %1211 = vmatprep.subr.mxu0 %v2524_v49  ;;  %1282 = vmatprep.subr.mxu1 %v2632_v12  ;;  %v1583_v49 = vld [vmem:[%s2775_s0 + $0xb0] sm:$0xff] }
 0x527   :  { %1212 = vmatpush1.msra.mxu0 %v2935_v16  ;;  %1283 = vmatpush1.msra.mxu1 %v2636_v14 }
 0x528   :  { %1213 = vmatprep.subr.mxu0 %v2937_v17  ;;  %1284 = vmatprep.subr.mxu1 %v2640_v19 }
 0x529   :  { %1214 = vmatpush1.msra.mxu0 %v2939_v54  ;;  %1285 = vmatpush1.msra.mxu1 %v2644_v63  ;;  %v2946_v54 = vld [vmem:[#allocation14_spill] sm:$0xff]  ;;  %v2947_v63 = vld [vmem:[#allocation12_spill] sm:$0xff] }
 0x52a   :  { %1215 = vmatprep.subr.mxu0 %v2941_v7  ;;  %1286 = vmatprep.subr.mxu1 %v2648_v9  ;;  %v1581_v9 = vld [vmem:[%s2775_s0 + $0xa0] sm:$0xff] }
 0x52b   :  { %1216 = vmatpush1.msra.mxu0 %v2651_v18  ;;  %1249 = vmatprep.mubr.f32.mxu0 %v2944_v20  ;;  %v1582_v18 = vld [vmem:[%s2775_s0 + $0xa8] sm:$0xff] }
 0x52c   :  { %1287 = vmatpush1.msra.mxu1 %v2655_v3  ;;  %1320 = vmatprep.mubr.f32.mxu1 %v2944_v20 }
 0x52d   :  { %1366 = vmatprep.subr.mxu0 %v2946_v54  ;;  %1437 = vmatprep.subr.mxu1 %v2947_v63  ;;  %v1584_v54 = vld [vmem:[%s2775_s0 + $0xb8] sm:$0xff] }
 0x5cc   :  { %v1070_v7 = vpop.f32.mrf.mxu0  ;;  %v1141_v3 = vpop.f32.mrf.mxu1 }
 0x5cd   :  { %v1146_v19 = vadd.f32 %v1581_v9, %v1070_v7  ;;  %v1148_v7 = vadd.f32 %v1583_v49, %v1141_v3 }
 0x5ce   :  { %v1072_v17 = vpop.f32.mrf.mxu0  ;;  %v1143_v63 = vpop.f32.mrf.mxu1 }
 0x5cf   :  { %v1585_v14 = vmul.f32 -1.442695, %v1146_v19  ;;  %v1147_v16 = vadd.f32 %v1582_v18, %v1072_v17  ;;  %v1149_v12 = vadd.f32 %v1584_v54, %v1143_v63 }
 0x5d1   :  { %1689 = vpow2.f32 %v1585_v14  ;;  %v1586_v20 = vmul.f32 -1.442695, %v1147_v16  ;;  %v1587_v10 = vmul.f32 -1.442695, %v1149_v12 }
 0x5d3   :  { %1691 = vpow2.f32 %v1586_v20 }
 0x5d4   :  { %1693 = vpow2.f32 %v1587_v10 }
 0x5de   :  { %v1690_v46 = vpop.eup %1689 }
 0x5df   :  { %v1153_v9 = vadd.f32 1.0, %v1690_v46 }
 0x5e0   :  { %v1692_v19 = vpop.eup %1691 }
 0x5e1   :  { %1695 = vrcp.f32 %v1153_v9  ;;  %v1159_v14 = vadd.f32 1.0, %v1692_v19  ;;  %v1694_v16 = vpop.eup %1693 }
 0x5e2   :  { %1697 = vtanh.f32 %v1148_v7  ;;  %v1166_v57 = vadd.f32 1.0, %v1694_v16 }
 0x5e3   :  { %1699 = vrcp.f32 %v1159_v14 }
 0x5e4   :  { %1701 = vrcp.f32 %v1166_v57  ;;  %v1597_v57 = vld [vmem:[%s2775_s0 + $0xe0] sm:$0xff] }
 0x5ee   :  { %v1696_v17 = vpop.eup %1695 }
 0x5ef   :  { %v1698_v18 = vpop.eup %1697 }
 0x5f0   :  { %v1700_v20 = vpop.eup %1699  ;;  %v1171_v54 = vmul.f32 %v1698_v18, %v1696_v17  ;;  %v1600_v17 = vld [vmem:[%s2775_s0 + $0xf8] sm:$0xff] }
 0x5f1   :  { %v1170_v63 = vmul.f32 %v1700_v20, %v2565_v51  ;;  %v1702_v46 = vpop.eup %1701 }
 0x5f3   :  { %v2674_v47 = vadd.f32 %v1171_v54, %v1170_v63  ;;  %v1599_v54 = vld [vmem:[%s2775_s0 + $0xf0] sm:$0xff] }
 0x5f5   :  { %1703 = vtanh.f32 %v2674_v47 }
 0x602   :  { %v1704_v49 = vpop.eup %1703 }
 0x603   :  { %v1174_v10 = vmul.f32 %v1704_v49, %v1702_v46 }
 0x605   :  { %1588 = vst [vmem:[%s2777_s2 + $0x28] sm:$0xff] %v1174_v10  ;;  %1250 = vmatmul.mubr.f32.vlgmr.msra.gmra.mxu0 %v1174_v10  ;;  %1321 = vmatmul.mubr.f32.vlgmr.msra.gmra.mxu1 %v1174_v10 }
 0x606   :  { %1367 = vmatpush1.msra.mxu0 %v2384_v55  ;;  %1438 = vmatpush1.msra.mxu1 %v2387_v62  ;;  %v2948_v55 = vld [vmem:[#allocation7_spill] sm:$0xff]  ;;  %v2949_v62 = vld [vmem:[#allocation21_spill] sm:$0xff] }
 0x607   :  { %1368 = vmatprep.subr.mxu0 %v2390_v53  ;;  %1439 = vmatprep.subr.mxu1 %v2393_v1  ;;  %v2950_v53 = vld [vmem:[#allocation9_spill] sm:$0xff] }
 0x608   :  { %1369 = vmatpush1.msra.mxu0 %v2396_v56  ;;  %1440 = vmatpush1.msra.mxu1 %v2399_v58  ;;  %v2951_v1 = vld [vmem:[#allocation13_spill] sm:$0xff]  ;;  %v2952_v56 = vld [vmem:[#allocation16_spill] sm:$0xff]  ;;  %v2953_v58 = vld [vmem:[#allocation22_spill] sm:$0xff] }
 0x609   :  { %1370 = vmatprep.subr.mxu0 %v2402_v59  ;;  %1441 = vmatprep.subr.mxu1 %v2405_v0  ;;  %v2954_v59 = vld [vmem:[#allocation10_spill] sm:$0xff]  ;;  %v2955_v0 = vld [vmem:[#allocation15_spill] sm:$0xff] }
 0x60a   :  { %1371 = vmatpush1.msra.mxu0 %v2408_v52  ;;  %1442 = vmatpush1.msra.mxu1 %v2411_v60  ;;  %v2956_v52 = vld [vmem:[#allocation18_spill] sm:$0xff]  ;;  %v2957_v60 = vld [vmem:[#allocation23_spill] sm:$0xff] }
 0x60b   :  { %1372 = vmatprep.subr.mxu0 %v2414_v48  ;;  %1443 = vmatprep.subr.mxu1 %v2417_v50  ;;  %v2958_v48 = vld [vmem:[#allocation11_spill] sm:$0xff]  ;;  %v2959_v50 = vld [vmem:[#allocation17_spill] sm:$0xff] }
 0x60c   :  { %1373 = vmatpush1.msra.mxu0 %v2420_v2  ;;  %1444 = vmatpush1.msra.mxu1 %v2423_v4  ;;  %v2960_v2 = vld [vmem:[#allocation20_spill] sm:$0xff] }
 0x60d   :  { %1374 = vmatprep.subr.mxu0 %v2426_v6  ;;  %1445 = vmatprep.subr.mxu1 %v2429_v8  ;;  %v2961_v4 = vld [vmem:[#allocation24_spill] sm:$0xff]  ;;  %v2962_v6 = vld [vmem:[#allocation19_spill] sm:$0xff]  ;;  %v2963_v8 = vmov 0.0  }
 0x60e   :  { %1375 = vmatpush1.msra.mxu0 %v2432_v11  ;;  %1446 = vmatpush1.msra.mxu1 %v2435_v13  ;;  %v2964_v11 = vld [vmem:[#allocation25_spill] sm:$0xff]  ;;  %v1589_v13 = vld [vmem:[%s2775_s0 + $0xc0] sm:$0xff] }
 0x60f   :  { %1376 = vmatprep.subr.mxu0 %v2438_v15  ;;  %1447 = vmatprep.subr.mxu1 %v2441_v21  ;;  %v1590_v21 = vld [vmem:[%s2775_s0 + $0xc8] sm:$0xff] }
 0x610   :  { %1377 = vmatpush1.msra.mxu0 %v2444_v22  ;;  %1448 = vmatpush1.msra.mxu1 %v2447_v23 }
 0x611   :  { %1378 = vmatprep.subr.mxu0 %v2450_v24  ;;  %1449 = vmatprep.subr.mxu1 %v2453_v25 }
 0x612   :  { %1379 = vmatpush1.msra.mxu0 %v2456_v26  ;;  %1450 = vmatpush1.msra.mxu1 %v2459_v27 }
 0x613   :  { %1380 = vmatprep.subr.mxu0 %v2462_v28  ;;  %1451 = vmatprep.subr.mxu1 %v2465_v29  ;;  %v1592_v28 = vld [vmem:[%s2775_s0 + $0xd8] sm:$0xff] }
 0x614   :  { %1381 = vmatpush1.msra.mxu0 %v2468_v30  ;;  %1452 = vmatpush1.msra.mxu1 %v2471_v31  ;;  %v1591_v31 = vld [vmem:[%s2775_s0 + $0xd0] sm:$0xff] }
 0x615   :  { %1382 = vmatprep.subr.mxu0 %v2474_v32  ;;  %1453 = vmatprep.subr.mxu1 %v2477_v33 }
 0x616   :  { %1383 = vmatpush1.msra.mxu0 %v2480_v34  ;;  %1454 = vmatpush1.msra.mxu1 %v2483_v35 }
 0x617   :  { %1384 = vmatprep.subr.mxu0 %v2486_v36  ;;  %1455 = vmatprep.subr.mxu1 %v2489_v37 }
 0x618   :  { %1385 = vmatpush1.msra.mxu0 %v2492_v38  ;;  %1456 = vmatpush1.msra.mxu1 %v2495_v39 }
 0x619   :  { %1386 = vmatprep.subr.mxu0 %v2498_v40  ;;  %1457 = vmatprep.subr.mxu1 %v2501_v41 }
 0x61a   :  { %1387 = vmatpush1.msra.mxu0 %v2504_v42  ;;  %1458 = vmatpush1.msra.mxu1 %v2612_v61 }
 0x61b   :  { %1388 = vmatprep.subr.mxu0 %v2508_v43  ;;  %1459 = vmatprep.subr.mxu1 %v2616_v44 }
 0x61c   :  { %1389 = vmatpush1.msra.mxu0 %v2512_v45  ;;  %1460 = vmatpush1.msra.mxu1 %v2620_v5 }
 0x61d   :  { %1390 = vmatprep.subr.mxu0 %v2948_v55  ;;  %1461 = vmatprep.subr.mxu1 %v2949_v62 }
 0x61e   :  { %1391 = vmatpush1.msra.mxu0 %v2950_v53  ;;  %1462 = vmatpush1.msra.mxu1 %v2951_v1 }
 0x61f   :  { %1392 = vmatprep.subr.mxu0 %v2952_v56  ;;  %1463 = vmatprep.subr.mxu1 %v2953_v58 }
 0x620   :  { %1393 = vmatpush1.msra.mxu0 %v2954_v59  ;;  %1464 = vmatpush1.msra.mxu1 %v2955_v0 }
 0x621   :  { %1394 = vmatprep.subr.mxu0 %v2956_v52  ;;  %1465 = vmatprep.subr.mxu1 %v2957_v60 }
 0x622   :  { %1395 = vmatpush1.msra.mxu0 %v2958_v48  ;;  %1466 = vmatpush1.msra.mxu1 %v2959_v50 }
 0x623   :  { %1396 = vmatprep.subr.mxu0 %v2960_v2  ;;  %1467 = vmatprep.subr.mxu1 %v2961_v4 }
 0x624   :  { %1397 = vmatpush1.msra.mxu0 %v2962_v6  ;;  %1430 = vmatprep.mubr.f32.mxu0 %v2963_v8 }
 0x625   :  { %1468 = vmatpush1.msra.mxu1 %v2964_v11  ;;  %1501 = vmatprep.mubr.f32.mxu1 %v2963_v8 }
 0x6c5   :  { %v1251_v15 = vpop.f32.mrf.mxu0  ;;  %v1322_v26 = vpop.f32.mrf.mxu1 }
 0x6c6   :  { %v1327_v22 = vadd.f32 %v1589_v13, %v1251_v15  ;;  %v1329_v34 = vadd.f32 %v1591_v31, %v1322_v26 }
 0x6c7   :  { %v1253_v23 = vpop.f32.mrf.mxu0  ;;  %v1324_v29 = vpop.f32.mrf.mxu1 }
 0x6c8   :  { %v1593_v24 = vmul.f32 -1.442695, %v1327_v22  ;;  %v1328_v25 = vadd.f32 %v1590_v21, %v1253_v23  ;;  %v1330_v30 = vadd.f32 %v1592_v28, %v1324_v29 }
 0x6ca   :  { %1705 = vpow2.f32 %v1593_v24  ;;  %v1594_v27 = vmul.f32 -1.442695, %v1328_v25  ;;  %v1595_v32 = vmul.f32 -1.442695, %v1330_v30 }
 0x6cc   :  { %1707 = vpow2.f32 %v1594_v27 }
 0x6cd   :  { %1709 = vpow2.f32 %v1595_v32 }
 0x6d7   :  { %v1706_v33 = vpop.eup %1705 }
 0x6d8   :  { %v1334_v35 = vadd.f32 1.0, %v1706_v33 }
 0x6d9   :  { %v1708_v36 = vpop.eup %1707 }
 0x6da   :  { %1711 = vrcp.f32 %v1334_v35  ;;  %v1340_v37 = vadd.f32 1.0, %v1708_v36  ;;  %v1710_v38 = vpop.eup %1709 }
 0x6db   :  { %1713 = vtanh.f32 %v1329_v34  ;;  %v1347_v42 = vadd.f32 1.0, %v1710_v38 }
 0x6dc   :  { %1715 = vrcp.f32 %v1340_v37 }
 0x6dd   :  { %1717 = vrcp.f32 %v1347_v42 }
 0x6e7   :  { %v1712_v39 = vpop.eup %1711 }
 0x6e8   :  { %v1714_v40 = vpop.eup %1713 }
 0x6e9   :  { %v1716_v41 = vpop.eup %1715  ;;  %v1352_v43 = vmul.f32 %v1714_v40, %v1712_v39 }
 0x6ea   :  { %v1351_v45 = vmul.f32 %v1716_v41, %v2674_v47  ;;  %v1718_v61 = vpop.eup %1717  ;;  %v1598_v47 = vld [vmem:[%s2775_s0 + $0xe8] sm:$0xff] }
 0x6ec   :  { %v1353_v51 = vadd.f32 %v1352_v43, %v1351_v45 }
 0x6ee   :  { %1719 = vtanh.f32 %v1353_v51 }
 0x6fb   :  { %v1720_v44 = vpop.eup %1719 }
 0x6fc   :  { %v1355_v5 = vmul.f32 %v1720_v44, %v1718_v61 }
 0x6fe   :  { %1596 = vst [vmem:[%s2777_s2 + $0x30] sm:$0xff] %v1355_v5  ;;  %1431 = vmatmul.mubr.f32.vlgmr.msra.gmra.mxu0 %v1355_v5  ;;  %1502 = vmatmul.mubr.f32.vlgmr.msra.gmra.mxu1 %v1355_v5 }
 0x7be   :  { %v1432_v12 = vpop.f32.mrf.mxu0  ;;  %v1503_v14 = vpop.f32.mrf.mxu1 }
 0x7bf   :  { %v1508_v3 = vadd.f32 %v1597_v57, %v1432_v12  ;;  %v1510_v49 = vadd.f32 %v1599_v54, %v1503_v14 }
 0x7c0   :  { %v1434_v7 = vpop.f32.mrf.mxu0  ;;  %v1505_v18 = vpop.f32.mrf.mxu1 }
 0x7c1   :  { %v1601_v9 = vmul.f32 -1.442695, %v1508_v3  ;;  %v1509_v19 = vadd.f32 %v1598_v47, %v1434_v7  ;;  %v1511_v20 = vadd.f32 %v1600_v17, %v1505_v18 }
 0x7c3   :  { %1721 = vpow2.f32 %v1601_v9  ;;  %v1602_v16 = vmul.f32 -1.442695, %v1509_v19  ;;  %v1603_v63 = vmul.f32 -1.442695, %v1511_v20 }
 0x7c5   :  { %1723 = vpow2.f32 %v1602_v16 }
 0x7c6   :  { %1725 = vpow2.f32 %v1603_v63 }
 0x7d0   :  { %v1722_v46 = vpop.eup %1721 }
 0x7d1   :  { %v1515_v10 = vadd.f32 1.0, %v1722_v46 }
 0x7d2   :  { %v1724_v55 = vpop.eup %1723 }
 0x7d3   :  { %1727 = vrcp.f32 %v1515_v10  ;;  %v1521_v62 = vadd.f32 1.0, %v1724_v55  ;;  %v1726_v53 = vpop.eup %1725 }
 0x7d4   :  { %1729 = vtanh.f32 %v1510_v49  ;;  %v1528_v59 = vadd.f32 1.0, %v1726_v53 }
 0x7d5   :  { %1731 = vrcp.f32 %v1521_v62 }
 0x7d6   :  { %1733 = vrcp.f32 %v1528_v59 }
 0x7e0   :  { %v1728_v1 = vpop.eup %1727 }
 0x7e1   :  { %v1730_v56 = vpop.eup %1729 }
 0x7e2   :  { %v1732_v58 = vpop.eup %1731  ;;  %v1533_v0 = vmul.f32 %v1730_v56, %v1728_v1 }
 0x7e3   :  { %v1532_v52 = vmul.f32 %v1732_v58, %v1353_v51  ;;  %v1734_v48 = vpop.eup %1733 }
 0x7e5   :  { %v1534_v60 = vadd.f32 %v1533_v0, %v1532_v52 }
 0x7e7   :  { %1735 = vtanh.f32 %v1534_v60 }
 0x7f4   :  { %v1736_v50 = vpop.eup %1735 }
 0x7f5   :  { %v1536_v2 = vmul.f32 %v1736_v50, %v1734_v48 }
 0x7f7   :  { %1604 = vst [vmem:[%s2777_s2 + $0x38] sm:$0xff] %v1536_v2 }
 0x7f8   :  { %1545 = vsyncpa [#allocation5], 1 }

// kernel: lstm_model_forward.11
= control target key start
LH: loop header
LB: loop body
LE: loop exit
PB: predicated region body
PF: predicated region fallthrough
CT: control target
= control target key end

     0   :  { %8 = vsyncpa [#allocation3], 0  ;;  %s2330_s0 = inlined_call_operand.vmem [shape: bf16[8,256], index: 0, kind: input, shape index: {}]   ;;  %s2331_s1 = inlined_call_operand.hbm [shape: bf16[8192,256], index: 1, kind: input, shape index: {}]   ;;  %s2332_s2 = inlined_call_operand.hbm [shape: f32[1,8192], index: 2, kind: input, shape index: {}]   ;;  %s2333_s3 = inlined_call_operand.vmem [shape: f32[8,8192], index: 3, kind: output, shape index: {}]  }
   0x1   :  { %10 = vsyncpa [#allocation3 + $0x1], 0 }
   0x2   :  { %11 = vsyncpa [#allocation5], 0 }
   0x3   :  { %13 = vsyncpa [#allocation5 + $0x1], 0  ;;  %s2043_s12 = smov 0   ;;  %s2045_s13 = smov 0  }
   0x4   :  { %s2047_s14 = smov 0   ;;  %s2049_s15 = smov 0  }
   0x5   :  { %s2051_s16 = smov 0   ;;  %s2053_s17 = smov 0  }
   0x6 LB: > { %s1498_s18 = sadd.s32 4294967295, %s2017_s17   ;;  %s34_s19 = sadd.s32 1, %s2013_s16  ;;  %s2017_s17 = sphi %s2053_s17, %s19_s17   ;;  %s2013_s16 = sphi %s2051_s16, %s2342_s16   ;;  %s2009_s15 = sphi %s2049_s15, %s2341_s15   ;;  %s2005_s14 = sphi %s2047_s14, %s2340_s14   ;;  %s2001_s13 = sphi %s2045_s13, %s2339_s13   ;;  %s1997_s12 = sphi %s2043_s12, %s2338_s12  }
   0x7   : > { %p36_p0 = scmp.ge.s32.totalorder %s34_s19, 8  ;;  %s75_s20 = sadd.s32 1, %s2005_s14 }
   0x8   : > { %p82_p1 = scmp.ne.s32.totalorder %s2005_s14, %s2001_s13  ;;  %p83_p2 = scmp.eq.s32.totalorder %s2017_s17, 0 }
   0x9   : > { %s2344_s19 = smov (%p36_p0, %s34_s19), 0  ;;  %p88_p4 = scmp.ne.s32.totalorder %s2001_s13, %s1997_s12 }
   0xa   : > { %p2079_p3 = por %p83_p2, %p82_p1  ;;  %s70_s22 = ssub.s32 %s2013_s16, %s2344_s19 }
   0xb   : > { %p89_p5 = scmp.eq.s32.totalorder %s1498_s18, 0  ;;  %p73_p6 = scmp.eq.s32.totalorder %s70_s22, 0 }
   0xc   : > { %p1661_p8 = scmp.lt.s32.totalorder %s2017_s17, 8  ;;  %s2095_s25 = sand.u32 1, %s2005_s14  }
   0xd   : > { %p2086_p7 = por %p89_p5, %p88_p4  ;;  %s1648_s26 = sshll.u32 %s2013_s16, 14 }
   0xe   : > { %s2092_s24 = scalar_select %p73_p6, %s2005_s14, %s75_s20  }
   0xf   : > { %s1503_s27 = sshll.u32 %s2095_s25, 10  ;;  %s192_s30 = scalar_lea.hbm %s2331_s1, %s1648_s26 }
  0x10   : > { %s183_s4 = scalar_lea.vmem [#allocation2], %s1503_s27  ;;  %p2104_p9 = pnand %p1661_p8, %p2079_p3 }
  0x11   : > { %s193_s5 = sshll.u32 %s183_s4, 4  ;;  %s180_s7 = scalar_lea.sflag [#allocation3], %s2095_s25  ;;  %s194_s5 = int_to_ptr.vmem [resolvable:$true] %s193_s5 }
  0x12   : > { %p1909_p10 = pneg %p2104_p9  ;;  %s1920_s8 = scalar_lea.vmem %s194_s5, 16384 }
  0x13   : > { %p1921_p11 = scmp.ne.s32.totalorder %s194_s5, %s1920_s8  ;;  %s2019_s9 = smov [#allocation2]  }
  0x14   : > { %s1925_s10 = sshll.u32 %s2019_s9, 4  ;;  %s1926_s10 = int_to_ptr.vmem [resolvable:$false] %s1925_s10 }
  0x15   : > { %p1923_p12 = pnand %p1921_p11, %p1909_p10  ;;  %s1927_s11 = scalar_lea.vmem %s1926_s10, 32768 }
  0x16   : > { %p1928_p0 = scmp.lt.s32.totalorder %s194_s5, %s1926_s10  ;;  %p1929_p1 = scmp.lt.s32.totalorder %s1927_s11, %s1920_s8 }
  0x17   : > { %p1924_p13 = pneg %p1923_p12 }
  0x18   : > { %p1930_p2 = por %p1929_p1, %p1928_p0 }
  0x1a   : > { %p1931_p3 = pnand %p1930_p2, %p1924_p13 }
  0x1c   : > { %1934 = shalt.err (!%p1931_p3)
}
  0x1d   : > { %s2020_s12 = smov 128   ;;  %s2021_s18 = smov 8  }
  0x1e   : > { %1657 = dma.hbm_to_vmem [thread:$0]  (!%p2104_p9), %s192_s30, 16384, %s194_s5, %s180_s7, %s2020_s12, %s2020_s12, %s2021_s18  }
  0x1f   : > { %p1510_p4 = scmp.ge.s32.totalorder %s2017_s17, 1  ;;  %p220_p5 = scmp.lt.s32.totalorder %s2017_s17, 9 }
  0x20   : > { %s1507_s20 = sshll.u32 %s2095_s25, 3  ;;  %s1649_s22 = sshll.u32 %s2013_s16, 7 }
  0x21   : > { %p2119_p6 = pnand %p1510_p4, %p220_p5  ;;  %s207_s26 = scalar_lea.vmem [#allocation4], %s1507_s20 }
  0x22   : > { %s215_s27 = sshll.u32 %s207_s26, 4  ;;  %s213_s4 = scalar_lea.hbm %s2332_s2, %s1649_s22  ;;  %s216_s27 = int_to_ptr.vmem [resolvable:$true] %s215_s27 }
  0x23   : > { %s204_s8 = scalar_lea.sflag [#allocation5], %s2095_s25  ;;  %s1948_s9 = scalar_lea.vmem %s216_s27, 128 }
  0x24   : > { %p1949_p8 = scmp.ne.s32.totalorder %s216_s27, %s1948_s9  ;;  %s2022_s30 = smov [#allocation4]  }
  0x25   : > { %s1953_s5 = sshll.u32 %s2022_s30, 4  ;;  %s1954_s5 = int_to_ptr.vmem [resolvable:$false] %s1953_s5 }
  0x26   : > { %p1951_p11 = pnand %p1949_p8, %p1909_p10  ;;  %s1955_s7 = scalar_lea.vmem %s1954_s5, 256 }
  0x27   : > { %p1956_p13 = scmp.lt.s32.totalorder %s216_s27, %s1954_s5  ;;  %p1957_p0 = scmp.lt.s32.totalorder %s1955_s7, %s1948_s9 }
  0x28   : > { %p1952_p12 = pneg %p1951_p11 }
  0x29   : > { %p1958_p1 = por %p1957_p0, %p1956_p13 }
  0x2b   : > { %p1959_p2 = pnand %p1958_p1, %p1952_p12 }
  0x2d   : > { %1962 = shalt.err (!%p1959_p2)
}
  0x2e   : > { %1660 = dma.hbm_to_vmem [thread:$0]  (!%p2104_p9), %s213_s4, 128, %s216_s27, %s204_s8  }
  0x2f   : > { %224 = sbr.rel (%p2119_p6) target bundleno = 514 (0x202), region = 32  ;;  %s226_s25 = sand.u32 (!%p2119_p6), 1, %s2001_s13  }
  0x30   : > { %s1511_s10 = sshll.u32 (!%p2119_p6), %s226_s25, 10  ;;  %s227_s11 = scalar_lea.sflag (!%p2119_p6), [#allocation3], %s226_s25 }
  0x31   : > { %s2136_s12 = scalar_lea.vmem (!%p2119_p6), [#allocation2], %s1511_s10 }
  0x34   : > { %1988 = dma.done.wait (%p2086_p7), %s227_s11, 16384  }
  0x35   : > { %1990 = vsyncadd (%p2086_p7), %s227_s11, 4294950912  ;;  %s1512_s18 = sshll.u32 %s226_s25, 3  ;;  %s236_s20 = scalar_lea.sflag [#allocation5], %s226_s25 }
  0x36   : > { %s2142_s6 = scalar_lea.vmem [#allocation4], %s1512_s18 }
  0x37   : > { %1992 = dma.done.wait (%p2086_p7), %s236_s20, 128  }
  0x38   : > { %1994 = vsyncadd (%p2086_p7), %s236_s20, 4294967168  ;;  %v1713_v0 = vld [vmem:[%s2136_s12 + $0x74] ss:$8 sps:$4 sm:$0xff]   ;;  %v1717_v2 = vld [vmem:[%s2136_s12 + $0x70] ss:$8 sps:$4 sm:$0xff]   ;;  %s1513_s22 = sshll.u32 %s2009_s15, 3 }
  0x39   : > { %v1715_v1 = vld [vmem:[%s2136_s12 + $0x174] ss:$8 sps:$4 sm:$0xff]   ;;  %1099 = vmatprep.subr.bf16.mxu0 %v1713_v0  ;;  %v1718_v3 = vld [vmem:[%s2136_s12 + $0x170] ss:$8 sps:$4 sm:$0xff]   ;;  %v1719_v4 = vld [vmem:[%s2136_s12 + $0x64] ss:$8 sps:$4 sm:$0xff]  }
  0x3a   : > { %1140 = vmatprep.subr.bf16.mxu1 %v1715_v1  ;;  %1100 = vmatpush1.bf16.xpose.msra.mxu0 %v1717_v2  ;;  %v1721_v5 = vld [vmem:[%s2136_s12 + $0x164] ss:$8 sps:$4 sm:$0xff]   ;;  %v1723_v6 = vld [vmem:[%s2136_s12 + $0x60] ss:$8 sps:$4 sm:$0xff]   ;;  %v1725_v8 = vld [vmem:[%s2136_s12 + $0x54] ss:$8 sps:$4 sm:$0xff]  }
  0x3b   : > { %1141 = vmatpush1.bf16.xpose.msra.mxu1 %v1718_v3  ;;  %1101 = vmatprep.subr.bf16.mxu0 %v1719_v4  ;;  %v1724_v7 = vld [vmem:[%s2136_s12 + $0x160] ss:$8 sps:$4 sm:$0xff]   ;;  %v1727_v9 = vld [vmem:[%s2136_s12 + $0x154] ss:$8 sps:$4 sm:$0xff]   ;;  %v1729_v10 = vld [vmem:[%s2136_s12 + $0x50] ss:$8 sps:$4 sm:$0xff]  }
  0x3c   : > { %1142 = vmatprep.subr.bf16.mxu1 %v1721_v5  ;;  %v1730_v11 = vld [vmem:[%s2136_s12 + $0x150] ss:$8 sps:$4 sm:$0xff]   ;;  %v1731_v12 = vld [vmem:[%s2136_s12 + $0x44] ss:$8 sps:$4 sm:$0xff]   ;;  %v1735_v14 = vld [vmem:[%s2136_s12 + $0x40] ss:$8 sps:$4 sm:$0xff]  }
  0x3d   : > { %v1733_v13 = vld [vmem:[%s2136_s12 + $0x144] ss:$8 sps:$4 sm:$0xff]   ;;  %v1736_v15 = vld [vmem:[%s2136_s12 + $0x140] ss:$8 sps:$4 sm:$0xff]   ;;  %v1737_v16 = vld [vmem:[%s2136_s12 + $0x34] ss:$8 sps:$4 sm:$0xff]  }
  0x3e   : > { %v1739_v17 = vld [vmem:[%s2136_s12 + $0x134] ss:$8 sps:$4 sm:$0xff]   ;;  %v1741_v18 = vld [vmem:[%s2136_s12 + $0x30] ss:$8 sps:$4 sm:$0xff]   ;;  %v1743_v20 = vld [vmem:[%s2136_s12 + $0x24] ss:$8 sps:$4 sm:$0xff]  }
  0x3f   : > { %v1742_v19 = vld [vmem:[%s2136_s12 + $0x130] ss:$8 sps:$4 sm:$0xff]   ;;  %v1745_v21 = vld [vmem:[%s2136_s12 + $0x124] ss:$8 sps:$4 sm:$0xff]   ;;  %v1747_v22 = vld [vmem:[%s2136_s12 + $0x20] ss:$8 sps:$4 sm:$0xff]  }
  0x40   : > { %v1748_v23 = vld [vmem:[%s2136_s12 + $0x120] ss:$8 sps:$4 sm:$0xff]   ;;  %v1749_v24 = vld [vmem:[%s2136_s12 + $0x14] ss:$8 sps:$4 sm:$0xff]   ;;  %v1753_v28 = vld [vmem:[%s2136_s12 + $0x10] ss:$8 sps:$4 sm:$0xff]  }
  0x41   : > { %v1751_v25 = vld [vmem:[%s2136_s12 + $0x114] ss:$8 sps:$4 sm:$0xff]   ;;  %v2177_v26 = vld [vmem:[%s2330_s0] sm:$0xff]  ;;  %v1754_v29 = vld [vmem:[%s2136_s12 + $0x110] ss:$8 sps:$4 sm:$0xff]   ;;  %p296_p7 = scmp.lt.s32.totalorder %s1513_s22, 63 }
  0x42   : > { %1102 = vmatpush1.bf16.xpose.msra.mxu0 %v1723_v6  ;;  %v2181_v27 = vcombine.high %v2177_v26, %v2177_v26  ;;  %v1755_v30 = vld [vmem:[%s2136_s12 + $0x4] ss:$8 sps:$4 sm:$0xff]   ;;  %v1759_v32 = vld [vmem:[%s2136_s12] ss:$8 sps:$4 sm:$0xff]   ;;  %v1761_v34 = vld [vmem:[%s2136_s12 + $0xf4] ss:$8 sps:$4 sm:$0xff]   ;;  %v2227_v4 = vcombine.low %v2177_v26, %v2177_v26 }
  0x43   : > { %1143 = vmatpush1.bf16.xpose.msra.mxu1 %v1724_v7  ;;  %1103 = vmatprep.subr.bf16.mxu0 %v1725_v8  ;;  %v1757_v31 = vld [vmem:[%s2136_s12 + $0x104] ss:$8 sps:$4 sm:$0xff]   ;;  %v1760_v33 = vld [vmem:[%s2136_s12 + $0x100] ss:$8 sps:$4 sm:$0xff]   ;;  %v1763_v35 = vld [vmem:[%s2136_s12 + $0x1f4] ss:$8 sps:$4 sm:$0xff]  }
  0x44   : > { %1144 = vmatprep.subr.bf16.mxu1 %v1727_v9  ;;  %1131 = vmatprep.mubr.bf16.mxu0 %v2181_v27  ;;  %v1765_v36 = vld [vmem:[%s2136_s12 + $0xf0] ss:$8 sps:$4 sm:$0xff]   ;;  %v1767_v38 = vld [vmem:[%s2136_s12 + $0xe4] ss:$8 sps:$4 sm:$0xff]   ;;  %v1771_v40 = vld [vmem:[%s2136_s12 + $0xe0] ss:$8 sps:$4 sm:$0xff]  }
  0x45   : > { %1172 = vmatprep.mubr.bf16.mxu1 %v2181_v27  ;;  %v1766_v37 = vld [vmem:[%s2136_s12 + $0x1f0] ss:$8 sps:$4 sm:$0xff]   ;;  %v1769_v39 = vld [vmem:[%s2136_s12 + $0x1e4] ss:$8 sps:$4 sm:$0xff]   ;;  %v1772_v41 = vld [vmem:[%s2136_s12 + $0x1e0] ss:$8 sps:$4 sm:$0xff]  }
  0x46   : > { %v1773_v42 = vld [vmem:[%s2136_s12 + $0xd4] ss:$8 sps:$4 sm:$0xff]   ;;  %v1777_v44 = vld [vmem:[%s2136_s12 + $0xd0] ss:$8 sps:$4 sm:$0xff]   ;;  %v1779_v46 = vld [vmem:[%s2136_s12 + $0xc4] ss:$8 sps:$4 sm:$0xff]  }
  0x47   : > { %v1775_v43 = vld [vmem:[%s2136_s12 + $0x1d4] ss:$8 sps:$4 sm:$0xff]   ;;  %v1778_v45 = vld [vmem:[%s2136_s12 + $0x1d0] ss:$8 sps:$4 sm:$0xff]   ;;  %v1781_v47 = vld [vmem:[%s2136_s12 + $0x1c4] ss:$8 sps:$4 sm:$0xff]  }
  0x48   : > { %v1783_v48 = vld [vmem:[%s2136_s12 + $0xc0] ss:$8 sps:$4 sm:$0xff]   ;;  %v1785_v50 = vld [vmem:[%s2136_s12 + $0xb4] ss:$8 sps:$4 sm:$0xff]   ;;  %v1789_v52 = vld [vmem:[%s2136_s12 + $0xb0] ss:$8 sps:$4 sm:$0xff]  }
  0x49   : > { %v1784_v49 = vld [vmem:[%s2136_s12 + $0x1c0] ss:$8 sps:$4 sm:$0xff]   ;;  %v1787_v51 = vld [vmem:[%s2136_s12 + $0x1b4] ss:$8 sps:$4 sm:$0xff]   ;;  %v1790_v53 = vld [vmem:[%s2136_s12 + $0x1b0] ss:$8 sps:$4 sm:$0xff]  }
  0x4a   : > { %1104 = vmatpush1.bf16.xpose.msra.mxu0 %v1729_v10  ;;  %v1791_v54 = vld [vmem:[%s2136_s12 + $0xa4] ss:$8 sps:$4 sm:$0xff]   ;;  %v1795_v56 = vld [vmem:[%s2136_s12 + $0xa0] ss:$8 sps:$4 sm:$0xff]   ;;  %v1797_v58 = vld [vmem:[%s2136_s12 + $0x94] ss:$8 sps:$4 sm:$0xff]  }
  0x4b   : > { %1145 = vmatpush1.bf16.xpose.msra.mxu1 %v1730_v11  ;;  %1105 = vmatprep.subr.bf16.mxu0 %v1731_v12  ;;  %v1793_v55 = vld [vmem:[%s2136_s12 + $0x1a4] ss:$8 sps:$4 sm:$0xff]   ;;  %v1796_v57 = vld [vmem:[%s2136_s12 + $0x1a0] ss:$8 sps:$4 sm:$0xff]   ;;  %v1799_v59 = vld [vmem:[%s2136_s12 + $0x194] ss:$8 sps:$4 sm:$0xff]  }
  0x4c   : > { %1146 = vmatprep.subr.bf16.mxu1 %v1733_v13  ;;  %v1801_v60 = vld [vmem:[%s2136_s12 + $0x90] ss:$8 sps:$4 sm:$0xff]   ;;  %v1803_v62 = vld [vmem:[%s2136_s12 + $0x84] ss:$8 sps:$4 sm:$0xff]   ;;  %v1807_v0 = vld [vmem:[%s2136_s12 + $0x80] ss:$8 sps:$4 sm:$0xff]  }
  0x4d   : > { %v1802_v61 = vld [vmem:[%s2136_s12 + $0x190] ss:$8 sps:$4 sm:$0xff]   ;;  %v1805_v63 = vld [vmem:[%s2136_s12 + $0x184] ss:$8 sps:$4 sm:$0xff]   ;;  %v1808_v1 = vld [vmem:[%s2136_s12 + $0x180] ss:$8 sps:$4 sm:$0xff]  }
  0x4e   : > { %v1813_v2 = vld [vmem:[%s2136_s12 + $0x274] ss:$8 sps:$4 sm:$0xff]   ;;  %v1811_v5 = vld [vmem:[%s2136_s12 + $0x270] ss:$8 sps:$4 sm:$0xff]   ;;  %v1819_v7 = vld [vmem:[%s2136_s12 + $0x264] ss:$8 sps:$4 sm:$0xff]  }
  0x4f   : > { %v1816_v3 = vld [vmem:[%s2136_s12 + $0x374] ss:$8 sps:$4 sm:$0xff]   ;;  %v1814_v6 = vld [vmem:[%s2136_s12 + $0x370] ss:$8 sps:$4 sm:$0xff]   ;;  %v1822_v8 = vld [vmem:[%s2136_s12 + $0x364] ss:$8 sps:$4 sm:$0xff]  }
  0x50   : > { %v1817_v9 = vld [vmem:[%s2136_s12 + $0x260] ss:$8 sps:$4 sm:$0xff]   ;;  %v1825_v11 = vld [vmem:[%s2136_s12 + $0x254] ss:$8 sps:$4 sm:$0xff]   ;;  %v1823_v13 = vld [vmem:[%s2136_s12 + $0x250] ss:$8 sps:$4 sm:$0xff]  }
  0x51   : > { %v1820_v10 = vld [vmem:[%s2136_s12 + $0x360] ss:$8 sps:$4 sm:$0xff]   ;;  %v1828_v12 = vld [vmem:[%s2136_s12 + $0x354] ss:$8 sps:$4 sm:$0xff]   ;;  %s2346_s22 = smov (!%p296_p7, %s1513_s22), 63 }
  0x52   : > { %1106 = vmatpush1.bf16.xpose.msra.mxu0 %v1735_v14  ;;  %v1826_v14 = vld [vmem:[%s2136_s12 + $0x350] ss:$8 sps:$4 sm:$0xff]   ;;  %v1844_v26 = vld [vmem:[%s2136_s12 + $0x320] ss:$8 sps:$4 sm:$0xff]   ;;  %s1514_s26 = sshll.u32 %s2346_s22, 3 }
  0x53   : > { %1147 = vmatpush1.bf16.xpose.msra.mxu1 %v1736_v15  ;;  %1107 = vmatprep.subr.bf16.mxu0 %v1737_v16  ;;  %v1831_v15 = vld [vmem:[%s2136_s12 + $0x244] ss:$8 sps:$4 sm:$0xff]   ;;  %s2302_s28 = scalar_lea.vmem %s2333_s3, %s1514_s26 }
  0x54   : > { %1148 = vmatprep.subr.bf16.mxu1 %v1739_v17  ;;  %v1834_v16 = vld [vmem:[%s2136_s12 + $0x344] ss:$8 sps:$4 sm:$0xff]   ;;  %v1829_v17 = vld [vmem:[%s2136_s12 + $0x240] ss:$8 sps:$4 sm:$0xff]  }
  0x5a   : > { %1108 = vmatpush1.bf16.xpose.msra.mxu0 %v1741_v18  ;;  %v1832_v18 = vld [vmem:[%s2136_s12 + $0x340] ss:$8 sps:$4 sm:$0xff]  }
  0x5b   : > { %1149 = vmatpush1.bf16.xpose.msra.mxu1 %v1742_v19  ;;  %1109 = vmatprep.subr.bf16.mxu0 %v1743_v20  ;;  %v1837_v19 = vld [vmem:[%s2136_s12 + $0x234] ss:$8 sps:$4 sm:$0xff]  }
  0x5c   : > { %1150 = vmatprep.subr.bf16.mxu1 %v1745_v21  ;;  %v1840_v20 = vld [vmem:[%s2136_s12 + $0x334] ss:$8 sps:$4 sm:$0xff]   ;;  %v1835_v21 = vld [vmem:[%s2136_s12 + $0x230] ss:$8 sps:$4 sm:$0xff]  }
  0x62   : > { %1110 = vmatpush1.bf16.xpose.msra.mxu0 %v1747_v22  ;;  %v1838_v22 = vld [vmem:[%s2136_s12 + $0x330] ss:$8 sps:$4 sm:$0xff]  }
  0x63   : > { %1151 = vmatpush1.bf16.xpose.msra.mxu1 %v1748_v23  ;;  %1111 = vmatprep.subr.bf16.mxu0 %v1749_v24  ;;  %v1843_v23 = vld [vmem:[%s2136_s12 + $0x224] ss:$8 sps:$4 sm:$0xff]  }
  0x64   : > { %1152 = vmatprep.subr.bf16.mxu1 %v1751_v25  ;;  %v1846_v24 = vld [vmem:[%s2136_s12 + $0x324] ss:$8 sps:$4 sm:$0xff]   ;;  %v1841_v25 = vld [vmem:[%s2136_s12 + $0x220] ss:$8 sps:$4 sm:$0xff]  }
  0x6a   : > { %1112 = vmatpush1.bf16.xpose.msra.mxu0 %v1753_v28  ;;  %v1852_v28 = vld [vmem:[%s2136_s12 + $0x314] ss:$8 sps:$4 sm:$0xff]  }
  0x6b   : > { %1153 = vmatpush1.bf16.xpose.msra.mxu1 %v1754_v29  ;;  %1113 = vmatprep.subr.bf16.mxu0 %v1755_v30  ;;  %v1847_v29 = vld [vmem:[%s2136_s12 + $0x210] ss:$8 sps:$4 sm:$0xff]  }
  0x6c   : > { %1154 = vmatprep.subr.bf16.mxu1 %v1757_v31  ;;  %v1850_v30 = vld [vmem:[%s2136_s12 + $0x310] ss:$8 sps:$4 sm:$0xff]   ;;  %v1855_v31 = vld [vmem:[%s2136_s12 + $0x204] ss:$8 sps:$4 sm:$0xff]  }
  0x72   : > { %1114 = vmatpush1.bf16.xpose.msra.mxu0 %v1759_v32  ;;  %v1858_v32 = vld [vmem:[%s2136_s12 + $0x304] ss:$8 sps:$4 sm:$0xff]  }
  0x73   : > { %1155 = vmatpush1.bf16.xpose.msra.mxu1 %v1760_v33  ;;  %1115 = vmatprep.subr.bf16.mxu0 %v1761_v34  ;;  %v1853_v33 = vld [vmem:[%s2136_s12 + $0x200] ss:$8 sps:$4 sm:$0xff]  }
  0x74   : > { %1156 = vmatprep.subr.bf16.mxu1 %v1763_v35  ;;  %v1856_v34 = vld [vmem:[%s2136_s12 + $0x300] ss:$8 sps:$4 sm:$0xff]   ;;  %v1861_v35 = vld [vmem:[%s2136_s12 + $0x2f4] ss:$8 sps:$4 sm:$0xff]  }
  0x7a   : > { %1116 = vmatpush2.bf16.xpose.msra.mxu0 %v1765_v36  ;;  %v1864_v36 = vld [vmem:[%s2136_s12 + $0x3f4] ss:$8 sps:$4 sm:$0xff]  }
  0x7b   : > { %1157 = vmatpush2.bf16.xpose.msra.mxu1 %v1766_v37  ;;  %1117 = vmatprep.subr.bf16.mxu0 %v1767_v38  ;;  %v1859_v37 = vld [vmem:[%s2136_s12 + $0x2f0] ss:$8 sps:$4 sm:$0xff]  }
  0x7c   : > { %1158 = vmatprep.subr.bf16.mxu1 %v1769_v39  ;;  %v1862_v38 = vld [vmem:[%s2136_s12 + $0x3f0] ss:$8 sps:$4 sm:$0xff]   ;;  %v1867_v39 = vld [vmem:[%s2136_s12 + $0x2e4] ss:$8 sps:$4 sm:$0xff]  }
  0x82   : > { %1118 = vmatpush2.bf16.xpose.msra.mxu0 %v1771_v40  ;;  %v1870_v40 = vld [vmem:[%s2136_s12 + $0x3e4] ss:$8 sps:$4 sm:$0xff]  }
  0x83   : > { %1159 = vmatpush2.bf16.xpose.msra.mxu1 %v1772_v41  ;;  %1119 = vmatprep.subr.bf16.mxu0 %v1773_v42  ;;  %v1865_v41 = vld [vmem:[%s2136_s12 + $0x2e0] ss:$8 sps:$4 sm:$0xff]  }
  0x84   : > { %1160 = vmatprep.subr.bf16.mxu1 %v1775_v43  ;;  %v1868_v42 = vld [vmem:[%s2136_s12 + $0x3e0] ss:$8 sps:$4 sm:$0xff]   ;;  %v1873_v43 = vld [vmem:[%s2136_s12 + $0x2d4] ss:$8 sps:$4 sm:$0xff]  }
  0x8a   : > { %1120 = vmatpush2.bf16.xpose.msra.mxu0 %v1777_v44  ;;  %v1876_v44 = vld [vmem:[%s2136_s12 + $0x3d4] ss:$8 sps:$4 sm:$0xff]  }
  0x8b   : > { %1161 = vmatpush2.bf16.xpose.msra.mxu1 %v1778_v45  ;;  %1121 = vmatprep.subr.bf16.mxu0 %v1779_v46  ;;  %v1871_v45 = vld [vmem:[%s2136_s12 + $0x2d0] ss:$8 sps:$4 sm:$0xff]  }
  0x8c   : > { %1162 = vmatprep.subr.bf16.mxu1 %v1781_v47  ;;  %v1874_v46 = vld [vmem:[%s2136_s12 + $0x3d0] ss:$8 sps:$4 sm:$0xff]   ;;  %v1879_v47 = vld [vmem:[%s2136_s12 + $0x2c4] ss:$8 sps:$4 sm:$0xff]  }
  0x92   : > { %1122 = vmatpush2.bf16.xpose.msra.mxu0 %v1783_v48  ;;  %v1882_v48 = vld [vmem:[%s2136_s12 + $0x3c4] ss:$8 sps:$4 sm:$0xff]  }
  0x93   : > { %1163 = vmatpush2.bf16.xpose.msra.mxu1 %v1784_v49  ;;  %1123 = vmatprep.subr.bf16.mxu0 %v1785_v50  ;;  %v1877_v49 = vld [vmem:[%s2136_s12 + $0x2c0] ss:$8 sps:$4 sm:$0xff]  }
  0x94   : > { %1164 = vmatprep.subr.bf16.mxu1 %v1787_v51  ;;  %v1880_v50 = vld [vmem:[%s2136_s12 + $0x3c0] ss:$8 sps:$4 sm:$0xff]   ;;  %v1885_v51 = vld [vmem:[%s2136_s12 + $0x2b4] ss:$8 sps:$4 sm:$0xff]  }
  0x9a   : > { %1124 = vmatpush2.bf16.xpose.msra.mxu0 %v1789_v52  ;;  %v1888_v52 = vld [vmem:[%s2136_s12 + $0x3b4] ss:$8 sps:$4 sm:$0xff]  }
  0x9b   : > { %1165 = vmatpush2.bf16.xpose.msra.mxu1 %v1790_v53  ;;  %1125 = vmatprep.subr.bf16.mxu0 %v1791_v54  ;;  %v1883_v53 = vld [vmem:[%s2136_s12 + $0x2b0] ss:$8 sps:$4 sm:$0xff]  }
  0x9c   : > { %1166 = vmatprep.subr.bf16.mxu1 %v1793_v55  ;;  %v1886_v54 = vld [vmem:[%s2136_s12 + $0x3b0] ss:$8 sps:$4 sm:$0xff]   ;;  %v1891_v55 = vld [vmem:[%s2136_s12 + $0x2a4] ss:$8 sps:$4 sm:$0xff]  }
  0xa2   : > { %1126 = vmatpush2.bf16.xpose.msra.mxu0 %v1795_v56  ;;  %v1894_v56 = vld [vmem:[%s2136_s12 + $0x3a4] ss:$8 sps:$4 sm:$0xff]  }
  0xa3   : > { %1167 = vmatpush2.bf16.xpose.msra.mxu1 %v1796_v57  ;;  %1127 = vmatprep.subr.bf16.mxu0 %v1797_v58  ;;  %v1889_v57 = vld [vmem:[%s2136_s12 + $0x2a0] ss:$8 sps:$4 sm:$0xff]  }
  0xa4   : > { %1168 = vmatprep.subr.bf16.mxu1 %v1799_v59  ;;  %v1892_v58 = vld [vmem:[%s2136_s12 + $0x3a0] ss:$8 sps:$4 sm:$0xff]   ;;  %v1897_v59 = vld [vmem:[%s2136_s12 + $0x294] ss:$8 sps:$4 sm:$0xff]  }
  0xaa   : > { %1128 = vmatpush2.bf16.xpose.msra.mxu0 %v1801_v60  ;;  %v1900_v60 = vld [vmem:[%s2136_s12 + $0x394] ss:$8 sps:$4 sm:$0xff]  }
  0xab   : > { %1169 = vmatpush2.bf16.xpose.msra.mxu1 %v1802_v61  ;;  %1129 = vmatprep.subr.bf16.mxu0 %v1803_v62  ;;  %v1895_v61 = vld [vmem:[%s2136_s12 + $0x290] ss:$8 sps:$4 sm:$0xff]  }
  0xac   : > { %1170 = vmatprep.subr.bf16.mxu1 %v1805_v63  ;;  %v1898_v62 = vld [vmem:[%s2136_s12 + $0x390] ss:$8 sps:$4 sm:$0xff]   ;;  %v1903_v63 = vld [vmem:[%s2136_s12 + $0x284] ss:$8 sps:$4 sm:$0xff]  }
  0xb2   : > { %1130 = vmatpush2.bf16.xpose.msra.mxu0 %v1807_v0  ;;  %v1906_v0 = vld [vmem:[%s2136_s12 + $0x384] ss:$8 sps:$4 sm:$0xff]  }
  0xb3   : > { %1171 = vmatpush2.bf16.xpose.msra.mxu1 %v1808_v1  ;;  %1181 = vmatprep.subr.bf16.mxu0 %v1813_v2  ;;  %v1901_v1 = vld [vmem:[%s2136_s12 + $0x280] ss:$8 sps:$4 sm:$0xff]  }
  0xb4   : > { %1222 = vmatprep.subr.bf16.mxu1 %v1816_v3  ;;  %v1904_v2 = vld [vmem:[%s2136_s12 + $0x380] ss:$8 sps:$4 sm:$0xff]   ;;  %v1292_v3 = vlaneseq }
  0xb9   : > { %1132 = vmatmul.mubr.bf16.vlgmr.msra.gmra.mxu0 %v2227_v4 }
  0xba   : > { %1173 = vmatmul.mubr.bf16.vlgmr.msra.gmra.mxu1 %v2227_v4  ;;  %1182 = vmatpush1.bf16.xpose.msra.mxu0 %v1811_v5  ;;  %v1293_v5 = vshrl.u32 %v1292_v3, 7 }
  0xbb   : > { %1223 = vmatpush1.bf16.xpose.msra.mxu1 %v1814_v6  ;;  %1183 = vmatprep.subr.bf16.mxu0 %v1819_v7 }
  0xbc   : > { %1224 = vmatprep.subr.bf16.mxu1 %v1822_v8  ;;  %1213 = vmatprep.mubr.bf16.mxu0 %v2181_v27  ;;  %v1294_v6 = vsub.s32 0, %v1293_v5  ;;  %v1302_v7 = vsub.s32 2, %v1293_v5  ;;  %v1290_v8 = vld [vmem:[%s2142_s6] sm:$0xff] }
  0xbd   : > { %1254 = vmatprep.mubr.bf16.mxu1 %v2181_v27  ;;  %v1849_v27 = vld [vmem:[%s2136_s12 + $0x214] ss:$8 sps:$4 sm:$0xff]  }
  0xc2   : > { %1184 = vmatpush1.bf16.xpose.msra.mxu0 %v1817_v9  ;;  %v1298_v9 = vsub.s32 1, %v1293_v5 }
  0xc3   : > { %1225 = vmatpush1.bf16.xpose.msra.mxu1 %v1820_v10  ;;  %1185 = vmatprep.subr.bf16.mxu0 %v1825_v11  ;;  %v1306_v10 = vsub.s32 3, %v1293_v5  ;;  %v1295_v11 = vrot.slane %v1290_v8, %v1294_v6 }
  0xc4   : > { %1226 = vmatprep.subr.bf16.mxu1 %v1828_v12  ;;  %v1303_v12 = vrot.slane %v1290_v8, %v1302_v7 }
  0xca   : > { %1186 = vmatpush1.bf16.xpose.msra.mxu0 %v1823_v13 }
  0xcb   : > { %1227 = vmatpush1.bf16.xpose.msra.mxu1 %v1826_v14  ;;  %1187 = vmatprep.subr.bf16.mxu0 %v1831_v15  ;;  %v1299_v15 = vrot.slane %v1290_v8, %v1298_v9 }
  0xcc   : > { %1228 = vmatprep.subr.bf16.mxu1 %v1834_v16  ;;  %v1307_v16 = vrot.slane %v1290_v8, %v1306_v10 }
  0xd2   : > { %1188 = vmatpush1.bf16.xpose.msra.mxu0 %v1829_v17 }
  0xd3   : > { %1229 = vmatpush1.bf16.xpose.msra.mxu1 %v1832_v18  ;;  %1189 = vmatprep.subr.bf16.mxu0 %v1837_v19 }
  0xd4   : > { %1230 = vmatprep.subr.bf16.mxu1 %v1840_v20 }
  0xda   : > { %1190 = vmatpush1.bf16.xpose.msra.mxu0 %v1835_v21 }
  0xdb   : > { %1231 = vmatpush1.bf16.xpose.msra.mxu1 %v1838_v22  ;;  %1191 = vmatprep.subr.bf16.mxu0 %v1843_v23 }
  0xdc   : > { %1232 = vmatprep.subr.bf16.mxu1 %v1846_v24 }
  0xe2   : > { %1192 = vmatpush1.bf16.xpose.msra.mxu0 %v1841_v25 }
  0xe3   : > { %1233 = vmatpush1.bf16.xpose.msra.mxu1 %v1844_v26  ;;  %1193 = vmatprep.subr.bf16.mxu0 %v1849_v27 }
  0xe4   : > { %1234 = vmatprep.subr.bf16.mxu1 %v1852_v28 }
  0xea   : > { %1194 = vmatpush1.bf16.xpose.msra.mxu0 %v1847_v29 }
  0xeb   : > { %1235 = vmatpush1.bf16.xpose.msra.mxu1 %v1850_v30  ;;  %1195 = vmatprep.subr.bf16.mxu0 %v1855_v31  ;;  %v1310_v30 = vsub.s32 4, %v1293_v5  ;;  %v1318_v31 = vsub.s32 6, %v1293_v5 }
  0xec   : > { %1236 = vmatprep.subr.bf16.mxu1 %v1858_v32  ;;  %v1314_v32 = vsub.s32 5, %v1293_v5 }
  0xf2   : > { %1196 = vmatpush1.bf16.xpose.msra.mxu0 %v1853_v33  ;;  %v1322_v33 = vsub.s32 7, %v1293_v5 }
  0xf3   : > { %1237 = vmatpush1.bf16.xpose.msra.mxu1 %v1856_v34  ;;  %1197 = vmatprep.subr.bf16.mxu0 %v1861_v35  ;;  %v1311_v34 = vrot.slane %v1290_v8, %v1310_v30  ;;  %v1319_v35 = vrot.slane %v1290_v8, %v1318_v31 }
  0xf4   : > { %1238 = vmatprep.subr.bf16.mxu1 %v1864_v36 }
  0xfa   : > { %1198 = vmatpush2.bf16.xpose.msra.mxu0 %v1859_v37 }
  0xfb   : > { %1239 = vmatpush2.bf16.xpose.msra.mxu1 %v1862_v38  ;;  %1199 = vmatprep.subr.bf16.mxu0 %v1867_v39  ;;  %v1315_v38 = vrot.slane %v1290_v8, %v1314_v32  ;;  %v1323_v39 = vrot.slane %v1290_v8, %v1322_v33 }
  0xfc   : > { %1240 = vmatprep.subr.bf16.mxu1 %v1870_v40 }
 0x102   : > { %1200 = vmatpush2.bf16.xpose.msra.mxu0 %v1865_v41 }
 0x103   : > { %1241 = vmatpush2.bf16.xpose.msra.mxu1 %v1868_v42  ;;  %1201 = vmatprep.subr.bf16.mxu0 %v1873_v43 }
 0x104   : > { %1242 = vmatprep.subr.bf16.mxu1 %v1876_v44 }
 0x10a   : > { %1202 = vmatpush2.bf16.xpose.msra.mxu0 %v1871_v45 }
 0x10b   : > { %1243 = vmatpush2.bf16.xpose.msra.mxu1 %v1874_v46  ;;  %1203 = vmatprep.subr.bf16.mxu0 %v1879_v47 }
 0x10c   : > { %1244 = vmatprep.subr.bf16.mxu1 %v1882_v48 }
 0x112   : > { %1204 = vmatpush2.bf16.xpose.msra.mxu0 %v1877_v49 }
 0x113   : > { %1245 = vmatpush2.bf16.xpose.msra.mxu1 %v1880_v50  ;;  %1205 = vmatprep.subr.bf16.mxu0 %v1885_v51 }
 0x114   : > { %1246 = vmatprep.subr.bf16.mxu1 %v1888_v52 }
 0x11a   : > { %1206 = vmatpush2.bf16.xpose.msra.mxu0 %v1883_v53 }
 0x11b   : > { %1247 = vmatpush2.bf16.xpose.msra.mxu1 %v1886_v54  ;;  %1207 = vmatprep.subr.bf16.mxu0 %v1891_v55 }
 0x11c   : > { %1248 = vmatprep.subr.bf16.mxu1 %v1894_v56 }
 0x122   : > { %1208 = vmatpush2.bf16.xpose.msra.mxu0 %v1889_v57 }
 0x123   : > { %1249 = vmatpush2.bf16.xpose.msra.mxu1 %v1892_v58  ;;  %1209 = vmatprep.subr.bf16.mxu0 %v1897_v59 }
 0x124   : > { %1250 = vmatprep.subr.bf16.mxu1 %v1900_v60 }
 0x12a   : > { %1210 = vmatpush2.bf16.xpose.msra.mxu0 %v1895_v61 }
 0x12b   : > { %1251 = vmatpush2.bf16.xpose.msra.mxu1 %v1898_v62  ;;  %1211 = vmatprep.subr.bf16.mxu0 %v1903_v63 }
 0x12c   : > { %1252 = vmatprep.subr.bf16.mxu1 %v1906_v0 }
 0x132   : > { %1212 = vmatpush2.bf16.xpose.msra.mxu0 %v1901_v1 }
 0x133   : > { %1253 = vmatpush2.bf16.xpose.msra.mxu1 %v1904_v2 }
 0x139   : > { %1214 = vmatmul.mubr.bf16.vlgmr.msra.gmra.mxu0 %v2227_v4 }
 0x13a   : > { %1255 = vmatmul.mubr.bf16.vlgmr.msra.gmra.mxu1 %v2227_v4 }
 0x179   : > { %v1133_v13 = vpop.f32.mrf.mxu0 }
 0x17a   : > { %v1174_v14 = vpop.f32.mrf.mxu1  ;;  %v1332_v4 = vadd.f32 %v1295_v11, %v1133_v13 }
 0x17b   : > { %v1135_v17 = vpop.f32.mrf.mxu0  ;;  %v1334_v19 = vadd.f32 %v1303_v12, %v1174_v14 }
 0x17c   : > { %v1176_v18 = vpop.f32.mrf.mxu1  ;;  %v1340_v22 = vmax.f32 %v1332_v4, 0.0  ;;  %v1333_v24 = vadd.f32 %v1299_v15, %v1135_v17 }
 0x17d   : > { %v1137_v20 = vpop.f32.mrf.mxu0  ;;  %v1342_v23 = vmax.f32 %v1334_v19, 0.0  ;;  %v1335_v25 = vadd.f32 %v1307_v16, %v1176_v18 }
 0x17e   : > { %v1178_v21 = vpop.f32.mrf.mxu1  ;;  %1348 = vst [vmem:[%s2302_s28] sm:$0xff] %v1340_v22  ;;  %v1341_v28 = vmax.f32 %v1333_v24, 0.0 }
 0x17f   : > { %v1138_v26 = vpop.f32.mrf.mxu0  ;;  %1350 = vst [vmem:[%s2302_s28 + $0x10] sm:$0xff] %v1342_v23  ;;  %v1343_v29 = vmax.f32 %v1335_v25, 0.0 }
 0x180   : > { %v1179_v27 = vpop.f32.mrf.mxu1  ;;  %1349 = vst [vmem:[%s2302_s28 + $0x8] sm:$0xff] %v1341_v28 }
 0x181   : > { %1351 = vst [vmem:[%s2302_s28 + $0x18] sm:$0xff] %v1343_v29 }
 0x1f9   : > { %v1215_v36 = vpop.f32.mrf.mxu0 }
 0x1fa   : > { %v1256_v37 = vpop.f32.mrf.mxu1  ;;  %v1336_v42 = vadd.f32 %v1311_v34, %v1215_v36 }
 0x1fb   : > { %v1217_v40 = vpop.f32.mrf.mxu0  ;;  %v1338_v43 = vadd.f32 %v1319_v35, %v1256_v37 }
 0x1fc   : > { %v1258_v41 = vpop.f32.mrf.mxu1  ;;  %v1344_v46 = vmax.f32 %v1336_v42, 0.0  ;;  %v1337_v48 = vadd.f32 %v1315_v38, %v1217_v40 }
 0x1fd   : > { %v1219_v44 = vpop.f32.mrf.mxu0  ;;  %v1346_v47 = vmax.f32 %v1338_v43, 0.0  ;;  %v1339_v49 = vadd.f32 %v1323_v39, %v1258_v41 }
 0x1fe   : > { %v1260_v45 = vpop.f32.mrf.mxu1  ;;  %1352 = vst [vmem:[%s2302_s28 + $0x20] sm:$0xff] %v1344_v46  ;;  %v1345_v52 = vmax.f32 %v1337_v48, 0.0 }
 0x1ff   : > { %v1220_v50 = vpop.f32.mrf.mxu0  ;;  %1354 = vst [vmem:[%s2302_s28 + $0x30] sm:$0xff] %v1346_v47  ;;  %v1347_v53 = vmax.f32 %v1339_v49, 0.0 }
 0x200   : > { %v1261_v51 = vpop.f32.mrf.mxu1  ;;  %1353 = vst [vmem:[%s2302_s28 + $0x28] sm:$0xff] %v1345_v52 }
 0x201   : > { %1355 = vst [vmem:[%s2302_s28 + $0x38] sm:$0xff] %v1347_v53 }
 0x202 PF: > { %s19_s17 = sadd.s32 1, %s2017_s17   ;;  %s2338_s12 = smov %s2001_s13 }
 0x203   : > { %p16_p9 = scmp.ge.s32.totalorder %s19_s17, 10   ;;  %s2339_s13 = smov %s2005_s14 }
 0x204   : > { %s2340_s14 = smov %s2092_s24  ;;  %s2341_s15 = smov %s2013_s16 }
 0x205   : > { %s2342_s16 = smov %s2344_s19  ;;  %18 = sbr.rel (!%p16_p9) target bundleno = 6 (0x6), region = 96 }
 0x20a   :  { %1386 = vsyncpa [#allocation3], 1 }
 0x20b   :  { %1388 = vsyncpa [#allocation3 + $0x1], 1 }
 0x20c   :  { %1389 = vsyncpa [#allocation5], 1 }
 0x20d   :  { %1391 = vsyncpa [#allocation5 + $0x1], 1 }

// kernel: lstm_model_forward.13
= control target key start
LH: loop header
LB: loop body
LE: loop exit
PB: predicated region body
PF: predicated region fallthrough
CT: control target
= control target key end

     0   :  { %s1836_s1 = inlined_call_operand.vmem [shape: bf16[128,2048], index: 1, kind: input, shape index: {}]   ;;  %s1837_s0 = inlined_call_operand.vmem [shape: bf16[8,2048], index: 0, kind: input, shape index: {}]   ;;  %s1838_s2 = inlined_call_operand.vmem [shape: f32[1,128], index: 2, kind: input, shape index: {}]   ;;  %s1839_s3 = inlined_call_operand.vmem [shape: f32[8,128], index: 3, kind: output, shape index: {}]  }
   0x1   :  { %v141_v0 = vld [vmem:[%s1836_s1 + $0x380] sm:$0xff]  ;;  %v142_v2 = vld [vmem:[%s1836_s1 + $0x388] sm:$0xff] }
   0x2   :  { %v149_v1 = vld [vmem:[%s1836_s1 + $0x3c0] sm:$0xff]  ;;  %v150_v4 = vld [vmem:[%s1836_s1 + $0x3c8] sm:$0xff] }
   0x3   :  { %v1321_v3 = vcombine.high %v141_v0, %v149_v1  ;;  %v1320_v5 = vcombine.low %v141_v0, %v149_v1  ;;  %v125_v6 = vld [vmem:[%s1836_s1 + $0x300] sm:$0xff]  ;;  %v1323_v8 = vcombine.high %v142_v2, %v150_v4  ;;  %v1322_v9 = vcombine.low %v142_v2, %v150_v4  ;;  %v126_v11 = vld [vmem:[%s1836_s1 + $0x308] sm:$0xff]  ;;  %v143_v2 = vld [vmem:[%s1836_s1 + $0x390] sm:$0xff] }
   0x4   :  { %v133_v7 = vld [vmem:[%s1836_s1 + $0x340] sm:$0xff]  ;;  %v134_v12 = vld [vmem:[%s1836_s1 + $0x348] sm:$0xff]  ;;  %v144_v4 = vld [vmem:[%s1836_s1 + $0x398] sm:$0xff] }
   0x5   :  { %v1305_v10 = vcombine.high %v125_v6, %v133_v7  ;;  %853 = vmatprep.subr.bf16.mxu0 %v1321_v3  ;;  %v1307_v13 = vcombine.high %v126_v11, %v134_v12  ;;  %893 = vmatprep.subr.bf16.mxu1 %v1323_v8  ;;  %v109_v14 = vld [vmem:[%s1836_s1 + $0x280] sm:$0xff]  ;;  %v110_v16 = vld [vmem:[%s1836_s1 + $0x288] sm:$0xff]  ;;  %v1304_v18 = vcombine.low %v125_v6, %v133_v7  ;;  %v151_v3 = vld [vmem:[%s1836_s1 + $0x3d0] sm:$0xff] }
   0x6   :  { %854 = vmatpush1.bf16.xpose.msra.mxu0 %v1320_v5  ;;  %894 = vmatpush1.bf16.xpose.msra.mxu1 %v1322_v9  ;;  %v117_v15 = vld [vmem:[%s1836_s1 + $0x2c0] sm:$0xff]  ;;  %v118_v17 = vld [vmem:[%s1836_s1 + $0x2c8] sm:$0xff]  ;;  %v1306_v19 = vcombine.low %v126_v11, %v134_v12  ;;  %v152_v5 = vld [vmem:[%s1836_s1 + $0x3d8] sm:$0xff]  ;;  %v1325_v8 = vcombine.high %v143_v2, %v151_v3 }
   0x7   :  { %855 = vmatprep.subr.bf16.mxu0 %v1305_v10  ;;  %895 = vmatprep.subr.bf16.mxu1 %v1307_v13  ;;  %v1289_v20 = vcombine.high %v109_v14, %v117_v15  ;;  %v1291_v21 = vcombine.high %v110_v16, %v118_v17  ;;  %v1413_v22 = vld [vmem:[%s1837_s0] sm:$0xff]  ;;  %v1420_v24 = vld [vmem:[%s1837_s0 + $0x8] sm:$0xff]  ;;  %v1288_v30 = vcombine.low %v109_v14, %v117_v15  ;;  %v127_v10 = vld [vmem:[%s1836_s1 + $0x310] sm:$0xff] }
   0x8   :  { %v1193_v23 = vcombine.high %v1413_v22, %v1413_v22  ;;  %v1195_v25 = vcombine.high %v1420_v24, %v1420_v24  ;;  %v93_v26 = vld [vmem:[%s1836_s1 + $0x200] sm:$0xff]  ;;  %v94_v28 = vld [vmem:[%s1836_s1 + $0x208] sm:$0xff]  ;;  %v1290_v31 = vcombine.low %v110_v16, %v118_v17  ;;  %v1327_v9 = vcombine.high %v144_v4, %v152_v5  ;;  %v135_v11 = vld [vmem:[%s1836_s1 + $0x350] sm:$0xff] }
   0x9   :  { %v101_v27 = vld [vmem:[%s1836_s1 + $0x240] sm:$0xff]  ;;  %v102_v29 = vld [vmem:[%s1836_s1 + $0x248] sm:$0xff]  ;;  %v1192_v12 = vcombine.low %v1413_v22, %v1413_v22  ;;  %v128_v13 = vld [vmem:[%s1836_s1 + $0x318] sm:$0xff]  ;;  %v1194_v16 = vcombine.low %v1420_v24, %v1420_v24  ;;  %v1324_v17 = vcombine.low %v143_v2, %v151_v3 }
   0xa   :  { %885 = vmatprep.mubr.bf16.mxu0 %v1193_v23  ;;  %925 = vmatprep.mubr.bf16.mxu1 %v1195_v25  ;;  %v1273_v32 = vcombine.high %v93_v26, %v101_v27  ;;  %v1275_v33 = vcombine.high %v94_v28, %v102_v29  ;;  %v77_v34 = vld [vmem:[%s1836_s1 + $0x180] sm:$0xff]  ;;  %v78_v36 = vld [vmem:[%s1836_s1 + $0x188] sm:$0xff]  ;;  %v1272_v38 = vcombine.low %v93_v26, %v101_v27  ;;  %v136_v14 = vld [vmem:[%s1836_s1 + $0x358] sm:$0xff] }
   0xb   :  { %v85_v35 = vld [vmem:[%s1836_s1 + $0x1c0] sm:$0xff]  ;;  %v86_v37 = vld [vmem:[%s1836_s1 + $0x1c8] sm:$0xff]  ;;  %v1274_v39 = vcombine.low %v94_v28, %v102_v29  ;;  %v1513_v15 = vld [vmem:[%s1837_s0 + $0x10] sm:$0xff]  ;;  %v1308_v28 = vcombine.low %v127_v10, %v135_v11  ;;  %v1310_v29 = vcombine.low %v128_v13, %v136_v14 }
   0xc   :  { %v1257_v40 = vcombine.high %v77_v34, %v85_v35  ;;  %v1259_v41 = vcombine.high %v78_v36, %v86_v37  ;;  %v61_v42 = vld [vmem:[%s1836_s1 + $0x100] sm:$0xff]  ;;  %v62_v44 = vld [vmem:[%s1836_s1 + $0x108] sm:$0xff]  ;;  %v1256_v46 = vcombine.low %v77_v34, %v85_v35  ;;  %v1258_v47 = vcombine.low %v78_v36, %v86_v37  ;;  %v111_v24 = vld [vmem:[%s1836_s1 + $0x290] sm:$0xff] }
   0xd   :  { %v69_v43 = vld [vmem:[%s1836_s1 + $0x140] sm:$0xff]  ;;  %v70_v45 = vld [vmem:[%s1836_s1 + $0x148] sm:$0xff]  ;;  %v1197_v22 = vcombine.high %v1513_v15, %v1513_v15  ;;  %v119_v25 = vld [vmem:[%s1836_s1 + $0x2d0] sm:$0xff] }
   0xe   :  { %856 = vmatpush1.bf16.xpose.msra.mxu0 %v1304_v18  ;;  %896 = vmatpush1.bf16.xpose.msra.mxu1 %v1306_v19  ;;  %v1241_v48 = vcombine.high %v61_v42, %v69_v43  ;;  %v1243_v49 = vcombine.high %v62_v44, %v70_v45  ;;  %v45_v50 = vld [vmem:[%s1836_s1 + $0x80] sm:$0xff]  ;;  %v46_v52 = vld [vmem:[%s1836_s1 + $0x88] sm:$0xff]  ;;  %v1240_v54 = vcombine.low %v61_v42, %v69_v43  ;;  %v1520_v18 = vld [vmem:[%s1837_s0 + $0x18] sm:$0xff] }
   0xf   :  { %857 = vmatprep.subr.bf16.mxu0 %v1289_v20  ;;  %897 = vmatprep.subr.bf16.mxu1 %v1291_v21  ;;  %v53_v51 = vld [vmem:[%s1836_s1 + $0xc0] sm:$0xff]  ;;  %v54_v53 = vld [vmem:[%s1836_s1 + $0xc8] sm:$0xff]  ;;  %v1242_v55 = vcombine.low %v62_v44, %v70_v45  ;;  %v1326_v19 = vcombine.low %v144_v4, %v152_v5  ;;  %v1309_v20 = vcombine.high %v127_v10, %v135_v11  ;;  %v112_v26 = vld [vmem:[%s1836_s1 + $0x298] sm:$0xff] }
  0x10   :  { %v1225_v56 = vcombine.high %v45_v50, %v53_v51  ;;  %v1227_v57 = vcombine.high %v46_v52, %v54_v53  ;;  %v29_v58 = vld [vmem:[%s1836_s1] sm:$0xff]  ;;  %v30_v60 = vld [vmem:[%s1836_s1 + $0x8] sm:$0xff]  ;;  %v1224_v62 = vcombine.low %v45_v50, %v53_v51  ;;  %v1226_v63 = vcombine.low %v46_v52, %v54_v53  ;;  %v120_v27 = vld [vmem:[%s1836_s1 + $0x2d8] sm:$0xff] }
  0x11   :  { %v37_v59 = vld [vmem:[%s1836_s1 + $0x40] sm:$0xff]  ;;  %v38_v61 = vld [vmem:[%s1836_s1 + $0x48] sm:$0xff]  ;;  %v1311_v21 = vcombine.high %v128_v13, %v136_v14  ;;  %v1199_v23 = vcombine.high %v1520_v18, %v1520_v18  ;;  %v96_v34 = vld [vmem:[%s1836_s1 + $0x218] sm:$0xff]  ;;  %v1292_v36 = vcombine.low %v111_v24, %v119_v25  ;;  %v1294_v37 = vcombine.low %v112_v26, %v120_v27 }
  0x12   :  { %v1209_v0 = vcombine.high %v29_v58, %v37_v59  ;;  %v1211_v1 = vcombine.high %v30_v60, %v38_v61  ;;  %v1208_v6 = vcombine.low %v29_v58, %v37_v59  ;;  %v1210_v7 = vcombine.low %v30_v60, %v38_v61  ;;  %v104_v35 = vld [vmem:[%s1836_s1 + $0x258] sm:$0xff]  ;;  %v146_v10 = vld [vmem:[%s1836_s1 + $0x3a8] sm:$0xff] }
  0x13   :  { %v80_v42 = vld [vmem:[%s1836_s1 + $0x198] sm:$0xff]  ;;  %v1278_v45 = vcombine.low %v96_v34, %v104_v35  ;;  %v154_v11 = vld [vmem:[%s1836_s1 + $0x3e8] sm:$0xff] }
  0x14   :  { %v88_v43 = vld [vmem:[%s1836_s1 + $0x1d8] sm:$0xff] }
  0x15   :  { %v64_v50 = vld [vmem:[%s1836_s1 + $0x118] sm:$0xff]  ;;  %v1262_v53 = vcombine.low %v80_v42, %v88_v43 }
  0x16   :  { %858 = vmatpush1.bf16.xpose.msra.mxu0 %v1288_v30  ;;  %898 = vmatpush1.bf16.xpose.msra.mxu1 %v1290_v31  ;;  %v1293_v30 = vcombine.high %v111_v24, %v119_v25  ;;  %v1295_v31 = vcombine.high %v112_v26, %v120_v27  ;;  %v72_v51 = vld [vmem:[%s1836_s1 + $0x158] sm:$0xff]  ;;  %v1198_v24 = vcombine.low %v1520_v18, %v1520_v18  ;;  %v113_v18 = vld [vmem:[%s1836_s1 + $0x2a0] sm:$0xff] }
  0x17   :  { %859 = vmatprep.subr.bf16.mxu0 %v1273_v32  ;;  %899 = vmatprep.subr.bf16.mxu1 %v1275_v33  ;;  %v95_v32 = vld [vmem:[%s1836_s1 + $0x210] sm:$0xff]  ;;  %v48_v58 = vld [vmem:[%s1836_s1 + $0x98] sm:$0xff]  ;;  %v1246_v61 = vcombine.low %v64_v50, %v72_v51  ;;  %v1330_v26 = vcombine.low %v146_v10, %v154_v11 }
  0x18   :  { %v103_v33 = vld [vmem:[%s1836_s1 + $0x250] sm:$0xff]  ;;  %v56_v59 = vld [vmem:[%s1836_s1 + $0xd8] sm:$0xff] }
  0x19   :  { %v1276_v44 = vcombine.low %v95_v32, %v103_v33  ;;  %v32_v2 = vld [vmem:[%s1836_s1 + $0x18] sm:$0xff]  ;;  %v1230_v5 = vcombine.low %v48_v58, %v56_v59 }
  0x1a   :  { %v40_v3 = vld [vmem:[%s1836_s1 + $0x58] sm:$0xff] }
  0x1b   :  { %v1214_v13 = vcombine.low %v32_v2, %v40_v3 }
  0x1e   :  { %860 = vmatpush1.bf16.xpose.msra.mxu0 %v1272_v38  ;;  %900 = vmatpush1.bf16.xpose.msra.mxu1 %v1274_v39  ;;  %v1277_v38 = vcombine.high %v95_v32, %v103_v33  ;;  %v1279_v39 = vcombine.high %v96_v34, %v104_v35  ;;  %v114_v32 = vld [vmem:[%s1836_s1 + $0x2a8] sm:$0xff] }
  0x1f   :  { %861 = vmatprep.subr.bf16.mxu0 %v1257_v40  ;;  %901 = vmatprep.subr.bf16.mxu1 %v1259_v41  ;;  %v79_v40 = vld [vmem:[%s1836_s1 + $0x190] sm:$0xff]  ;;  %v122_v33 = vld [vmem:[%s1836_s1 + $0x2e8] sm:$0xff] }
  0x20   :  { %v87_v41 = vld [vmem:[%s1836_s1 + $0x1d0] sm:$0xff] }
  0x21   :  { %v1260_v52 = vcombine.low %v79_v40, %v87_v41 }
  0x26   :  { %862 = vmatpush1.bf16.xpose.msra.mxu0 %v1256_v46  ;;  %902 = vmatpush1.bf16.xpose.msra.mxu1 %v1258_v47  ;;  %v1261_v46 = vcombine.high %v79_v40, %v87_v41  ;;  %v1263_v47 = vcombine.high %v80_v42, %v88_v43  ;;  %v98_v40 = vld [vmem:[%s1836_s1 + $0x228] sm:$0xff]  ;;  %v1298_v43 = vcombine.low %v114_v32, %v122_v33 }
  0x27   :  { %863 = vmatprep.subr.bf16.mxu0 %v1241_v48  ;;  %903 = vmatprep.subr.bf16.mxu1 %v1243_v49  ;;  %v63_v48 = vld [vmem:[%s1836_s1 + $0x110] sm:$0xff]  ;;  %v106_v41 = vld [vmem:[%s1836_s1 + $0x268] sm:$0xff] }
  0x28   :  { %v71_v49 = vld [vmem:[%s1836_s1 + $0x150] sm:$0xff] }
  0x29   :  { %v1244_v60 = vcombine.low %v63_v48, %v71_v49 }
  0x2e   :  { %864 = vmatpush1.bf16.xpose.msra.mxu0 %v1240_v54  ;;  %904 = vmatpush1.bf16.xpose.msra.mxu1 %v1242_v55  ;;  %v1245_v54 = vcombine.high %v63_v48, %v71_v49  ;;  %v1247_v55 = vcombine.high %v64_v50, %v72_v51  ;;  %v82_v48 = vld [vmem:[%s1836_s1 + $0x1a8] sm:$0xff]  ;;  %v1282_v51 = vcombine.low %v98_v40, %v106_v41 }
  0x2f   :  { %865 = vmatprep.subr.bf16.mxu0 %v1225_v56  ;;  %905 = vmatprep.subr.bf16.mxu1 %v1227_v57  ;;  %v47_v56 = vld [vmem:[%s1836_s1 + $0x90] sm:$0xff]  ;;  %v90_v49 = vld [vmem:[%s1836_s1 + $0x1e8] sm:$0xff] }
  0x30   :  { %v55_v57 = vld [vmem:[%s1836_s1 + $0xd0] sm:$0xff] }
  0x31   :  { %v1228_v4 = vcombine.low %v47_v56, %v55_v57 }
  0x36   :  { %866 = vmatpush1.bf16.xpose.msra.mxu0 %v1224_v62  ;;  %906 = vmatpush1.bf16.xpose.msra.mxu1 %v1226_v63  ;;  %v1229_v62 = vcombine.high %v47_v56, %v55_v57  ;;  %v1231_v63 = vcombine.high %v48_v58, %v56_v59  ;;  %v66_v56 = vld [vmem:[%s1836_s1 + $0x128] sm:$0xff]  ;;  %v1266_v59 = vcombine.low %v82_v48, %v90_v49 }
  0x37   :  { %867 = vmatprep.subr.bf16.mxu0 %v1209_v0  ;;  %907 = vmatprep.subr.bf16.mxu1 %v1211_v1  ;;  %v31_v0 = vld [vmem:[%s1836_s1 + $0x10] sm:$0xff]  ;;  %v74_v57 = vld [vmem:[%s1836_s1 + $0x168] sm:$0xff] }
  0x38   :  { %v39_v1 = vld [vmem:[%s1836_s1 + $0x50] sm:$0xff] }
  0x3e   :  { %868 = vmatpush1.bf16.xpose.msra.mxu0 %v1208_v6  ;;  %908 = vmatpush1.bf16.xpose.msra.mxu1 %v1210_v7  ;;  %v1213_v6 = vcombine.high %v31_v0, %v39_v1  ;;  %v1215_v7 = vcombine.high %v32_v2, %v40_v3  ;;  %v1250_v3 = vcombine.low %v66_v56, %v74_v57 }
  0x3f   :  { %933 = vmatprep.subr.bf16.mxu0 %v1325_v8  ;;  %973 = vmatprep.subr.bf16.mxu1 %v1327_v9  ;;  %v145_v8 = vld [vmem:[%s1836_s1 + $0x3a0] sm:$0xff] }
  0x40   :  { %v153_v9 = vld [vmem:[%s1836_s1 + $0x3e0] sm:$0xff] }
  0x41   :  { %v1329_v14 = vcombine.high %v145_v8, %v153_v9  ;;  %v1328_v25 = vcombine.low %v145_v8, %v153_v9  ;;  %v34_v8 = vld [vmem:[%s1836_s1 + $0x28] sm:$0xff] }
  0x42   :  { %v42_v9 = vld [vmem:[%s1836_s1 + $0x68] sm:$0xff] }
  0x45   :  { %886 = vmatmul.mubr.bf16.vlgmr.msra.gmra.mxu0 %v1192_v12  ;;  %926 = vmatmul.mubr.bf16.vlgmr.msra.gmra.mxu1 %v1194_v16  ;;  %v1212_v12 = vcombine.low %v31_v0, %v39_v1  ;;  %v1331_v16 = vcombine.high %v146_v10, %v154_v11  ;;  %v50_v0 = vld [vmem:[%s1836_s1 + $0xa8] sm:$0xff] }
  0x46   :  { %934 = vmatpush1.bf16.xpose.msra.mxu0 %v1324_v17  ;;  %974 = vmatpush1.bf16.xpose.msra.mxu1 %v1326_v19  ;;  %v129_v17 = vld [vmem:[%s1836_s1 + $0x320] sm:$0xff]  ;;  %v58_v1 = vld [vmem:[%s1836_s1 + $0xe8] sm:$0xff] }
  0x47   :  { %935 = vmatprep.subr.bf16.mxu0 %v1309_v20  ;;  %975 = vmatprep.subr.bf16.mxu1 %v1311_v21  ;;  %v137_v19 = vld [vmem:[%s1836_s1 + $0x360] sm:$0xff]  ;;  %v1196_v20 = vcombine.low %v1513_v15, %v1513_v15  ;;  %v130_v21 = vld [vmem:[%s1836_s1 + $0x328] sm:$0xff]  ;;  %v1234_v11 = vcombine.low %v50_v0, %v58_v1 }
  0x48   :  { %965 = vmatprep.mubr.bf16.mxu0 %v1197_v22  ;;  %1005 = vmatprep.mubr.bf16.mxu1 %v1199_v23  ;;  %v138_v22 = vld [vmem:[%s1836_s1 + $0x368] sm:$0xff]  ;;  %v1627_v23 = vld [vmem:[%s1837_s0 + $0x20] sm:$0xff]  ;;  %v1313_v27 = vcombine.high %v129_v17, %v137_v19  ;;  %v1312_v34 = vcombine.low %v129_v17, %v137_v19  ;;  %v148_v17 = vld [vmem:[%s1836_s1 + $0x3b8] sm:$0xff] }
  0x49   :  { %v1634_v15 = vld [vmem:[%s1837_s0 + $0x28] sm:$0xff]  ;;  %v1314_v35 = vcombine.low %v130_v21, %v138_v22  ;;  %v156_v19 = vld [vmem:[%s1836_s1 + $0x3f8] sm:$0xff] }
  0x4e   :  { %936 = vmatpush1.bf16.xpose.msra.mxu0 %v1308_v28  ;;  %976 = vmatpush1.bf16.xpose.msra.mxu1 %v1310_v29  ;;  %v1315_v28 = vcombine.high %v130_v21, %v138_v22  ;;  %v1201_v29 = vcombine.high %v1627_v23, %v1627_v23  ;;  %v1218_v21 = vcombine.low %v34_v8, %v42_v9 }
  0x4f   :  { %937 = vmatprep.subr.bf16.mxu0 %v1293_v30  ;;  %977 = vmatprep.subr.bf16.mxu1 %v1295_v31  ;;  %v1203_v30 = vcombine.high %v1634_v15, %v1634_v15  ;;  %v121_v31 = vld [vmem:[%s1836_s1 + $0x2e0] sm:$0xff] }
  0x50   :  { %v1296_v42 = vcombine.low %v113_v18, %v121_v31 }
  0x56   :  { %938 = vmatpush1.bf16.xpose.msra.mxu0 %v1292_v36  ;;  %978 = vmatpush1.bf16.xpose.msra.mxu1 %v1294_v37  ;;  %v1297_v36 = vcombine.high %v113_v18, %v121_v31  ;;  %v1299_v37 = vcombine.high %v114_v32, %v122_v33  ;;  %v1202_v18 = vcombine.low %v1634_v15, %v1634_v15  ;;  %v115_v15 = vld [vmem:[%s1836_s1 + $0x2b0] sm:$0xff] }
  0x57   :  { %939 = vmatprep.subr.bf16.mxu0 %v1277_v38  ;;  %979 = vmatprep.subr.bf16.mxu1 %v1279_v39  ;;  %v97_v38 = vld [vmem:[%s1836_s1 + $0x220] sm:$0xff]  ;;  %v1334_v32 = vcombine.low %v148_v17, %v156_v19 }
  0x58   :  { %v105_v39 = vld [vmem:[%s1836_s1 + $0x260] sm:$0xff] }
  0x59   :  { %v1280_v50 = vcombine.low %v97_v38, %v105_v39 }
  0x5e   :  { %940 = vmatpush1.bf16.xpose.msra.mxu0 %v1276_v44  ;;  %980 = vmatpush1.bf16.xpose.msra.mxu1 %v1278_v45  ;;  %v1281_v44 = vcombine.high %v97_v38, %v105_v39  ;;  %v1283_v45 = vcombine.high %v98_v40, %v106_v41  ;;  %v116_v38 = vld [vmem:[%s1836_s1 + $0x2b8] sm:$0xff] }
  0x5f   :  { %941 = vmatprep.subr.bf16.mxu0 %v1261_v46  ;;  %981 = vmatprep.subr.bf16.mxu1 %v1263_v47  ;;  %v81_v46 = vld [vmem:[%s1836_s1 + $0x1a0] sm:$0xff]  ;;  %v124_v39 = vld [vmem:[%s1836_s1 + $0x2f8] sm:$0xff] }
  0x60   :  { %v89_v47 = vld [vmem:[%s1836_s1 + $0x1e0] sm:$0xff] }
  0x61   :  { %v1264_v58 = vcombine.low %v81_v46, %v89_v47 }
  0x66   :  { %942 = vmatpush1.bf16.xpose.msra.mxu0 %v1260_v52  ;;  %982 = vmatpush1.bf16.xpose.msra.mxu1 %v1262_v53  ;;  %v1265_v52 = vcombine.high %v81_v46, %v89_v47  ;;  %v1267_v53 = vcombine.high %v82_v48, %v90_v49  ;;  %v100_v46 = vld [vmem:[%s1836_s1 + $0x238] sm:$0xff]  ;;  %v1302_v49 = vcombine.low %v116_v38, %v124_v39 }
  0x67   :  { %943 = vmatprep.subr.bf16.mxu0 %v1245_v54  ;;  %983 = vmatprep.subr.bf16.mxu1 %v1247_v55  ;;  %v65_v54 = vld [vmem:[%s1836_s1 + $0x120] sm:$0xff]  ;;  %v108_v47 = vld [vmem:[%s1836_s1 + $0x278] sm:$0xff] }
  0x68   :  { %v73_v55 = vld [vmem:[%s1836_s1 + $0x160] sm:$0xff] }
  0x69   :  { %v1248_v2 = vcombine.low %v65_v54, %v73_v55 }
  0x6e   :  { %944 = vmatpush1.bf16.xpose.msra.mxu0 %v1244_v60  ;;  %984 = vmatpush1.bf16.xpose.msra.mxu1 %v1246_v61  ;;  %v1249_v60 = vcombine.high %v65_v54, %v73_v55  ;;  %v1251_v61 = vcombine.high %v66_v56, %v74_v57  ;;  %v84_v54 = vld [vmem:[%s1836_s1 + $0x1b8] sm:$0xff]  ;;  %v1286_v57 = vcombine.low %v100_v46, %v108_v47 }
  0x6f   :  { %945 = vmatprep.subr.bf16.mxu0 %v1229_v62  ;;  %985 = vmatprep.subr.bf16.mxu1 %v1231_v63  ;;  %v49_v62 = vld [vmem:[%s1836_s1 + $0xa0] sm:$0xff]  ;;  %v92_v55 = vld [vmem:[%s1836_s1 + $0x1f8] sm:$0xff] }
  0x70   :  { %v57_v63 = vld [vmem:[%s1836_s1 + $0xe0] sm:$0xff] }
  0x71   :  { %v1232_v10 = vcombine.low %v49_v62, %v57_v63 }
  0x76   :  { %946 = vmatpush1.bf16.xpose.msra.mxu0 %v1228_v4  ;;  %986 = vmatpush1.bf16.xpose.msra.mxu1 %v1230_v5  ;;  %v1233_v4 = vcombine.high %v49_v62, %v57_v63  ;;  %v1235_v5 = vcombine.high %v50_v0, %v58_v1  ;;  %v68_v62 = vld [vmem:[%s1836_s1 + $0x138] sm:$0xff]  ;;  %v1270_v1 = vcombine.low %v84_v54, %v92_v55 }
  0x77   :  { %947 = vmatprep.subr.bf16.mxu0 %v1213_v6  ;;  %987 = vmatprep.subr.bf16.mxu1 %v1215_v7  ;;  %v33_v6 = vld [vmem:[%s1836_s1 + $0x20] sm:$0xff]  ;;  %v76_v63 = vld [vmem:[%s1836_s1 + $0x178] sm:$0xff] }
  0x78   :  { %v41_v7 = vld [vmem:[%s1836_s1 + $0x60] sm:$0xff] }
  0x7e   :  { %948 = vmatpush1.bf16.xpose.msra.mxu0 %v1212_v12  ;;  %988 = vmatpush1.bf16.xpose.msra.mxu1 %v1214_v13  ;;  %v1217_v12 = vcombine.high %v33_v6, %v41_v7  ;;  %v1219_v13 = vcombine.high %v34_v8, %v42_v9  ;;  %v1254_v9 = vcombine.low %v68_v62, %v76_v63 }
  0x7f   :  { %1013 = vmatprep.subr.bf16.mxu0 %v1329_v14  ;;  %1053 = vmatprep.subr.bf16.mxu1 %v1331_v16  ;;  %v147_v14 = vld [vmem:[%s1836_s1 + $0x3b0] sm:$0xff] }
  0x80   :  { %v155_v16 = vld [vmem:[%s1836_s1 + $0x3f0] sm:$0xff] }
  0x81   :  { %v1333_v22 = vcombine.high %v147_v14, %v155_v16  ;;  %v1332_v31 = vcombine.low %v147_v14, %v155_v16  ;;  %v36_v14 = vld [vmem:[%s1836_s1 + $0x38] sm:$0xff] }
  0x82   :  { %v44_v16 = vld [vmem:[%s1836_s1 + $0x78] sm:$0xff] }
  0x85   :  { %966 = vmatmul.mubr.bf16.vlgmr.msra.gmra.mxu0 %v1196_v20  ;;  %1006 = vmatmul.mubr.bf16.vlgmr.msra.gmra.mxu1 %v1198_v24  ;;  %v1216_v20 = vcombine.low %v33_v6, %v41_v7  ;;  %v1335_v24 = vcombine.high %v148_v17, %v156_v19  ;;  %v52_v6 = vld [vmem:[%s1836_s1 + $0xb8] sm:$0xff] }
  0x86   :  { %1014 = vmatpush1.bf16.xpose.msra.mxu0 %v1328_v25  ;;  %1054 = vmatpush1.bf16.xpose.msra.mxu1 %v1330_v26  ;;  %v131_v25 = vld [vmem:[%s1836_s1 + $0x330] sm:$0xff]  ;;  %v60_v7 = vld [vmem:[%s1836_s1 + $0xf8] sm:$0xff] }
  0x87   :  { %1015 = vmatprep.subr.bf16.mxu0 %v1313_v27  ;;  %1055 = vmatprep.subr.bf16.mxu1 %v1315_v28  ;;  %v139_v26 = vld [vmem:[%s1836_s1 + $0x370] sm:$0xff]  ;;  %v1200_v27 = vcombine.low %v1627_v23, %v1627_v23  ;;  %v132_v28 = vld [vmem:[%s1836_s1 + $0x338] sm:$0xff]  ;;  %v1238_v19 = vcombine.low %v52_v6, %v60_v7 }
  0x88   :  { %1045 = vmatprep.mubr.bf16.mxu0 %v1201_v29  ;;  %1085 = vmatprep.mubr.bf16.mxu1 %v1203_v30  ;;  %v140_v29 = vld [vmem:[%s1836_s1 + $0x378] sm:$0xff]  ;;  %v1741_v30 = vld [vmem:[%s1837_s0 + $0x30] sm:$0xff]  ;;  %v1317_v33 = vcombine.high %v131_v25, %v139_v26  ;;  %v1316_v40 = vcombine.low %v131_v25, %v139_v26 }
  0x89   :  { %v1748_v23 = vld [vmem:[%s1837_s0 + $0x38] sm:$0xff]  ;;  %v1318_v41 = vcombine.low %v132_v28, %v140_v29  ;;  %v1204_v25 = vcombine.low %v1741_v30, %v1741_v30 }
  0x8a   :  { %v1206_v26 = vcombine.low %v1748_v23, %v1748_v23 }
  0x8e   :  { %1016 = vmatpush1.bf16.xpose.msra.mxu0 %v1312_v34  ;;  %1056 = vmatpush1.bf16.xpose.msra.mxu1 %v1314_v35  ;;  %v1319_v34 = vcombine.high %v132_v28, %v140_v29  ;;  %v1205_v35 = vcombine.high %v1741_v30, %v1741_v30 }
  0x8f   :  { %1017 = vmatprep.subr.bf16.mxu0 %v1297_v36  ;;  %1057 = vmatprep.subr.bf16.mxu1 %v1299_v37  ;;  %v1207_v36 = vcombine.high %v1748_v23, %v1748_v23  ;;  %v123_v37 = vld [vmem:[%s1836_s1 + $0x2f0] sm:$0xff] }
  0x90   :  { %v1300_v48 = vcombine.low %v115_v15, %v123_v37 }
  0x96   :  { %1018 = vmatpush1.bf16.xpose.msra.mxu0 %v1296_v42  ;;  %1058 = vmatpush1.bf16.xpose.msra.mxu1 %v1298_v43  ;;  %v1301_v42 = vcombine.high %v115_v15, %v123_v37  ;;  %v1303_v43 = vcombine.high %v116_v38, %v124_v39 }
  0x97   :  { %1019 = vmatprep.subr.bf16.mxu0 %v1281_v44  ;;  %1059 = vmatprep.subr.bf16.mxu1 %v1283_v45  ;;  %v99_v44 = vld [vmem:[%s1836_s1 + $0x230] sm:$0xff] }
  0x98   :  { %v107_v45 = vld [vmem:[%s1836_s1 + $0x270] sm:$0xff] }
  0x99   :  { %v1284_v56 = vcombine.low %v99_v44, %v107_v45 }
  0x9e   :  { %1020 = vmatpush1.bf16.xpose.msra.mxu0 %v1280_v50  ;;  %1060 = vmatpush1.bf16.xpose.msra.mxu1 %v1282_v51  ;;  %v1285_v50 = vcombine.high %v99_v44, %v107_v45  ;;  %v1287_v51 = vcombine.high %v100_v46, %v108_v47 }
  0x9f   :  { %1021 = vmatprep.subr.bf16.mxu0 %v1265_v52  ;;  %1061 = vmatprep.subr.bf16.mxu1 %v1267_v53  ;;  %v83_v52 = vld [vmem:[%s1836_s1 + $0x1b0] sm:$0xff] }
  0xa0   :  { %v91_v53 = vld [vmem:[%s1836_s1 + $0x1f0] sm:$0xff] }
  0xa1   :  { %v1268_v0 = vcombine.low %v83_v52, %v91_v53 }
  0xa6   :  { %1022 = vmatpush1.bf16.xpose.msra.mxu0 %v1264_v58  ;;  %1062 = vmatpush1.bf16.xpose.msra.mxu1 %v1266_v59  ;;  %v1269_v58 = vcombine.high %v83_v52, %v91_v53  ;;  %v1271_v59 = vcombine.high %v84_v54, %v92_v55 }
  0xa7   :  { %1023 = vmatprep.subr.bf16.mxu0 %v1249_v60  ;;  %1063 = vmatprep.subr.bf16.mxu1 %v1251_v61  ;;  %v67_v60 = vld [vmem:[%s1836_s1 + $0x130] sm:$0xff] }
  0xa8   :  { %v75_v61 = vld [vmem:[%s1836_s1 + $0x170] sm:$0xff] }
  0xa9   :  { %v1252_v8 = vcombine.low %v67_v60, %v75_v61 }
  0xae   :  { %1024 = vmatpush1.bf16.xpose.msra.mxu0 %v1248_v2  ;;  %1064 = vmatpush1.bf16.xpose.msra.mxu1 %v1250_v3  ;;  %v1253_v2 = vcombine.high %v67_v60, %v75_v61  ;;  %v1255_v3 = vcombine.high %v68_v62, %v76_v63 }
  0xaf   :  { %1025 = vmatprep.subr.bf16.mxu0 %v1233_v4  ;;  %1065 = vmatprep.subr.bf16.mxu1 %v1235_v5  ;;  %v51_v4 = vld [vmem:[%s1836_s1 + $0xb0] sm:$0xff] }
  0xb0   :  { %v59_v5 = vld [vmem:[%s1836_s1 + $0xf0] sm:$0xff] }
  0xb1   :  { %v1236_v17 = vcombine.low %v51_v4, %v59_v5 }
  0xb6   :  { %1026 = vmatpush1.bf16.xpose.msra.mxu0 %v1232_v10  ;;  %1066 = vmatpush1.bf16.xpose.msra.mxu1 %v1234_v11  ;;  %v1237_v10 = vcombine.high %v51_v4, %v59_v5  ;;  %v1239_v11 = vcombine.high %v52_v6, %v60_v7 }
  0xb7   :  { %1027 = vmatprep.subr.bf16.mxu0 %v1217_v12  ;;  %1067 = vmatprep.subr.bf16.mxu1 %v1219_v13  ;;  %v35_v12 = vld [vmem:[%s1836_s1 + $0x30] sm:$0xff] }
  0xb8   :  { %v43_v13 = vld [vmem:[%s1836_s1 + $0x70] sm:$0xff] }
  0xbe   :  { %1028 = vmatpush1.bf16.xpose.msra.mxu0 %v1216_v20  ;;  %1068 = vmatpush1.bf16.xpose.msra.mxu1 %v1218_v21  ;;  %v1221_v20 = vcombine.high %v35_v12, %v43_v13  ;;  %v1223_v21 = vcombine.high %v36_v14, %v44_v16 }
  0xbf   :  { %1093 = vmatprep.subr.bf16.mxu0 %v1333_v22  ;;  %1133 = vmatprep.subr.bf16.mxu1 %v1335_v24  ;;  %v1220_v22 = vcombine.low %v35_v12, %v43_v13  ;;  %v1222_v24 = vcombine.low %v36_v14, %v44_v16 }
  0xc5   :  { %1046 = vmatmul.mubr.bf16.vlgmr.msra.gmra.mxu0 %v1200_v27  ;;  %1086 = vmatmul.mubr.bf16.vlgmr.msra.gmra.mxu1 %v1202_v18 }
  0xc6   :  { %1094 = vmatpush1.bf16.xpose.msra.mxu0 %v1332_v31  ;;  %1134 = vmatpush1.bf16.xpose.msra.mxu1 %v1334_v32 }
  0xc7   :  { %1095 = vmatprep.subr.bf16.mxu0 %v1317_v33  ;;  %1135 = vmatprep.subr.bf16.mxu1 %v1319_v34 }
  0xc8   :  { %1125 = vmatprep.mubr.bf16.mxu0 %v1205_v35  ;;  %1165 = vmatprep.mubr.bf16.mxu1 %v1207_v36 }
  0xce   :  { %1096 = vmatpush1.bf16.xpose.msra.mxu0 %v1316_v40  ;;  %1136 = vmatpush1.bf16.xpose.msra.mxu1 %v1318_v41 }
  0xcf   :  { %1097 = vmatprep.subr.bf16.mxu0 %v1301_v42  ;;  %1137 = vmatprep.subr.bf16.mxu1 %v1303_v43 }
  0xd6   :  { %1098 = vmatpush1.bf16.xpose.msra.mxu0 %v1300_v48  ;;  %1138 = vmatpush1.bf16.xpose.msra.mxu1 %v1302_v49 }
  0xd7   :  { %1099 = vmatprep.subr.bf16.mxu0 %v1285_v50  ;;  %1139 = vmatprep.subr.bf16.mxu1 %v1287_v51 }
  0xde   :  { %1100 = vmatpush1.bf16.xpose.msra.mxu0 %v1284_v56  ;;  %1140 = vmatpush1.bf16.xpose.msra.mxu1 %v1286_v57 }
  0xdf   :  { %1101 = vmatprep.subr.bf16.mxu0 %v1269_v58  ;;  %1141 = vmatprep.subr.bf16.mxu1 %v1271_v59  ;;  %v1336_v59 = vld [vmem:[%s1838_s2] ss:$0 sm:$0xff] }
  0xe6   :  { %1102 = vmatpush1.bf16.xpose.msra.mxu0 %v1268_v0  ;;  %1142 = vmatpush1.bf16.xpose.msra.mxu1 %v1270_v1 }
  0xe7   :  { %1103 = vmatprep.subr.bf16.mxu0 %v1253_v2  ;;  %1143 = vmatprep.subr.bf16.mxu1 %v1255_v3 }
  0xee   :  { %1104 = vmatpush1.bf16.xpose.msra.mxu0 %v1252_v8  ;;  %1144 = vmatpush1.bf16.xpose.msra.mxu1 %v1254_v9 }
  0xef   :  { %1105 = vmatprep.subr.bf16.mxu0 %v1237_v10  ;;  %1145 = vmatprep.subr.bf16.mxu1 %v1239_v11 }
  0xf6   :  { %1106 = vmatpush1.bf16.xpose.msra.mxu0 %v1236_v17  ;;  %1146 = vmatpush1.bf16.xpose.msra.mxu1 %v1238_v19 }
  0xf7   :  { %1107 = vmatprep.subr.bf16.mxu0 %v1221_v20  ;;  %1147 = vmatprep.subr.bf16.mxu1 %v1223_v21 }
  0xfe   :  { %1108 = vmatpush1.bf16.xpose.msra.mxu0 %v1220_v22  ;;  %1148 = vmatpush1.bf16.xpose.msra.mxu1 %v1222_v24 }
 0x105   :  { %v887_v27 = vpop.f32.mrf.mxu0  ;;  %1126 = vmatmul.mubr.bf16.vlgmr.msra.gmra.mxu0 %v1204_v25  ;;  %v927_v28 = vpop.f32.mrf.mxu1  ;;  %1166 = vmatmul.mubr.bf16.vlgmr.msra.gmra.mxu1 %v1206_v26 }
 0x106   :  { %v928_v29 = vadd.f32 %v927_v28, %v887_v27 }
 0x107   :  { %v889_v18 = vpop.f32.mrf.mxu0  ;;  %v929_v31 = vpop.f32.mrf.mxu1 }
 0x109   :  { %v890_v32 = vpop.f32.mrf.mxu0  ;;  %v930_v33 = vpop.f32.mrf.mxu1 }
 0x10b   :  { %v891_v34 = vpop.f32.mrf.mxu0  ;;  %v931_v35 = vpop.f32.mrf.mxu1 }
 0x145   :  { %v967_v36 = vpop.f32.mrf.mxu0  ;;  %v1007_v37 = vpop.f32.mrf.mxu1 }
 0x146   :  { %v968_v15 = vadd.f32 %v967_v36, %v928_v29 }
 0x147   :  { %v969_v38 = vpop.f32.mrf.mxu0  ;;  %v1009_v30 = vpop.f32.mrf.mxu1 }
 0x148   :  { %v1008_v39 = vadd.f32 %v1007_v37, %v968_v15 }
 0x149   :  { %v970_v40 = vpop.f32.mrf.mxu0  ;;  %v1010_v41 = vpop.f32.mrf.mxu1 }
 0x14b   :  { %v971_v23 = vpop.f32.mrf.mxu0  ;;  %v1011_v42 = vpop.f32.mrf.mxu1 }
 0x185   :  { %v1047_v43 = vpop.f32.mrf.mxu0  ;;  %v1087_v44 = vpop.f32.mrf.mxu1 }
 0x186   :  { %v1048_v51 = vadd.f32 %v1047_v43, %v1008_v39 }
 0x187   :  { %v1049_v45 = vpop.f32.mrf.mxu0  ;;  %v1089_v46 = vpop.f32.mrf.mxu1 }
 0x188   :  { %v1088_v52 = vadd.f32 %v1087_v44, %v1048_v51 }
 0x189   :  { %v1050_v47 = vpop.f32.mrf.mxu0  ;;  %v1090_v48 = vpop.f32.mrf.mxu1 }
 0x18b   :  { %v1051_v49 = vpop.f32.mrf.mxu0  ;;  %v1091_v50 = vpop.f32.mrf.mxu1 }
 0x1c5   :  { %v1127_v53 = vpop.f32.mrf.mxu0  ;;  %v1167_v55 = vpop.f32.mrf.mxu1 }
 0x1c6   :  { %v1128_v54 = vadd.f32 %v1127_v53, %v1088_v52 }
 0x1c7   :  { %v1129_v56 = vpop.f32.mrf.mxu0  ;;  %v1169_v58 = vpop.f32.mrf.mxu1 }
 0x1c8   :  { %v1168_v57 = vadd.f32 %v1167_v55, %v1128_v54 }
 0x1c9   :  { %v1130_v60 = vpop.f32.mrf.mxu0  ;;  %v1170_v61 = vpop.f32.mrf.mxu1 }
 0x1ca   :  { %v1186_v63 = vadd.f32 %v1336_v59, %v1168_v57 }
 0x1cb   :  { %v1131_v62 = vpop.f32.mrf.mxu0  ;;  %v1171_v0 = vpop.f32.mrf.mxu1 }
 0x1cc   :  { %1187 = vst [vmem:[%s1839_s3] sm:$0xff] %v1186_v63 }

// kernel: lstm_model_forward.12
= control target key start
LH: loop header
LB: loop body
LE: loop exit
PB: predicated region body
PF: predicated region fallthrough
CT: control target
= control target key end

     0   :  { %s10953_s0 = inlined_call_operand.vmem [shape: bf16[8,8192], index: 0, kind: input, shape index: {}]   ;;  %s10954_s1 = inlined_call_operand.hbm [shape: bf16[2048,8192], index: 1, kind: input, shape index: {}]   ;;  %s10955_s2 = inlined_call_operand.hbm [shape: f32[1,2048], index: 2, kind: input, shape index: {}]   ;;  %s10956_s3 = inlined_call_operand.vmem [shape: f32[8,2048], index: 3, kind: output, shape index: {}]  }
   0x1   :  { %10959 = sst [smem:[#allocation10_spill]] %s10954_s1 }
   0x2   :  { %8 = vsyncpa [#allocation3], 0 }
   0x3   :  { %10 = vsyncpa [#allocation3 + $0x1], 0 }
   0x4   :  { %11 = vsyncpa [#allocation5], 0 }
   0x5   :  { %13 = vsyncpa [#allocation5 + $0x1], 0  ;;  %s9442_s12 = smov 0   ;;  %s9444_s13 = smov 0  }
   0x6   :  { %s9446_s14 = smov 0   ;;  %s9448_s15 = smov 0  }
   0x7   :  { %s9450_s16 = smov 0   ;;  %s9452_s17 = smov 0  }
   0x8   :  { %s9454_s18 = smov 0   ;;  %s9456_s19 = smov 0  }
   0x9   :  { %s9458_s20 = smov 0   ;;  %s9460_s21 = smov 0  }
   0xa   :  { %s9462_s22 = smov 0  }
   0xb LB: > { %s31_s23 = sadd.s32 1, %s9406_s20  ;;  %p82_p1 = scmp.ne.s32.totalorder %s9394_s17, %s9390_s16  ;;  %s9414_s22 = sphi %s9462_s22, %s19_s22   ;;  %s9410_s21 = sphi %s9460_s21, %s10984_s21   ;;  %s9406_s20 = sphi %s9458_s20, %s10983_s20   ;;  %s9402_s19 = sphi %s9456_s19, %s10982_s19   ;;  %s9398_s18 = sphi %s9454_s18, %s10981_s18   ;;  %s9394_s17 = sphi %s9452_s17, %s10980_s17   ;;  %s9390_s16 = sphi %s9450_s16, %s10979_s16   ;;  %s9386_s15 = sphi %s9448_s15, %s10978_s15   ;;  %s9382_s14 = sphi %s9446_s14, %s10977_s14   ;;  %s9378_s13 = sphi %s9444_s13, %s10976_s13   ;;  %s9374_s12 = sphi %s9442_s12, %s10975_s12  }
   0xc   : > { %p9499_p0 = scmp.ge.s32.totalorder %s31_s23, 4  ;;  %p83_p2 = scmp.eq.s32.totalorder %s9414_s22, 0 }
   0xd   : > { %p9155_p4 = scmp.lt.s32.totalorder %s9414_s22, 8  ;;  %s179_s27 = sand.u32 1, %s9394_s17  }
   0xe   : > { %s10986_s23 = smov (%p9499_p0, %s31_s23), 0  ;;  %p84_p3 = por %p83_p2, %p82_p1 }
   0xf   : > { %10961 = sst [smem:[#allocation8_spill]] %s10986_s23  ;;  %s8083_s28 = sshll.u32 %s179_s27, 13 }
  0x10   : > { %s8085_s29 = sshll.u32 %s9406_s20, 4  ;;  %s9142_s30 = sshll.u32 %s9410_s21, 13 }
  0x11   : > { %s183_s4 = scalar_lea.vmem [#allocation2], %s8083_s28  ;;  %s190_s6 = sadd.s32 %s9142_s30, %s8085_s29 }
  0x12   : > { %s193_s5 = sshll.u32 %s183_s4, 4  ;;  %s8087_s7 = sshll.u32 %s190_s6, 6  ;;  %s194_s5 = int_to_ptr.vmem [resolvable:$true] %s193_s5 }
  0x13   : > { %p9520_p5 = pnand %p9155_p4, %p84_p3  ;;  %s10963_s1 = sld [smem:[#allocation10_spill]] }
  0x14   : > { %p8091_p6 = scmp.ge.s32.totalorder %s9414_s22, 1  ;;  %s180_s24 = scalar_lea.sflag [#allocation3], %s179_s27 }
  0x15   : > { %p9266_p7 = pneg %p9520_p5  ;;  %s9277_s26 = scalar_lea.vmem %s194_s5, 131072 }
  0x16   : > { %p9278_p8 = scmp.ne.s32.totalorder %s194_s5, %s9277_s26  ;;  %s9416_s28 = smov [#allocation2]  }
  0x17   : > { %s9282_s29 = sshll.u32 %s9416_s28, 4  ;;  %s9283_s29 = int_to_ptr.vmem [resolvable:$false] %s9282_s29 }
  0x18   : > { %p9280_p9 = pnand %p9278_p8, %p9266_p7  ;;  %s9284_s30 = scalar_lea.vmem %s9283_s29, 262144 }
  0x19   : > { %s192_s11 = scalar_lea.hbm %s10963_s1, %s8087_s7  ;;  %p9285_p11 = scmp.lt.s32.totalorder %s194_s5, %s9283_s29 }
  0x1a   : > { %p9281_p10 = pneg %p9280_p9  ;;  %p9286_p12 = scmp.lt.s32.totalorder %s9284_s30, %s9277_s26 }
  0x1c   : > { %p9287_p13 = por %p9286_p12, %p9285_p11 }
  0x1e   : > { %p9288_p1 = pnand %p9287_p13, %p9281_p10 }
  0x20   : > { %9291 = shalt.err (!%p9288_p1)
}
  0x21   : > { %s9417_s4 = smov 4096   ;;  %s9418_s27 = smov 1024  }
  0x22   : > { %s9419_s26 = smov 64   ;;  %p220_p3 = scmp.lt.s32.totalorder %s9414_s22, 9 }
  0x23   : > { %9151 = dma.hbm_to_vmem [thread:$0]  (!%p9520_p5), %s192_s11, 131072, %s194_s5, %s180_s24, %s9417_s4, %s9418_s27, %s9419_s26  }
  0x24   : > { %p9535_p7 = pnand %p8091_p6, %p220_p3  ;;  %s8079_s7 = sadd.s32 4294967295, %s9414_s22  }
  0x25   : > { %s34_s9 = sadd.s32 1, %s9410_s21  ;;  %p88_p8 = scmp.ne.s32.totalorder %s9390_s16, %s9386_s15 }
  0x26   : > { %s10988_s9 = smov (!%p9499_p0, %s34_s9), %s9410_s21  ;;  %p9546_p9 = scmp.eq.s32.totalorder %s8079_s7, 0 }
  0x27   : > { %p36_p5 = scmp.ge.s32.totalorder %s10988_s9, 2  ;;  %s101_s24 = sadd.s32 1, %s9382_s14 }
  0x28   : > { %p9553_p6 = por %p9546_p9, %p88_p8  ;;  %p108_p10 = scmp.ne.s32.totalorder %s9382_s14, %s9378_s13 }
  0x29   : > { %s10990_s9 = smov (%p36_p5, %s10988_s9), 0  ;;  %p114_p11 = scmp.ne.s32.totalorder %s9378_s13, %s9374_s12 }
  0x2a   : > { %10967 = sst [smem:[#allocation9_spill]] %s10990_s9  ;;  %p9563_p0 = por %p108_p10, %p83_p2 }
  0x2b   : > { %s70_s25 = ssub.s32 %s9410_s21, %s10990_s9  ;;  %s203_s10 = sand.u32 1, %s9382_s14  }
  0x2c   : > { %s10969_s11 = ssub.s32 %s9406_s20, %s10986_s23  ;;  %p99_p12 = scmp.eq.s32.totalorder %s70_s25, 0 }
  0x2d   : > { %s72_s28 = sor.u32 %s10969_s11, %s70_s25  ;;  %p9577_p1 = por %p114_p11, %p9546_p9 }
  0x2e   : > { %p73_p13 = scmp.eq.s32.totalorder %s72_s28, 0  ;;  %s10971_s4 = sadd.s32 1, %s9394_s17 }
  0x2f   : > { %s9582_s30 = scalar_select %p99_p12, %s9382_s14, %s101_s24  }
  0x30   : > { %s9587_s27 = scalar_select %p73_p13, %s9394_s17, %s10971_s4  }
  0x31   : > { %s8088_s26 = sshll.u32 %s203_s10, 3  ;;  %s9143_s7 = sshll.u32 %s9410_s21, 7 }
  0x32   : > { %s213_s9 = scalar_lea.hbm %s10955_s2, %s9143_s7  ;;  %s207_s23 = scalar_lea.vmem [#allocation4], %s8088_s26 }
  0x33   : > { %s215_s11 = sshll.u32 %s207_s23, 4  ;;  %p9597_p2 = pnand %p9155_p4, %p9563_p0  ;;  %s216_s11 = int_to_ptr.vmem [resolvable:$true] %s215_s11 }
  0x34   : > { %s204_s24 = scalar_lea.sflag [#allocation5], %s203_s10  ;;  %s9305_s25 = scalar_lea.vmem %s216_s11, 128 }
  0x35   : > { %p9294_p3 = pneg %p9597_p2  ;;  %p9306_p8 = scmp.ne.s32.totalorder %s216_s11, %s9305_s25 }
  0x36   : > { %s9420_s28 = smov [#allocation4]  }
  0x37   : > { %p9308_p9 = pnand %p9306_p8, %p9294_p3  ;;  %s9310_s1 = sshll.u32 %s9420_s28, 4  ;;  %s9311_s1 = int_to_ptr.vmem [resolvable:$false] %s9310_s1 }
  0x38   : > { %s9312_s4 = scalar_lea.vmem %s9311_s1, 256  ;;  %p9313_p10 = scmp.lt.s32.totalorder %s216_s11, %s9311_s1 }
  0x39   : > { %p9309_p5 = pneg %p9308_p9  ;;  %p9314_p11 = scmp.lt.s32.totalorder %s9312_s4, %s9305_s25 }
  0x3b   : > { %p9315_p12 = por %p9314_p11, %p9313_p10 }
  0x3d   : > { %p9316_p13 = pnand %p9315_p12, %p9309_p5 }
  0x3f   : > { %9319 = shalt.err (!%p9316_p13)
}
  0x40   : > { %9154 = dma.hbm_to_vmem [thread:$0]  (!%p9597_p2), %s213_s9, 128, %s216_s11, %s204_s24  }
  0x41   : > { %224 = sbr.rel (%p9535_p7) target bundleno = 2361 (0x939), region = 32  ;;  %s226_s23 = sand.u32 (!%p9535_p7), 1, %s9390_s16  }
  0x42   : > { %s8092_s15 = sshll.u32 (!%p9535_p7), %s226_s23, 13  ;;  %s227_s10 = scalar_lea.sflag (!%p9535_p7), [#allocation3], %s226_s23 }
  0x43   : > { %s9608_s26 = scalar_lea.vmem (!%p9535_p7), [#allocation2], %s8092_s15 }
  0x46   : > { %9365 = dma.done.wait (%p9553_p6), %s227_s10, 131072  }
  0x47   : > { %9367 = vsyncadd (%p9553_p6), %s227_s10, 4294836224  ;;  %s235_s7 = sand.u32 1, %s9378_s13  }
  0x48   : > { %s9615_s12 = sshll.u32 %s235_s7, 3  ;;  %s236_s6 = scalar_lea.sflag [#allocation5], %s235_s7 }
  0x49   : > { %s239_s9 = scalar_lea.vmem [#allocation4], %s9615_s12 }
  0x4a   : > { %9369 = dma.done.wait (%p9577_p1), %s236_s6, 128  }
  0x4b   : > { %9371 = vsyncadd (%p9577_p1), %s236_s6, 4294967168  ;;  %s8094_s11 = sshll.u32 %s9398_s18, 4  ;;  %s8096_s8 = sshll.u32 %s9402_s19, 3 }
  0x4c   : > { %p283_p4 = scmp.lt.s32.totalorder %s8094_s11, 63  ;;  %p296_p7 = scmp.lt.s32.totalorder %s8096_s8, 15 }
  0x4d   : > { %p8098_p6 = scmp.ne.s32.totalorder %s9398_s18, 0 }
  0x4e   : > { %s10992_s11 = smov (!%p283_p4, %s8094_s11), 63  ;;  %s10994_s8 = smov (!%p296_p7, %s8096_s8), 15 }
  0x4f   : > { %s8095_s5 = sshll.u32 %s10992_s11, 2  ;;  %s8097_s1 = sshll.u32 %s10994_s8, 3 }
  0x50   : > { %s9627_s28 = scalar_lea.vmem %s10953_s0, %s8095_s5  ;;  %s9632_s29 = scalar_lea.vmem %s10956_s3, %s8097_s1 }
  0x51   : > { %306 = sbr.rel (%p8098_p6) target bundleno = 91 (0x5b), region = 44 }
  0x56   : > { %v9421_v0 = vmov 0.0  }
  0x57   : > { %307 = vst [vmem:[%s9632_s29] sm:$0xff] %v9421_v0  ;;  %308 = vst [vmem:[%s9632_s29 + $0x8] sm:$0xff] %v9421_v0 }
  0x58   : > { %309 = vst [vmem:[%s9632_s29 + $0x10] sm:$0xff] %v9421_v0  ;;  %310 = vst [vmem:[%s9632_s29 + $0x18] sm:$0xff] %v9421_v0 }
  0x59   : > { %311 = vst [vmem:[%s9632_s29 + $0x20] sm:$0xff] %v9421_v0  ;;  %312 = vst [vmem:[%s9632_s29 + $0x28] sm:$0xff] %v9421_v0 }
  0x5a   : > { %313 = vst [vmem:[%s9632_s29 + $0x30] sm:$0xff] %v9421_v0  ;;  %314 = vst [vmem:[%s9632_s29 + $0x38] sm:$0xff] %v9421_v0 }
  0x5b PF: > { %v443_v1 = vld [vmem:[%s9608_s26 + $0x380] sm:$0xff]  ;;  %v444_v3 = vld [vmem:[%s9608_s26 + $0x388] sm:$0xff]  ;;  %p9139_p0 = scmp.ne.s32.totalorder %s9398_s18, 3 }
  0x5c   : > { %v451_v2 = vld [vmem:[%s9608_s26 + $0x3c0] sm:$0xff]  ;;  %v452_v5 = vld [vmem:[%s9608_s26 + $0x3c8] sm:$0xff] }
  0x5d   : > { %v8228_v4 = vcombine.high %v443_v1, %v451_v2  ;;  %v8227_v6 = vcombine.low %v443_v1, %v451_v2  ;;  %v427_v7 = vld [vmem:[%s9608_s26 + $0x300] sm:$0xff]  ;;  %v8230_v9 = vcombine.high %v444_v3, %v452_v5  ;;  %v8229_v10 = vcombine.low %v444_v3, %v452_v5  ;;  %v428_v12 = vld [vmem:[%s9608_s26 + $0x308] sm:$0xff] }
  0x5e   : > { %v435_v8 = vld [vmem:[%s9608_s26 + $0x340] sm:$0xff]  ;;  %v436_v13 = vld [vmem:[%s9608_s26 + $0x348] sm:$0xff] }
  0x5f   : > { %v8212_v11 = vcombine.high %v427_v7, %v435_v8  ;;  %6531 = vmatprep.subr.bf16.mxu0 %v8228_v4  ;;  %v8214_v14 = vcombine.high %v428_v12, %v436_v13  ;;  %6572 = vmatprep.subr.bf16.mxu1 %v8230_v9  ;;  %v411_v15 = vld [vmem:[%s9608_s26 + $0x280] sm:$0xff]  ;;  %v412_v17 = vld [vmem:[%s9608_s26 + $0x288] sm:$0xff]  ;;  %v8211_v19 = vcombine.low %v427_v7, %v435_v8 }
  0x60   : > { %6532 = vmatpush1.bf16.xpose.msra.mxu0 %v8227_v6  ;;  %6573 = vmatpush1.bf16.xpose.msra.mxu1 %v8229_v10  ;;  %v419_v16 = vld [vmem:[%s9608_s26 + $0x2c0] sm:$0xff]  ;;  %v420_v18 = vld [vmem:[%s9608_s26 + $0x2c8] sm:$0xff]  ;;  %v8213_v20 = vcombine.low %v428_v12, %v436_v13 }
  0x61   : > { %6533 = vmatprep.subr.bf16.mxu0 %v8212_v11  ;;  %6574 = vmatprep.subr.bf16.mxu1 %v8214_v14  ;;  %v8196_v21 = vcombine.high %v411_v15, %v419_v16  ;;  %v8198_v22 = vcombine.high %v412_v17, %v420_v18  ;;  %v395_v23 = vld [vmem:[%s9608_s26 + $0x200] sm:$0xff]  ;;  %v396_v25 = vld [vmem:[%s9608_s26 + $0x208] sm:$0xff]  ;;  %v8195_v27 = vcombine.low %v411_v15, %v419_v16 }
  0x62   : > { %v403_v24 = vld [vmem:[%s9608_s26 + $0x240] sm:$0xff]  ;;  %v404_v26 = vld [vmem:[%s9608_s26 + $0x248] sm:$0xff]  ;;  %v8197_v28 = vcombine.low %v412_v17, %v420_v18 }
  0x63   : > { %v8180_v29 = vcombine.high %v395_v23, %v403_v24  ;;  %v8182_v30 = vcombine.high %v396_v25, %v404_v26  ;;  %v9660_v31 = vld [vmem:[%s9627_s28] sm:$0xff]  ;;  %v9663_v32 = vld [vmem:[%s9627_s28 + $0x8] sm:$0xff]  ;;  %v8179_v39 = vcombine.low %v395_v23, %v403_v24  ;;  %v8181_v40 = vcombine.low %v396_v25, %v404_v26 }
  0x64   : > { %v379_v33 = vld [vmem:[%s9608_s26 + $0x180] sm:$0xff]  ;;  %v9669_v35 = vcombine.high %v9660_v31, %v9660_v31  ;;  %v9673_v36 = vcombine.high %v9663_v32, %v9663_v32  ;;  %v380_v37 = vld [vmem:[%s9608_s26 + $0x188] sm:$0xff] }
  0x65   : > { %v387_v34 = vld [vmem:[%s9608_s26 + $0x1c0] sm:$0xff]  ;;  %v388_v38 = vld [vmem:[%s9608_s26 + $0x1c8] sm:$0xff] }
  0x66   : > { %6563 = vmatprep.mubr.bf16.mxu0 %v9669_v35  ;;  %6604 = vmatprep.mubr.bf16.mxu1 %v9673_v36  ;;  %v8164_v41 = vcombine.high %v379_v33, %v387_v34  ;;  %v8166_v42 = vcombine.high %v380_v37, %v388_v38  ;;  %v363_v43 = vld [vmem:[%s9608_s26 + $0x100] sm:$0xff]  ;;  %v364_v45 = vld [vmem:[%s9608_s26 + $0x108] sm:$0xff]  ;;  %v8163_v47 = vcombine.low %v379_v33, %v387_v34 }
  0x67   : > { %v371_v44 = vld [vmem:[%s9608_s26 + $0x140] sm:$0xff]  ;;  %v372_v46 = vld [vmem:[%s9608_s26 + $0x148] sm:$0xff]  ;;  %v8165_v48 = vcombine.low %v380_v37, %v388_v38 }
  0x68   : > { %6534 = vmatpush1.bf16.xpose.msra.mxu0 %v8211_v19  ;;  %6575 = vmatpush1.bf16.xpose.msra.mxu1 %v8213_v20  ;;  %v8148_v49 = vcombine.high %v363_v43, %v371_v44  ;;  %v8150_v50 = vcombine.high %v364_v45, %v372_v46  ;;  %v347_v51 = vld [vmem:[%s9608_s26 + $0x80] sm:$0xff]  ;;  %v348_v53 = vld [vmem:[%s9608_s26 + $0x88] sm:$0xff]  ;;  %v8147_v55 = vcombine.low %v363_v43, %v371_v44 }
  0x69   : > { %6535 = vmatprep.subr.bf16.mxu0 %v8196_v21  ;;  %6576 = vmatprep.subr.bf16.mxu1 %v8198_v22  ;;  %v355_v52 = vld [vmem:[%s9608_s26 + $0xc0] sm:$0xff]  ;;  %v356_v54 = vld [vmem:[%s9608_s26 + $0xc8] sm:$0xff]  ;;  %v8149_v56 = vcombine.low %v364_v45, %v372_v46 }
  0x6a   : > { %v8132_v57 = vcombine.high %v347_v51, %v355_v52  ;;  %v8134_v58 = vcombine.high %v348_v53, %v356_v54  ;;  %v331_v59 = vld [vmem:[%s9608_s26] sm:$0xff]  ;;  %v332_v61 = vld [vmem:[%s9608_s26 + $0x8] sm:$0xff]  ;;  %v8131_v63 = vcombine.low %v347_v51, %v355_v52  ;;  %v8133_v0 = vcombine.low %v348_v53, %v356_v54 }
  0x6b   : > { %v339_v60 = vld [vmem:[%s9608_s26 + $0x40] sm:$0xff]  ;;  %v340_v62 = vld [vmem:[%s9608_s26 + $0x48] sm:$0xff] }
  0x6c   : > { %v8116_v1 = vcombine.high %v331_v59, %v339_v60  ;;  %v8118_v2 = vcombine.high %v332_v61, %v340_v62  ;;  %v571_v3 = vld [vmem:[%s9608_s26 + $0x780] sm:$0xff]  ;;  %v572_v5 = vld [vmem:[%s9608_s26 + $0x788] sm:$0xff]  ;;  %v8115_v7 = vcombine.low %v331_v59, %v339_v60  ;;  %v8117_v8 = vcombine.low %v332_v61, %v340_v62 }
  0x6d   : > { %v579_v4 = vld [vmem:[%s9608_s26 + $0x7c0] sm:$0xff]  ;;  %v580_v6 = vld [vmem:[%s9608_s26 + $0x7c8] sm:$0xff] }
  0x6e   : > { %v8356_v9 = vcombine.high %v571_v3, %v579_v4  ;;  %v8358_v10 = vcombine.high %v572_v5, %v580_v6  ;;  %v555_v11 = vld [vmem:[%s9608_s26 + $0x700] sm:$0xff]  ;;  %v556_v13 = vld [vmem:[%s9608_s26 + $0x708] sm:$0xff]  ;;  %v8355_v15 = vcombine.low %v571_v3, %v579_v4  ;;  %v8357_v16 = vcombine.low %v572_v5, %v580_v6 }
  0x6f   : > { %v563_v12 = vld [vmem:[%s9608_s26 + $0x740] sm:$0xff]  ;;  %v564_v14 = vld [vmem:[%s9608_s26 + $0x748] sm:$0xff] }
  0x70   : > { %6536 = vmatpush1.bf16.xpose.msra.mxu0 %v8195_v27  ;;  %6577 = vmatpush1.bf16.xpose.msra.mxu1 %v8197_v28  ;;  %v8340_v17 = vcombine.high %v555_v11, %v563_v12  ;;  %v8342_v18 = vcombine.high %v556_v13, %v564_v14  ;;  %v539_v19 = vld [vmem:[%s9608_s26 + $0x680] sm:$0xff]  ;;  %v540_v21 = vld [vmem:[%s9608_s26 + $0x688] sm:$0xff]  ;;  %v8339_v23 = vcombine.low %v555_v11, %v563_v12 }
  0x71   : > { %6537 = vmatprep.subr.bf16.mxu0 %v8180_v29  ;;  %6578 = vmatprep.subr.bf16.mxu1 %v8182_v30  ;;  %v547_v20 = vld [vmem:[%s9608_s26 + $0x6c0] sm:$0xff]  ;;  %v548_v22 = vld [vmem:[%s9608_s26 + $0x6c8] sm:$0xff]  ;;  %v8341_v24 = vcombine.low %v556_v13, %v564_v14 }
  0x72   : > { %v8324_v25 = vcombine.high %v539_v19, %v547_v20  ;;  %v8326_v26 = vcombine.high %v540_v21, %v548_v22  ;;  %v523_v27 = vld [vmem:[%s9608_s26 + $0x600] sm:$0xff]  ;;  %v524_v29 = vld [vmem:[%s9608_s26 + $0x608] sm:$0xff]  ;;  %v8323_v33 = vcombine.low %v539_v19, %v547_v20  ;;  %v8325_v34 = vcombine.low %v540_v21, %v548_v22  ;;  %v438_v19 = vld [vmem:[%s9608_s26 + $0x358] sm:$0xff] }
  0x73   : > { %v531_v28 = vld [vmem:[%s9608_s26 + $0x640] sm:$0xff]  ;;  %v532_v30 = vld [vmem:[%s9608_s26 + $0x648] sm:$0xff]  ;;  %v9736_v20 = vld [vmem:[%s9627_s28 + $0x10] sm:$0xff]  ;;  %v9740_v21 = vcombine.low %v9663_v32, %v9663_v32 }
  0x74   : > { %v8308_v37 = vcombine.high %v523_v27, %v531_v28  ;;  %v8310_v38 = vcombine.high %v524_v29, %v532_v30  ;;  %v8307_v43 = vcombine.low %v523_v27, %v531_v28  ;;  %v8309_v44 = vcombine.low %v524_v29, %v532_v30  ;;  %v413_v32 = vld [vmem:[%s9608_s26 + $0x290] sm:$0xff]  ;;  %v414_v29 = vld [vmem:[%s9608_s26 + $0x298] sm:$0xff] }
  0x75   : > { %v421_v28 = vld [vmem:[%s9608_s26 + $0x2d0] sm:$0xff]  ;;  %v422_v30 = vld [vmem:[%s9608_s26 + $0x2d8] sm:$0xff] }
  0x78   : > { %6538 = vmatpush1.bf16.xpose.msra.mxu0 %v8179_v39  ;;  %6579 = vmatpush1.bf16.xpose.msra.mxu1 %v8181_v40  ;;  %v507_v39 = vld [vmem:[%s9608_s26 + $0x580] sm:$0xff] }
  0x79   : > { %6539 = vmatprep.subr.bf16.mxu0 %v8164_v41  ;;  %6580 = vmatprep.subr.bf16.mxu1 %v8166_v42  ;;  %v515_v40 = vld [vmem:[%s9608_s26 + $0x5c0] sm:$0xff]  ;;  %v508_v41 = vld [vmem:[%s9608_s26 + $0x588] sm:$0xff] }
  0x7a   : > { %v516_v42 = vld [vmem:[%s9608_s26 + $0x5c8] sm:$0xff]  ;;  %v8292_v45 = vcombine.high %v507_v39, %v515_v40  ;;  %v8291_v51 = vcombine.low %v507_v39, %v515_v40  ;;  %v397_v39 = vld [vmem:[%s9608_s26 + $0x210] sm:$0xff] }
  0x7b   : > { %v8294_v46 = vcombine.high %v508_v41, %v516_v42  ;;  %v8293_v52 = vcombine.low %v508_v41, %v516_v42  ;;  %v405_v40 = vld [vmem:[%s9608_s26 + $0x250] sm:$0xff]  ;;  %v398_v41 = vld [vmem:[%s9608_s26 + $0x218] sm:$0xff] }
  0x7c   : > { %v406_v42 = vld [vmem:[%s9608_s26 + $0x258] sm:$0xff] }
  0x80   : > { %6540 = vmatpush1.bf16.xpose.msra.mxu0 %v8163_v47  ;;  %6581 = vmatpush1.bf16.xpose.msra.mxu1 %v8165_v48  ;;  %v491_v47 = vld [vmem:[%s9608_s26 + $0x500] sm:$0xff] }
  0x81   : > { %6541 = vmatprep.subr.bf16.mxu0 %v8148_v49  ;;  %6582 = vmatprep.subr.bf16.mxu1 %v8150_v50  ;;  %v499_v48 = vld [vmem:[%s9608_s26 + $0x540] sm:$0xff]  ;;  %v492_v49 = vld [vmem:[%s9608_s26 + $0x508] sm:$0xff] }
  0x82   : > { %v500_v50 = vld [vmem:[%s9608_s26 + $0x548] sm:$0xff]  ;;  %v8276_v53 = vcombine.high %v491_v47, %v499_v48  ;;  %v8275_v59 = vcombine.low %v491_v47, %v499_v48  ;;  %v381_v47 = vld [vmem:[%s9608_s26 + $0x190] sm:$0xff] }
  0x83   : > { %v8278_v54 = vcombine.high %v492_v49, %v500_v50  ;;  %v8277_v60 = vcombine.low %v492_v49, %v500_v50  ;;  %v389_v48 = vld [vmem:[%s9608_s26 + $0x1d0] sm:$0xff]  ;;  %v382_v49 = vld [vmem:[%s9608_s26 + $0x198] sm:$0xff] }
  0x84   : > { %v390_v50 = vld [vmem:[%s9608_s26 + $0x1d8] sm:$0xff] }
  0x88   : > { %6542 = vmatpush1.bf16.xpose.msra.mxu0 %v8147_v55  ;;  %6583 = vmatpush1.bf16.xpose.msra.mxu1 %v8149_v56  ;;  %v475_v55 = vld [vmem:[%s9608_s26 + $0x480] sm:$0xff] }
  0x89   : > { %6543 = vmatprep.subr.bf16.mxu0 %v8132_v57  ;;  %6584 = vmatprep.subr.bf16.mxu1 %v8134_v58  ;;  %v483_v56 = vld [vmem:[%s9608_s26 + $0x4c0] sm:$0xff]  ;;  %v476_v57 = vld [vmem:[%s9608_s26 + $0x488] sm:$0xff] }
  0x8a   : > { %v484_v58 = vld [vmem:[%s9608_s26 + $0x4c8] sm:$0xff]  ;;  %v8260_v61 = vcombine.high %v475_v55, %v483_v56  ;;  %v8259_v3 = vcombine.low %v475_v55, %v483_v56  ;;  %v365_v55 = vld [vmem:[%s9608_s26 + $0x110] sm:$0xff] }
  0x8b   : > { %v8262_v62 = vcombine.high %v476_v57, %v484_v58  ;;  %v8261_v4 = vcombine.low %v476_v57, %v484_v58  ;;  %v373_v56 = vld [vmem:[%s9608_s26 + $0x150] sm:$0xff]  ;;  %v366_v57 = vld [vmem:[%s9608_s26 + $0x118] sm:$0xff] }
  0x8c   : > { %v374_v58 = vld [vmem:[%s9608_s26 + $0x158] sm:$0xff] }
  0x90   : > { %6544 = vmatpush1.bf16.xpose.msra.mxu0 %v8131_v63  ;;  %6585 = vmatpush1.bf16.xpose.msra.mxu1 %v8133_v0  ;;  %v459_v63 = vld [vmem:[%s9608_s26 + $0x400] sm:$0xff] }
  0x91   : > { %6545 = vmatprep.subr.bf16.mxu0 %v8116_v1  ;;  %6586 = vmatprep.subr.bf16.mxu1 %v8118_v2  ;;  %v467_v0 = vld [vmem:[%s9608_s26 + $0x440] sm:$0xff]  ;;  %v460_v1 = vld [vmem:[%s9608_s26 + $0x408] sm:$0xff] }
  0x92   : > { %v468_v2 = vld [vmem:[%s9608_s26 + $0x448] sm:$0xff]  ;;  %v8244_v5 = vcombine.high %v459_v63, %v467_v0  ;;  %v8243_v11 = vcombine.low %v459_v63, %v467_v0  ;;  %v349_v63 = vld [vmem:[%s9608_s26 + $0x90] sm:$0xff] }
  0x93   : > { %v8246_v6 = vcombine.high %v460_v1, %v468_v2  ;;  %v8245_v12 = vcombine.low %v460_v1, %v468_v2  ;;  %v357_v0 = vld [vmem:[%s9608_s26 + $0xd0] sm:$0xff]  ;;  %v350_v1 = vld [vmem:[%s9608_s26 + $0x98] sm:$0xff] }
  0x94   : > { %v358_v2 = vld [vmem:[%s9608_s26 + $0xd8] sm:$0xff] }
  0x98   : > { %6546 = vmatpush1.bf16.xpose.msra.mxu0 %v8115_v7  ;;  %6587 = vmatpush1.bf16.xpose.msra.mxu1 %v8117_v8  ;;  %v445_v7 = vld [vmem:[%s9608_s26 + $0x390] sm:$0xff] }
  0x99   : > { %6547 = vmatprep.subr.bf16.mxu0 %v8356_v9  ;;  %6588 = vmatprep.subr.bf16.mxu1 %v8358_v10  ;;  %v453_v8 = vld [vmem:[%s9608_s26 + $0x3d0] sm:$0xff]  ;;  %v446_v9 = vld [vmem:[%s9608_s26 + $0x398] sm:$0xff] }
  0x9a   : > { %v454_v10 = vld [vmem:[%s9608_s26 + $0x3d8] sm:$0xff]  ;;  %v8232_v13 = vcombine.high %v445_v7, %v453_v8  ;;  %v8231_v22 = vcombine.low %v445_v7, %v453_v8  ;;  %v333_v7 = vld [vmem:[%s9608_s26 + $0x10] sm:$0xff] }
  0x9b   : > { %v8234_v14 = vcombine.high %v446_v9, %v454_v10  ;;  %v341_v8 = vld [vmem:[%s9608_s26 + $0x50] sm:$0xff] }
  0xa0   : > { %6548 = vmatpush2.bf16.xpose.msra.mxu0 %v8355_v15  ;;  %6589 = vmatpush2.bf16.xpose.msra.mxu1 %v8357_v16  ;;  %v429_v15 = vld [vmem:[%s9608_s26 + $0x310] sm:$0xff] }
  0xa1   : > { %6549 = vmatprep.subr.bf16.mxu0 %v8340_v17  ;;  %6590 = vmatprep.subr.bf16.mxu1 %v8342_v18  ;;  %v437_v16 = vld [vmem:[%s9608_s26 + $0x350] sm:$0xff]  ;;  %v9731_v17 = vcombine.low %v9660_v31, %v9660_v31  ;;  %v430_v18 = vld [vmem:[%s9608_s26 + $0x318] sm:$0xff]  ;;  %v9747_v31 = vcombine.high %v9736_v20, %v9736_v20 }
  0xa8   : > { %6550 = vmatpush2.bf16.xpose.msra.mxu0 %v8339_v23  ;;  %6591 = vmatpush2.bf16.xpose.msra.mxu1 %v8341_v24  ;;  %v9743_v23 = vld [vmem:[%s9627_s28 + $0x18] sm:$0xff]  ;;  %v8233_v24 = vcombine.low %v446_v9, %v454_v10 }
  0xa9   : > { %6551 = vmatprep.subr.bf16.mxu0 %v8324_v25  ;;  %6592 = vmatprep.subr.bf16.mxu1 %v8326_v26  ;;  %v8216_v25 = vcombine.high %v429_v15, %v437_v16  ;;  %v8218_v26 = vcombine.high %v430_v18, %v438_v19  ;;  %v9752_v27 = vcombine.high %v9743_v23, %v9743_v23  ;;  %v334_v9 = vld [vmem:[%s9608_s26 + $0x18] sm:$0xff] }
  0xaa   : > { %v342_v10 = vld [vmem:[%s9608_s26 + $0x58] sm:$0xff] }
  0xb0   : > { %6552 = vmatpush2.bf16.xpose.msra.mxu0 %v8323_v33  ;;  %6593 = vmatpush2.bf16.xpose.msra.mxu1 %v8325_v34  ;;  %v8215_v33 = vcombine.low %v429_v15, %v437_v16  ;;  %v8217_v34 = vcombine.low %v430_v18, %v438_v19  ;;  %v573_v15 = vld [vmem:[%s9608_s26 + $0x790] sm:$0xff]  ;;  %v574_v18 = vld [vmem:[%s9608_s26 + $0x798] sm:$0xff] }
  0xb1   : > { %6553 = vmatprep.subr.bf16.mxu0 %v8308_v37  ;;  %6594 = vmatprep.subr.bf16.mxu1 %v8310_v38  ;;  %v8200_v37 = vcombine.high %v413_v32, %v421_v28  ;;  %v8202_v38 = vcombine.high %v414_v29, %v422_v30  ;;  %v581_v16 = vld [vmem:[%s9608_s26 + $0x7d0] sm:$0xff]  ;;  %v582_v19 = vld [vmem:[%s9608_s26 + $0x7d8] sm:$0xff] }
  0xb8   : > { %6554 = vmatpush2.bf16.xpose.msra.mxu0 %v8307_v43  ;;  %6595 = vmatpush2.bf16.xpose.msra.mxu1 %v8309_v44  ;;  %v8199_v43 = vcombine.low %v413_v32, %v421_v28  ;;  %v8201_v44 = vcombine.low %v414_v29, %v422_v30  ;;  %v557_v32 = vld [vmem:[%s9608_s26 + $0x710] sm:$0xff]  ;;  %v558_v29 = vld [vmem:[%s9608_s26 + $0x718] sm:$0xff] }
  0xb9   : > { %6555 = vmatprep.subr.bf16.mxu0 %v8292_v45  ;;  %6596 = vmatprep.subr.bf16.mxu1 %v8294_v46  ;;  %v8184_v45 = vcombine.high %v397_v39, %v405_v40  ;;  %v8186_v46 = vcombine.high %v398_v41, %v406_v42  ;;  %v565_v28 = vld [vmem:[%s9608_s26 + $0x750] sm:$0xff]  ;;  %v566_v30 = vld [vmem:[%s9608_s26 + $0x758] sm:$0xff] }
  0xc0   : > { %6556 = vmatpush2.bf16.xpose.msra.mxu0 %v8291_v51  ;;  %6597 = vmatpush2.bf16.xpose.msra.mxu1 %v8293_v52  ;;  %v8183_v51 = vcombine.low %v397_v39, %v405_v40  ;;  %v8185_v52 = vcombine.low %v398_v41, %v406_v42  ;;  %v541_v39 = vld [vmem:[%s9608_s26 + $0x690] sm:$0xff]  ;;  %v542_v41 = vld [vmem:[%s9608_s26 + $0x698] sm:$0xff] }
  0xc1   : > { %6557 = vmatprep.subr.bf16.mxu0 %v8276_v53  ;;  %6598 = vmatprep.subr.bf16.mxu1 %v8278_v54  ;;  %v8168_v53 = vcombine.high %v381_v47, %v389_v48  ;;  %v8170_v54 = vcombine.high %v382_v49, %v390_v50  ;;  %v549_v40 = vld [vmem:[%s9608_s26 + $0x6d0] sm:$0xff]  ;;  %v550_v42 = vld [vmem:[%s9608_s26 + $0x6d8] sm:$0xff] }
  0xc8   : > { %6558 = vmatpush2.bf16.xpose.msra.mxu0 %v8275_v59  ;;  %6599 = vmatpush2.bf16.xpose.msra.mxu1 %v8277_v60  ;;  %v8167_v59 = vcombine.low %v381_v47, %v389_v48  ;;  %v8169_v60 = vcombine.low %v382_v49, %v390_v50  ;;  %v525_v47 = vld [vmem:[%s9608_s26 + $0x610] sm:$0xff]  ;;  %v526_v49 = vld [vmem:[%s9608_s26 + $0x618] sm:$0xff] }
  0xc9   : > { %6559 = vmatprep.subr.bf16.mxu0 %v8260_v61  ;;  %6600 = vmatprep.subr.bf16.mxu1 %v8262_v62  ;;  %v8152_v61 = vcombine.high %v365_v55, %v373_v56  ;;  %v8154_v62 = vcombine.high %v366_v57, %v374_v58  ;;  %v533_v48 = vld [vmem:[%s9608_s26 + $0x650] sm:$0xff]  ;;  %v534_v50 = vld [vmem:[%s9608_s26 + $0x658] sm:$0xff] }
  0xd0   : > { %6560 = vmatpush2.bf16.xpose.msra.mxu0 %v8259_v3  ;;  %6601 = vmatpush2.bf16.xpose.msra.mxu1 %v8261_v4  ;;  %v8151_v3 = vcombine.low %v365_v55, %v373_v56  ;;  %v8153_v4 = vcombine.low %v366_v57, %v374_v58  ;;  %v509_v55 = vld [vmem:[%s9608_s26 + $0x590] sm:$0xff]  ;;  %v510_v57 = vld [vmem:[%s9608_s26 + $0x598] sm:$0xff] }
  0xd1   : > { %6561 = vmatprep.subr.bf16.mxu0 %v8244_v5  ;;  %6602 = vmatprep.subr.bf16.mxu1 %v8246_v6  ;;  %v8136_v5 = vcombine.high %v349_v63, %v357_v0  ;;  %v8138_v6 = vcombine.high %v350_v1, %v358_v2  ;;  %v517_v56 = vld [vmem:[%s9608_s26 + $0x5d0] sm:$0xff]  ;;  %v518_v58 = vld [vmem:[%s9608_s26 + $0x5d8] sm:$0xff] }
  0xd8   : > { %6562 = vmatpush2.bf16.xpose.msra.mxu0 %v8243_v11  ;;  %6603 = vmatpush2.bf16.xpose.msra.mxu1 %v8245_v12  ;;  %v8135_v11 = vcombine.low %v349_v63, %v357_v0  ;;  %v8137_v12 = vcombine.low %v350_v1, %v358_v2  ;;  %v493_v63 = vld [vmem:[%s9608_s26 + $0x510] sm:$0xff]  ;;  %v494_v1 = vld [vmem:[%s9608_s26 + $0x518] sm:$0xff] }
  0xd9   : > { %6613 = vmatprep.subr.bf16.mxu0 %v8232_v13  ;;  %6654 = vmatprep.subr.bf16.mxu1 %v8234_v14  ;;  %v8120_v13 = vcombine.high %v333_v7, %v341_v8  ;;  %v8122_v14 = vcombine.high %v334_v9, %v342_v10  ;;  %v501_v0 = vld [vmem:[%s9608_s26 + $0x550] sm:$0xff]  ;;  %v502_v2 = vld [vmem:[%s9608_s26 + $0x558] sm:$0xff] }
  0xdf   : > { %6564 = vmatmul.mubr.bf16.vlgmr.msra.gmra.mxu0 %v9731_v17  ;;  %6605 = vmatmul.mubr.bf16.vlgmr.msra.gmra.mxu1 %v9740_v21 }
  0xe0   : > { %6614 = vmatpush1.bf16.xpose.msra.mxu0 %v8231_v22  ;;  %6655 = vmatpush1.bf16.xpose.msra.mxu1 %v8233_v24  ;;  %v8119_v22 = vcombine.low %v333_v7, %v341_v8  ;;  %v8121_v24 = vcombine.low %v334_v9, %v342_v10  ;;  %v477_v7 = vld [vmem:[%s9608_s26 + $0x490] sm:$0xff]  ;;  %v478_v9 = vld [vmem:[%s9608_s26 + $0x498] sm:$0xff] }
  0xe1   : > { %6615 = vmatprep.subr.bf16.mxu0 %v8216_v25  ;;  %6656 = vmatprep.subr.bf16.mxu1 %v8218_v26  ;;  %v8360_v25 = vcombine.high %v573_v15, %v581_v16  ;;  %v8362_v26 = vcombine.high %v574_v18, %v582_v19  ;;  %v485_v8 = vld [vmem:[%s9608_s26 + $0x4d0] sm:$0xff]  ;;  %v486_v10 = vld [vmem:[%s9608_s26 + $0x4d8] sm:$0xff] }
  0xe2   : > { %6645 = vmatprep.mubr.bf16.mxu0 %v9747_v31  ;;  %6686 = vmatprep.mubr.bf16.mxu1 %v9752_v27 }
  0xe8   : > { %6616 = vmatpush1.bf16.xpose.msra.mxu0 %v8215_v33  ;;  %6657 = vmatpush1.bf16.xpose.msra.mxu1 %v8217_v34  ;;  %v8359_v33 = vcombine.low %v573_v15, %v581_v16  ;;  %v8361_v34 = vcombine.low %v574_v18, %v582_v19  ;;  %v461_v15 = vld [vmem:[%s9608_s26 + $0x410] sm:$0xff]  ;;  %v462_v18 = vld [vmem:[%s9608_s26 + $0x418] sm:$0xff] }
  0xe9   : > { %6617 = vmatprep.subr.bf16.mxu0 %v8200_v37  ;;  %6658 = vmatprep.subr.bf16.mxu1 %v8202_v38  ;;  %v8344_v37 = vcombine.high %v557_v32, %v565_v28  ;;  %v8346_v38 = vcombine.high %v558_v29, %v566_v30  ;;  %v469_v16 = vld [vmem:[%s9608_s26 + $0x450] sm:$0xff]  ;;  %v470_v19 = vld [vmem:[%s9608_s26 + $0x458] sm:$0xff] }
  0xf0   : > { %6618 = vmatpush1.bf16.xpose.msra.mxu0 %v8199_v43  ;;  %6659 = vmatpush1.bf16.xpose.msra.mxu1 %v8201_v44  ;;  %v8343_v43 = vcombine.low %v557_v32, %v565_v28  ;;  %v8345_v44 = vcombine.low %v558_v29, %v566_v30  ;;  %v447_v32 = vld [vmem:[%s9608_s26 + $0x3a0] sm:$0xff]  ;;  %v448_v29 = vld [vmem:[%s9608_s26 + $0x3a8] sm:$0xff] }
  0xf1   : > { %6619 = vmatprep.subr.bf16.mxu0 %v8184_v45  ;;  %6660 = vmatprep.subr.bf16.mxu1 %v8186_v46  ;;  %v8328_v45 = vcombine.high %v541_v39, %v549_v40  ;;  %v8330_v46 = vcombine.high %v542_v41, %v550_v42  ;;  %v455_v28 = vld [vmem:[%s9608_s26 + $0x3e0] sm:$0xff]  ;;  %v456_v30 = vld [vmem:[%s9608_s26 + $0x3e8] sm:$0xff] }
  0xf8   : > { %6620 = vmatpush1.bf16.xpose.msra.mxu0 %v8183_v51  ;;  %6661 = vmatpush1.bf16.xpose.msra.mxu1 %v8185_v52  ;;  %v8327_v51 = vcombine.low %v541_v39, %v549_v40  ;;  %v8329_v52 = vcombine.low %v542_v41, %v550_v42  ;;  %v431_v39 = vld [vmem:[%s9608_s26 + $0x320] sm:$0xff]  ;;  %v9821_v41 = vcombine.low %v9736_v20, %v9736_v20  ;;  %v432_v42 = vld [vmem:[%s9608_s26 + $0x328] sm:$0xff] }
  0xf9   : > { %6621 = vmatprep.subr.bf16.mxu0 %v8168_v53  ;;  %6662 = vmatprep.subr.bf16.mxu1 %v8170_v54  ;;  %v8312_v53 = vcombine.high %v525_v47, %v533_v48  ;;  %v8314_v54 = vcombine.high %v526_v49, %v534_v50  ;;  %v439_v40 = vld [vmem:[%s9608_s26 + $0x360] sm:$0xff] }
 0x100   : > { %6622 = vmatpush1.bf16.xpose.msra.mxu0 %v8167_v59  ;;  %6663 = vmatpush1.bf16.xpose.msra.mxu1 %v8169_v60  ;;  %v8311_v59 = vcombine.low %v525_v47, %v533_v48  ;;  %v8313_v60 = vcombine.low %v526_v49, %v534_v50  ;;  %v9833_v47 = vld [vmem:[%s9627_s28 + $0x28] sm:$0xff]  ;;  %v8237_v48 = vcombine.low %v448_v29, %v456_v30 }
 0x101   : > { %6623 = vmatprep.subr.bf16.mxu0 %v8152_v61  ;;  %6664 = vmatprep.subr.bf16.mxu1 %v8154_v62  ;;  %v8296_v61 = vcombine.high %v509_v55, %v517_v56  ;;  %v8298_v62 = vcombine.high %v510_v57, %v518_v58  ;;  %v8220_v49 = vcombine.high %v431_v39, %v439_v40 }
 0x108   : > { %6624 = vmatpush1.bf16.xpose.msra.mxu0 %v8151_v3  ;;  %6665 = vmatpush1.bf16.xpose.msra.mxu1 %v8153_v4  ;;  %v8295_v3 = vcombine.low %v509_v55, %v517_v56  ;;  %v8297_v4 = vcombine.low %v510_v57, %v518_v58  ;;  %v8219_v55 = vcombine.low %v431_v39, %v439_v40 }
 0x109   : > { %6625 = vmatprep.subr.bf16.mxu0 %v8136_v5  ;;  %6666 = vmatprep.subr.bf16.mxu1 %v8138_v6  ;;  %v8280_v5 = vcombine.high %v493_v63, %v501_v0  ;;  %v8282_v6 = vcombine.high %v494_v1, %v502_v2 }
 0x110   : > { %6626 = vmatpush1.bf16.xpose.msra.mxu0 %v8135_v11  ;;  %6667 = vmatpush1.bf16.xpose.msra.mxu1 %v8137_v12  ;;  %v8279_v11 = vcombine.low %v493_v63, %v501_v0  ;;  %v8281_v12 = vcombine.low %v494_v1, %v502_v2 }
 0x111   : > { %6627 = vmatprep.subr.bf16.mxu0 %v8120_v13  ;;  %6668 = vmatprep.subr.bf16.mxu1 %v8122_v14  ;;  %v8264_v13 = vcombine.high %v477_v7, %v485_v8  ;;  %v8266_v14 = vcombine.high %v478_v9, %v486_v10 }
 0x118   : > { %6628 = vmatpush1.bf16.xpose.msra.mxu0 %v8119_v22  ;;  %6669 = vmatpush1.bf16.xpose.msra.mxu1 %v8121_v24  ;;  %v8263_v22 = vcombine.low %v477_v7, %v485_v8  ;;  %v8265_v24 = vcombine.low %v478_v9, %v486_v10 }
 0x119   : > { %6629 = vmatprep.subr.bf16.mxu0 %v8360_v25  ;;  %6670 = vmatprep.subr.bf16.mxu1 %v8362_v26  ;;  %v8248_v25 = vcombine.high %v461_v15, %v469_v16  ;;  %v8250_v26 = vcombine.high %v462_v18, %v470_v19 }
 0x120   : > { %6630 = vmatpush2.bf16.xpose.msra.mxu0 %v8359_v33  ;;  %6671 = vmatpush2.bf16.xpose.msra.mxu1 %v8361_v34  ;;  %v8247_v33 = vcombine.low %v461_v15, %v469_v16  ;;  %v8249_v34 = vcombine.low %v462_v18, %v470_v19 }
 0x121   : > { %6631 = vmatprep.subr.bf16.mxu0 %v8344_v37  ;;  %6672 = vmatprep.subr.bf16.mxu1 %v8346_v38  ;;  %v8236_v37 = vcombine.high %v447_v32, %v455_v28  ;;  %v8238_v38 = vcombine.high %v448_v29, %v456_v30 }
 0x128   : > { %6632 = vmatpush2.bf16.xpose.msra.mxu0 %v8343_v43  ;;  %6673 = vmatpush2.bf16.xpose.msra.mxu1 %v8345_v44  ;;  %v440_v43 = vld [vmem:[%s9608_s26 + $0x368] sm:$0xff]  ;;  %v9826_v44 = vld [vmem:[%s9627_s28 + $0x20] sm:$0xff] }
 0x129   : > { %6633 = vmatprep.subr.bf16.mxu0 %v8328_v45  ;;  %6674 = vmatprep.subr.bf16.mxu1 %v8330_v46  ;;  %v9830_v45 = vcombine.low %v9743_v23, %v9743_v23  ;;  %v8235_v46 = vcombine.low %v447_v32, %v455_v28  ;;  %v8222_v50 = vcombine.high %v432_v42, %v440_v43  ;;  %v415_v23 = vld [vmem:[%s9608_s26 + $0x2a0] sm:$0xff] }
 0x12a   : > { %v9837_v20 = vcombine.high %v9826_v44, %v9826_v44  ;;  %v8221_v56 = vcombine.low %v432_v42, %v440_v43 }
 0x130   : > { %6634 = vmatpush2.bf16.xpose.msra.mxu0 %v8327_v51  ;;  %6675 = vmatpush2.bf16.xpose.msra.mxu1 %v8329_v52  ;;  %v9842_v51 = vcombine.high %v9833_v47, %v9833_v47  ;;  %v423_v52 = vld [vmem:[%s9608_s26 + $0x2e0] sm:$0xff] }
 0x131   : > { %6635 = vmatprep.subr.bf16.mxu0 %v8312_v53  ;;  %6676 = vmatprep.subr.bf16.mxu1 %v8314_v54  ;;  %v416_v53 = vld [vmem:[%s9608_s26 + $0x2a8] sm:$0xff]  ;;  %v8204_v57 = vcombine.high %v415_v23, %v423_v52  ;;  %v8203_v63 = vcombine.low %v415_v23, %v423_v52 }
 0x132   : > { %v424_v54 = vld [vmem:[%s9608_s26 + $0x2e8] sm:$0xff] }
 0x133   : > { %v8206_v58 = vcombine.high %v416_v53, %v424_v54  ;;  %v8205_v0 = vcombine.low %v416_v53, %v424_v54 }
 0x138   : > { %6636 = vmatpush2.bf16.xpose.msra.mxu0 %v8311_v59  ;;  %6677 = vmatpush2.bf16.xpose.msra.mxu1 %v8313_v60  ;;  %v399_v59 = vld [vmem:[%s9608_s26 + $0x220] sm:$0xff] }
 0x139   : > { %6637 = vmatprep.subr.bf16.mxu0 %v8296_v61  ;;  %6678 = vmatprep.subr.bf16.mxu1 %v8298_v62  ;;  %v407_v60 = vld [vmem:[%s9608_s26 + $0x260] sm:$0xff]  ;;  %v400_v61 = vld [vmem:[%s9608_s26 + $0x228] sm:$0xff] }
 0x13a   : > { %v408_v62 = vld [vmem:[%s9608_s26 + $0x268] sm:$0xff]  ;;  %v8188_v1 = vcombine.high %v399_v59, %v407_v60  ;;  %v8187_v7 = vcombine.low %v399_v59, %v407_v60 }
 0x13b   : > { %v8190_v2 = vcombine.high %v400_v61, %v408_v62  ;;  %v8189_v8 = vcombine.low %v400_v61, %v408_v62 }
 0x140   : > { %6638 = vmatpush2.bf16.xpose.msra.mxu0 %v8295_v3  ;;  %6679 = vmatpush2.bf16.xpose.msra.mxu1 %v8297_v4  ;;  %v383_v3 = vld [vmem:[%s9608_s26 + $0x1a0] sm:$0xff] }
 0x141   : > { %6639 = vmatprep.subr.bf16.mxu0 %v8280_v5  ;;  %6680 = vmatprep.subr.bf16.mxu1 %v8282_v6  ;;  %v391_v4 = vld [vmem:[%s9608_s26 + $0x1e0] sm:$0xff]  ;;  %v384_v5 = vld [vmem:[%s9608_s26 + $0x1a8] sm:$0xff] }
 0x142   : > { %v392_v6 = vld [vmem:[%s9608_s26 + $0x1e8] sm:$0xff]  ;;  %v8172_v9 = vcombine.high %v383_v3, %v391_v4  ;;  %v8171_v15 = vcombine.low %v383_v3, %v391_v4  ;;  %v543_v4 = vld [vmem:[%s9608_s26 + $0x6a0] sm:$0xff] }
 0x143   : > { %v8174_v10 = vcombine.high %v384_v5, %v392_v6  ;;  %v8173_v16 = vcombine.low %v384_v5, %v392_v6  ;;  %v551_v5 = vld [vmem:[%s9608_s26 + $0x6e0] sm:$0xff] }
 0x148   : > { %6640 = vmatpush2.bf16.xpose.msra.mxu0 %v8279_v11  ;;  %6681 = vmatpush2.bf16.xpose.msra.mxu1 %v8281_v12  ;;  %v367_v11 = vld [vmem:[%s9608_s26 + $0x120] sm:$0xff] }
 0x149   : > { %6641 = vmatprep.subr.bf16.mxu0 %v8264_v13  ;;  %6682 = vmatprep.subr.bf16.mxu1 %v8266_v14  ;;  %v375_v12 = vld [vmem:[%s9608_s26 + $0x160] sm:$0xff]  ;;  %v368_v13 = vld [vmem:[%s9608_s26 + $0x128] sm:$0xff] }
 0x14a   : > { %v376_v14 = vld [vmem:[%s9608_s26 + $0x168] sm:$0xff]  ;;  %v8156_v18 = vcombine.high %v367_v11, %v375_v12  ;;  %v8155_v32 = vcombine.low %v367_v11, %v375_v12 }
 0x14b   : > { %v8158_v19 = vcombine.high %v368_v13, %v376_v14  ;;  %v8157_v28 = vcombine.low %v368_v13, %v376_v14  ;;  %v8332_v14 = vcombine.high %v543_v4, %v551_v5 }
 0x150   : > { %6642 = vmatpush2.bf16.xpose.msra.mxu0 %v8263_v22  ;;  %6683 = vmatpush2.bf16.xpose.msra.mxu1 %v8265_v24  ;;  %v351_v22 = vld [vmem:[%s9608_s26 + $0xa0] sm:$0xff] }
 0x151   : > { %6643 = vmatprep.subr.bf16.mxu0 %v8248_v25  ;;  %6684 = vmatprep.subr.bf16.mxu1 %v8250_v26  ;;  %v359_v24 = vld [vmem:[%s9608_s26 + $0xe0] sm:$0xff]  ;;  %v352_v25 = vld [vmem:[%s9608_s26 + $0xa8] sm:$0xff] }
 0x152   : > { %v360_v26 = vld [vmem:[%s9608_s26 + $0xe8] sm:$0xff]  ;;  %v8140_v29 = vcombine.high %v351_v22, %v359_v24  ;;  %v8139_v39 = vcombine.low %v351_v22, %v359_v24 }
 0x153   : > { %v8142_v30 = vcombine.high %v352_v25, %v360_v26  ;;  %v8141_v40 = vcombine.low %v352_v25, %v360_v26  ;;  %v528_v22 = vld [vmem:[%s9608_s26 + $0x628] sm:$0xff]  ;;  %v8331_v25 = vcombine.low %v543_v4, %v551_v5 }
 0x154   : > { %v536_v24 = vld [vmem:[%s9608_s26 + $0x668] sm:$0xff] }
 0x158   : > { %6644 = vmatpush2.bf16.xpose.msra.mxu0 %v8247_v33  ;;  %6685 = vmatpush2.bf16.xpose.msra.mxu1 %v8249_v34  ;;  %v335_v33 = vld [vmem:[%s9608_s26 + $0x20] sm:$0xff] }
 0x159   : > { %6695 = vmatprep.subr.bf16.mxu0 %v8236_v37  ;;  %6736 = vmatprep.subr.bf16.mxu1 %v8238_v38  ;;  %v343_v34 = vld [vmem:[%s9608_s26 + $0x60] sm:$0xff]  ;;  %v336_v37 = vld [vmem:[%s9608_s26 + $0x28] sm:$0xff] }
 0x15a   : > { %v344_v38 = vld [vmem:[%s9608_s26 + $0x68] sm:$0xff]  ;;  %v8124_v42 = vcombine.high %v335_v33, %v343_v34  ;;  %v8123_v23 = vcombine.low %v335_v33, %v343_v34 }
 0x15b   : > { %v8126_v43 = vcombine.high %v336_v37, %v344_v38  ;;  %v8125_v52 = vcombine.low %v336_v37, %v344_v38  ;;  %v512_v33 = vld [vmem:[%s9608_s26 + $0x5a8] sm:$0xff]  ;;  %v8317_v38 = vcombine.low %v528_v22, %v536_v24 }
 0x15c   : > { %v520_v34 = vld [vmem:[%s9608_s26 + $0x5e8] sm:$0xff] }
 0x15f   : > { %6646 = vmatmul.mubr.bf16.vlgmr.msra.gmra.mxu0 %v9821_v41  ;;  %6687 = vmatmul.mubr.bf16.vlgmr.msra.gmra.mxu1 %v9830_v45 }
 0x160   : > { %6696 = vmatpush1.bf16.xpose.msra.mxu0 %v8235_v46  ;;  %6737 = vmatpush1.bf16.xpose.msra.mxu1 %v8237_v48  ;;  %v575_v46 = vld [vmem:[%s9608_s26 + $0x7a0] sm:$0xff] }
 0x161   : > { %6697 = vmatprep.subr.bf16.mxu0 %v8220_v49  ;;  %6738 = vmatprep.subr.bf16.mxu1 %v8222_v50  ;;  %v583_v48 = vld [vmem:[%s9608_s26 + $0x7e0] sm:$0xff]  ;;  %v576_v49 = vld [vmem:[%s9608_s26 + $0x7a8] sm:$0xff] }
 0x162   : > { %6727 = vmatprep.mubr.bf16.mxu0 %v9837_v20  ;;  %6768 = vmatprep.mubr.bf16.mxu1 %v9842_v51  ;;  %v584_v50 = vld [vmem:[%s9608_s26 + $0x7e8] sm:$0xff]  ;;  %v8364_v53 = vcombine.high %v575_v46, %v583_v48  ;;  %v8363_v59 = vcombine.low %v575_v46, %v583_v48 }
 0x163   : > { %v8366_v54 = vcombine.high %v576_v49, %v584_v50  ;;  %v8365_v60 = vcombine.low %v576_v49, %v584_v50  ;;  %v496_v46 = vld [vmem:[%s9608_s26 + $0x528] sm:$0xff]  ;;  %v8301_v50 = vcombine.low %v512_v33, %v520_v34 }
 0x164   : > { %v504_v48 = vld [vmem:[%s9608_s26 + $0x568] sm:$0xff] }
 0x168   : > { %6698 = vmatpush1.bf16.xpose.msra.mxu0 %v8219_v55  ;;  %6739 = vmatpush1.bf16.xpose.msra.mxu1 %v8221_v56  ;;  %v559_v55 = vld [vmem:[%s9608_s26 + $0x720] sm:$0xff] }
 0x169   : > { %6699 = vmatprep.subr.bf16.mxu0 %v8204_v57  ;;  %6740 = vmatprep.subr.bf16.mxu1 %v8206_v58  ;;  %v567_v56 = vld [vmem:[%s9608_s26 + $0x760] sm:$0xff]  ;;  %v560_v57 = vld [vmem:[%s9608_s26 + $0x728] sm:$0xff] }
 0x16a   : > { %v568_v58 = vld [vmem:[%s9608_s26 + $0x768] sm:$0xff]  ;;  %v8348_v61 = vcombine.high %v559_v55, %v567_v56  ;;  %v8347_v11 = vcombine.low %v559_v55, %v567_v56 }
 0x16b   : > { %v8350_v62 = vcombine.high %v560_v57, %v568_v58  ;;  %v8349_v13 = vcombine.low %v560_v57, %v568_v58  ;;  %v480_v55 = vld [vmem:[%s9608_s26 + $0x4a8] sm:$0xff]  ;;  %v8285_v58 = vcombine.low %v496_v46, %v504_v48 }
 0x16c   : > { %v488_v56 = vld [vmem:[%s9608_s26 + $0x4e8] sm:$0xff] }
 0x170   : > { %6700 = vmatpush1.bf16.xpose.msra.mxu0 %v8203_v63  ;;  %6741 = vmatpush1.bf16.xpose.msra.mxu1 %v8205_v0 }
 0x171   : > { %6701 = vmatprep.subr.bf16.mxu0 %v8188_v1  ;;  %6742 = vmatprep.subr.bf16.mxu1 %v8190_v2 }
 0x178   : > { %6702 = vmatpush1.bf16.xpose.msra.mxu0 %v8187_v7  ;;  %6743 = vmatpush1.bf16.xpose.msra.mxu1 %v8189_v8  ;;  %v544_v8 = vld [vmem:[%s9608_s26 + $0x6a8] sm:$0xff] }
 0x179   : > { %6703 = vmatprep.subr.bf16.mxu0 %v8172_v9  ;;  %6744 = vmatprep.subr.bf16.mxu1 %v8174_v10  ;;  %v552_v9 = vld [vmem:[%s9608_s26 + $0x6e8] sm:$0xff] }
 0x17a   : > { %v8333_v26 = vcombine.low %v544_v8, %v552_v9 }
 0x180   : > { %6704 = vmatpush1.bf16.xpose.msra.mxu0 %v8171_v15  ;;  %6745 = vmatpush1.bf16.xpose.msra.mxu1 %v8173_v16  ;;  %v8334_v16 = vcombine.high %v544_v8, %v552_v9  ;;  %v457_v8 = vld [vmem:[%s9608_s26 + $0x3f0] sm:$0xff]  ;;  %v450_v9 = vld [vmem:[%s9608_s26 + $0x3b8] sm:$0xff] }
 0x181   : > { %6705 = vmatprep.subr.bf16.mxu0 %v8156_v18  ;;  %6746 = vmatprep.subr.bf16.mxu1 %v8158_v19  ;;  %v527_v18 = vld [vmem:[%s9608_s26 + $0x620] sm:$0xff] }
 0x182   : > { %v535_v19 = vld [vmem:[%s9608_s26 + $0x660] sm:$0xff] }
 0x183   : > { %v8315_v37 = vcombine.low %v527_v18, %v535_v19 }
 0x188   : > { %6706 = vmatpush1.bf16.xpose.msra.mxu0 %v8155_v32  ;;  %6747 = vmatpush1.bf16.xpose.msra.mxu1 %v8157_v28  ;;  %v8316_v32 = vcombine.high %v527_v18, %v535_v19  ;;  %v8318_v28 = vcombine.high %v528_v22, %v536_v24  ;;  %v9915_v18 = vcombine.low %v9826_v44, %v9826_v44  ;;  %v434_v19 = vld [vmem:[%s9608_s26 + $0x338] sm:$0xff]  ;;  %v9920_v24 = vld [vmem:[%s9627_s28 + $0x30] sm:$0xff] }
 0x189   : > { %6707 = vmatprep.subr.bf16.mxu0 %v8140_v29  ;;  %6748 = vmatprep.subr.bf16.mxu1 %v8142_v30  ;;  %v511_v29 = vld [vmem:[%s9608_s26 + $0x5a0] sm:$0xff]  ;;  %v442_v22 = vld [vmem:[%s9608_s26 + $0x378] sm:$0xff]  ;;  %v9931_v44 = vcombine.high %v9920_v24, %v9920_v24 }
 0x18a   : > { %v519_v30 = vld [vmem:[%s9608_s26 + $0x5e0] sm:$0xff] }
 0x18b   : > { %v8299_v49 = vcombine.low %v511_v29, %v519_v30 }
 0x190   : > { %6708 = vmatpush1.bf16.xpose.msra.mxu0 %v8139_v39  ;;  %6749 = vmatpush1.bf16.xpose.msra.mxu1 %v8141_v40  ;;  %v8300_v39 = vcombine.high %v511_v29, %v519_v30  ;;  %v8302_v40 = vcombine.high %v512_v33, %v520_v34  ;;  %v8226_v30 = vcombine.high %v434_v19, %v442_v22  ;;  %v425_v34 = vld [vmem:[%s9608_s26 + $0x2f0] sm:$0xff] }
 0x191   : > { %6709 = vmatprep.subr.bf16.mxu0 %v8124_v42  ;;  %6750 = vmatprep.subr.bf16.mxu1 %v8126_v43  ;;  %v495_v42 = vld [vmem:[%s9608_s26 + $0x520] sm:$0xff] }
 0x192   : > { %v503_v43 = vld [vmem:[%s9608_s26 + $0x560] sm:$0xff] }
 0x193   : > { %v8283_v57 = vcombine.low %v495_v42, %v503_v43 }
 0x198   : > { %6710 = vmatpush1.bf16.xpose.msra.mxu0 %v8123_v23  ;;  %6751 = vmatpush1.bf16.xpose.msra.mxu1 %v8125_v52  ;;  %v8284_v23 = vcombine.high %v495_v42, %v503_v43  ;;  %v8286_v52 = vcombine.high %v496_v46, %v504_v48  ;;  %v401_v46 = vld [vmem:[%s9608_s26 + $0x230] sm:$0xff] }
 0x199   : > { %6711 = vmatprep.subr.bf16.mxu0 %v8364_v53  ;;  %6752 = vmatprep.subr.bf16.mxu1 %v8366_v54  ;;  %v479_v53 = vld [vmem:[%s9608_s26 + $0x4a0] sm:$0xff]  ;;  %v409_v48 = vld [vmem:[%s9608_s26 + $0x270] sm:$0xff] }
 0x19a   : > { %v487_v54 = vld [vmem:[%s9608_s26 + $0x4e0] sm:$0xff] }
 0x19f   : > { %v6565_v63 = vpop.f32.mrf.mxu0  ;;  %v6606_v0 = vpop.f32.mrf.mxu1 }
 0x1a0   : > { %6712 = vmatpush2.bf16.xpose.msra.mxu0 %v8363_v59  ;;  %v9879_v1 = vadd.f32 %v6606_v0, %v6565_v63  ;;  %6753 = vmatpush2.bf16.xpose.msra.mxu1 %v8365_v60  ;;  %v8268_v59 = vcombine.high %v479_v53, %v487_v54  ;;  %v8270_v60 = vcombine.high %v480_v55, %v488_v56  ;;  %v464_v63 = vld [vmem:[%s9608_s26 + $0x428] sm:$0xff] }
 0x1a1   : > { %v6567_v2 = vpop.f32.mrf.mxu0  ;;  %6713 = vmatprep.subr.bf16.mxu0 %v8348_v61  ;;  %v6608_v3 = vpop.f32.mrf.mxu1  ;;  %6754 = vmatprep.subr.bf16.mxu1 %v8350_v62  ;;  %v463_v61 = vld [vmem:[%s9608_s26 + $0x420] sm:$0xff]  ;;  %v472_v0 = vld [vmem:[%s9608_s26 + $0x468] sm:$0xff] }
 0x1a2   : > { %v9883_v6 = vadd.f32 %v6608_v3, %v6567_v2  ;;  %v471_v62 = vld [vmem:[%s9608_s26 + $0x460] sm:$0xff]  ;;  %v8267_v2 = vcombine.low %v479_v53, %v487_v54  ;;  %v8269_v3 = vcombine.low %v480_v55, %v488_v56  ;;  %v8254_v5 = vcombine.high %v464_v63, %v472_v0  ;;  %v385_v55 = vld [vmem:[%s9608_s26 + $0x1b0] sm:$0xff] }
 0x1a3   : > { %v6569_v7 = vpop.f32.mrf.mxu0  ;;  %v6610_v10 = vpop.f32.mrf.mxu1  ;;  %v8252_v4 = vcombine.high %v463_v61, %v471_v62  ;;  %v8192_v53 = vcombine.high %v401_v46, %v409_v48  ;;  %v393_v56 = vld [vmem:[%s9608_s26 + $0x1f0] sm:$0xff] }
 0x1a4   : > { %v449_v7 = vld [vmem:[%s9608_s26 + $0x3b0] sm:$0xff]  ;;  %v458_v10 = vld [vmem:[%s9608_s26 + $0x3f8] sm:$0xff] }
 0x1a5   : > { %v6570_v12 = vpop.f32.mrf.mxu0  ;;  %v6611_v15 = vpop.f32.mrf.mxu1 }
 0x1a6   : > { %v8253_v12 = vcombine.low %v464_v63, %v472_v0  ;;  %v433_v15 = vld [vmem:[%s9608_s26 + $0x330] sm:$0xff] }
 0x1a7   : > { %v369_v63 = vld [vmem:[%s9608_s26 + $0x130] sm:$0xff] }
 0x1a8   : > { %6714 = vmatpush2.bf16.xpose.msra.mxu0 %v8347_v11  ;;  %6755 = vmatpush2.bf16.xpose.msra.mxu1 %v8349_v13  ;;  %v8251_v11 = vcombine.low %v463_v61, %v471_v62  ;;  %v8240_v13 = vcombine.high %v449_v7, %v457_v8  ;;  %v8176_v61 = vcombine.high %v385_v55, %v393_v56  ;;  %v377_v0 = vld [vmem:[%s9608_s26 + $0x170] sm:$0xff] }
 0x1a9   : > { %6715 = vmatprep.subr.bf16.mxu0 %v8332_v14  ;;  %6756 = vmatprep.subr.bf16.mxu1 %v8334_v16  ;;  %v8242_v14 = vcombine.high %v450_v9, %v458_v10  ;;  %v441_v16 = vld [vmem:[%s9608_s26 + $0x370] sm:$0xff] }
 0x1aa   : > { %v8224_v29 = vcombine.high %v433_v15, %v441_v16 }
 0x1b0   : > { %6716 = vmatpush2.bf16.xpose.msra.mxu0 %v8331_v25  ;;  %6757 = vmatpush2.bf16.xpose.msra.mxu1 %v8333_v26  ;;  %v9924_v25 = vcombine.low %v9833_v47, %v9833_v47  ;;  %v8239_v26 = vcombine.low %v449_v7, %v457_v8  ;;  %v417_v47 = vld [vmem:[%s9608_s26 + $0x2b0] sm:$0xff]  ;;  %v8160_v7 = vcombine.high %v369_v63, %v377_v0 }
 0x1b1   : > { %6717 = vmatprep.subr.bf16.mxu0 %v8316_v32  ;;  %6758 = vmatprep.subr.bf16.mxu1 %v8318_v28  ;;  %v9927_v32 = vld [vmem:[%s9627_s28 + $0x38] sm:$0xff]  ;;  %v8241_v28 = vcombine.low %v450_v9, %v458_v10  ;;  %v8208_v42 = vcombine.high %v417_v47, %v425_v34  ;;  %v353_v9 = vld [vmem:[%s9608_s26 + $0xb0] sm:$0xff] }
 0x1b2   : > { %v9936_v33 = vcombine.high %v9927_v32, %v9927_v32  ;;  %v361_v10 = vld [vmem:[%s9608_s26 + $0xf0] sm:$0xff] }
 0x1b8   : > { %6718 = vmatpush2.bf16.xpose.msra.mxu0 %v8315_v37  ;;  %6759 = vmatpush2.bf16.xpose.msra.mxu1 %v8317_v38  ;;  %v418_v37 = vld [vmem:[%s9608_s26 + $0x2b8] sm:$0xff] }
 0x1b9   : > { %6719 = vmatprep.subr.bf16.mxu0 %v8300_v39  ;;  %6760 = vmatprep.subr.bf16.mxu1 %v8302_v40  ;;  %v426_v38 = vld [vmem:[%s9608_s26 + $0x2f8] sm:$0xff]  ;;  %v8223_v39 = vcombine.low %v433_v15, %v441_v16  ;;  %v8225_v40 = vcombine.low %v434_v19, %v442_v22  ;;  %v8144_v15 = vcombine.high %v353_v9, %v361_v10  ;;  %v337_v19 = vld [vmem:[%s9608_s26 + $0x30] sm:$0xff] }
 0x1ba   : > { %v8210_v43 = vcombine.high %v418_v37, %v426_v38  ;;  %v345_v22 = vld [vmem:[%s9608_s26 + $0x70] sm:$0xff] }
 0x1c0   : > { %6720 = vmatpush2.bf16.xpose.msra.mxu0 %v8299_v49  ;;  %6761 = vmatpush2.bf16.xpose.msra.mxu1 %v8301_v50  ;;  %v402_v49 = vld [vmem:[%s9608_s26 + $0x238] sm:$0xff] }
 0x1c1   : > { %6721 = vmatprep.subr.bf16.mxu0 %v8284_v23  ;;  %6762 = vmatprep.subr.bf16.mxu1 %v8286_v52  ;;  %v410_v50 = vld [vmem:[%s9608_s26 + $0x278] sm:$0xff]  ;;  %v8207_v23 = vcombine.low %v417_v47, %v425_v34  ;;  %v8209_v52 = vcombine.low %v418_v37, %v426_v38  ;;  %v8128_v47 = vcombine.high %v337_v19, %v345_v22  ;;  %v577_v37 = vld [vmem:[%s9608_s26 + $0x7b0] sm:$0xff] }
 0x1c2   : > { %v8194_v54 = vcombine.high %v402_v49, %v410_v50  ;;  %v585_v38 = vld [vmem:[%s9608_s26 + $0x7f0] sm:$0xff] }
 0x1c8   : > { %6722 = vmatpush2.bf16.xpose.msra.mxu0 %v8283_v57  ;;  %6763 = vmatpush2.bf16.xpose.msra.mxu1 %v8285_v58  ;;  %v386_v57 = vld [vmem:[%s9608_s26 + $0x1b8] sm:$0xff] }
 0x1c9   : > { %6723 = vmatprep.subr.bf16.mxu0 %v8268_v59  ;;  %6764 = vmatprep.subr.bf16.mxu1 %v8270_v60  ;;  %v394_v58 = vld [vmem:[%s9608_s26 + $0x1f8] sm:$0xff]  ;;  %v8191_v59 = vcombine.low %v401_v46, %v409_v48  ;;  %v8193_v60 = vcombine.low %v402_v49, %v410_v50  ;;  %v8368_v46 = vcombine.high %v577_v37, %v585_v38  ;;  %v561_v49 = vld [vmem:[%s9608_s26 + $0x730] sm:$0xff] }
 0x1ca   : > { %v8178_v62 = vcombine.high %v386_v57, %v394_v58  ;;  %v569_v50 = vld [vmem:[%s9608_s26 + $0x770] sm:$0xff] }
 0x1d0   : > { %6724 = vmatpush2.bf16.xpose.msra.mxu0 %v8267_v2  ;;  %6765 = vmatpush2.bf16.xpose.msra.mxu1 %v8269_v3  ;;  %v370_v2 = vld [vmem:[%s9608_s26 + $0x138] sm:$0xff] }
 0x1d1   : > { %6725 = vmatprep.subr.bf16.mxu0 %v8252_v4  ;;  %6766 = vmatprep.subr.bf16.mxu1 %v8254_v5  ;;  %v378_v3 = vld [vmem:[%s9608_s26 + $0x178] sm:$0xff]  ;;  %v8175_v4 = vcombine.low %v385_v55, %v393_v56  ;;  %v8177_v5 = vcombine.low %v386_v57, %v394_v58  ;;  %v8352_v55 = vcombine.high %v561_v49, %v569_v50 }
 0x1d2   : > { %v8162_v8 = vcombine.high %v370_v2, %v378_v3 }
 0x1d8   : > { %6726 = vmatpush2.bf16.xpose.msra.mxu0 %v8251_v11  ;;  %6767 = vmatpush2.bf16.xpose.msra.mxu1 %v8253_v12  ;;  %v354_v11 = vld [vmem:[%s9608_s26 + $0xb8] sm:$0xff] }
 0x1d9   : > { %6777 = vmatprep.subr.bf16.mxu0 %v8240_v13  ;;  %6818 = vmatprep.subr.bf16.mxu1 %v8242_v14  ;;  %v362_v12 = vld [vmem:[%s9608_s26 + $0xf8] sm:$0xff]  ;;  %v8159_v13 = vcombine.low %v369_v63, %v377_v0  ;;  %v8161_v14 = vcombine.low %v370_v2, %v378_v3  ;;  %v545_v0 = vld [vmem:[%s9608_s26 + $0x6b0] sm:$0xff] }
 0x1da   : > { %v8146_v16 = vcombine.high %v354_v11, %v362_v12  ;;  %v553_v2 = vld [vmem:[%s9608_s26 + $0x6f0] sm:$0xff] }
 0x1df   : > { %6728 = vmatmul.mubr.bf16.vlgmr.msra.gmra.mxu0 %v9915_v18  ;;  %6769 = vmatmul.mubr.bf16.vlgmr.msra.gmra.mxu1 %v9924_v25 }
 0x1e0   : > { %6778 = vmatpush1.bf16.xpose.msra.mxu0 %v8239_v26  ;;  %6819 = vmatpush1.bf16.xpose.msra.mxu1 %v8241_v28  ;;  %v338_v26 = vld [vmem:[%s9608_s26 + $0x38] sm:$0xff] }
 0x1e1   : > { %6779 = vmatprep.subr.bf16.mxu0 %v8224_v29  ;;  %6820 = vmatprep.subr.bf16.mxu1 %v8226_v30  ;;  %v346_v28 = vld [vmem:[%s9608_s26 + $0x78] sm:$0xff]  ;;  %v8143_v29 = vcombine.low %v353_v9, %v361_v10  ;;  %v8145_v30 = vcombine.low %v354_v11, %v362_v12  ;;  %v8336_v11 = vcombine.high %v545_v0, %v553_v2 }
 0x1e2   : > { %6809 = vmatprep.mubr.bf16.mxu0 %v9931_v44  ;;  %6850 = vmatprep.mubr.bf16.mxu1 %v9936_v33  ;;  %v8130_v34 = vcombine.high %v338_v26, %v346_v28 }
 0x1e8   : > { %6780 = vmatpush1.bf16.xpose.msra.mxu0 %v8223_v39  ;;  %6821 = vmatpush1.bf16.xpose.msra.mxu1 %v8225_v40  ;;  %v578_v39 = vld [vmem:[%s9608_s26 + $0x7b8] sm:$0xff] }
 0x1e9   : > { %6781 = vmatprep.subr.bf16.mxu0 %v8208_v42  ;;  %6822 = vmatprep.subr.bf16.mxu1 %v8210_v43  ;;  %v586_v40 = vld [vmem:[%s9608_s26 + $0x7f8] sm:$0xff]  ;;  %v8127_v42 = vcombine.low %v337_v19, %v345_v22  ;;  %v8129_v43 = vcombine.low %v338_v26, %v346_v28  ;;  %v8335_v19 = vcombine.low %v545_v0, %v553_v2 }
 0x1ea   : > { %v8370_v48 = vcombine.high %v578_v39, %v586_v40  ;;  %v466_v0 = vld [vmem:[%s9608_s26 + $0x438] sm:$0xff] }
 0x1eb   : > { %v474_v2 = vld [vmem:[%s9608_s26 + $0x478] sm:$0xff] }
 0x1f0   : > { %6782 = vmatpush1.bf16.xpose.msra.mxu0 %v8207_v23  ;;  %6823 = vmatpush1.bf16.xpose.msra.mxu1 %v8209_v52  ;;  %v562_v23 = vld [vmem:[%s9608_s26 + $0x738] sm:$0xff] }
 0x1f1   : > { %6783 = vmatprep.subr.bf16.mxu0 %v8192_v53  ;;  %6824 = vmatprep.subr.bf16.mxu1 %v8194_v54  ;;  %v570_v52 = vld [vmem:[%s9608_s26 + $0x778] sm:$0xff]  ;;  %v8367_v53 = vcombine.low %v577_v37, %v585_v38  ;;  %v8369_v54 = vcombine.low %v578_v39, %v586_v40 }
 0x1f2   : > { %v8354_v56 = vcombine.high %v562_v23, %v570_v52  ;;  %v8353_v10 = vcombine.low %v562_v23, %v570_v52 }
 0x1f8   : > { %6784 = vmatpush1.bf16.xpose.msra.mxu0 %v8191_v59  ;;  %6825 = vmatpush1.bf16.xpose.msra.mxu1 %v8193_v60 }
 0x1f9   : > { %6785 = vmatprep.subr.bf16.mxu0 %v8176_v61  ;;  %6826 = vmatprep.subr.bf16.mxu1 %v8178_v62 }
 0x200   : > { %6786 = vmatpush1.bf16.xpose.msra.mxu0 %v8175_v4  ;;  %6827 = vmatpush1.bf16.xpose.msra.mxu1 %v8177_v5  ;;  %v546_v4 = vld [vmem:[%s9608_s26 + $0x6b8] sm:$0xff] }
 0x201   : > { %6787 = vmatprep.subr.bf16.mxu0 %v8160_v7  ;;  %6828 = vmatprep.subr.bf16.mxu1 %v8162_v8  ;;  %v554_v5 = vld [vmem:[%s9608_s26 + $0x6f8] sm:$0xff]  ;;  %v8351_v8 = vcombine.low %v561_v49, %v569_v50 }
 0x202   : > { %v8337_v22 = vcombine.low %v546_v4, %v554_v5 }
 0x208   : > { %6788 = vmatpush1.bf16.xpose.msra.mxu0 %v8159_v13  ;;  %6829 = vmatpush1.bf16.xpose.msra.mxu1 %v8161_v14  ;;  %v529_v13 = vld [vmem:[%s9608_s26 + $0x630] sm:$0xff] }
 0x209   : > { %6789 = vmatprep.subr.bf16.mxu0 %v8144_v15  ;;  %6830 = vmatprep.subr.bf16.mxu1 %v8146_v16  ;;  %v537_v14 = vld [vmem:[%s9608_s26 + $0x670] sm:$0xff]  ;;  %v530_v15 = vld [vmem:[%s9608_s26 + $0x638] sm:$0xff] }
 0x20a   : > { %v538_v16 = vld [vmem:[%s9608_s26 + $0x678] sm:$0xff]  ;;  %v8320_v26 = vcombine.high %v529_v13, %v537_v14  ;;  %v8319_v37 = vcombine.low %v529_v13, %v537_v14 }
 0x20b   : > { %v8322_v28 = vcombine.high %v530_v15, %v538_v16  ;;  %v8321_v38 = vcombine.low %v530_v15, %v538_v16  ;;  %v683_v15 = vld [vmem:[%s9608_s26 + $0xb00] sm:$0xff] }
 0x20c   : > { %v691_v16 = vld [vmem:[%s9608_s26 + $0xb40] sm:$0xff] }
 0x210   : > { %6790 = vmatpush1.bf16.xpose.msra.mxu0 %v8143_v29  ;;  %6831 = vmatpush1.bf16.xpose.msra.mxu1 %v8145_v30  ;;  %v513_v29 = vld [vmem:[%s9608_s26 + $0x5b0] sm:$0xff] }
 0x211   : > { %6791 = vmatprep.subr.bf16.mxu0 %v8128_v47  ;;  %6832 = vmatprep.subr.bf16.mxu1 %v8130_v34  ;;  %v521_v30 = vld [vmem:[%s9608_s26 + $0x5f0] sm:$0xff]  ;;  %v514_v47 = vld [vmem:[%s9608_s26 + $0x5b8] sm:$0xff] }
 0x212   : > { %v522_v34 = vld [vmem:[%s9608_s26 + $0x5f8] sm:$0xff]  ;;  %v8304_v39 = vcombine.high %v513_v29, %v521_v30  ;;  %v8303_v49 = vcombine.low %v513_v29, %v521_v30 }
 0x213   : > { %v8306_v40 = vcombine.high %v514_v47, %v522_v34  ;;  %v8305_v50 = vcombine.low %v514_v47, %v522_v34  ;;  %v8468_v47 = vcombine.high %v683_v15, %v691_v16 }
 0x218   : > { %6792 = vmatpush1.bf16.xpose.msra.mxu0 %v8127_v42  ;;  %6833 = vmatpush1.bf16.xpose.msra.mxu1 %v8129_v43  ;;  %v497_v42 = vld [vmem:[%s9608_s26 + $0x530] sm:$0xff] }
 0x219   : > { %6793 = vmatprep.subr.bf16.mxu0 %v8368_v46  ;;  %6834 = vmatprep.subr.bf16.mxu1 %v8370_v48  ;;  %v505_v43 = vld [vmem:[%s9608_s26 + $0x570] sm:$0xff]  ;;  %v498_v46 = vld [vmem:[%s9608_s26 + $0x538] sm:$0xff] }
 0x21a   : > { %v506_v48 = vld [vmem:[%s9608_s26 + $0x578] sm:$0xff]  ;;  %v8288_v23 = vcombine.high %v497_v42, %v505_v43 }
 0x21b   : > { %v8290_v52 = vcombine.high %v498_v46, %v506_v48 }
 0x21f   : > { %v6647_v57 = vpop.f32.mrf.mxu0  ;;  %v6688_v59 = vpop.f32.mrf.mxu1 }
 0x220   : > { %v6648_v58 = vadd.f32 %v6647_v57, %v9879_v1  ;;  %6794 = vmatpush2.bf16.xpose.msra.mxu0 %v8367_v53  ;;  %6835 = vmatpush2.bf16.xpose.msra.mxu1 %v8369_v54  ;;  %v481_v53 = vld [vmem:[%s9608_s26 + $0x4b0] sm:$0xff]  ;;  %v8287_v57 = vcombine.low %v497_v42, %v505_v43 }
 0x221   : > { %v6649_v60 = vpop.f32.mrf.mxu0  ;;  %6795 = vmatprep.subr.bf16.mxu0 %v8352_v55  ;;  %v6690_v63 = vpop.f32.mrf.mxu1  ;;  %6836 = vmatprep.subr.bf16.mxu1 %v8354_v56  ;;  %v489_v54 = vld [vmem:[%s9608_s26 + $0x4f0] sm:$0xff]  ;;  %v482_v55 = vld [vmem:[%s9608_s26 + $0x4b8] sm:$0xff] }
 0x222   : > { %v9974_v61 = vadd.f32 %v6688_v59, %v6648_v58  ;;  %v6650_v62 = vadd.f32 %v6649_v60, %v9883_v6  ;;  %v8338_v6 = vcombine.high %v546_v4, %v554_v5  ;;  %v490_v56 = vld [vmem:[%s9608_s26 + $0x4f8] sm:$0xff]  ;;  %v8289_v58 = vcombine.low %v498_v46, %v506_v48  ;;  %v651_v46 = vld [vmem:[%s9608_s26 + $0xa00] sm:$0xff] }
 0x223   : > { %v6651_v3 = vpop.f32.mrf.mxu0  ;;  %v6692_v7 = vpop.f32.mrf.mxu1  ;;  %v8272_v59 = vcombine.high %v481_v53, %v489_v54  ;;  %v8274_v60 = vcombine.high %v482_v55, %v490_v56  ;;  %v8273_v4 = vcombine.low %v482_v55, %v490_v56  ;;  %v659_v48 = vld [vmem:[%s9608_s26 + $0xa40] sm:$0xff] }
 0x224   : > { %v9981_v1 = vadd.f32 %v6690_v63, %v6650_v62  ;;  %v465_v62 = vld [vmem:[%s9608_s26 + $0x430] sm:$0xff]  ;;  %v8271_v3 = vcombine.low %v481_v53, %v489_v54  ;;  %v8258_v7 = vcombine.high %v466_v0, %v474_v2  ;;  %v8436_v53 = vcombine.high %v651_v46, %v659_v48  ;;  %v635_v55 = vld [vmem:[%s9608_s26 + $0x980] sm:$0xff] }
 0x225   : > { %v6652_v9 = vpop.f32.mrf.mxu0  ;;  %v6693_v12 = vpop.f32.mrf.mxu1  ;;  %v473_v63 = vld [vmem:[%s9608_s26 + $0x470] sm:$0xff]  ;;  %v643_v56 = vld [vmem:[%s9608_s26 + $0x9c0] sm:$0xff] }
 0x226   : > { %v8256_v5 = vcombine.high %v465_v62, %v473_v63  ;;  %v707_v9 = vld [vmem:[%s9608_s26 + $0xbc0] sm:$0xff]  ;;  %v8255_v12 = vcombine.low %v465_v62, %v473_v63  ;;  %v8420_v62 = vcombine.high %v635_v55, %v643_v56 }
 0x228   : > { %6796 = vmatpush2.bf16.xpose.msra.mxu0 %v8351_v8  ;;  %6837 = vmatpush2.bf16.xpose.msra.mxu1 %v8353_v10  ;;  %v699_v8 = vld [vmem:[%s9608_s26 + $0xb80] sm:$0xff]  ;;  %v700_v10 = vld [vmem:[%s9608_s26 + $0xb88] sm:$0xff] }
 0x229   : > { %6797 = vmatprep.subr.bf16.mxu0 %v8336_v11  ;;  %6838 = vmatprep.subr.bf16.mxu1 %v8338_v6  ;;  %v708_v11 = vld [vmem:[%s9608_s26 + $0xbc8] sm:$0xff]  ;;  %v8257_v6 = vcombine.low %v466_v0, %v474_v2  ;;  %v8484_v13 = vcombine.high %v699_v8, %v707_v9  ;;  %v8483_v29 = vcombine.low %v699_v8, %v707_v9  ;;  %v619_v0 = vld [vmem:[%s9608_s26 + $0x900] sm:$0xff] }
 0x22a   : > { %v8486_v14 = vcombine.high %v700_v10, %v708_v11  ;;  %v8485_v30 = vcombine.low %v700_v10, %v708_v11  ;;  %v627_v2 = vld [vmem:[%s9608_s26 + $0x940] sm:$0xff] }
 0x22b   : > { %v8404_v8 = vcombine.high %v619_v0, %v627_v2  ;;  %v603_v10 = vld [vmem:[%s9608_s26 + $0x880] sm:$0xff] }
 0x22c   : > { %v611_v11 = vld [vmem:[%s9608_s26 + $0x8c0] sm:$0xff] }
 0x230   : > { %6798 = vmatpush2.bf16.xpose.msra.mxu0 %v8335_v19  ;;  %6839 = vmatpush2.bf16.xpose.msra.mxu1 %v8337_v22  ;;  %v10011_v19 = vcombine.low %v9920_v24, %v9920_v24  ;;  %v684_v22 = vld [vmem:[%s9608_s26 + $0xb08] sm:$0xff]  ;;  %v667_v24 = vld [vmem:[%s9608_s26 + $0xa80] sm:$0xff] }
 0x231   : > { %6799 = vmatprep.subr.bf16.mxu0 %v8320_v26  ;;  %6840 = vmatprep.subr.bf16.mxu1 %v8322_v28  ;;  %v692_v26 = vld [vmem:[%s9608_s26 + $0xb48] sm:$0xff]  ;;  %v10017_v28 = vcombine.low %v9927_v32, %v9927_v32 }
 0x232   : > { %v8470_v34 = vcombine.high %v684_v22, %v692_v26  ;;  %v668_v32 = vld [vmem:[%s9608_s26 + $0xa88] sm:$0xff] }
 0x238   : > { %6800 = vmatpush2.bf16.xpose.msra.mxu0 %v8319_v37  ;;  %6841 = vmatpush2.bf16.xpose.msra.mxu1 %v8321_v38  ;;  %v675_v37 = vld [vmem:[%s9608_s26 + $0xac0] sm:$0xff]  ;;  %v676_v38 = vld [vmem:[%s9608_s26 + $0xac8] sm:$0xff] }
 0x239   : > { %6801 = vmatprep.subr.bf16.mxu0 %v8304_v39  ;;  %6842 = vmatprep.subr.bf16.mxu1 %v8306_v40  ;;  %v8467_v39 = vcombine.low %v683_v15, %v691_v16  ;;  %v8469_v40 = vcombine.low %v684_v22, %v692_v26  ;;  %v8452_v42 = vcombine.high %v667_v24, %v675_v37  ;;  %v587_v22 = vld [vmem:[%s9608_s26 + $0x800] sm:$0xff] }
 0x23a   : > { %v8454_v43 = vcombine.high %v668_v32, %v676_v38  ;;  %v8388_v15 = vcombine.high %v603_v10, %v611_v11  ;;  %v595_v26 = vld [vmem:[%s9608_s26 + $0x840] sm:$0xff] }
 0x240   : > { %6802 = vmatpush2.bf16.xpose.msra.mxu0 %v8303_v49  ;;  %6843 = vmatpush2.bf16.xpose.msra.mxu1 %v8305_v50  ;;  %v652_v49 = vld [vmem:[%s9608_s26 + $0xa08] sm:$0xff] }
 0x241   : > { %6803 = vmatprep.subr.bf16.mxu0 %v8288_v23  ;;  %6844 = vmatprep.subr.bf16.mxu1 %v8290_v52  ;;  %v660_v50 = vld [vmem:[%s9608_s26 + $0xa48] sm:$0xff]  ;;  %v8451_v23 = vcombine.low %v667_v24, %v675_v37  ;;  %v8453_v52 = vcombine.low %v668_v32, %v676_v38  ;;  %v8372_v24 = vcombine.high %v587_v22, %v595_v26  ;;  %v827_v32 = vld [vmem:[%s9608_s26 + $0xf80] sm:$0xff] }
 0x242   : > { %v8438_v54 = vcombine.high %v652_v49, %v660_v50  ;;  %v835_v38 = vld [vmem:[%s9608_s26 + $0xfc0] sm:$0xff] }
 0x248   : > { %6804 = vmatpush2.bf16.xpose.msra.mxu0 %v8287_v57  ;;  %6845 = vmatpush2.bf16.xpose.msra.mxu1 %v8289_v58  ;;  %v636_v57 = vld [vmem:[%s9608_s26 + $0x988] sm:$0xff] }
 0x249   : > { %6805 = vmatprep.subr.bf16.mxu0 %v8272_v59  ;;  %6846 = vmatprep.subr.bf16.mxu1 %v8274_v60  ;;  %v644_v58 = vld [vmem:[%s9608_s26 + $0x9c8] sm:$0xff]  ;;  %v8435_v59 = vcombine.low %v651_v46, %v659_v48  ;;  %v8437_v60 = vcombine.low %v652_v49, %v660_v50  ;;  %v8612_v46 = vcombine.high %v827_v32, %v835_v38  ;;  %v811_v49 = vld [vmem:[%s9608_s26 + $0xf00] sm:$0xff] }
 0x24a   : > { %v8422_v63 = vcombine.high %v636_v57, %v644_v58  ;;  %v819_v50 = vld [vmem:[%s9608_s26 + $0xf40] sm:$0xff] }
 0x250   : > { %6806 = vmatpush2.bf16.xpose.msra.mxu0 %v8271_v3  ;;  %6847 = vmatpush2.bf16.xpose.msra.mxu1 %v8273_v4  ;;  %v620_v3 = vld [vmem:[%s9608_s26 + $0x908] sm:$0xff] }
 0x251   : > { %6807 = vmatprep.subr.bf16.mxu0 %v8256_v5  ;;  %6848 = vmatprep.subr.bf16.mxu1 %v8258_v7  ;;  %v628_v4 = vld [vmem:[%s9608_s26 + $0x948] sm:$0xff]  ;;  %v8419_v5 = vcombine.low %v635_v55, %v643_v56  ;;  %v8421_v7 = vcombine.low %v636_v57, %v644_v58  ;;  %v8596_v55 = vcombine.high %v811_v49, %v819_v50 }
 0x252   : > { %v8406_v9 = vcombine.high %v620_v3, %v628_v4 }
 0x258   : > { %6808 = vmatpush2.bf16.xpose.msra.mxu0 %v8255_v12  ;;  %6849 = vmatpush2.bf16.xpose.msra.mxu1 %v8257_v6  ;;  %v604_v12 = vld [vmem:[%s9608_s26 + $0x888] sm:$0xff] }
 0x259   : > { %6859 = vmatprep.subr.bf16.mxu0 %v8484_v13  ;;  %6900 = vmatprep.subr.bf16.mxu1 %v8486_v14  ;;  %v612_v6 = vld [vmem:[%s9608_s26 + $0x8c8] sm:$0xff]  ;;  %v8403_v13 = vcombine.low %v619_v0, %v627_v2  ;;  %v8405_v14 = vcombine.low %v620_v3, %v628_v4  ;;  %v795_v2 = vld [vmem:[%s9608_s26 + $0xe80] sm:$0xff] }
 0x25a   : > { %v8390_v16 = vcombine.high %v604_v12, %v612_v6  ;;  %v803_v3 = vld [vmem:[%s9608_s26 + $0xec0] sm:$0xff] }
 0x25f   : > { %6810 = vmatmul.mubr.bf16.vlgmr.msra.gmra.mxu0 %v10011_v19  ;;  %6851 = vmatmul.mubr.bf16.vlgmr.msra.gmra.mxu1 %v10017_v28 }
 0x260   : > { %6860 = vmatpush1.bf16.xpose.msra.mxu0 %v8483_v29  ;;  %6901 = vmatpush1.bf16.xpose.msra.mxu1 %v8485_v30  ;;  %v588_v29 = vld [vmem:[%s9608_s26 + $0x808] sm:$0xff] }
 0x261   : > { %6861 = vmatprep.subr.bf16.mxu0 %v8468_v47  ;;  %6902 = vmatprep.subr.bf16.mxu1 %v8470_v34  ;;  %v596_v30 = vld [vmem:[%s9608_s26 + $0x848] sm:$0xff]  ;;  %v8387_v47 = vcombine.low %v603_v10, %v611_v11  ;;  %v8389_v34 = vcombine.low %v604_v12, %v612_v6  ;;  %v8580_v12 = vcombine.high %v795_v2, %v803_v3 }
 0x262   : > { %6891 = vmatprep.mubr.bf16.mxu0 %v9669_v35  ;;  %6932 = vmatprep.mubr.bf16.mxu1 %v9673_v36  ;;  %v8374_v37 = vcombine.high %v588_v29, %v596_v30 }
 0x268   : > { %6862 = vmatpush1.bf16.xpose.msra.mxu0 %v8467_v39  ;;  %6903 = vmatpush1.bf16.xpose.msra.mxu1 %v8469_v40  ;;  %v828_v39 = vld [vmem:[%s9608_s26 + $0xf88] sm:$0xff] }
 0x269   : > { %6863 = vmatprep.subr.bf16.mxu0 %v8452_v42  ;;  %6904 = vmatprep.subr.bf16.mxu1 %v8454_v43  ;;  %v836_v40 = vld [vmem:[%s9608_s26 + $0xfc8] sm:$0xff]  ;;  %v8371_v42 = vcombine.low %v587_v22, %v595_v26  ;;  %v8373_v43 = vcombine.low %v588_v29, %v596_v30  ;;  %v8579_v22 = vcombine.low %v795_v2, %v803_v3 }
 0x26a   : > { %v8614_v48 = vcombine.high %v828_v39, %v836_v40  ;;  %v716_v2 = vld [vmem:[%s9608_s26 + $0xc08] sm:$0xff] }
 0x26b   : > { %v724_v3 = vld [vmem:[%s9608_s26 + $0xc48] sm:$0xff] }
 0x270   : > { %6864 = vmatpush1.bf16.xpose.msra.mxu0 %v8451_v23  ;;  %6905 = vmatpush1.bf16.xpose.msra.mxu1 %v8453_v52  ;;  %v812_v23 = vld [vmem:[%s9608_s26 + $0xf08] sm:$0xff] }
 0x271   : > { %6865 = vmatprep.subr.bf16.mxu0 %v8436_v53  ;;  %6906 = vmatprep.subr.bf16.mxu1 %v8438_v54  ;;  %v820_v52 = vld [vmem:[%s9608_s26 + $0xf48] sm:$0xff]  ;;  %v8611_v53 = vcombine.low %v827_v32, %v835_v38  ;;  %v8613_v54 = vcombine.low %v828_v39, %v836_v40 }
 0x272   : > { %v8598_v56 = vcombine.high %v812_v23, %v820_v52  ;;  %v8597_v11 = vcombine.low %v812_v23, %v820_v52 }
 0x278   : > { %6866 = vmatpush1.bf16.xpose.msra.mxu0 %v8435_v59  ;;  %6907 = vmatpush1.bf16.xpose.msra.mxu1 %v8437_v60 }
 0x279   : > { %6867 = vmatprep.subr.bf16.mxu0 %v8420_v62  ;;  %6908 = vmatprep.subr.bf16.mxu1 %v8422_v63 }
 0x280   : > { %6868 = vmatpush1.bf16.xpose.msra.mxu0 %v8419_v5  ;;  %6909 = vmatpush1.bf16.xpose.msra.mxu1 %v8421_v7  ;;  %v796_v5 = vld [vmem:[%s9608_s26 + $0xe88] sm:$0xff] }
 0x281   : > { %6869 = vmatprep.subr.bf16.mxu0 %v8404_v8  ;;  %6910 = vmatprep.subr.bf16.mxu1 %v8406_v9  ;;  %v804_v7 = vld [vmem:[%s9608_s26 + $0xec8] sm:$0xff]  ;;  %v8595_v9 = vcombine.low %v811_v49, %v819_v50 }
 0x282   : > { %v8581_v26 = vcombine.low %v796_v5, %v804_v7 }
 0x288   : > { %6870 = vmatpush1.bf16.xpose.msra.mxu0 %v8403_v13  ;;  %6911 = vmatpush1.bf16.xpose.msra.mxu1 %v8405_v14  ;;  %v779_v13 = vld [vmem:[%s9608_s26 + $0xe00] sm:$0xff] }
 0x289   : > { %6871 = vmatprep.subr.bf16.mxu0 %v8388_v15  ;;  %6912 = vmatprep.subr.bf16.mxu1 %v8390_v16  ;;  %v787_v14 = vld [vmem:[%s9608_s26 + $0xe40] sm:$0xff]  ;;  %v780_v15 = vld [vmem:[%s9608_s26 + $0xe08] sm:$0xff] }
 0x28a   : > { %v788_v16 = vld [vmem:[%s9608_s26 + $0xe48] sm:$0xff]  ;;  %v8564_v29 = vcombine.high %v779_v13, %v787_v14  ;;  %v8563_v32 = vcombine.low %v779_v13, %v787_v14 }
 0x28b   : > { %v8566_v30 = vcombine.high %v780_v15, %v788_v16  ;;  %v8565_v38 = vcombine.low %v780_v15, %v788_v16  ;;  %v685_v15 = vld [vmem:[%s9608_s26 + $0xb10] sm:$0xff] }
 0x28c   : > { %v693_v16 = vld [vmem:[%s9608_s26 + $0xb50] sm:$0xff] }
 0x290   : > { %6872 = vmatpush1.bf16.xpose.msra.mxu0 %v8387_v47  ;;  %6913 = vmatpush1.bf16.xpose.msra.mxu1 %v8389_v34  ;;  %v763_v47 = vld [vmem:[%s9608_s26 + $0xd80] sm:$0xff] }
 0x291   : > { %6873 = vmatprep.subr.bf16.mxu0 %v8372_v24  ;;  %6914 = vmatprep.subr.bf16.mxu1 %v8374_v37  ;;  %v771_v34 = vld [vmem:[%s9608_s26 + $0xdc0] sm:$0xff]  ;;  %v764_v24 = vld [vmem:[%s9608_s26 + $0xd88] sm:$0xff] }
 0x292   : > { %v772_v37 = vld [vmem:[%s9608_s26 + $0xdc8] sm:$0xff]  ;;  %v8548_v39 = vcombine.high %v763_v47, %v771_v34  ;;  %v8547_v49 = vcombine.low %v763_v47, %v771_v34  ;;  %v8472_v47 = vcombine.high %v685_v15, %v693_v16 }
 0x293   : > { %v8550_v40 = vcombine.high %v764_v24, %v772_v37  ;;  %v8549_v50 = vcombine.low %v764_v24, %v772_v37  ;;  %v669_v24 = vld [vmem:[%s9608_s26 + $0xa90] sm:$0xff] }
 0x294   : > { %v677_v37 = vld [vmem:[%s9608_s26 + $0xad0] sm:$0xff] }
 0x298   : > { %6874 = vmatpush1.bf16.xpose.msra.mxu0 %v8371_v42  ;;  %6915 = vmatpush1.bf16.xpose.msra.mxu1 %v8373_v43  ;;  %v747_v42 = vld [vmem:[%s9608_s26 + $0xd00] sm:$0xff] }
 0x299   : > { %6875 = vmatprep.subr.bf16.mxu0 %v8612_v46  ;;  %6916 = vmatprep.subr.bf16.mxu1 %v8614_v48  ;;  %v755_v43 = vld [vmem:[%s9608_s26 + $0xd40] sm:$0xff]  ;;  %v748_v46 = vld [vmem:[%s9608_s26 + $0xd08] sm:$0xff] }
 0x29a   : > { %v756_v48 = vld [vmem:[%s9608_s26 + $0xd48] sm:$0xff]  ;;  %v8532_v23 = vcombine.high %v747_v42, %v755_v43 }
 0x29b   : > { %v8534_v52 = vcombine.high %v748_v46, %v756_v48 }
 0x29f   : > { %v6729_v57 = vpop.f32.mrf.mxu0  ;;  %v6770_v59 = vpop.f32.mrf.mxu1 }
 0x2a0   : > { %v6730_v58 = vadd.f32 %v6729_v57, %v9974_v61  ;;  %6876 = vmatpush2.bf16.xpose.msra.mxu0 %v8611_v53  ;;  %6917 = vmatpush2.bf16.xpose.msra.mxu1 %v8613_v54  ;;  %v731_v53 = vld [vmem:[%s9608_s26 + $0xc80] sm:$0xff]  ;;  %v8531_v57 = vcombine.low %v747_v42, %v755_v43  ;;  %v8456_v42 = vcombine.high %v669_v24, %v677_v37 }
 0x2a1   : > { %v6731_v60 = vpop.f32.mrf.mxu0  ;;  %6877 = vmatprep.subr.bf16.mxu0 %v8596_v55  ;;  %v6772_v0 = vpop.f32.mrf.mxu1  ;;  %6918 = vmatprep.subr.bf16.mxu1 %v8598_v56  ;;  %v739_v54 = vld [vmem:[%s9608_s26 + $0xcc0] sm:$0xff]  ;;  %v732_v55 = vld [vmem:[%s9608_s26 + $0xc88] sm:$0xff] }
 0x2a2   : > { %v10056_v62 = vadd.f32 %v6770_v59, %v6730_v58  ;;  %v6732_v63 = vadd.f32 %v6731_v60, %v9981_v1  ;;  %v8582_v1 = vcombine.high %v796_v5, %v804_v7  ;;  %v740_v56 = vld [vmem:[%s9608_s26 + $0xcc8] sm:$0xff]  ;;  %v8533_v58 = vcombine.low %v748_v46, %v756_v48  ;;  %v653_v46 = vld [vmem:[%s9608_s26 + $0xa10] sm:$0xff] }
 0x2a3   : > { %v6733_v4 = vpop.f32.mrf.mxu0  ;;  %v6774_v8 = vpop.f32.mrf.mxu1  ;;  %v8516_v59 = vcombine.high %v731_v53, %v739_v54  ;;  %v8518_v60 = vcombine.high %v732_v55, %v740_v56  ;;  %v8517_v5 = vcombine.low %v732_v55, %v740_v56  ;;  %v661_v48 = vld [vmem:[%s9608_s26 + $0xa50] sm:$0xff] }
 0x2a4   : > { %v10063_v61 = vadd.f32 %v6772_v0, %v6732_v63  ;;  %v715_v63 = vld [vmem:[%s9608_s26 + $0xc00] sm:$0xff]  ;;  %v8515_v4 = vcombine.low %v731_v53, %v739_v54  ;;  %v8502_v8 = vcombine.high %v716_v2, %v724_v3  ;;  %v8440_v53 = vcombine.high %v653_v46, %v661_v48  ;;  %v637_v55 = vld [vmem:[%s9608_s26 + $0x990] sm:$0xff] }
 0x2a5   : > { %v6734_v10 = vpop.f32.mrf.mxu0  ;;  %v6775_v6 = vpop.f32.mrf.mxu1  ;;  %v723_v0 = vld [vmem:[%s9608_s26 + $0xc40] sm:$0xff]  ;;  %v645_v56 = vld [vmem:[%s9608_s26 + $0x9d0] sm:$0xff] }
 0x2a6   : > { %v8500_v7 = vcombine.high %v715_v63, %v723_v0  ;;  %v709_v10 = vld [vmem:[%s9608_s26 + $0xbd0] sm:$0xff]  ;;  %v8499_v6 = vcombine.low %v715_v63, %v723_v0  ;;  %v8424_v63 = vcombine.high %v637_v55, %v645_v56 }
 0x2a8   : > { %6878 = vmatpush2.bf16.xpose.msra.mxu0 %v8595_v9  ;;  %6919 = vmatpush2.bf16.xpose.msra.mxu1 %v8597_v11  ;;  %v701_v9 = vld [vmem:[%s9608_s26 + $0xb90] sm:$0xff]  ;;  %v702_v11 = vld [vmem:[%s9608_s26 + $0xb98] sm:$0xff] }
 0x2a9   : > { %6879 = vmatprep.subr.bf16.mxu0 %v8580_v12  ;;  %6920 = vmatprep.subr.bf16.mxu1 %v8582_v1  ;;  %v710_v12 = vld [vmem:[%s9608_s26 + $0xbd8] sm:$0xff]  ;;  %v8501_v1 = vcombine.low %v716_v2, %v724_v3  ;;  %v8488_v13 = vcombine.high %v701_v9, %v709_v10  ;;  %v621_v2 = vld [vmem:[%s9608_s26 + $0x910] sm:$0xff] }
 0x2aa   : > { %v8490_v14 = vcombine.high %v702_v11, %v710_v12  ;;  %v629_v3 = vld [vmem:[%s9608_s26 + $0x950] sm:$0xff] }
 0x2b0   : > { %6880 = vmatpush2.bf16.xpose.msra.mxu0 %v8579_v22  ;;  %6921 = vmatpush2.bf16.xpose.msra.mxu1 %v8581_v26  ;;  %v686_v22 = vld [vmem:[%s9608_s26 + $0xb18] sm:$0xff] }
 0x2b1   : > { %6881 = vmatprep.subr.bf16.mxu0 %v8564_v29  ;;  %6922 = vmatprep.subr.bf16.mxu1 %v8566_v30  ;;  %v694_v26 = vld [vmem:[%s9608_s26 + $0xb58] sm:$0xff]  ;;  %v8487_v29 = vcombine.low %v701_v9, %v709_v10  ;;  %v8489_v30 = vcombine.low %v702_v11, %v710_v12  ;;  %v8408_v9 = vcombine.high %v621_v2, %v629_v3  ;;  %v605_v11 = vld [vmem:[%s9608_s26 + $0x890] sm:$0xff] }
 0x2b2   : > { %v8474_v34 = vcombine.high %v686_v22, %v694_v26  ;;  %v613_v12 = vld [vmem:[%s9608_s26 + $0x8d0] sm:$0xff] }
 0x2b8   : > { %6882 = vmatpush2.bf16.xpose.msra.mxu0 %v8563_v32  ;;  %6923 = vmatpush2.bf16.xpose.msra.mxu1 %v8565_v38  ;;  %v670_v32 = vld [vmem:[%s9608_s26 + $0xa98] sm:$0xff] }
 0x2b9   : > { %6883 = vmatprep.subr.bf16.mxu0 %v8548_v39  ;;  %6924 = vmatprep.subr.bf16.mxu1 %v8550_v40  ;;  %v678_v38 = vld [vmem:[%s9608_s26 + $0xad8] sm:$0xff]  ;;  %v8471_v39 = vcombine.low %v685_v15, %v693_v16  ;;  %v8473_v40 = vcombine.low %v686_v22, %v694_v26  ;;  %v8392_v15 = vcombine.high %v605_v11, %v613_v12  ;;  %v589_v22 = vld [vmem:[%s9608_s26 + $0x810] sm:$0xff] }
 0x2ba   : > { %v8458_v43 = vcombine.high %v670_v32, %v678_v38  ;;  %v597_v26 = vld [vmem:[%s9608_s26 + $0x850] sm:$0xff] }
 0x2c0   : > { %6884 = vmatpush2.bf16.xpose.msra.mxu0 %v8547_v49  ;;  %6925 = vmatpush2.bf16.xpose.msra.mxu1 %v8549_v50  ;;  %v654_v49 = vld [vmem:[%s9608_s26 + $0xa18] sm:$0xff] }
 0x2c1   : > { %6885 = vmatprep.subr.bf16.mxu0 %v8532_v23  ;;  %6926 = vmatprep.subr.bf16.mxu1 %v8534_v52  ;;  %v662_v50 = vld [vmem:[%s9608_s26 + $0xa58] sm:$0xff]  ;;  %v8455_v23 = vcombine.low %v669_v24, %v677_v37  ;;  %v8457_v52 = vcombine.low %v670_v32, %v678_v38  ;;  %v8376_v24 = vcombine.high %v589_v22, %v597_v26  ;;  %v829_v32 = vld [vmem:[%s9608_s26 + $0xf90] sm:$0xff] }
 0x2c2   : > { %v8442_v54 = vcombine.high %v654_v49, %v662_v50  ;;  %v837_v38 = vld [vmem:[%s9608_s26 + $0xfd0] sm:$0xff] }
 0x2c8   : > { %6886 = vmatpush2.bf16.xpose.msra.mxu0 %v8531_v57  ;;  %6927 = vmatpush2.bf16.xpose.msra.mxu1 %v8533_v58  ;;  %v638_v57 = vld [vmem:[%s9608_s26 + $0x998] sm:$0xff] }
 0x2c9   : > { %6887 = vmatprep.subr.bf16.mxu0 %v8516_v59  ;;  %6928 = vmatprep.subr.bf16.mxu1 %v8518_v60  ;;  %v646_v58 = vld [vmem:[%s9608_s26 + $0x9d8] sm:$0xff]  ;;  %v8439_v59 = vcombine.low %v653_v46, %v661_v48  ;;  %v8441_v60 = vcombine.low %v654_v49, %v662_v50  ;;  %v8616_v46 = vcombine.high %v829_v32, %v837_v38  ;;  %v813_v49 = vld [vmem:[%s9608_s26 + $0xf10] sm:$0xff] }
 0x2ca   : > { %v8426_v0 = vcombine.high %v638_v57, %v646_v58  ;;  %v821_v50 = vld [vmem:[%s9608_s26 + $0xf50] sm:$0xff] }
 0x2d0   : > { %6888 = vmatpush2.bf16.xpose.msra.mxu0 %v8515_v4  ;;  %6929 = vmatpush2.bf16.xpose.msra.mxu1 %v8517_v5  ;;  %v622_v4 = vld [vmem:[%s9608_s26 + $0x918] sm:$0xff] }
 0x2d1   : > { %6889 = vmatprep.subr.bf16.mxu0 %v8500_v7  ;;  %6930 = vmatprep.subr.bf16.mxu1 %v8502_v8  ;;  %v630_v5 = vld [vmem:[%s9608_s26 + $0x958] sm:$0xff]  ;;  %v8423_v7 = vcombine.low %v637_v55, %v645_v56  ;;  %v8425_v8 = vcombine.low %v638_v57, %v646_v58  ;;  %v8600_v55 = vcombine.high %v813_v49, %v821_v50 }
 0x2d2   : > { %v8410_v10 = vcombine.high %v622_v4, %v630_v5 }
 0x2d8   : > { %6890 = vmatpush2.bf16.xpose.msra.mxu0 %v8499_v6  ;;  %6931 = vmatpush2.bf16.xpose.msra.mxu1 %v8501_v1  ;;  %v606_v6 = vld [vmem:[%s9608_s26 + $0x898] sm:$0xff] }
 0x2d9   : > { %6941 = vmatprep.subr.bf16.mxu0 %v8488_v13  ;;  %6982 = vmatprep.subr.bf16.mxu1 %v8490_v14  ;;  %v614_v1 = vld [vmem:[%s9608_s26 + $0x8d8] sm:$0xff]  ;;  %v8407_v13 = vcombine.low %v621_v2, %v629_v3  ;;  %v8409_v14 = vcombine.low %v622_v4, %v630_v5  ;;  %v797_v4 = vld [vmem:[%s9608_s26 + $0xe90] sm:$0xff] }
 0x2da   : > { %v8394_v16 = vcombine.high %v606_v6, %v614_v1  ;;  %v805_v5 = vld [vmem:[%s9608_s26 + $0xed0] sm:$0xff] }
 0x2df   : > { %6892 = vmatmul.mubr.bf16.vlgmr.msra.gmra.mxu0 %v9731_v17  ;;  %6933 = vmatmul.mubr.bf16.vlgmr.msra.gmra.mxu1 %v9740_v21 }
 0x2e0   : > { %6942 = vmatpush1.bf16.xpose.msra.mxu0 %v8487_v29  ;;  %6983 = vmatpush1.bf16.xpose.msra.mxu1 %v8489_v30  ;;  %v590_v29 = vld [vmem:[%s9608_s26 + $0x818] sm:$0xff] }
 0x2e1   : > { %6943 = vmatprep.subr.bf16.mxu0 %v8472_v47  ;;  %6984 = vmatprep.subr.bf16.mxu1 %v8474_v34  ;;  %v598_v30 = vld [vmem:[%s9608_s26 + $0x858] sm:$0xff]  ;;  %v8391_v47 = vcombine.low %v605_v11, %v613_v12  ;;  %v8393_v34 = vcombine.low %v606_v6, %v614_v1  ;;  %v8599_v6 = vcombine.low %v813_v49, %v821_v50  ;;  %v749_v49 = vld [vmem:[%s9608_s26 + $0xd10] sm:$0xff] }
 0x2e2   : > { %6973 = vmatprep.mubr.bf16.mxu0 %v9747_v31  ;;  %7014 = vmatprep.mubr.bf16.mxu1 %v9752_v27  ;;  %v8378_v37 = vcombine.high %v590_v29, %v598_v30  ;;  %v757_v50 = vld [vmem:[%s9608_s26 + $0xd50] sm:$0xff] }
 0x2e8   : > { %6944 = vmatpush1.bf16.xpose.msra.mxu0 %v8471_v39  ;;  %6985 = vmatpush1.bf16.xpose.msra.mxu1 %v8473_v40  ;;  %v830_v39 = vld [vmem:[%s9608_s26 + $0xf98] sm:$0xff] }
 0x2e9   : > { %6945 = vmatprep.subr.bf16.mxu0 %v8456_v42  ;;  %6986 = vmatprep.subr.bf16.mxu1 %v8458_v43  ;;  %v838_v40 = vld [vmem:[%s9608_s26 + $0xfd8] sm:$0xff]  ;;  %v8375_v42 = vcombine.low %v589_v22, %v597_v26  ;;  %v8377_v43 = vcombine.low %v590_v29, %v598_v30  ;;  %v781_v22 = vld [vmem:[%s9608_s26 + $0xe10] sm:$0xff] }
 0x2ea   : > { %v8618_v48 = vcombine.high %v830_v39, %v838_v40  ;;  %v789_v26 = vld [vmem:[%s9608_s26 + $0xe50] sm:$0xff]  ;;  %v782_v29 = vld [vmem:[%s9608_s26 + $0xe18] sm:$0xff] }
 0x2eb   : > { %v790_v30 = vld [vmem:[%s9608_s26 + $0xe58] sm:$0xff] }
 0x2f0   : > { %6946 = vmatpush1.bf16.xpose.msra.mxu0 %v8455_v23  ;;  %6987 = vmatpush1.bf16.xpose.msra.mxu1 %v8457_v52  ;;  %v814_v23 = vld [vmem:[%s9608_s26 + $0xf18] sm:$0xff] }
 0x2f1   : > { %6947 = vmatprep.subr.bf16.mxu0 %v8440_v53  ;;  %6988 = vmatprep.subr.bf16.mxu1 %v8442_v54  ;;  %v822_v52 = vld [vmem:[%s9608_s26 + $0xf58] sm:$0xff]  ;;  %v8615_v53 = vcombine.low %v829_v32, %v837_v38  ;;  %v8617_v54 = vcombine.low %v830_v39, %v838_v40  ;;  %v765_v32 = vld [vmem:[%s9608_s26 + $0xd90] sm:$0xff] }
 0x2f2   : > { %v8602_v56 = vcombine.high %v814_v23, %v822_v52  ;;  %v773_v38 = vld [vmem:[%s9608_s26 + $0xdd0] sm:$0xff]  ;;  %v766_v39 = vld [vmem:[%s9608_s26 + $0xd98] sm:$0xff] }
 0x2f3   : > { %v774_v40 = vld [vmem:[%s9608_s26 + $0xdd8] sm:$0xff] }
 0x2f8   : > { %6948 = vmatpush1.bf16.xpose.msra.mxu0 %v8439_v59  ;;  %6989 = vmatpush1.bf16.xpose.msra.mxu1 %v8441_v60  ;;  %v315_v60 = vld [vmem:[%s9632_s29] sm:$0xff] }
 0x2f9   : > { %6949 = vmatprep.subr.bf16.mxu0 %v8424_v63  ;;  %6990 = vmatprep.subr.bf16.mxu1 %v8426_v0 }
 0x300   : > { %6950 = vmatpush1.bf16.xpose.msra.mxu0 %v8423_v7  ;;  %6991 = vmatpush1.bf16.xpose.msra.mxu1 %v8425_v8  ;;  %v316_v7 = vld [vmem:[%s9632_s29 + $0x8] sm:$0xff] }
 0x301   : > { %6951 = vmatprep.subr.bf16.mxu0 %v8408_v9  ;;  %6992 = vmatprep.subr.bf16.mxu1 %v8410_v10  ;;  %v798_v9 = vld [vmem:[%s9608_s26 + $0xe98] sm:$0xff] }
 0x308   : > { %6952 = vmatpush1.bf16.xpose.msra.mxu0 %v8407_v13  ;;  %6993 = vmatpush1.bf16.xpose.msra.mxu1 %v8409_v14  ;;  %v8584_v13 = vcombine.high %v797_v4, %v805_v5 }
 0x309   : > { %6953 = vmatprep.subr.bf16.mxu0 %v8392_v15  ;;  %6994 = vmatprep.subr.bf16.mxu1 %v8394_v16 }
 0x310   : > { %6954 = vmatpush1.bf16.xpose.msra.mxu0 %v8391_v47  ;;  %6995 = vmatpush1.bf16.xpose.msra.mxu1 %v8393_v34  ;;  %v8583_v47 = vcombine.low %v797_v4, %v805_v5  ;;  %v717_v4 = vld [vmem:[%s9608_s26 + $0xc10] sm:$0xff] }
 0x311   : > { %6955 = vmatprep.subr.bf16.mxu0 %v8376_v24  ;;  %6996 = vmatprep.subr.bf16.mxu1 %v8378_v37  ;;  %v8568_v24 = vcombine.high %v781_v22, %v789_v26  ;;  %v8570_v37 = vcombine.high %v782_v29, %v790_v30  ;;  %v725_v5 = vld [vmem:[%s9608_s26 + $0xc50] sm:$0xff] }
 0x318   : > { %6956 = vmatpush1.bf16.xpose.msra.mxu0 %v8375_v42  ;;  %6997 = vmatpush1.bf16.xpose.msra.mxu1 %v8377_v43  ;;  %v8567_v42 = vcombine.low %v781_v22, %v789_v26  ;;  %v8569_v43 = vcombine.low %v782_v29, %v790_v30  ;;  %v687_v22 = vld [vmem:[%s9608_s26 + $0xb20] sm:$0xff]  ;;  %v688_v29 = vld [vmem:[%s9608_s26 + $0xb28] sm:$0xff] }
 0x319   : > { %6957 = vmatprep.subr.bf16.mxu0 %v8616_v46  ;;  %6998 = vmatprep.subr.bf16.mxu1 %v8618_v48  ;;  %v8552_v46 = vcombine.high %v765_v32, %v773_v38  ;;  %v8554_v48 = vcombine.high %v766_v39, %v774_v40  ;;  %v695_v26 = vld [vmem:[%s9608_s26 + $0xb60] sm:$0xff]  ;;  %v696_v30 = vld [vmem:[%s9608_s26 + $0xb68] sm:$0xff] }
 0x31f   : > { %v6811_v57 = vpop.f32.mrf.mxu0  ;;  %v6852_v59 = vpop.f32.mrf.mxu1 }
 0x320   : > { %v6812_v58 = vadd.f32 %v6811_v57, %v10056_v62  ;;  %6958 = vmatpush2.bf16.xpose.msra.mxu0 %v8615_v53  ;;  %6999 = vmatpush2.bf16.xpose.msra.mxu1 %v8617_v54  ;;  %v806_v62 = vld [vmem:[%s9608_s26 + $0xed8] sm:$0xff]  ;;  %v8551_v53 = vcombine.low %v765_v32, %v773_v38  ;;  %v8553_v54 = vcombine.low %v766_v39, %v774_v40  ;;  %v733_v57 = vld [vmem:[%s9608_s26 + $0xc90] sm:$0xff]  ;;  %v671_v32 = vld [vmem:[%s9608_s26 + $0xaa0] sm:$0xff] }
 0x321   : > { %v6813_v63 = vpop.f32.mrf.mxu0  ;;  %6959 = vmatprep.subr.bf16.mxu0 %v8600_v55  ;;  %v6854_v3 = vpop.f32.mrf.mxu1  ;;  %7000 = vmatprep.subr.bf16.mxu1 %v8602_v56  ;;  %v8586_v16 = vcombine.high %v798_v9, %v806_v62  ;;  %v8585_v34 = vcombine.low %v798_v9, %v806_v62  ;;  %v8536_v55 = vcombine.high %v749_v49, %v757_v50  ;;  %v679_v38 = vld [vmem:[%s9608_s26 + $0xae0] sm:$0xff]  ;;  %v672_v39 = vld [vmem:[%s9608_s26 + $0xaa8] sm:$0xff] }
 0x322   : > { %v6853_v0 = vadd.f32 %v6852_v59, %v6812_v58  ;;  %v6814_v2 = vadd.f32 %v6813_v63, %v10063_v61  ;;  %v8601_v61 = vcombine.low %v814_v23, %v822_v52  ;;  %v750_v23 = vld [vmem:[%s9608_s26 + $0xd18] sm:$0xff]  ;;  %v741_v58 = vld [vmem:[%s9608_s26 + $0xcd0] sm:$0xff]  ;;  %v8535_v63 = vcombine.low %v749_v49, %v757_v50  ;;  %v680_v40 = vld [vmem:[%s9608_s26 + $0xae8] sm:$0xff] }
 0x323   : > { %v6815_v8 = vpop.f32.mrf.mxu0  ;;  %v6856_v12 = vpop.f32.mrf.mxu1  ;;  %v758_v52 = vld [vmem:[%s9608_s26 + $0xd58] sm:$0xff]  ;;  %v8519_v9 = vcombine.low %v733_v57, %v741_v58  ;;  %v655_v49 = vld [vmem:[%s9608_s26 + $0xa20] sm:$0xff] }
 0x324   : > { %v7843_v10 = vadd.f32 %v6853_v0, %v315_v60  ;;  %v6855_v11 = vadd.f32 %v6854_v3, %v6814_v2  ;;  %v8538_v56 = vcombine.high %v750_v23, %v758_v52  ;;  %v734_v59 = vld [vmem:[%s9608_s26 + $0xc98] sm:$0xff]  ;;  %v8537_v0 = vcombine.low %v750_v23, %v758_v52  ;;  %v703_v12 = vld [vmem:[%s9608_s26 + $0xba0] sm:$0xff]  ;;  %v656_v23 = vld [vmem:[%s9608_s26 + $0xa28] sm:$0xff] }
 0x325   : > { %v6816_v1 = vpop.f32.mrf.mxu0  ;;  %v6857_v15 = vpop.f32.mrf.mxu1  ;;  %v742_v60 = vld [vmem:[%s9608_s26 + $0xcd8] sm:$0xff]  ;;  %v8520_v2 = vcombine.high %v733_v57, %v741_v58  ;;  %v663_v50 = vld [vmem:[%s9608_s26 + $0xa60] sm:$0xff]  ;;  %v664_v52 = vld [vmem:[%s9608_s26 + $0xa68] sm:$0xff] }
 0x326   : > { %7851 = vst [vmem:[%s9632_s29] sm:$0xff] %v7843_v10  ;;  %v7844_v14 = vadd.f32 %v6855_v11, %v316_v7  ;;  %v8522_v3 = vcombine.high %v734_v59, %v742_v60  ;;  %v718_v7 = vld [vmem:[%s9608_s26 + $0xc18] sm:$0xff]  ;;  %v8521_v62 = vcombine.low %v734_v59, %v742_v60  ;;  %v8504_v10 = vcombine.high %v717_v4, %v725_v5  ;;  %v704_v1 = vld [vmem:[%s9608_s26 + $0xba8] sm:$0xff]  ;;  %v639_v57 = vld [vmem:[%s9608_s26 + $0x9a0] sm:$0xff] }
 0x327   : > { %v726_v8 = vld [vmem:[%s9608_s26 + $0xc58] sm:$0xff]  ;;  %v647_v58 = vld [vmem:[%s9608_s26 + $0x9e0] sm:$0xff]  ;;  %v640_v59 = vld [vmem:[%s9608_s26 + $0x9a8] sm:$0xff] }
 0x328   : > { %7852 = vst [vmem:[%s9632_s29 + $0x8] sm:$0xff] %v7844_v14  ;;  %6960 = vmatpush2.bf16.xpose.msra.mxu0 %v8599_v6  ;;  %7001 = vmatpush2.bf16.xpose.msra.mxu1 %v8601_v61  ;;  %v8506_v11 = vcombine.high %v718_v7, %v726_v8  ;;  %v711_v6 = vld [vmem:[%s9608_s26 + $0xbe0] sm:$0xff]  ;;  %v712_v61 = vld [vmem:[%s9608_s26 + $0xbe8] sm:$0xff]  ;;  %v8505_v14 = vcombine.low %v718_v7, %v726_v8 }
 0x329   : > { %6961 = vmatprep.subr.bf16.mxu0 %v8584_v13  ;;  %7002 = vmatprep.subr.bf16.mxu1 %v8586_v16  ;;  %v8503_v13 = vcombine.low %v717_v4, %v725_v5  ;;  %v8492_v15 = vcombine.high %v703_v12, %v711_v6  ;;  %v8494_v16 = vcombine.high %v704_v1, %v712_v61  ;;  %v648_v60 = vld [vmem:[%s9608_s26 + $0x9e8] sm:$0xff]  ;;  %v623_v4 = vld [vmem:[%s9608_s26 + $0x920] sm:$0xff] }
 0x32a   : > { %v631_v5 = vld [vmem:[%s9608_s26 + $0x960] sm:$0xff]  ;;  %v624_v7 = vld [vmem:[%s9608_s26 + $0x928] sm:$0xff] }
 0x32b   : > { %v632_v8 = vld [vmem:[%s9608_s26 + $0x968] sm:$0xff] }
 0x330   : > { %6962 = vmatpush2.bf16.xpose.msra.mxu0 %v8583_v47  ;;  %7003 = vmatpush2.bf16.xpose.msra.mxu1 %v8585_v34  ;;  %v8491_v47 = vcombine.low %v703_v12, %v711_v6  ;;  %v8493_v34 = vcombine.low %v704_v1, %v712_v61  ;;  %v607_v12 = vld [vmem:[%s9608_s26 + $0x8a0] sm:$0xff]  ;;  %v608_v1 = vld [vmem:[%s9608_s26 + $0x8a8] sm:$0xff] }
 0x331   : > { %6963 = vmatprep.subr.bf16.mxu0 %v8568_v24  ;;  %7004 = vmatprep.subr.bf16.mxu1 %v8570_v37  ;;  %v8476_v24 = vcombine.high %v687_v22, %v695_v26  ;;  %v8478_v37 = vcombine.high %v688_v29, %v696_v30  ;;  %v615_v6 = vld [vmem:[%s9608_s26 + $0x8e0] sm:$0xff]  ;;  %v616_v61 = vld [vmem:[%s9608_s26 + $0x8e8] sm:$0xff] }
 0x338   : > { %6964 = vmatpush2.bf16.xpose.msra.mxu0 %v8567_v42  ;;  %7005 = vmatpush2.bf16.xpose.msra.mxu1 %v8569_v43  ;;  %v8475_v42 = vcombine.low %v687_v22, %v695_v26  ;;  %v8477_v43 = vcombine.low %v688_v29, %v696_v30  ;;  %v591_v22 = vld [vmem:[%s9608_s26 + $0x820] sm:$0xff]  ;;  %v592_v29 = vld [vmem:[%s9608_s26 + $0x828] sm:$0xff] }
 0x339   : > { %6965 = vmatprep.subr.bf16.mxu0 %v8552_v46  ;;  %7006 = vmatprep.subr.bf16.mxu1 %v8554_v48  ;;  %v8460_v46 = vcombine.high %v671_v32, %v679_v38  ;;  %v8462_v48 = vcombine.high %v672_v39, %v680_v40  ;;  %v599_v26 = vld [vmem:[%s9608_s26 + $0x860] sm:$0xff]  ;;  %v600_v30 = vld [vmem:[%s9608_s26 + $0x868] sm:$0xff] }
 0x340   : > { %6966 = vmatpush2.bf16.xpose.msra.mxu0 %v8551_v53  ;;  %7007 = vmatpush2.bf16.xpose.msra.mxu1 %v8553_v54  ;;  %v8459_v53 = vcombine.low %v671_v32, %v679_v38  ;;  %v8461_v54 = vcombine.low %v672_v39, %v680_v40  ;;  %v831_v32 = vld [vmem:[%s9608_s26 + $0xfa0] sm:$0xff]  ;;  %v832_v39 = vld [vmem:[%s9608_s26 + $0xfa8] sm:$0xff] }
 0x341   : > { %6967 = vmatprep.subr.bf16.mxu0 %v8536_v55  ;;  %7008 = vmatprep.subr.bf16.mxu1 %v8538_v56  ;;  %v8444_v55 = vcombine.high %v655_v49, %v663_v50  ;;  %v8446_v56 = vcombine.high %v656_v23, %v664_v52  ;;  %v839_v38 = vld [vmem:[%s9608_s26 + $0xfe0] sm:$0xff]  ;;  %v840_v40 = vld [vmem:[%s9608_s26 + $0xfe8] sm:$0xff] }
 0x348   : > { %6968 = vmatpush2.bf16.xpose.msra.mxu0 %v8535_v63  ;;  %7009 = vmatpush2.bf16.xpose.msra.mxu1 %v8537_v0  ;;  %v8443_v63 = vcombine.low %v655_v49, %v663_v50  ;;  %v8445_v0 = vcombine.low %v656_v23, %v664_v52  ;;  %v815_v49 = vld [vmem:[%s9608_s26 + $0xf20] sm:$0xff]  ;;  %v816_v23 = vld [vmem:[%s9608_s26 + $0xf28] sm:$0xff] }
 0x349   : > { %6969 = vmatprep.subr.bf16.mxu0 %v8520_v2  ;;  %7010 = vmatprep.subr.bf16.mxu1 %v8522_v3  ;;  %v8428_v2 = vcombine.high %v639_v57, %v647_v58  ;;  %v8430_v3 = vcombine.high %v640_v59, %v648_v60  ;;  %v823_v50 = vld [vmem:[%s9608_s26 + $0xf60] sm:$0xff]  ;;  %v824_v52 = vld [vmem:[%s9608_s26 + $0xf68] sm:$0xff] }
 0x350   : > { %6970 = vmatpush2.bf16.xpose.msra.mxu0 %v8519_v9  ;;  %7011 = vmatpush2.bf16.xpose.msra.mxu1 %v8521_v62  ;;  %v8427_v9 = vcombine.low %v639_v57, %v647_v58  ;;  %v8429_v62 = vcombine.low %v640_v59, %v648_v60 }
 0x351   : > { %6971 = vmatprep.subr.bf16.mxu0 %v8504_v10  ;;  %7012 = vmatprep.subr.bf16.mxu1 %v8506_v11  ;;  %v8412_v10 = vcombine.high %v623_v4, %v631_v5  ;;  %v8414_v11 = vcombine.high %v624_v7, %v632_v8 }
 0x358   : > { %6972 = vmatpush2.bf16.xpose.msra.mxu0 %v8503_v13  ;;  %7013 = vmatpush2.bf16.xpose.msra.mxu1 %v8505_v14  ;;  %v8411_v13 = vcombine.low %v623_v4, %v631_v5  ;;  %v8413_v14 = vcombine.low %v624_v7, %v632_v8  ;;  %v800_v5 = vld [vmem:[%s9608_s26 + $0xea8] sm:$0xff] }
 0x359   : > { %7023 = vmatprep.subr.bf16.mxu0 %v8492_v15  ;;  %7064 = vmatprep.subr.bf16.mxu1 %v8494_v16  ;;  %v8396_v15 = vcombine.high %v607_v12, %v615_v6  ;;  %v8398_v16 = vcombine.high %v608_v1, %v616_v61  ;;  %v808_v7 = vld [vmem:[%s9608_s26 + $0xee8] sm:$0xff] }
 0x35f   : > { %6974 = vmatmul.mubr.bf16.vlgmr.msra.gmra.mxu0 %v9821_v41  ;;  %7015 = vmatmul.mubr.bf16.vlgmr.msra.gmra.mxu1 %v9830_v45 }
 0x360   : > { %7024 = vmatpush1.bf16.xpose.msra.mxu0 %v8491_v47  ;;  %7065 = vmatpush1.bf16.xpose.msra.mxu1 %v8493_v34  ;;  %v8395_v47 = vcombine.low %v607_v12, %v615_v6  ;;  %v8397_v34 = vcombine.low %v608_v1, %v616_v61  ;;  %v8590_v6 = vcombine.high %v800_v5, %v808_v7  ;;  %v783_v1 = vld [vmem:[%s9608_s26 + $0xe20] sm:$0xff] }
 0x361   : > { %7025 = vmatprep.subr.bf16.mxu0 %v8476_v24  ;;  %7066 = vmatprep.subr.bf16.mxu1 %v8478_v37  ;;  %v8380_v24 = vcombine.high %v591_v22, %v599_v26  ;;  %v8382_v37 = vcombine.high %v592_v29, %v600_v30  ;;  %v791_v61 = vld [vmem:[%s9608_s26 + $0xe60] sm:$0xff] }
 0x362   : > { %7055 = vmatprep.mubr.bf16.mxu0 %v9837_v20  ;;  %7096 = vmatprep.mubr.bf16.mxu1 %v9842_v51 }
 0x368   : > { %7026 = vmatpush1.bf16.xpose.msra.mxu0 %v8475_v42  ;;  %7067 = vmatpush1.bf16.xpose.msra.mxu1 %v8477_v43  ;;  %v8379_v42 = vcombine.low %v591_v22, %v599_v26  ;;  %v8381_v43 = vcombine.low %v592_v29, %v600_v30  ;;  %v8572_v22 = vcombine.high %v783_v1, %v791_v61  ;;  %v767_v29 = vld [vmem:[%s9608_s26 + $0xda0] sm:$0xff] }
 0x369   : > { %7027 = vmatprep.subr.bf16.mxu0 %v8460_v46  ;;  %7068 = vmatprep.subr.bf16.mxu1 %v8462_v48  ;;  %v8620_v46 = vcombine.high %v831_v32, %v839_v38  ;;  %v8622_v48 = vcombine.high %v832_v39, %v840_v40  ;;  %v775_v30 = vld [vmem:[%s9608_s26 + $0xde0] sm:$0xff] }
 0x370   : > { %7028 = vmatpush1.bf16.xpose.msra.mxu0 %v8459_v53  ;;  %7069 = vmatpush1.bf16.xpose.msra.mxu1 %v8461_v54  ;;  %v8619_v53 = vcombine.low %v831_v32, %v839_v38  ;;  %v8621_v54 = vcombine.low %v832_v39, %v840_v40  ;;  %v8556_v32 = vcombine.high %v767_v29, %v775_v30  ;;  %v751_v39 = vld [vmem:[%s9608_s26 + $0xd20] sm:$0xff] }
 0x371   : > { %7029 = vmatprep.subr.bf16.mxu0 %v8444_v55  ;;  %7070 = vmatprep.subr.bf16.mxu1 %v8446_v56  ;;  %v8604_v55 = vcombine.high %v815_v49, %v823_v50  ;;  %v8606_v56 = vcombine.high %v816_v23, %v824_v52  ;;  %v759_v40 = vld [vmem:[%s9608_s26 + $0xd60] sm:$0xff] }
 0x378   : > { %7030 = vmatpush1.bf16.xpose.msra.mxu0 %v8443_v63  ;;  %7071 = vmatpush1.bf16.xpose.msra.mxu1 %v8445_v0  ;;  %v799_v0 = vld [vmem:[%s9608_s26 + $0xea0] sm:$0xff] }
 0x379   : > { %7031 = vmatprep.subr.bf16.mxu0 %v8428_v2  ;;  %7072 = vmatprep.subr.bf16.mxu1 %v8430_v3  ;;  %v807_v2 = vld [vmem:[%s9608_s26 + $0xee0] sm:$0xff] }
 0x380   : > { %7032 = vmatpush1.bf16.xpose.msra.mxu0 %v8427_v9  ;;  %7073 = vmatpush1.bf16.xpose.msra.mxu1 %v8429_v62  ;;  %v8603_v9 = vcombine.low %v815_v49, %v823_v50  ;;  %v8540_v49 = vcombine.high %v751_v39, %v759_v40 }
 0x381   : > { %7033 = vmatprep.subr.bf16.mxu0 %v8412_v10  ;;  %7074 = vmatprep.subr.bf16.mxu1 %v8414_v11  ;;  %v8605_v10 = vcombine.low %v816_v23, %v824_v52  ;;  %v8588_v11 = vcombine.high %v799_v0, %v807_v2  ;;  %v735_v23 = vld [vmem:[%s9608_s26 + $0xca0] sm:$0xff] }
 0x382   : > { %v743_v52 = vld [vmem:[%s9608_s26 + $0xce0] sm:$0xff] }
 0x388   : > { %7034 = vmatpush1.bf16.xpose.msra.mxu0 %v8411_v13  ;;  %7075 = vmatpush1.bf16.xpose.msra.mxu1 %v8413_v14  ;;  %v784_v13 = vld [vmem:[%s9608_s26 + $0xe28] sm:$0xff] }
 0x389   : > { %7035 = vmatprep.subr.bf16.mxu0 %v8396_v15  ;;  %7076 = vmatprep.subr.bf16.mxu1 %v8398_v16  ;;  %v792_v14 = vld [vmem:[%s9608_s26 + $0xe68] sm:$0xff]  ;;  %v8587_v15 = vcombine.low %v799_v0, %v807_v2  ;;  %v8589_v16 = vcombine.low %v800_v5, %v808_v7 }
 0x38a   : > { %v8574_v26 = vcombine.high %v784_v13, %v792_v14  ;;  %v720_v0 = vld [vmem:[%s9608_s26 + $0xc28] sm:$0xff] }
 0x38b   : > { %v728_v2 = vld [vmem:[%s9608_s26 + $0xc68] sm:$0xff] }
 0x390   : > { %7036 = vmatpush1.bf16.xpose.msra.mxu0 %v8395_v47  ;;  %7077 = vmatpush1.bf16.xpose.msra.mxu1 %v8397_v34  ;;  %v768_v47 = vld [vmem:[%s9608_s26 + $0xda8] sm:$0xff] }
 0x391   : > { %7037 = vmatprep.subr.bf16.mxu0 %v8380_v24  ;;  %7078 = vmatprep.subr.bf16.mxu1 %v8382_v37  ;;  %v776_v34 = vld [vmem:[%s9608_s26 + $0xde8] sm:$0xff]  ;;  %v8571_v24 = vcombine.low %v783_v1, %v791_v61  ;;  %v8573_v37 = vcombine.low %v784_v13, %v792_v14  ;;  %v689_v13 = vld [vmem:[%s9608_s26 + $0xb30] sm:$0xff] }
 0x392   : > { %v8558_v38 = vcombine.high %v768_v47, %v776_v34  ;;  %v697_v14 = vld [vmem:[%s9608_s26 + $0xb70] sm:$0xff] }
 0x398   : > { %7038 = vmatpush1.bf16.xpose.msra.mxu0 %v8379_v42  ;;  %7079 = vmatpush1.bf16.xpose.msra.mxu1 %v8381_v43  ;;  %v752_v42 = vld [vmem:[%s9608_s26 + $0xd28] sm:$0xff] }
 0x399   : > { %7039 = vmatprep.subr.bf16.mxu0 %v8620_v46  ;;  %7080 = vmatprep.subr.bf16.mxu1 %v8622_v48  ;;  %v760_v43 = vld [vmem:[%s9608_s26 + $0xd68] sm:$0xff]  ;;  %v8555_v46 = vcombine.low %v767_v29, %v775_v30  ;;  %v8557_v48 = vcombine.low %v768_v47, %v776_v34  ;;  %v8480_v29 = vcombine.high %v689_v13, %v697_v14  ;;  %v673_v47 = vld [vmem:[%s9608_s26 + $0xab0] sm:$0xff] }
 0x39a   : > { %v8542_v50 = vcombine.high %v752_v42, %v760_v43  ;;  %v681_v34 = vld [vmem:[%s9608_s26 + $0xaf0] sm:$0xff] }
 0x39f   : > { %v6893_v57 = vpop.f32.mrf.mxu0  ;;  %v6934_v58 = vpop.f32.mrf.mxu1 }
 0x3a0   : > { %7040 = vmatpush2.bf16.xpose.msra.mxu0 %v8619_v53  ;;  %v10203_v59 = vadd.f32 %v6934_v58, %v6893_v57  ;;  %7081 = vmatpush2.bf16.xpose.msra.mxu1 %v8621_v54  ;;  %v736_v53 = vld [vmem:[%s9608_s26 + $0xca8] sm:$0xff]  ;;  %v8524_v57 = vcombine.high %v735_v23, %v743_v52 }
 0x3a1   : > { %v6895_v60 = vpop.f32.mrf.mxu0  ;;  %7041 = vmatprep.subr.bf16.mxu0 %v8604_v55  ;;  %v6936_v63 = vpop.f32.mrf.mxu1  ;;  %7082 = vmatprep.subr.bf16.mxu1 %v8606_v56  ;;  %v744_v54 = vld [vmem:[%s9608_s26 + $0xce8] sm:$0xff]  ;;  %v8539_v55 = vcombine.low %v751_v39, %v759_v40  ;;  %v8541_v56 = vcombine.low %v752_v42, %v760_v43  ;;  %v8464_v39 = vcombine.high %v673_v47, %v681_v34  ;;  %v657_v42 = vld [vmem:[%s9608_s26 + $0xa30] sm:$0xff] }
 0x3a2   : > { %v10207_v3 = vadd.f32 %v6936_v63, %v6895_v60  ;;  %v8526_v58 = vcombine.high %v736_v53, %v744_v54  ;;  %v719_v60 = vld [vmem:[%s9608_s26 + $0xc20] sm:$0xff]  ;;  %v8525_v5 = vcombine.low %v736_v53, %v744_v54  ;;  %v665_v43 = vld [vmem:[%s9608_s26 + $0xa70] sm:$0xff] }
 0x3a3   : > { %v6897_v4 = vpop.f32.mrf.mxu0  ;;  %v6938_v8 = vpop.f32.mrf.mxu1  ;;  %v727_v63 = vld [vmem:[%s9608_s26 + $0xc60] sm:$0xff]  ;;  %v641_v53 = vld [vmem:[%s9608_s26 + $0x9b0] sm:$0xff] }
 0x3a4   : > { %v8523_v4 = vcombine.low %v735_v23, %v743_v52  ;;  %v8508_v7 = vcombine.high %v719_v60, %v727_v63  ;;  %v8510_v8 = vcombine.high %v720_v0, %v728_v2  ;;  %v8448_v23 = vcombine.high %v657_v42, %v665_v43  ;;  %v649_v54 = vld [vmem:[%s9608_s26 + $0x9f0] sm:$0xff] }
 0x3a5   : > { %v6898_v62 = vpop.f32.mrf.mxu0  ;;  %v6939_v12 = vpop.f32.mrf.mxu1 }
 0x3a6   : > { %v713_v62 = vld [vmem:[%s9608_s26 + $0xbf0] sm:$0xff]  ;;  %v8507_v12 = vcombine.low %v719_v60, %v727_v63  ;;  %v8432_v60 = vcombine.high %v641_v53, %v649_v54 }
 0x3a8   : > { %7042 = vmatpush2.bf16.xpose.msra.mxu0 %v8603_v9  ;;  %7083 = vmatpush2.bf16.xpose.msra.mxu1 %v8605_v10  ;;  %v705_v9 = vld [vmem:[%s9608_s26 + $0xbb0] sm:$0xff]  ;;  %v706_v10 = vld [vmem:[%s9608_s26 + $0xbb8] sm:$0xff] }
 0x3a9   : > { %7043 = vmatprep.subr.bf16.mxu0 %v8588_v11  ;;  %7084 = vmatprep.subr.bf16.mxu1 %v8590_v6  ;;  %v714_v11 = vld [vmem:[%s9608_s26 + $0xbf8] sm:$0xff]  ;;  %v8509_v6 = vcombine.low %v720_v0, %v728_v2  ;;  %v8496_v1 = vcombine.high %v705_v9, %v713_v62  ;;  %v625_v0 = vld [vmem:[%s9608_s26 + $0x930] sm:$0xff] }
 0x3aa   : > { %v8498_v61 = vcombine.high %v706_v10, %v714_v11  ;;  %v633_v2 = vld [vmem:[%s9608_s26 + $0x970] sm:$0xff] }
 0x3b0   : > { %7044 = vmatpush2.bf16.xpose.msra.mxu0 %v8587_v15  ;;  %7085 = vmatpush2.bf16.xpose.msra.mxu1 %v8589_v16  ;;  %v690_v15 = vld [vmem:[%s9608_s26 + $0xb38] sm:$0xff] }
 0x3b1   : > { %7045 = vmatprep.subr.bf16.mxu0 %v8572_v22  ;;  %7086 = vmatprep.subr.bf16.mxu1 %v8574_v26  ;;  %v698_v16 = vld [vmem:[%s9608_s26 + $0xb78] sm:$0xff]  ;;  %v8495_v22 = vcombine.low %v705_v9, %v713_v62  ;;  %v8497_v26 = vcombine.low %v706_v10, %v714_v11  ;;  %v8416_v9 = vcombine.high %v625_v0, %v633_v2  ;;  %v609_v10 = vld [vmem:[%s9608_s26 + $0x8b0] sm:$0xff] }
 0x3b2   : > { %v8482_v30 = vcombine.high %v690_v15, %v698_v16  ;;  %v617_v11 = vld [vmem:[%s9608_s26 + $0x8f0] sm:$0xff] }
 0x3b8   : > { %7046 = vmatpush2.bf16.xpose.msra.mxu0 %v8571_v24  ;;  %7087 = vmatpush2.bf16.xpose.msra.mxu1 %v8573_v37  ;;  %v674_v24 = vld [vmem:[%s9608_s26 + $0xab8] sm:$0xff] }
 0x3b9   : > { %7047 = vmatprep.subr.bf16.mxu0 %v8556_v32  ;;  %7088 = vmatprep.subr.bf16.mxu1 %v8558_v38  ;;  %v682_v37 = vld [vmem:[%s9608_s26 + $0xaf8] sm:$0xff]  ;;  %v8479_v32 = vcombine.low %v689_v13, %v697_v14  ;;  %v8481_v38 = vcombine.low %v690_v15, %v698_v16  ;;  %v8400_v13 = vcombine.high %v609_v10, %v617_v11  ;;  %v593_v15 = vld [vmem:[%s9608_s26 + $0x830] sm:$0xff] }
 0x3ba   : > { %v8466_v40 = vcombine.high %v674_v24, %v682_v37  ;;  %v601_v16 = vld [vmem:[%s9608_s26 + $0x870] sm:$0xff] }
 0x3c0   : > { %7048 = vmatpush2.bf16.xpose.msra.mxu0 %v8555_v46  ;;  %7089 = vmatpush2.bf16.xpose.msra.mxu1 %v8557_v48  ;;  %v658_v46 = vld [vmem:[%s9608_s26 + $0xa38] sm:$0xff] }
 0x3c1   : > { %7049 = vmatprep.subr.bf16.mxu0 %v8540_v49  ;;  %7090 = vmatprep.subr.bf16.mxu1 %v8542_v50  ;;  %v666_v48 = vld [vmem:[%s9608_s26 + $0xa78] sm:$0xff]  ;;  %v8463_v49 = vcombine.low %v673_v47, %v681_v34  ;;  %v8465_v50 = vcombine.low %v674_v24, %v682_v37  ;;  %v8384_v47 = vcombine.high %v593_v15, %v601_v16  ;;  %v833_v24 = vld [vmem:[%s9608_s26 + $0xfb0] sm:$0xff] }
 0x3c2   : > { %v8450_v52 = vcombine.high %v658_v46, %v666_v48  ;;  %v841_v37 = vld [vmem:[%s9608_s26 + $0xff0] sm:$0xff] }
 0x3c8   : > { %7050 = vmatpush2.bf16.xpose.msra.mxu0 %v8539_v55  ;;  %7091 = vmatpush2.bf16.xpose.msra.mxu1 %v8541_v56  ;;  %v642_v55 = vld [vmem:[%s9608_s26 + $0x9b8] sm:$0xff] }
 0x3c9   : > { %7051 = vmatprep.subr.bf16.mxu0 %v8524_v57  ;;  %7092 = vmatprep.subr.bf16.mxu1 %v8526_v58  ;;  %v650_v56 = vld [vmem:[%s9608_s26 + $0x9f8] sm:$0xff]  ;;  %v8447_v57 = vcombine.low %v657_v42, %v665_v43  ;;  %v8449_v58 = vcombine.low %v658_v46, %v666_v48  ;;  %v8624_v42 = vcombine.high %v833_v24, %v841_v37  ;;  %v817_v46 = vld [vmem:[%s9608_s26 + $0xf30] sm:$0xff] }
 0x3ca   : > { %v8434_v63 = vcombine.high %v642_v55, %v650_v56  ;;  %v825_v48 = vld [vmem:[%s9608_s26 + $0xf70] sm:$0xff] }
 0x3d0   : > { %7052 = vmatpush2.bf16.xpose.msra.mxu0 %v8523_v4  ;;  %7093 = vmatpush2.bf16.xpose.msra.mxu1 %v8525_v5  ;;  %v626_v4 = vld [vmem:[%s9608_s26 + $0x938] sm:$0xff] }
 0x3d1   : > { %7053 = vmatprep.subr.bf16.mxu0 %v8508_v7  ;;  %7094 = vmatprep.subr.bf16.mxu1 %v8510_v8  ;;  %v634_v5 = vld [vmem:[%s9608_s26 + $0x978] sm:$0xff]  ;;  %v8431_v7 = vcombine.low %v641_v53, %v649_v54  ;;  %v8433_v8 = vcombine.low %v642_v55, %v650_v56  ;;  %v8608_v53 = vcombine.high %v817_v46, %v825_v48 }
 0x3d2   : > { %v8418_v62 = vcombine.high %v626_v4, %v634_v5 }
 0x3d8   : > { %7054 = vmatpush2.bf16.xpose.msra.mxu0 %v8507_v12  ;;  %7095 = vmatpush2.bf16.xpose.msra.mxu1 %v8509_v6  ;;  %v610_v12 = vld [vmem:[%s9608_s26 + $0x8b8] sm:$0xff] }
 0x3d9   : > { %7105 = vmatprep.subr.bf16.mxu0 %v8496_v1  ;;  %7146 = vmatprep.subr.bf16.mxu1 %v8498_v61  ;;  %v618_v6 = vld [vmem:[%s9608_s26 + $0x8f8] sm:$0xff]  ;;  %v8415_v1 = vcombine.low %v625_v0, %v633_v2  ;;  %v8417_v61 = vcombine.low %v626_v4, %v634_v5  ;;  %v801_v2 = vld [vmem:[%s9608_s26 + $0xeb0] sm:$0xff] }
 0x3da   : > { %v8402_v14 = vcombine.high %v610_v12, %v618_v6  ;;  %v809_v4 = vld [vmem:[%s9608_s26 + $0xef0] sm:$0xff] }
 0x3df   : > { %7056 = vmatmul.mubr.bf16.vlgmr.msra.gmra.mxu0 %v9915_v18  ;;  %7097 = vmatmul.mubr.bf16.vlgmr.msra.gmra.mxu1 %v9924_v25 }
 0x3e0   : > { %7106 = vmatpush1.bf16.xpose.msra.mxu0 %v8495_v22  ;;  %7147 = vmatpush1.bf16.xpose.msra.mxu1 %v8497_v26  ;;  %v594_v22 = vld [vmem:[%s9608_s26 + $0x838] sm:$0xff] }
 0x3e1   : > { %7107 = vmatprep.subr.bf16.mxu0 %v8480_v29  ;;  %7148 = vmatprep.subr.bf16.mxu1 %v8482_v30  ;;  %v602_v26 = vld [vmem:[%s9608_s26 + $0x878] sm:$0xff]  ;;  %v8399_v29 = vcombine.low %v609_v10, %v617_v11  ;;  %v8401_v30 = vcombine.low %v610_v12, %v618_v6  ;;  %v8592_v12 = vcombine.high %v801_v2, %v809_v4 }
 0x3e2   : > { %7137 = vmatprep.mubr.bf16.mxu0 %v9931_v44  ;;  %7178 = vmatprep.mubr.bf16.mxu1 %v9936_v33  ;;  %v8386_v34 = vcombine.high %v594_v22, %v602_v26 }
 0x3e8   : > { %7108 = vmatpush1.bf16.xpose.msra.mxu0 %v8479_v32  ;;  %7149 = vmatpush1.bf16.xpose.msra.mxu1 %v8481_v38  ;;  %v834_v32 = vld [vmem:[%s9608_s26 + $0xfb8] sm:$0xff] }
 0x3e9   : > { %7109 = vmatprep.subr.bf16.mxu0 %v8464_v39  ;;  %7150 = vmatprep.subr.bf16.mxu1 %v8466_v40  ;;  %v842_v38 = vld [vmem:[%s9608_s26 + $0xff8] sm:$0xff]  ;;  %v8383_v39 = vcombine.low %v593_v15, %v601_v16  ;;  %v8385_v40 = vcombine.low %v594_v22, %v602_v26  ;;  %v8591_v15 = vcombine.low %v801_v2, %v809_v4 }
 0x3ea   : > { %v8626_v43 = vcombine.high %v834_v32, %v842_v38  ;;  %v722_v2 = vld [vmem:[%s9608_s26 + $0xc38] sm:$0xff] }
 0x3eb   : > { %v730_v4 = vld [vmem:[%s9608_s26 + $0xc78] sm:$0xff] }
 0x3f0   : > { %7110 = vmatpush1.bf16.xpose.msra.mxu0 %v8463_v49  ;;  %7151 = vmatpush1.bf16.xpose.msra.mxu1 %v8465_v50  ;;  %v818_v49 = vld [vmem:[%s9608_s26 + $0xf38] sm:$0xff] }
 0x3f1   : > { %7111 = vmatprep.subr.bf16.mxu0 %v8448_v23  ;;  %7152 = vmatprep.subr.bf16.mxu1 %v8450_v52  ;;  %v826_v50 = vld [vmem:[%s9608_s26 + $0xf78] sm:$0xff]  ;;  %v8623_v23 = vcombine.low %v833_v24, %v841_v37  ;;  %v8625_v52 = vcombine.low %v834_v32, %v842_v38 }
 0x3f2   : > { %v8610_v54 = vcombine.high %v818_v49, %v826_v50  ;;  %v8609_v11 = vcombine.low %v818_v49, %v826_v50 }
 0x3f8   : > { %7112 = vmatpush1.bf16.xpose.msra.mxu0 %v8447_v57  ;;  %7153 = vmatpush1.bf16.xpose.msra.mxu1 %v8449_v58 }
 0x3f9   : > { %7113 = vmatprep.subr.bf16.mxu0 %v8432_v60  ;;  %7154 = vmatprep.subr.bf16.mxu1 %v8434_v63 }
 0x400   : > { %7114 = vmatpush1.bf16.xpose.msra.mxu0 %v8431_v7  ;;  %7155 = vmatpush1.bf16.xpose.msra.mxu1 %v8433_v8  ;;  %v802_v7 = vld [vmem:[%s9608_s26 + $0xeb8] sm:$0xff] }
 0x401   : > { %7115 = vmatprep.subr.bf16.mxu0 %v8416_v9  ;;  %7156 = vmatprep.subr.bf16.mxu1 %v8418_v62  ;;  %v810_v8 = vld [vmem:[%s9608_s26 + $0xef8] sm:$0xff]  ;;  %v8607_v62 = vcombine.low %v817_v46, %v825_v48 }
 0x402   : > { %v8593_v16 = vcombine.low %v802_v7, %v810_v8 }
 0x408   : > { %7116 = vmatpush1.bf16.xpose.msra.mxu0 %v8415_v1  ;;  %7157 = vmatpush1.bf16.xpose.msra.mxu1 %v8417_v61  ;;  %v785_v1 = vld [vmem:[%s9608_s26 + $0xe30] sm:$0xff] }
 0x409   : > { %7117 = vmatprep.subr.bf16.mxu0 %v8400_v13  ;;  %7158 = vmatprep.subr.bf16.mxu1 %v8402_v14  ;;  %v793_v61 = vld [vmem:[%s9608_s26 + $0xe70] sm:$0xff]  ;;  %v786_v13 = vld [vmem:[%s9608_s26 + $0xe38] sm:$0xff] }
 0x40a   : > { %v794_v14 = vld [vmem:[%s9608_s26 + $0xe78] sm:$0xff]  ;;  %v8576_v22 = vcombine.high %v785_v1, %v793_v61  ;;  %v8575_v24 = vcombine.low %v785_v1, %v793_v61 }
 0x40b   : > { %v8578_v26 = vcombine.high %v786_v13, %v794_v14  ;;  %v8577_v37 = vcombine.low %v786_v13, %v794_v14  ;;  %v939_v13 = vld [vmem:[%s9608_s26 + $0x1300] sm:$0xff] }
 0x40c   : > { %v947_v14 = vld [vmem:[%s9608_s26 + $0x1340] sm:$0xff] }
 0x410   : > { %7118 = vmatpush1.bf16.xpose.msra.mxu0 %v8399_v29  ;;  %7159 = vmatpush1.bf16.xpose.msra.mxu1 %v8401_v30  ;;  %v769_v29 = vld [vmem:[%s9608_s26 + $0xdb0] sm:$0xff] }
 0x411   : > { %7119 = vmatprep.subr.bf16.mxu0 %v8384_v47  ;;  %7160 = vmatprep.subr.bf16.mxu1 %v8386_v34  ;;  %v777_v30 = vld [vmem:[%s9608_s26 + $0xdf0] sm:$0xff]  ;;  %v770_v47 = vld [vmem:[%s9608_s26 + $0xdb8] sm:$0xff] }
 0x412   : > { %v778_v34 = vld [vmem:[%s9608_s26 + $0xdf8] sm:$0xff]  ;;  %v8560_v32 = vcombine.high %v769_v29, %v777_v30  ;;  %v8559_v46 = vcombine.low %v769_v29, %v777_v30  ;;  %v8724_v29 = vcombine.high %v939_v13, %v947_v14 }
 0x413   : > { %v8562_v38 = vcombine.high %v770_v47, %v778_v34  ;;  %v8561_v48 = vcombine.low %v770_v47, %v778_v34  ;;  %v923_v47 = vld [vmem:[%s9608_s26 + $0x1280] sm:$0xff] }
 0x414   : > { %v931_v34 = vld [vmem:[%s9608_s26 + $0x12c0] sm:$0xff] }
 0x418   : > { %7120 = vmatpush1.bf16.xpose.msra.mxu0 %v8383_v39  ;;  %7161 = vmatpush1.bf16.xpose.msra.mxu1 %v8385_v40  ;;  %v753_v39 = vld [vmem:[%s9608_s26 + $0xd30] sm:$0xff] }
 0x419   : > { %7121 = vmatprep.subr.bf16.mxu0 %v8624_v42  ;;  %7162 = vmatprep.subr.bf16.mxu1 %v8626_v43  ;;  %v761_v40 = vld [vmem:[%s9608_s26 + $0xd70] sm:$0xff]  ;;  %v754_v42 = vld [vmem:[%s9608_s26 + $0xd38] sm:$0xff] }
 0x41a   : > { %v762_v43 = vld [vmem:[%s9608_s26 + $0xd78] sm:$0xff]  ;;  %v8544_v49 = vcombine.high %v753_v39, %v761_v40 }
 0x41b   : > { %v8546_v50 = vcombine.high %v754_v42, %v762_v43 }
 0x41f   : > { %v6975_v55 = vpop.f32.mrf.mxu0  ;;  %v7016_v57 = vpop.f32.mrf.mxu1 }
 0x420   : > { %v6976_v56 = vadd.f32 %v6975_v55, %v10203_v59  ;;  %7122 = vmatpush2.bf16.xpose.msra.mxu0 %v8623_v23  ;;  %7163 = vmatpush2.bf16.xpose.msra.mxu1 %v8625_v52  ;;  %v737_v23 = vld [vmem:[%s9608_s26 + $0xcb0] sm:$0xff]  ;;  %v8543_v55 = vcombine.low %v753_v39, %v761_v40  ;;  %v8708_v39 = vcombine.high %v923_v47, %v931_v34 }
 0x421   : > { %v6977_v58 = vpop.f32.mrf.mxu0  ;;  %7123 = vmatprep.subr.bf16.mxu0 %v8608_v53  ;;  %v7018_v0 = vpop.f32.mrf.mxu1  ;;  %7164 = vmatprep.subr.bf16.mxu1 %v8610_v54  ;;  %v745_v52 = vld [vmem:[%s9608_s26 + $0xcf0] sm:$0xff]  ;;  %v738_v53 = vld [vmem:[%s9608_s26 + $0xcb8] sm:$0xff] }
 0x422   : > { %v10276_v60 = vadd.f32 %v7016_v57, %v6976_v56  ;;  %v6978_v63 = vadd.f32 %v6977_v58, %v10207_v3  ;;  %v8594_v3 = vcombine.high %v802_v7, %v810_v8  ;;  %v746_v54 = vld [vmem:[%s9608_s26 + $0xcf8] sm:$0xff]  ;;  %v8545_v56 = vcombine.low %v754_v42, %v762_v43  ;;  %v907_v42 = vld [vmem:[%s9608_s26 + $0x1200] sm:$0xff] }
 0x423   : > { %v6979_v5 = vpop.f32.mrf.mxu0  ;;  %v7020_v9 = vpop.f32.mrf.mxu1  ;;  %v8528_v57 = vcombine.high %v737_v23, %v745_v52  ;;  %v8530_v58 = vcombine.high %v738_v53, %v746_v54  ;;  %v8529_v7 = vcombine.low %v738_v53, %v746_v54  ;;  %v915_v43 = vld [vmem:[%s9608_s26 + $0x1240] sm:$0xff] }
 0x424   : > { %v10283_v59 = vadd.f32 %v7018_v0, %v6978_v63  ;;  %v721_v63 = vld [vmem:[%s9608_s26 + $0xc30] sm:$0xff]  ;;  %v8527_v5 = vcombine.low %v737_v23, %v745_v52  ;;  %v8514_v9 = vcombine.high %v722_v2, %v730_v4  ;;  %v8692_v23 = vcombine.high %v907_v42, %v915_v43  ;;  %v891_v53 = vld [vmem:[%s9608_s26 + $0x1180] sm:$0xff] }
 0x425   : > { %v6980_v10 = vpop.f32.mrf.mxu0  ;;  %v7021_v6 = vpop.f32.mrf.mxu1  ;;  %v729_v0 = vld [vmem:[%s9608_s26 + $0xc70] sm:$0xff]  ;;  %v899_v54 = vld [vmem:[%s9608_s26 + $0x11c0] sm:$0xff] }
 0x426   : > { %v8512_v8 = vcombine.high %v721_v63, %v729_v0  ;;  %v963_v10 = vld [vmem:[%s9608_s26 + $0x13c0] sm:$0xff]  ;;  %v8511_v6 = vcombine.low %v721_v63, %v729_v0  ;;  %v8676_v63 = vcombine.high %v891_v53, %v899_v54 }
 0x428   : > { %7124 = vmatpush2.bf16.xpose.msra.mxu0 %v8607_v62  ;;  %7165 = vmatpush2.bf16.xpose.msra.mxu1 %v8609_v11  ;;  %v955_v62 = vld [vmem:[%s9608_s26 + $0x1380] sm:$0xff]  ;;  %v956_v11 = vld [vmem:[%s9608_s26 + $0x1388] sm:$0xff] }
 0x429   : > { %7125 = vmatprep.subr.bf16.mxu0 %v8592_v12  ;;  %7166 = vmatprep.subr.bf16.mxu1 %v8594_v3  ;;  %v964_v12 = vld [vmem:[%s9608_s26 + $0x13c8] sm:$0xff]  ;;  %v8513_v3 = vcombine.low %v722_v2, %v730_v4  ;;  %v8740_v1 = vcombine.high %v955_v62, %v963_v10  ;;  %v875_v2 = vld [vmem:[%s9608_s26 + $0x1100] sm:$0xff] }
 0x42a   : > { %v8742_v61 = vcombine.high %v956_v11, %v964_v12  ;;  %v883_v4 = vld [vmem:[%s9608_s26 + $0x1140] sm:$0xff] }
 0x430   : > { %7126 = vmatpush2.bf16.xpose.msra.mxu0 %v8591_v15  ;;  %7167 = vmatpush2.bf16.xpose.msra.mxu1 %v8593_v16  ;;  %v940_v15 = vld [vmem:[%s9608_s26 + $0x1308] sm:$0xff] }
 0x431   : > { %7127 = vmatprep.subr.bf16.mxu0 %v8576_v22  ;;  %7168 = vmatprep.subr.bf16.mxu1 %v8578_v26  ;;  %v948_v16 = vld [vmem:[%s9608_s26 + $0x1348] sm:$0xff]  ;;  %v8739_v22 = vcombine.low %v955_v62, %v963_v10  ;;  %v8741_v26 = vcombine.low %v956_v11, %v964_v12  ;;  %v8660_v62 = vcombine.high %v875_v2, %v883_v4  ;;  %v859_v11 = vld [vmem:[%s9608_s26 + $0x1080] sm:$0xff] }
 0x432   : > { %v8726_v30 = vcombine.high %v940_v15, %v948_v16  ;;  %v867_v12 = vld [vmem:[%s9608_s26 + $0x10c0] sm:$0xff] }
 0x438   : > { %7128 = vmatpush2.bf16.xpose.msra.mxu0 %v8575_v24  ;;  %7169 = vmatpush2.bf16.xpose.msra.mxu1 %v8577_v37  ;;  %v924_v24 = vld [vmem:[%s9608_s26 + $0x1288] sm:$0xff] }
 0x439   : > { %7129 = vmatprep.subr.bf16.mxu0 %v8560_v32  ;;  %7170 = vmatprep.subr.bf16.mxu1 %v8562_v38  ;;  %v932_v37 = vld [vmem:[%s9608_s26 + $0x12c8] sm:$0xff]  ;;  %v8723_v32 = vcombine.low %v939_v13, %v947_v14  ;;  %v8725_v38 = vcombine.low %v940_v15, %v948_v16  ;;  %v8644_v13 = vcombine.high %v859_v11, %v867_v12  ;;  %v843_v15 = vld [vmem:[%s9608_s26 + $0x1000] sm:$0xff] }
 0x43a   : > { %v8710_v40 = vcombine.high %v924_v24, %v932_v37  ;;  %v851_v16 = vld [vmem:[%s9608_s26 + $0x1040] sm:$0xff] }
 0x440   : > { %7130 = vmatpush2.bf16.xpose.msra.mxu0 %v8559_v46  ;;  %7171 = vmatpush2.bf16.xpose.msra.mxu1 %v8561_v48  ;;  %v908_v46 = vld [vmem:[%s9608_s26 + $0x1208] sm:$0xff] }
 0x441   : > { %7131 = vmatprep.subr.bf16.mxu0 %v8544_v49  ;;  %7172 = vmatprep.subr.bf16.mxu1 %v8546_v50  ;;  %v916_v48 = vld [vmem:[%s9608_s26 + $0x1248] sm:$0xff]  ;;  %v8707_v49 = vcombine.low %v923_v47, %v931_v34  ;;  %v8709_v50 = vcombine.low %v924_v24, %v932_v37  ;;  %v8628_v47 = vcombine.high %v843_v15, %v851_v16  ;;  %v1083_v24 = vld [vmem:[%s9608_s26 + $0x1780] sm:$0xff] }
 0x442   : > { %v8694_v52 = vcombine.high %v908_v46, %v916_v48  ;;  %v1091_v37 = vld [vmem:[%s9608_s26 + $0x17c0] sm:$0xff] }
 0x448   : > { %7132 = vmatpush2.bf16.xpose.msra.mxu0 %v8543_v55  ;;  %7173 = vmatpush2.bf16.xpose.msra.mxu1 %v8545_v56  ;;  %v892_v55 = vld [vmem:[%s9608_s26 + $0x1188] sm:$0xff] }
 0x449   : > { %7133 = vmatprep.subr.bf16.mxu0 %v8528_v57  ;;  %7174 = vmatprep.subr.bf16.mxu1 %v8530_v58  ;;  %v900_v56 = vld [vmem:[%s9608_s26 + $0x11c8] sm:$0xff]  ;;  %v8691_v57 = vcombine.low %v907_v42, %v915_v43  ;;  %v8693_v58 = vcombine.low %v908_v46, %v916_v48  ;;  %v8868_v42 = vcombine.high %v1083_v24, %v1091_v37  ;;  %v1067_v46 = vld [vmem:[%s9608_s26 + $0x1700] sm:$0xff] }
 0x44a   : > { %v8678_v0 = vcombine.high %v892_v55, %v900_v56  ;;  %v1075_v48 = vld [vmem:[%s9608_s26 + $0x1740] sm:$0xff] }
 0x450   : > { %7134 = vmatpush2.bf16.xpose.msra.mxu0 %v8527_v5  ;;  %7175 = vmatpush2.bf16.xpose.msra.mxu1 %v8529_v7  ;;  %v876_v5 = vld [vmem:[%s9608_s26 + $0x1108] sm:$0xff] }
 0x451   : > { %7135 = vmatprep.subr.bf16.mxu0 %v8512_v8  ;;  %7176 = vmatprep.subr.bf16.mxu1 %v8514_v9  ;;  %v884_v7 = vld [vmem:[%s9608_s26 + $0x1148] sm:$0xff]  ;;  %v8675_v8 = vcombine.low %v891_v53, %v899_v54  ;;  %v8677_v9 = vcombine.low %v892_v55, %v900_v56  ;;  %v8852_v53 = vcombine.high %v1067_v46, %v1075_v48 }
 0x452   : > { %v8662_v10 = vcombine.high %v876_v5, %v884_v7 }
 0x458   : > { %7136 = vmatpush2.bf16.xpose.msra.mxu0 %v8511_v6  ;;  %7177 = vmatpush2.bf16.xpose.msra.mxu1 %v8513_v3  ;;  %v860_v6 = vld [vmem:[%s9608_s26 + $0x1088] sm:$0xff] }
 0x459   : > { %7187 = vmatprep.subr.bf16.mxu0 %v8740_v1  ;;  %7228 = vmatprep.subr.bf16.mxu1 %v8742_v61  ;;  %v868_v3 = vld [vmem:[%s9608_s26 + $0x10c8] sm:$0xff]  ;;  %v8659_v1 = vcombine.low %v875_v2, %v883_v4  ;;  %v8661_v61 = vcombine.low %v876_v5, %v884_v7  ;;  %v1051_v4 = vld [vmem:[%s9608_s26 + $0x1680] sm:$0xff] }
 0x45a   : > { %v8646_v14 = vcombine.high %v860_v6, %v868_v3  ;;  %v1059_v5 = vld [vmem:[%s9608_s26 + $0x16c0] sm:$0xff] }
 0x45f   : > { %7138 = vmatmul.mubr.bf16.vlgmr.msra.gmra.mxu0 %v10011_v19  ;;  %7179 = vmatmul.mubr.bf16.vlgmr.msra.gmra.mxu1 %v10017_v28 }
 0x460   : > { %7188 = vmatpush1.bf16.xpose.msra.mxu0 %v8739_v22  ;;  %7229 = vmatpush1.bf16.xpose.msra.mxu1 %v8741_v26  ;;  %v844_v22 = vld [vmem:[%s9608_s26 + $0x1008] sm:$0xff] }
 0x461   : > { %7189 = vmatprep.subr.bf16.mxu0 %v8724_v29  ;;  %7230 = vmatprep.subr.bf16.mxu1 %v8726_v30  ;;  %v852_v26 = vld [vmem:[%s9608_s26 + $0x1048] sm:$0xff]  ;;  %v8643_v29 = vcombine.low %v859_v11, %v867_v12  ;;  %v8645_v30 = vcombine.low %v860_v6, %v868_v3  ;;  %v8836_v6 = vcombine.high %v1051_v4, %v1059_v5 }
 0x462   : > { %7219 = vmatprep.mubr.bf16.mxu0 %v9669_v35  ;;  %7260 = vmatprep.mubr.bf16.mxu1 %v9673_v36  ;;  %v8630_v34 = vcombine.high %v844_v22, %v852_v26 }
 0x468   : > { %7190 = vmatpush1.bf16.xpose.msra.mxu0 %v8723_v32  ;;  %7231 = vmatpush1.bf16.xpose.msra.mxu1 %v8725_v38  ;;  %v1084_v32 = vld [vmem:[%s9608_s26 + $0x1788] sm:$0xff] }
 0x469   : > { %7191 = vmatprep.subr.bf16.mxu0 %v8708_v39  ;;  %7232 = vmatprep.subr.bf16.mxu1 %v8710_v40  ;;  %v1092_v38 = vld [vmem:[%s9608_s26 + $0x17c8] sm:$0xff]  ;;  %v8627_v39 = vcombine.low %v843_v15, %v851_v16  ;;  %v8629_v40 = vcombine.low %v844_v22, %v852_v26  ;;  %v8835_v15 = vcombine.low %v1051_v4, %v1059_v5 }
 0x46a   : > { %v8870_v43 = vcombine.high %v1084_v32, %v1092_v38  ;;  %v972_v4 = vld [vmem:[%s9608_s26 + $0x1408] sm:$0xff] }
 0x46b   : > { %v980_v5 = vld [vmem:[%s9608_s26 + $0x1448] sm:$0xff] }
 0x470   : > { %7192 = vmatpush1.bf16.xpose.msra.mxu0 %v8707_v49  ;;  %7233 = vmatpush1.bf16.xpose.msra.mxu1 %v8709_v50  ;;  %v1068_v49 = vld [vmem:[%s9608_s26 + $0x1708] sm:$0xff] }
 0x471   : > { %7193 = vmatprep.subr.bf16.mxu0 %v8692_v23  ;;  %7234 = vmatprep.subr.bf16.mxu1 %v8694_v52  ;;  %v1076_v50 = vld [vmem:[%s9608_s26 + $0x1748] sm:$0xff]  ;;  %v8867_v23 = vcombine.low %v1083_v24, %v1091_v37  ;;  %v8869_v52 = vcombine.low %v1084_v32, %v1092_v38 }
 0x472   : > { %v8854_v54 = vcombine.high %v1068_v49, %v1076_v50  ;;  %v8853_v12 = vcombine.low %v1068_v49, %v1076_v50 }
 0x478   : > { %7194 = vmatpush1.bf16.xpose.msra.mxu0 %v8691_v57  ;;  %7235 = vmatpush1.bf16.xpose.msra.mxu1 %v8693_v58 }
 0x479   : > { %7195 = vmatprep.subr.bf16.mxu0 %v8676_v63  ;;  %7236 = vmatprep.subr.bf16.mxu1 %v8678_v0 }
 0x480   : > { %7196 = vmatpush1.bf16.xpose.msra.mxu0 %v8675_v8  ;;  %7237 = vmatpush1.bf16.xpose.msra.mxu1 %v8677_v9  ;;  %v1052_v8 = vld [vmem:[%s9608_s26 + $0x1688] sm:$0xff] }
 0x481   : > { %7197 = vmatprep.subr.bf16.mxu0 %v8660_v62  ;;  %7238 = vmatprep.subr.bf16.mxu1 %v8662_v10  ;;  %v1060_v9 = vld [vmem:[%s9608_s26 + $0x16c8] sm:$0xff]  ;;  %v8851_v10 = vcombine.low %v1067_v46, %v1075_v48 }
 0x482   : > { %v8837_v16 = vcombine.low %v1052_v8, %v1060_v9 }
 0x488   : > { %7198 = vmatpush1.bf16.xpose.msra.mxu0 %v8659_v1  ;;  %7239 = vmatpush1.bf16.xpose.msra.mxu1 %v8661_v61  ;;  %v1035_v1 = vld [vmem:[%s9608_s26 + $0x1600] sm:$0xff] }
 0x489   : > { %7199 = vmatprep.subr.bf16.mxu0 %v8644_v13  ;;  %7240 = vmatprep.subr.bf16.mxu1 %v8646_v14  ;;  %v1043_v61 = vld [vmem:[%s9608_s26 + $0x1640] sm:$0xff]  ;;  %v1036_v13 = vld [vmem:[%s9608_s26 + $0x1608] sm:$0xff] }
 0x48a   : > { %v1044_v14 = vld [vmem:[%s9608_s26 + $0x1648] sm:$0xff]  ;;  %v8820_v22 = vcombine.high %v1035_v1, %v1043_v61  ;;  %v8819_v24 = vcombine.low %v1035_v1, %v1043_v61 }
 0x48b   : > { %v8822_v26 = vcombine.high %v1036_v13, %v1044_v14  ;;  %v8821_v37 = vcombine.low %v1036_v13, %v1044_v14  ;;  %v941_v13 = vld [vmem:[%s9608_s26 + $0x1310] sm:$0xff] }
 0x48c   : > { %v949_v14 = vld [vmem:[%s9608_s26 + $0x1350] sm:$0xff] }
 0x490   : > { %7200 = vmatpush1.bf16.xpose.msra.mxu0 %v8643_v29  ;;  %7241 = vmatpush1.bf16.xpose.msra.mxu1 %v8645_v30  ;;  %v1019_v29 = vld [vmem:[%s9608_s26 + $0x1580] sm:$0xff] }
 0x491   : > { %7201 = vmatprep.subr.bf16.mxu0 %v8628_v47  ;;  %7242 = vmatprep.subr.bf16.mxu1 %v8630_v34  ;;  %v1027_v30 = vld [vmem:[%s9608_s26 + $0x15c0] sm:$0xff]  ;;  %v1020_v47 = vld [vmem:[%s9608_s26 + $0x1588] sm:$0xff] }
 0x492   : > { %v1028_v34 = vld [vmem:[%s9608_s26 + $0x15c8] sm:$0xff]  ;;  %v8804_v32 = vcombine.high %v1019_v29, %v1027_v30  ;;  %v8803_v46 = vcombine.low %v1019_v29, %v1027_v30  ;;  %v8728_v29 = vcombine.high %v941_v13, %v949_v14 }
 0x493   : > { %v8806_v38 = vcombine.high %v1020_v47, %v1028_v34  ;;  %v8805_v48 = vcombine.low %v1020_v47, %v1028_v34  ;;  %v925_v47 = vld [vmem:[%s9608_s26 + $0x1290] sm:$0xff] }
 0x494   : > { %v933_v34 = vld [vmem:[%s9608_s26 + $0x12d0] sm:$0xff] }
 0x498   : > { %7202 = vmatpush1.bf16.xpose.msra.mxu0 %v8627_v39  ;;  %7243 = vmatpush1.bf16.xpose.msra.mxu1 %v8629_v40  ;;  %v1003_v39 = vld [vmem:[%s9608_s26 + $0x1500] sm:$0xff] }
 0x499   : > { %7203 = vmatprep.subr.bf16.mxu0 %v8868_v42  ;;  %7244 = vmatprep.subr.bf16.mxu1 %v8870_v43  ;;  %v1011_v40 = vld [vmem:[%s9608_s26 + $0x1540] sm:$0xff]  ;;  %v1004_v42 = vld [vmem:[%s9608_s26 + $0x1508] sm:$0xff] }
 0x49a   : > { %v1012_v43 = vld [vmem:[%s9608_s26 + $0x1548] sm:$0xff]  ;;  %v8788_v49 = vcombine.high %v1003_v39, %v1011_v40 }
 0x49b   : > { %v8790_v50 = vcombine.high %v1004_v42, %v1012_v43 }
 0x49f   : > { %v7057_v55 = vpop.f32.mrf.mxu0  ;;  %v7098_v57 = vpop.f32.mrf.mxu1 }
 0x4a0   : > { %v7058_v56 = vadd.f32 %v7057_v55, %v10276_v60  ;;  %7204 = vmatpush2.bf16.xpose.msra.mxu0 %v8867_v23  ;;  %7245 = vmatpush2.bf16.xpose.msra.mxu1 %v8869_v52  ;;  %v987_v23 = vld [vmem:[%s9608_s26 + $0x1480] sm:$0xff]  ;;  %v8787_v55 = vcombine.low %v1003_v39, %v1011_v40  ;;  %v8712_v39 = vcombine.high %v925_v47, %v933_v34 }
 0x4a1   : > { %v7059_v58 = vpop.f32.mrf.mxu0  ;;  %7205 = vmatprep.subr.bf16.mxu0 %v8852_v53  ;;  %v7100_v2 = vpop.f32.mrf.mxu1  ;;  %7246 = vmatprep.subr.bf16.mxu1 %v8854_v54  ;;  %v995_v52 = vld [vmem:[%s9608_s26 + $0x14c0] sm:$0xff]  ;;  %v988_v53 = vld [vmem:[%s9608_s26 + $0x1488] sm:$0xff] }
 0x4a2   : > { %v10350_v63 = vadd.f32 %v7098_v57, %v7058_v56  ;;  %v7060_v0 = vadd.f32 %v7059_v58, %v10283_v59  ;;  %v8838_v59 = vcombine.high %v1052_v8, %v1060_v9  ;;  %v996_v54 = vld [vmem:[%s9608_s26 + $0x14c8] sm:$0xff]  ;;  %v8789_v56 = vcombine.low %v1004_v42, %v1012_v43  ;;  %v909_v42 = vld [vmem:[%s9608_s26 + $0x1210] sm:$0xff] }
 0x4a3   : > { %v7061_v7 = vpop.f32.mrf.mxu0  ;;  %v7102_v62 = vpop.f32.mrf.mxu1  ;;  %v8772_v57 = vcombine.high %v987_v23, %v995_v52  ;;  %v8774_v58 = vcombine.high %v988_v53, %v996_v54  ;;  %v8773_v8 = vcombine.low %v988_v53, %v996_v54  ;;  %v917_v43 = vld [vmem:[%s9608_s26 + $0x1250] sm:$0xff] }
 0x4a4   : > { %v10357_v60 = vadd.f32 %v7100_v2, %v7060_v0  ;;  %v971_v0 = vld [vmem:[%s9608_s26 + $0x1400] sm:$0xff]  ;;  %v8771_v7 = vcombine.low %v987_v23, %v995_v52  ;;  %v8758_v62 = vcombine.high %v972_v4, %v980_v5  ;;  %v8696_v23 = vcombine.high %v909_v42, %v917_v43  ;;  %v893_v53 = vld [vmem:[%s9608_s26 + $0x1190] sm:$0xff] }
 0x4a5   : > { %v7062_v11 = vpop.f32.mrf.mxu0  ;;  %v7103_v3 = vpop.f32.mrf.mxu1  ;;  %v979_v2 = vld [vmem:[%s9608_s26 + $0x1440] sm:$0xff]  ;;  %v901_v54 = vld [vmem:[%s9608_s26 + $0x11d0] sm:$0xff] }
 0x4a6   : > { %v8756_v9 = vcombine.high %v971_v0, %v979_v2  ;;  %v965_v11 = vld [vmem:[%s9608_s26 + $0x13d0] sm:$0xff]  ;;  %v8755_v3 = vcombine.low %v971_v0, %v979_v2  ;;  %v8680_v0 = vcombine.high %v893_v53, %v901_v54 }
 0x4a8   : > { %7206 = vmatpush2.bf16.xpose.msra.mxu0 %v8851_v10  ;;  %7247 = vmatpush2.bf16.xpose.msra.mxu1 %v8853_v12  ;;  %v957_v10 = vld [vmem:[%s9608_s26 + $0x1390] sm:$0xff]  ;;  %v958_v12 = vld [vmem:[%s9608_s26 + $0x1398] sm:$0xff] }
 0x4a9   : > { %7207 = vmatprep.subr.bf16.mxu0 %v8836_v6  ;;  %7248 = vmatprep.subr.bf16.mxu1 %v8838_v59  ;;  %v966_v6 = vld [vmem:[%s9608_s26 + $0x13d8] sm:$0xff]  ;;  %v8757_v59 = vcombine.low %v972_v4, %v980_v5  ;;  %v8744_v1 = vcombine.high %v957_v10, %v965_v11  ;;  %v877_v4 = vld [vmem:[%s9608_s26 + $0x1110] sm:$0xff] }
 0x4aa   : > { %v8746_v61 = vcombine.high %v958_v12, %v966_v6  ;;  %v885_v5 = vld [vmem:[%s9608_s26 + $0x1150] sm:$0xff] }
 0x4b0   : > { %7208 = vmatpush2.bf16.xpose.msra.mxu0 %v8835_v15  ;;  %7249 = vmatpush2.bf16.xpose.msra.mxu1 %v8837_v16  ;;  %v942_v15 = vld [vmem:[%s9608_s26 + $0x1318] sm:$0xff] }
 0x4b1   : > { %7209 = vmatprep.subr.bf16.mxu0 %v8820_v22  ;;  %7250 = vmatprep.subr.bf16.mxu1 %v8822_v26  ;;  %v950_v16 = vld [vmem:[%s9608_s26 + $0x1358] sm:$0xff]  ;;  %v8743_v22 = vcombine.low %v957_v10, %v965_v11  ;;  %v8745_v26 = vcombine.low %v958_v12, %v966_v6  ;;  %v8664_v10 = vcombine.high %v877_v4, %v885_v5  ;;  %v861_v12 = vld [vmem:[%s9608_s26 + $0x1090] sm:$0xff] }
 0x4b2   : > { %v8730_v30 = vcombine.high %v942_v15, %v950_v16  ;;  %v869_v6 = vld [vmem:[%s9608_s26 + $0x10d0] sm:$0xff] }
 0x4b8   : > { %7210 = vmatpush2.bf16.xpose.msra.mxu0 %v8819_v24  ;;  %7251 = vmatpush2.bf16.xpose.msra.mxu1 %v8821_v37  ;;  %v926_v24 = vld [vmem:[%s9608_s26 + $0x1298] sm:$0xff] }
 0x4b9   : > { %7211 = vmatprep.subr.bf16.mxu0 %v8804_v32  ;;  %7252 = vmatprep.subr.bf16.mxu1 %v8806_v38  ;;  %v934_v37 = vld [vmem:[%s9608_s26 + $0x12d8] sm:$0xff]  ;;  %v8727_v32 = vcombine.low %v941_v13, %v949_v14  ;;  %v8729_v38 = vcombine.low %v942_v15, %v950_v16  ;;  %v8648_v13 = vcombine.high %v861_v12, %v869_v6  ;;  %v845_v15 = vld [vmem:[%s9608_s26 + $0x1010] sm:$0xff] }
 0x4ba   : > { %v8714_v40 = vcombine.high %v926_v24, %v934_v37  ;;  %v853_v16 = vld [vmem:[%s9608_s26 + $0x1050] sm:$0xff] }
 0x4c0   : > { %7212 = vmatpush2.bf16.xpose.msra.mxu0 %v8803_v46  ;;  %7253 = vmatpush2.bf16.xpose.msra.mxu1 %v8805_v48  ;;  %v910_v46 = vld [vmem:[%s9608_s26 + $0x1218] sm:$0xff] }
 0x4c1   : > { %7213 = vmatprep.subr.bf16.mxu0 %v8788_v49  ;;  %7254 = vmatprep.subr.bf16.mxu1 %v8790_v50  ;;  %v918_v48 = vld [vmem:[%s9608_s26 + $0x1258] sm:$0xff]  ;;  %v8711_v49 = vcombine.low %v925_v47, %v933_v34  ;;  %v8713_v50 = vcombine.low %v926_v24, %v934_v37  ;;  %v8632_v47 = vcombine.high %v845_v15, %v853_v16  ;;  %v1085_v24 = vld [vmem:[%s9608_s26 + $0x1790] sm:$0xff] }
 0x4c2   : > { %v8698_v52 = vcombine.high %v910_v46, %v918_v48  ;;  %v1093_v37 = vld [vmem:[%s9608_s26 + $0x17d0] sm:$0xff] }
 0x4c8   : > { %7214 = vmatpush2.bf16.xpose.msra.mxu0 %v8787_v55  ;;  %7255 = vmatpush2.bf16.xpose.msra.mxu1 %v8789_v56  ;;  %v894_v55 = vld [vmem:[%s9608_s26 + $0x1198] sm:$0xff] }
 0x4c9   : > { %7215 = vmatprep.subr.bf16.mxu0 %v8772_v57  ;;  %7256 = vmatprep.subr.bf16.mxu1 %v8774_v58  ;;  %v902_v56 = vld [vmem:[%s9608_s26 + $0x11d8] sm:$0xff]  ;;  %v8695_v57 = vcombine.low %v909_v42, %v917_v43  ;;  %v8697_v58 = vcombine.low %v910_v46, %v918_v48  ;;  %v8872_v42 = vcombine.high %v1085_v24, %v1093_v37  ;;  %v1069_v46 = vld [vmem:[%s9608_s26 + $0x1710] sm:$0xff] }
 0x4ca   : > { %v8682_v2 = vcombine.high %v894_v55, %v902_v56  ;;  %v1077_v48 = vld [vmem:[%s9608_s26 + $0x1750] sm:$0xff] }
 0x4d0   : > { %7216 = vmatpush2.bf16.xpose.msra.mxu0 %v8771_v7  ;;  %7257 = vmatpush2.bf16.xpose.msra.mxu1 %v8773_v8  ;;  %v878_v7 = vld [vmem:[%s9608_s26 + $0x1118] sm:$0xff] }
 0x4d1   : > { %7217 = vmatprep.subr.bf16.mxu0 %v8756_v9  ;;  %7258 = vmatprep.subr.bf16.mxu1 %v8758_v62  ;;  %v886_v8 = vld [vmem:[%s9608_s26 + $0x1158] sm:$0xff]  ;;  %v8679_v9 = vcombine.low %v893_v53, %v901_v54  ;;  %v8681_v62 = vcombine.low %v894_v55, %v902_v56  ;;  %v8856_v53 = vcombine.high %v1069_v46, %v1077_v48 }
 0x4d2   : > { %v8666_v11 = vcombine.high %v878_v7, %v886_v8 }
 0x4d8   : > { %7218 = vmatpush2.bf16.xpose.msra.mxu0 %v8755_v3  ;;  %7259 = vmatpush2.bf16.xpose.msra.mxu1 %v8757_v59  ;;  %v862_v3 = vld [vmem:[%s9608_s26 + $0x1098] sm:$0xff] }
 0x4d9   : > { %7269 = vmatprep.subr.bf16.mxu0 %v8744_v1  ;;  %7310 = vmatprep.subr.bf16.mxu1 %v8746_v61  ;;  %v870_v59 = vld [vmem:[%s9608_s26 + $0x10d8] sm:$0xff]  ;;  %v8663_v1 = vcombine.low %v877_v4, %v885_v5  ;;  %v8665_v61 = vcombine.low %v878_v7, %v886_v8  ;;  %v1053_v7 = vld [vmem:[%s9608_s26 + $0x1690] sm:$0xff] }
 0x4da   : > { %v8650_v14 = vcombine.high %v862_v3, %v870_v59  ;;  %v1061_v8 = vld [vmem:[%s9608_s26 + $0x16d0] sm:$0xff] }
 0x4df   : > { %7220 = vmatmul.mubr.bf16.vlgmr.msra.gmra.mxu0 %v9731_v17  ;;  %7261 = vmatmul.mubr.bf16.vlgmr.msra.gmra.mxu1 %v9740_v21 }
 0x4e0   : > { %7270 = vmatpush1.bf16.xpose.msra.mxu0 %v8743_v22  ;;  %7311 = vmatpush1.bf16.xpose.msra.mxu1 %v8745_v26  ;;  %v846_v22 = vld [vmem:[%s9608_s26 + $0x1018] sm:$0xff] }
 0x4e1   : > { %7271 = vmatprep.subr.bf16.mxu0 %v8728_v29  ;;  %7312 = vmatprep.subr.bf16.mxu1 %v8730_v30  ;;  %v854_v26 = vld [vmem:[%s9608_s26 + $0x1058] sm:$0xff]  ;;  %v8647_v29 = vcombine.low %v861_v12, %v869_v6  ;;  %v8649_v30 = vcombine.low %v862_v3, %v870_v59  ;;  %v8855_v3 = vcombine.low %v1069_v46, %v1077_v48  ;;  %v1005_v46 = vld [vmem:[%s9608_s26 + $0x1510] sm:$0xff] }
 0x4e2   : > { %7301 = vmatprep.mubr.bf16.mxu0 %v9747_v31  ;;  %7342 = vmatprep.mubr.bf16.mxu1 %v9752_v27  ;;  %v8634_v34 = vcombine.high %v846_v22, %v854_v26  ;;  %v1013_v48 = vld [vmem:[%s9608_s26 + $0x1550] sm:$0xff] }
 0x4e8   : > { %7272 = vmatpush1.bf16.xpose.msra.mxu0 %v8727_v32  ;;  %7313 = vmatpush1.bf16.xpose.msra.mxu1 %v8729_v38  ;;  %v1086_v32 = vld [vmem:[%s9608_s26 + $0x1798] sm:$0xff] }
 0x4e9   : > { %7273 = vmatprep.subr.bf16.mxu0 %v8712_v39  ;;  %7314 = vmatprep.subr.bf16.mxu1 %v8714_v40  ;;  %v1094_v38 = vld [vmem:[%s9608_s26 + $0x17d8] sm:$0xff]  ;;  %v8631_v39 = vcombine.low %v845_v15, %v853_v16  ;;  %v8633_v40 = vcombine.low %v846_v22, %v854_v26  ;;  %v1037_v15 = vld [vmem:[%s9608_s26 + $0x1610] sm:$0xff] }
 0x4ea   : > { %v8874_v43 = vcombine.high %v1086_v32, %v1094_v38  ;;  %v1045_v16 = vld [vmem:[%s9608_s26 + $0x1650] sm:$0xff]  ;;  %v1038_v22 = vld [vmem:[%s9608_s26 + $0x1618] sm:$0xff] }
 0x4eb   : > { %v1046_v26 = vld [vmem:[%s9608_s26 + $0x1658] sm:$0xff] }
 0x4f0   : > { %7274 = vmatpush1.bf16.xpose.msra.mxu0 %v8711_v49  ;;  %7315 = vmatpush1.bf16.xpose.msra.mxu1 %v8713_v50  ;;  %v1070_v49 = vld [vmem:[%s9608_s26 + $0x1718] sm:$0xff] }
 0x4f1   : > { %7275 = vmatprep.subr.bf16.mxu0 %v8696_v23  ;;  %7316 = vmatprep.subr.bf16.mxu1 %v8698_v52  ;;  %v1078_v50 = vld [vmem:[%s9608_s26 + $0x1758] sm:$0xff]  ;;  %v8871_v23 = vcombine.low %v1085_v24, %v1093_v37  ;;  %v8873_v52 = vcombine.low %v1086_v32, %v1094_v38  ;;  %v1021_v24 = vld [vmem:[%s9608_s26 + $0x1590] sm:$0xff] }
 0x4f2   : > { %v8858_v54 = vcombine.high %v1070_v49, %v1078_v50  ;;  %v1029_v37 = vld [vmem:[%s9608_s26 + $0x15d0] sm:$0xff]  ;;  %v1022_v32 = vld [vmem:[%s9608_s26 + $0x1598] sm:$0xff] }
 0x4f3   : > { %v1030_v38 = vld [vmem:[%s9608_s26 + $0x15d8] sm:$0xff] }
 0x4f8   : > { %7276 = vmatpush1.bf16.xpose.msra.mxu0 %v8695_v57  ;;  %7317 = vmatpush1.bf16.xpose.msra.mxu1 %v8697_v58  ;;  %v317_v58 = vld [vmem:[%s9632_s29 + $0x10] sm:$0xff] }
 0x4f9   : > { %7277 = vmatprep.subr.bf16.mxu0 %v8680_v0  ;;  %7318 = vmatprep.subr.bf16.mxu1 %v8682_v2 }
 0x500   : > { %7278 = vmatpush1.bf16.xpose.msra.mxu0 %v8679_v9  ;;  %7319 = vmatpush1.bf16.xpose.msra.mxu1 %v8681_v62  ;;  %v318_v9 = vld [vmem:[%s9632_s29 + $0x18] sm:$0xff] }
 0x501   : > { %7279 = vmatprep.subr.bf16.mxu0 %v8664_v10  ;;  %7320 = vmatprep.subr.bf16.mxu1 %v8666_v11  ;;  %v1054_v10 = vld [vmem:[%s9608_s26 + $0x1698] sm:$0xff] }
 0x508   : > { %7280 = vmatpush1.bf16.xpose.msra.mxu0 %v8663_v1  ;;  %7321 = vmatpush1.bf16.xpose.msra.mxu1 %v8665_v61  ;;  %v8840_v1 = vcombine.high %v1053_v7, %v1061_v8 }
 0x509   : > { %7281 = vmatprep.subr.bf16.mxu0 %v8648_v13  ;;  %7322 = vmatprep.subr.bf16.mxu1 %v8650_v14 }
 0x510   : > { %7282 = vmatpush1.bf16.xpose.msra.mxu0 %v8647_v29  ;;  %7323 = vmatpush1.bf16.xpose.msra.mxu1 %v8649_v30  ;;  %v8839_v29 = vcombine.low %v1053_v7, %v1061_v8  ;;  %v973_v7 = vld [vmem:[%s9608_s26 + $0x1410] sm:$0xff] }
 0x511   : > { %7283 = vmatprep.subr.bf16.mxu0 %v8632_v47  ;;  %7324 = vmatprep.subr.bf16.mxu1 %v8634_v34  ;;  %v8824_v47 = vcombine.high %v1037_v15, %v1045_v16  ;;  %v8826_v34 = vcombine.high %v1038_v22, %v1046_v26  ;;  %v981_v8 = vld [vmem:[%s9608_s26 + $0x1450] sm:$0xff] }
 0x518   : > { %7284 = vmatpush1.bf16.xpose.msra.mxu0 %v8631_v39  ;;  %7325 = vmatpush1.bf16.xpose.msra.mxu1 %v8633_v40  ;;  %v8823_v39 = vcombine.low %v1037_v15, %v1045_v16  ;;  %v8825_v40 = vcombine.low %v1038_v22, %v1046_v26  ;;  %v943_v15 = vld [vmem:[%s9608_s26 + $0x1320] sm:$0xff]  ;;  %v944_v22 = vld [vmem:[%s9608_s26 + $0x1328] sm:$0xff] }
 0x519   : > { %7285 = vmatprep.subr.bf16.mxu0 %v8872_v42  ;;  %7326 = vmatprep.subr.bf16.mxu1 %v8874_v43  ;;  %v8808_v42 = vcombine.high %v1021_v24, %v1029_v37  ;;  %v8810_v43 = vcombine.high %v1022_v32, %v1030_v38  ;;  %v951_v16 = vld [vmem:[%s9608_s26 + $0x1360] sm:$0xff]  ;;  %v952_v26 = vld [vmem:[%s9608_s26 + $0x1368] sm:$0xff] }
 0x51f   : > { %v7139_v55 = vpop.f32.mrf.mxu0  ;;  %v7180_v57 = vpop.f32.mrf.mxu1 }
 0x520   : > { %v7140_v56 = vadd.f32 %v7139_v55, %v10350_v63  ;;  %7286 = vmatpush2.bf16.xpose.msra.mxu0 %v8871_v23  ;;  %7327 = vmatpush2.bf16.xpose.msra.mxu1 %v8873_v52  ;;  %v1062_v63 = vld [vmem:[%s9608_s26 + $0x16d8] sm:$0xff]  ;;  %v8807_v23 = vcombine.low %v1021_v24, %v1029_v37  ;;  %v8809_v52 = vcombine.low %v1022_v32, %v1030_v38  ;;  %v989_v55 = vld [vmem:[%s9608_s26 + $0x1490] sm:$0xff]  ;;  %v927_v24 = vld [vmem:[%s9608_s26 + $0x12a0] sm:$0xff] }
 0x521   : > { %v7141_v0 = vpop.f32.mrf.mxu0  ;;  %7287 = vmatprep.subr.bf16.mxu0 %v8856_v53  ;;  %v7182_v5 = vpop.f32.mrf.mxu1  ;;  %7328 = vmatprep.subr.bf16.mxu1 %v8858_v54  ;;  %v8842_v14 = vcombine.high %v1054_v10, %v1062_v63  ;;  %v8841_v30 = vcombine.low %v1054_v10, %v1062_v63  ;;  %v8792_v53 = vcombine.high %v1005_v46, %v1013_v48  ;;  %v935_v37 = vld [vmem:[%s9608_s26 + $0x12e0] sm:$0xff]  ;;  %v928_v32 = vld [vmem:[%s9608_s26 + $0x12a8] sm:$0xff] }
 0x522   : > { %v7181_v2 = vadd.f32 %v7180_v57, %v7140_v56  ;;  %v7142_v4 = vadd.f32 %v7141_v0, %v10357_v60  ;;  %v8857_v60 = vcombine.low %v1070_v49, %v1078_v50  ;;  %v1006_v49 = vld [vmem:[%s9608_s26 + $0x1518] sm:$0xff]  ;;  %v997_v56 = vld [vmem:[%s9608_s26 + $0x14d0] sm:$0xff]  ;;  %v8791_v0 = vcombine.low %v1005_v46, %v1013_v48  ;;  %v936_v38 = vld [vmem:[%s9608_s26 + $0x12e8] sm:$0xff] }
 0x523   : > { %v7143_v62 = vpop.f32.mrf.mxu0  ;;  %v7184_v6 = vpop.f32.mrf.mxu1  ;;  %v1014_v50 = vld [vmem:[%s9608_s26 + $0x1558] sm:$0xff]  ;;  %v8775_v10 = vcombine.low %v989_v55, %v997_v56  ;;  %v911_v46 = vld [vmem:[%s9608_s26 + $0x1220] sm:$0xff] }
 0x524   : > { %v7845_v11 = vadd.f32 %v7181_v2, %v317_v58  ;;  %v7183_v12 = vadd.f32 %v7182_v5, %v7142_v4  ;;  %v8794_v54 = vcombine.high %v1006_v49, %v1014_v50  ;;  %v990_v57 = vld [vmem:[%s9608_s26 + $0x1498] sm:$0xff]  ;;  %v8793_v2 = vcombine.low %v1006_v49, %v1014_v50  ;;  %v959_v6 = vld [vmem:[%s9608_s26 + $0x13a0] sm:$0xff]  ;;  %v912_v49 = vld [vmem:[%s9608_s26 + $0x1228] sm:$0xff] }
 0x525   : > { %v7144_v59 = vpop.f32.mrf.mxu0  ;;  %v7185_v13 = vpop.f32.mrf.mxu1  ;;  %v998_v58 = vld [vmem:[%s9608_s26 + $0x14d8] sm:$0xff]  ;;  %v8776_v4 = vcombine.high %v989_v55, %v997_v56  ;;  %v919_v48 = vld [vmem:[%s9608_s26 + $0x1260] sm:$0xff]  ;;  %v920_v50 = vld [vmem:[%s9608_s26 + $0x1268] sm:$0xff] }
 0x526   : > { %7853 = vst [vmem:[%s9632_s29 + $0x10] sm:$0xff] %v7845_v11  ;;  %v7846_v61 = vadd.f32 %v7183_v12, %v318_v9  ;;  %v8778_v5 = vcombine.high %v990_v57, %v998_v58  ;;  %v974_v9 = vld [vmem:[%s9608_s26 + $0x1418] sm:$0xff]  ;;  %v8777_v63 = vcombine.low %v990_v57, %v998_v58  ;;  %v8760_v11 = vcombine.high %v973_v7, %v981_v8  ;;  %v960_v59 = vld [vmem:[%s9608_s26 + $0x13a8] sm:$0xff]  ;;  %v895_v55 = vld [vmem:[%s9608_s26 + $0x11a0] sm:$0xff] }
 0x527   : > { %v982_v62 = vld [vmem:[%s9608_s26 + $0x1458] sm:$0xff]  ;;  %v903_v56 = vld [vmem:[%s9608_s26 + $0x11e0] sm:$0xff]  ;;  %v896_v57 = vld [vmem:[%s9608_s26 + $0x11a8] sm:$0xff] }
 0x528   : > { %7854 = vst [vmem:[%s9632_s29 + $0x18] sm:$0xff] %v7846_v61  ;;  %7288 = vmatpush2.bf16.xpose.msra.mxu0 %v8855_v3  ;;  %7329 = vmatpush2.bf16.xpose.msra.mxu1 %v8857_v60  ;;  %v8762_v12 = vcombine.high %v974_v9, %v982_v62  ;;  %v967_v3 = vld [vmem:[%s9608_s26 + $0x13e0] sm:$0xff]  ;;  %v968_v60 = vld [vmem:[%s9608_s26 + $0x13e8] sm:$0xff]  ;;  %v8761_v61 = vcombine.low %v974_v9, %v982_v62 }
 0x529   : > { %7289 = vmatprep.subr.bf16.mxu0 %v8840_v1  ;;  %7330 = vmatprep.subr.bf16.mxu1 %v8842_v14  ;;  %v8759_v1 = vcombine.low %v973_v7, %v981_v8  ;;  %v8748_v13 = vcombine.high %v959_v6, %v967_v3  ;;  %v8750_v14 = vcombine.high %v960_v59, %v968_v60  ;;  %v904_v58 = vld [vmem:[%s9608_s26 + $0x11e8] sm:$0xff]  ;;  %v879_v7 = vld [vmem:[%s9608_s26 + $0x1120] sm:$0xff] }
 0x52a   : > { %v887_v8 = vld [vmem:[%s9608_s26 + $0x1160] sm:$0xff]  ;;  %v880_v9 = vld [vmem:[%s9608_s26 + $0x1128] sm:$0xff] }
 0x52b   : > { %v888_v62 = vld [vmem:[%s9608_s26 + $0x1168] sm:$0xff] }
 0x530   : > { %7290 = vmatpush2.bf16.xpose.msra.mxu0 %v8839_v29  ;;  %7331 = vmatpush2.bf16.xpose.msra.mxu1 %v8841_v30  ;;  %v8747_v29 = vcombine.low %v959_v6, %v967_v3  ;;  %v8749_v30 = vcombine.low %v960_v59, %v968_v60  ;;  %v863_v6 = vld [vmem:[%s9608_s26 + $0x10a0] sm:$0xff]  ;;  %v864_v59 = vld [vmem:[%s9608_s26 + $0x10a8] sm:$0xff] }
 0x531   : > { %7291 = vmatprep.subr.bf16.mxu0 %v8824_v47  ;;  %7332 = vmatprep.subr.bf16.mxu1 %v8826_v34  ;;  %v8732_v47 = vcombine.high %v943_v15, %v951_v16  ;;  %v8734_v34 = vcombine.high %v944_v22, %v952_v26  ;;  %v871_v3 = vld [vmem:[%s9608_s26 + $0x10e0] sm:$0xff]  ;;  %v872_v60 = vld [vmem:[%s9608_s26 + $0x10e8] sm:$0xff] }
 0x538   : > { %7292 = vmatpush2.bf16.xpose.msra.mxu0 %v8823_v39  ;;  %7333 = vmatpush2.bf16.xpose.msra.mxu1 %v8825_v40  ;;  %v8731_v39 = vcombine.low %v943_v15, %v951_v16  ;;  %v8733_v40 = vcombine.low %v944_v22, %v952_v26  ;;  %v847_v15 = vld [vmem:[%s9608_s26 + $0x1020] sm:$0xff]  ;;  %v848_v22 = vld [vmem:[%s9608_s26 + $0x1028] sm:$0xff] }
 0x539   : > { %7293 = vmatprep.subr.bf16.mxu0 %v8808_v42  ;;  %7334 = vmatprep.subr.bf16.mxu1 %v8810_v43  ;;  %v8716_v42 = vcombine.high %v927_v24, %v935_v37  ;;  %v8718_v43 = vcombine.high %v928_v32, %v936_v38  ;;  %v855_v16 = vld [vmem:[%s9608_s26 + $0x1060] sm:$0xff]  ;;  %v856_v26 = vld [vmem:[%s9608_s26 + $0x1068] sm:$0xff] }
 0x540   : > { %7294 = vmatpush2.bf16.xpose.msra.mxu0 %v8807_v23  ;;  %7335 = vmatpush2.bf16.xpose.msra.mxu1 %v8809_v52  ;;  %v8715_v23 = vcombine.low %v927_v24, %v935_v37  ;;  %v8717_v52 = vcombine.low %v928_v32, %v936_v38  ;;  %v1087_v24 = vld [vmem:[%s9608_s26 + $0x17a0] sm:$0xff]  ;;  %v1088_v32 = vld [vmem:[%s9608_s26 + $0x17a8] sm:$0xff] }
 0x541   : > { %7295 = vmatprep.subr.bf16.mxu0 %v8792_v53  ;;  %7336 = vmatprep.subr.bf16.mxu1 %v8794_v54  ;;  %v8700_v53 = vcombine.high %v911_v46, %v919_v48  ;;  %v8702_v54 = vcombine.high %v912_v49, %v920_v50  ;;  %v1095_v37 = vld [vmem:[%s9608_s26 + $0x17e0] sm:$0xff]  ;;  %v1096_v38 = vld [vmem:[%s9608_s26 + $0x17e8] sm:$0xff] }
 0x548   : > { %7296 = vmatpush2.bf16.xpose.msra.mxu0 %v8791_v0  ;;  %7337 = vmatpush2.bf16.xpose.msra.mxu1 %v8793_v2  ;;  %v8699_v0 = vcombine.low %v911_v46, %v919_v48  ;;  %v8701_v2 = vcombine.low %v912_v49, %v920_v50  ;;  %v1071_v46 = vld [vmem:[%s9608_s26 + $0x1720] sm:$0xff]  ;;  %v1072_v49 = vld [vmem:[%s9608_s26 + $0x1728] sm:$0xff] }
 0x549   : > { %7297 = vmatprep.subr.bf16.mxu0 %v8776_v4  ;;  %7338 = vmatprep.subr.bf16.mxu1 %v8778_v5  ;;  %v8684_v4 = vcombine.high %v895_v55, %v903_v56  ;;  %v8686_v5 = vcombine.high %v896_v57, %v904_v58  ;;  %v1079_v48 = vld [vmem:[%s9608_s26 + $0x1760] sm:$0xff]  ;;  %v1080_v50 = vld [vmem:[%s9608_s26 + $0x1768] sm:$0xff] }
 0x550   : > { %7298 = vmatpush2.bf16.xpose.msra.mxu0 %v8775_v10  ;;  %7339 = vmatpush2.bf16.xpose.msra.mxu1 %v8777_v63  ;;  %v8683_v10 = vcombine.low %v895_v55, %v903_v56  ;;  %v8685_v63 = vcombine.low %v896_v57, %v904_v58 }
 0x551   : > { %7299 = vmatprep.subr.bf16.mxu0 %v8760_v11  ;;  %7340 = vmatprep.subr.bf16.mxu1 %v8762_v12  ;;  %v8668_v11 = vcombine.high %v879_v7, %v887_v8  ;;  %v8670_v12 = vcombine.high %v880_v9, %v888_v62 }
 0x558   : > { %7300 = vmatpush2.bf16.xpose.msra.mxu0 %v8759_v1  ;;  %7341 = vmatpush2.bf16.xpose.msra.mxu1 %v8761_v61  ;;  %v8667_v1 = vcombine.low %v879_v7, %v887_v8  ;;  %v8669_v61 = vcombine.low %v880_v9, %v888_v62  ;;  %v1056_v8 = vld [vmem:[%s9608_s26 + $0x16a8] sm:$0xff] }
 0x559   : > { %7351 = vmatprep.subr.bf16.mxu0 %v8748_v13  ;;  %7392 = vmatprep.subr.bf16.mxu1 %v8750_v14  ;;  %v8652_v13 = vcombine.high %v863_v6, %v871_v3  ;;  %v8654_v14 = vcombine.high %v864_v59, %v872_v60  ;;  %v1064_v9 = vld [vmem:[%s9608_s26 + $0x16e8] sm:$0xff] }
 0x55f   : > { %7302 = vmatmul.mubr.bf16.vlgmr.msra.gmra.mxu0 %v9821_v41  ;;  %7343 = vmatmul.mubr.bf16.vlgmr.msra.gmra.mxu1 %v9830_v45 }
 0x560   : > { %7352 = vmatpush1.bf16.xpose.msra.mxu0 %v8747_v29  ;;  %7393 = vmatpush1.bf16.xpose.msra.mxu1 %v8749_v30  ;;  %v8651_v29 = vcombine.low %v863_v6, %v871_v3  ;;  %v8653_v30 = vcombine.low %v864_v59, %v872_v60  ;;  %v8846_v3 = vcombine.high %v1056_v8, %v1064_v9  ;;  %v1039_v59 = vld [vmem:[%s9608_s26 + $0x1620] sm:$0xff] }
 0x561   : > { %7353 = vmatprep.subr.bf16.mxu0 %v8732_v47  ;;  %7394 = vmatprep.subr.bf16.mxu1 %v8734_v34  ;;  %v8636_v47 = vcombine.high %v847_v15, %v855_v16  ;;  %v8638_v34 = vcombine.high %v848_v22, %v856_v26  ;;  %v1047_v60 = vld [vmem:[%s9608_s26 + $0x1660] sm:$0xff] }
 0x562   : > { %7383 = vmatprep.mubr.bf16.mxu0 %v9837_v20  ;;  %7424 = vmatprep.mubr.bf16.mxu1 %v9842_v51 }
 0x568   : > { %7354 = vmatpush1.bf16.xpose.msra.mxu0 %v8731_v39  ;;  %7395 = vmatpush1.bf16.xpose.msra.mxu1 %v8733_v40  ;;  %v8635_v39 = vcombine.low %v847_v15, %v855_v16  ;;  %v8637_v40 = vcombine.low %v848_v22, %v856_v26  ;;  %v8828_v15 = vcombine.high %v1039_v59, %v1047_v60  ;;  %v1023_v22 = vld [vmem:[%s9608_s26 + $0x15a0] sm:$0xff] }
 0x569   : > { %7355 = vmatprep.subr.bf16.mxu0 %v8716_v42  ;;  %7396 = vmatprep.subr.bf16.mxu1 %v8718_v43  ;;  %v8876_v42 = vcombine.high %v1087_v24, %v1095_v37  ;;  %v8878_v43 = vcombine.high %v1088_v32, %v1096_v38  ;;  %v1031_v26 = vld [vmem:[%s9608_s26 + $0x15e0] sm:$0xff] }
 0x570   : > { %7356 = vmatpush1.bf16.xpose.msra.mxu0 %v8715_v23  ;;  %7397 = vmatpush1.bf16.xpose.msra.mxu1 %v8717_v52  ;;  %v8875_v23 = vcombine.low %v1087_v24, %v1095_v37  ;;  %v8877_v52 = vcombine.low %v1088_v32, %v1096_v38  ;;  %v8812_v24 = vcombine.high %v1023_v22, %v1031_v26  ;;  %v1007_v32 = vld [vmem:[%s9608_s26 + $0x1520] sm:$0xff] }
 0x571   : > { %7357 = vmatprep.subr.bf16.mxu0 %v8700_v53  ;;  %7398 = vmatprep.subr.bf16.mxu1 %v8702_v54  ;;  %v8860_v53 = vcombine.high %v1071_v46, %v1079_v48  ;;  %v8862_v54 = vcombine.high %v1072_v49, %v1080_v50  ;;  %v1015_v38 = vld [vmem:[%s9608_s26 + $0x1560] sm:$0xff] }
 0x578   : > { %7358 = vmatpush1.bf16.xpose.msra.mxu0 %v8699_v0  ;;  %7399 = vmatpush1.bf16.xpose.msra.mxu1 %v8701_v2  ;;  %v1055_v2 = vld [vmem:[%s9608_s26 + $0x16a0] sm:$0xff] }
 0x579   : > { %7359 = vmatprep.subr.bf16.mxu0 %v8684_v4  ;;  %7400 = vmatprep.subr.bf16.mxu1 %v8686_v5  ;;  %v1063_v4 = vld [vmem:[%s9608_s26 + $0x16e0] sm:$0xff] }
 0x580   : > { %7360 = vmatpush1.bf16.xpose.msra.mxu0 %v8683_v10  ;;  %7401 = vmatpush1.bf16.xpose.msra.mxu1 %v8685_v63  ;;  %v8859_v10 = vcombine.low %v1071_v46, %v1079_v48  ;;  %v8796_v46 = vcombine.high %v1007_v32, %v1015_v38 }
 0x581   : > { %7361 = vmatprep.subr.bf16.mxu0 %v8668_v11  ;;  %7402 = vmatprep.subr.bf16.mxu1 %v8670_v12  ;;  %v8861_v11 = vcombine.low %v1072_v49, %v1080_v50  ;;  %v8844_v12 = vcombine.high %v1055_v2, %v1063_v4  ;;  %v991_v49 = vld [vmem:[%s9608_s26 + $0x14a0] sm:$0xff] }
 0x582   : > { %v999_v50 = vld [vmem:[%s9608_s26 + $0x14e0] sm:$0xff] }
 0x588   : > { %7362 = vmatpush1.bf16.xpose.msra.mxu0 %v8667_v1  ;;  %7403 = vmatpush1.bf16.xpose.msra.mxu1 %v8669_v61  ;;  %v1040_v1 = vld [vmem:[%s9608_s26 + $0x1628] sm:$0xff] }
 0x589   : > { %7363 = vmatprep.subr.bf16.mxu0 %v8652_v13  ;;  %7404 = vmatprep.subr.bf16.mxu1 %v8654_v14  ;;  %v1048_v61 = vld [vmem:[%s9608_s26 + $0x1668] sm:$0xff]  ;;  %v8843_v13 = vcombine.low %v1055_v2, %v1063_v4  ;;  %v8845_v14 = vcombine.low %v1056_v8, %v1064_v9 }
 0x58a   : > { %v8830_v16 = vcombine.high %v1040_v1, %v1048_v61  ;;  %v976_v2 = vld [vmem:[%s9608_s26 + $0x1428] sm:$0xff] }
 0x58b   : > { %v984_v4 = vld [vmem:[%s9608_s26 + $0x1468] sm:$0xff] }
 0x590   : > { %7364 = vmatpush1.bf16.xpose.msra.mxu0 %v8651_v29  ;;  %7405 = vmatpush1.bf16.xpose.msra.mxu1 %v8653_v30  ;;  %v1024_v29 = vld [vmem:[%s9608_s26 + $0x15a8] sm:$0xff] }
 0x591   : > { %7365 = vmatprep.subr.bf16.mxu0 %v8636_v47  ;;  %7406 = vmatprep.subr.bf16.mxu1 %v8638_v34  ;;  %v1032_v30 = vld [vmem:[%s9608_s26 + $0x15e8] sm:$0xff]  ;;  %v8827_v47 = vcombine.low %v1039_v59, %v1047_v60  ;;  %v8829_v34 = vcombine.low %v1040_v1, %v1048_v61  ;;  %v945_v1 = vld [vmem:[%s9608_s26 + $0x1330] sm:$0xff] }
 0x592   : > { %v8814_v37 = vcombine.high %v1024_v29, %v1032_v30  ;;  %v953_v61 = vld [vmem:[%s9608_s26 + $0x1370] sm:$0xff] }
 0x598   : > { %7366 = vmatpush1.bf16.xpose.msra.mxu0 %v8635_v39  ;;  %7407 = vmatpush1.bf16.xpose.msra.mxu1 %v8637_v40  ;;  %v1008_v39 = vld [vmem:[%s9608_s26 + $0x1528] sm:$0xff] }
 0x599   : > { %7367 = vmatprep.subr.bf16.mxu0 %v8876_v42  ;;  %7408 = vmatprep.subr.bf16.mxu1 %v8878_v43  ;;  %v1016_v40 = vld [vmem:[%s9608_s26 + $0x1568] sm:$0xff]  ;;  %v8811_v42 = vcombine.low %v1023_v22, %v1031_v26  ;;  %v8813_v43 = vcombine.low %v1024_v29, %v1032_v30  ;;  %v8736_v22 = vcombine.high %v945_v1, %v953_v61  ;;  %v929_v29 = vld [vmem:[%s9608_s26 + $0x12b0] sm:$0xff] }
 0x59a   : > { %v8798_v48 = vcombine.high %v1008_v39, %v1016_v40  ;;  %v937_v30 = vld [vmem:[%s9608_s26 + $0x12f0] sm:$0xff] }
 0x59f   : > { %v7221_v55 = vpop.f32.mrf.mxu0  ;;  %v7262_v56 = vpop.f32.mrf.mxu1 }
 0x5a0   : > { %7368 = vmatpush2.bf16.xpose.msra.mxu0 %v8875_v23  ;;  %v10497_v57 = vadd.f32 %v7262_v56, %v7221_v55  ;;  %7409 = vmatpush2.bf16.xpose.msra.mxu1 %v8877_v52  ;;  %v992_v23 = vld [vmem:[%s9608_s26 + $0x14a8] sm:$0xff]  ;;  %v8780_v55 = vcombine.high %v991_v49, %v999_v50 }
 0x5a1   : > { %v7223_v58 = vpop.f32.mrf.mxu0  ;;  %7369 = vmatprep.subr.bf16.mxu0 %v8860_v53  ;;  %v7264_v0 = vpop.f32.mrf.mxu1  ;;  %7410 = vmatprep.subr.bf16.mxu1 %v8862_v54  ;;  %v1000_v52 = vld [vmem:[%s9608_s26 + $0x14e8] sm:$0xff]  ;;  %v8795_v53 = vcombine.low %v1007_v32, %v1015_v38  ;;  %v8797_v54 = vcombine.low %v1008_v39, %v1016_v40  ;;  %v8720_v32 = vcombine.high %v929_v29, %v937_v30  ;;  %v913_v39 = vld [vmem:[%s9608_s26 + $0x1230] sm:$0xff] }
 0x5a2   : > { %v10501_v5 = vadd.f32 %v7264_v0, %v7223_v58  ;;  %v8782_v56 = vcombine.high %v992_v23, %v1000_v52  ;;  %v975_v58 = vld [vmem:[%s9608_s26 + $0x1420] sm:$0xff]  ;;  %v8781_v8 = vcombine.low %v992_v23, %v1000_v52  ;;  %v921_v40 = vld [vmem:[%s9608_s26 + $0x1270] sm:$0xff] }
 0x5a3   : > { %v7225_v7 = vpop.f32.mrf.mxu0  ;;  %v7266_v62 = vpop.f32.mrf.mxu1  ;;  %v983_v0 = vld [vmem:[%s9608_s26 + $0x1460] sm:$0xff]  ;;  %v897_v23 = vld [vmem:[%s9608_s26 + $0x11b0] sm:$0xff] }
 0x5a4   : > { %v8779_v7 = vcombine.low %v991_v49, %v999_v50  ;;  %v8764_v9 = vcombine.high %v975_v58, %v983_v0  ;;  %v8766_v62 = vcombine.high %v976_v2, %v984_v4  ;;  %v8704_v49 = vcombine.high %v913_v39, %v921_v40  ;;  %v905_v52 = vld [vmem:[%s9608_s26 + $0x11f0] sm:$0xff] }
 0x5a5   : > { %v7226_v63 = vpop.f32.mrf.mxu0  ;;  %v7267_v6 = vpop.f32.mrf.mxu1 }
 0x5a6   : > { %v969_v63 = vld [vmem:[%s9608_s26 + $0x13f0] sm:$0xff]  ;;  %v8763_v6 = vcombine.low %v975_v58, %v983_v0  ;;  %v8688_v58 = vcombine.high %v897_v23, %v905_v52 }
 0x5a8   : > { %7370 = vmatpush2.bf16.xpose.msra.mxu0 %v8859_v10  ;;  %7411 = vmatpush2.bf16.xpose.msra.mxu1 %v8861_v11  ;;  %v961_v10 = vld [vmem:[%s9608_s26 + $0x13b0] sm:$0xff]  ;;  %v962_v11 = vld [vmem:[%s9608_s26 + $0x13b8] sm:$0xff] }
 0x5a9   : > { %7371 = vmatprep.subr.bf16.mxu0 %v8844_v12  ;;  %7412 = vmatprep.subr.bf16.mxu1 %v8846_v3  ;;  %v970_v12 = vld [vmem:[%s9608_s26 + $0x13f8] sm:$0xff]  ;;  %v8765_v3 = vcombine.low %v976_v2, %v984_v4  ;;  %v8752_v59 = vcombine.high %v961_v10, %v969_v63  ;;  %v881_v2 = vld [vmem:[%s9608_s26 + $0x1130] sm:$0xff] }
 0x5aa   : > { %v8754_v60 = vcombine.high %v962_v11, %v970_v12  ;;  %v889_v4 = vld [vmem:[%s9608_s26 + $0x1170] sm:$0xff] }
 0x5b0   : > { %7372 = vmatpush2.bf16.xpose.msra.mxu0 %v8843_v13  ;;  %7413 = vmatpush2.bf16.xpose.msra.mxu1 %v8845_v14  ;;  %v946_v13 = vld [vmem:[%s9608_s26 + $0x1338] sm:$0xff] }
 0x5b1   : > { %7373 = vmatprep.subr.bf16.mxu0 %v8828_v15  ;;  %7414 = vmatprep.subr.bf16.mxu1 %v8830_v16  ;;  %v954_v14 = vld [vmem:[%s9608_s26 + $0x1378] sm:$0xff]  ;;  %v8751_v15 = vcombine.low %v961_v10, %v969_v63  ;;  %v8753_v16 = vcombine.low %v962_v11, %v970_v12  ;;  %v8672_v10 = vcombine.high %v881_v2, %v889_v4  ;;  %v865_v11 = vld [vmem:[%s9608_s26 + $0x10b0] sm:$0xff] }
 0x5b2   : > { %v8738_v26 = vcombine.high %v946_v13, %v954_v14  ;;  %v873_v12 = vld [vmem:[%s9608_s26 + $0x10f0] sm:$0xff] }
 0x5b8   : > { %7374 = vmatpush2.bf16.xpose.msra.mxu0 %v8827_v47  ;;  %7415 = vmatpush2.bf16.xpose.msra.mxu1 %v8829_v34  ;;  %v930_v47 = vld [vmem:[%s9608_s26 + $0x12b8] sm:$0xff] }
 0x5b9   : > { %7375 = vmatprep.subr.bf16.mxu0 %v8812_v24  ;;  %7416 = vmatprep.subr.bf16.mxu1 %v8814_v37  ;;  %v938_v34 = vld [vmem:[%s9608_s26 + $0x12f8] sm:$0xff]  ;;  %v8735_v24 = vcombine.low %v945_v1, %v953_v61  ;;  %v8737_v37 = vcombine.low %v946_v13, %v954_v14  ;;  %v8656_v1 = vcombine.high %v865_v11, %v873_v12  ;;  %v849_v13 = vld [vmem:[%s9608_s26 + $0x1030] sm:$0xff] }
 0x5ba   : > { %v8722_v38 = vcombine.high %v930_v47, %v938_v34  ;;  %v857_v14 = vld [vmem:[%s9608_s26 + $0x1070] sm:$0xff] }
 0x5c0   : > { %7376 = vmatpush2.bf16.xpose.msra.mxu0 %v8811_v42  ;;  %7417 = vmatpush2.bf16.xpose.msra.mxu1 %v8813_v43  ;;  %v914_v42 = vld [vmem:[%s9608_s26 + $0x1238] sm:$0xff] }
 0x5c1   : > { %7377 = vmatprep.subr.bf16.mxu0 %v8796_v46  ;;  %7418 = vmatprep.subr.bf16.mxu1 %v8798_v48  ;;  %v922_v43 = vld [vmem:[%s9608_s26 + $0x1278] sm:$0xff]  ;;  %v8719_v46 = vcombine.low %v929_v29, %v937_v30  ;;  %v8721_v48 = vcombine.low %v930_v47, %v938_v34  ;;  %v8640_v29 = vcombine.high %v849_v13, %v857_v14  ;;  %v1089_v47 = vld [vmem:[%s9608_s26 + $0x17b0] sm:$0xff] }
 0x5c2   : > { %v8706_v50 = vcombine.high %v914_v42, %v922_v43  ;;  %v1097_v34 = vld [vmem:[%s9608_s26 + $0x17f0] sm:$0xff] }
 0x5c8   : > { %7378 = vmatpush2.bf16.xpose.msra.mxu0 %v8795_v53  ;;  %7419 = vmatpush2.bf16.xpose.msra.mxu1 %v8797_v54  ;;  %v898_v53 = vld [vmem:[%s9608_s26 + $0x11b8] sm:$0xff] }
 0x5c9   : > { %7379 = vmatprep.subr.bf16.mxu0 %v8780_v55  ;;  %7420 = vmatprep.subr.bf16.mxu1 %v8782_v56  ;;  %v906_v54 = vld [vmem:[%s9608_s26 + $0x11f8] sm:$0xff]  ;;  %v8703_v55 = vcombine.low %v913_v39, %v921_v40  ;;  %v8705_v56 = vcombine.low %v914_v42, %v922_v43  ;;  %v8880_v39 = vcombine.high %v1089_v47, %v1097_v34  ;;  %v1073_v42 = vld [vmem:[%s9608_s26 + $0x1730] sm:$0xff] }
 0x5ca   : > { %v8690_v0 = vcombine.high %v898_v53, %v906_v54  ;;  %v1081_v43 = vld [vmem:[%s9608_s26 + $0x1770] sm:$0xff] }
 0x5d0   : > { %7380 = vmatpush2.bf16.xpose.msra.mxu0 %v8779_v7  ;;  %7421 = vmatpush2.bf16.xpose.msra.mxu1 %v8781_v8  ;;  %v882_v7 = vld [vmem:[%s9608_s26 + $0x1138] sm:$0xff] }
 0x5d1   : > { %7381 = vmatprep.subr.bf16.mxu0 %v8764_v9  ;;  %7422 = vmatprep.subr.bf16.mxu1 %v8766_v62  ;;  %v890_v8 = vld [vmem:[%s9608_s26 + $0x1178] sm:$0xff]  ;;  %v8687_v9 = vcombine.low %v897_v23, %v905_v52  ;;  %v8689_v62 = vcombine.low %v898_v53, %v906_v54  ;;  %v8864_v23 = vcombine.high %v1073_v42, %v1081_v43 }
 0x5d2   : > { %v8674_v63 = vcombine.high %v882_v7, %v890_v8 }
 0x5d8   : > { %7382 = vmatpush2.bf16.xpose.msra.mxu0 %v8763_v6  ;;  %7423 = vmatpush2.bf16.xpose.msra.mxu1 %v8765_v3  ;;  %v866_v6 = vld [vmem:[%s9608_s26 + $0x10b8] sm:$0xff] }
 0x5d9   : > { %7433 = vmatprep.subr.bf16.mxu0 %v8752_v59  ;;  %7474 = vmatprep.subr.bf16.mxu1 %v8754_v60  ;;  %v874_v3 = vld [vmem:[%s9608_s26 + $0x10f8] sm:$0xff]  ;;  %v8671_v59 = vcombine.low %v881_v2, %v889_v4  ;;  %v8673_v60 = vcombine.low %v882_v7, %v890_v8  ;;  %v1057_v4 = vld [vmem:[%s9608_s26 + $0x16b0] sm:$0xff] }
 0x5da   : > { %v8658_v61 = vcombine.high %v866_v6, %v874_v3  ;;  %v1065_v7 = vld [vmem:[%s9608_s26 + $0x16f0] sm:$0xff] }
 0x5df   : > { %7384 = vmatmul.mubr.bf16.vlgmr.msra.gmra.mxu0 %v9915_v18  ;;  %7425 = vmatmul.mubr.bf16.vlgmr.msra.gmra.mxu1 %v9924_v25 }
 0x5e0   : > { %7434 = vmatpush1.bf16.xpose.msra.mxu0 %v8751_v15  ;;  %7475 = vmatpush1.bf16.xpose.msra.mxu1 %v8753_v16  ;;  %v850_v15 = vld [vmem:[%s9608_s26 + $0x1038] sm:$0xff] }
 0x5e1   : > { %7435 = vmatprep.subr.bf16.mxu0 %v8736_v22  ;;  %7476 = vmatprep.subr.bf16.mxu1 %v8738_v26  ;;  %v858_v16 = vld [vmem:[%s9608_s26 + $0x1078] sm:$0xff]  ;;  %v8655_v22 = vcombine.low %v865_v11, %v873_v12  ;;  %v8657_v26 = vcombine.low %v866_v6, %v874_v3  ;;  %v8848_v6 = vcombine.high %v1057_v4, %v1065_v7 }
 0x5e2   : > { %7465 = vmatprep.mubr.bf16.mxu0 %v9931_v44  ;;  %7506 = vmatprep.mubr.bf16.mxu1 %v9936_v33  ;;  %v8642_v30 = vcombine.high %v850_v15, %v858_v16 }
 0x5e8   : > { %7436 = vmatpush1.bf16.xpose.msra.mxu0 %v8735_v24  ;;  %7477 = vmatpush1.bf16.xpose.msra.mxu1 %v8737_v37  ;;  %v1090_v24 = vld [vmem:[%s9608_s26 + $0x17b8] sm:$0xff] }
 0x5e9   : > { %7437 = vmatprep.subr.bf16.mxu0 %v8720_v32  ;;  %7478 = vmatprep.subr.bf16.mxu1 %v8722_v38  ;;  %v1098_v37 = vld [vmem:[%s9608_s26 + $0x17f8] sm:$0xff]  ;;  %v8639_v32 = vcombine.low %v849_v13, %v857_v14  ;;  %v8641_v38 = vcombine.low %v850_v15, %v858_v16  ;;  %v8847_v13 = vcombine.low %v1057_v4, %v1065_v7 }
 0x5ea   : > { %v8882_v40 = vcombine.high %v1090_v24, %v1098_v37  ;;  %v978_v4 = vld [vmem:[%s9608_s26 + $0x1438] sm:$0xff] }
 0x5eb   : > { %v986_v7 = vld [vmem:[%s9608_s26 + $0x1478] sm:$0xff] }
 0x5f0   : > { %7438 = vmatpush1.bf16.xpose.msra.mxu0 %v8719_v46  ;;  %7479 = vmatpush1.bf16.xpose.msra.mxu1 %v8721_v48  ;;  %v1074_v46 = vld [vmem:[%s9608_s26 + $0x1738] sm:$0xff] }
 0x5f1   : > { %7439 = vmatprep.subr.bf16.mxu0 %v8704_v49  ;;  %7480 = vmatprep.subr.bf16.mxu1 %v8706_v50  ;;  %v1082_v48 = vld [vmem:[%s9608_s26 + $0x1778] sm:$0xff]  ;;  %v8879_v49 = vcombine.low %v1089_v47, %v1097_v34  ;;  %v8881_v50 = vcombine.low %v1090_v24, %v1098_v37 }
 0x5f2   : > { %v8866_v52 = vcombine.high %v1074_v46, %v1082_v48  ;;  %v8865_v12 = vcombine.low %v1074_v46, %v1082_v48 }
 0x5f8   : > { %7440 = vmatpush1.bf16.xpose.msra.mxu0 %v8703_v55  ;;  %7481 = vmatpush1.bf16.xpose.msra.mxu1 %v8705_v56 }
 0x5f9   : > { %7441 = vmatprep.subr.bf16.mxu0 %v8688_v58  ;;  %7482 = vmatprep.subr.bf16.mxu1 %v8690_v0 }
 0x600   : > { %7442 = vmatpush1.bf16.xpose.msra.mxu0 %v8687_v9  ;;  %7483 = vmatpush1.bf16.xpose.msra.mxu1 %v8689_v62  ;;  %v1058_v9 = vld [vmem:[%s9608_s26 + $0x16b8] sm:$0xff] }
 0x601   : > { %7443 = vmatprep.subr.bf16.mxu0 %v8672_v10  ;;  %7484 = vmatprep.subr.bf16.mxu1 %v8674_v63  ;;  %v1066_v62 = vld [vmem:[%s9608_s26 + $0x16f8] sm:$0xff]  ;;  %v8863_v63 = vcombine.low %v1073_v42, %v1081_v43 }
 0x602   : > { %v8849_v14 = vcombine.low %v1058_v9, %v1066_v62 }
 0x608   : > { %7444 = vmatpush1.bf16.xpose.msra.mxu0 %v8671_v59  ;;  %7485 = vmatpush1.bf16.xpose.msra.mxu1 %v8673_v60  ;;  %v1041_v59 = vld [vmem:[%s9608_s26 + $0x1630] sm:$0xff] }
 0x609   : > { %7445 = vmatprep.subr.bf16.mxu0 %v8656_v1  ;;  %7486 = vmatprep.subr.bf16.mxu1 %v8658_v61  ;;  %v1049_v60 = vld [vmem:[%s9608_s26 + $0x1670] sm:$0xff]  ;;  %v1042_v1 = vld [vmem:[%s9608_s26 + $0x1638] sm:$0xff] }
 0x60a   : > { %v1050_v61 = vld [vmem:[%s9608_s26 + $0x1678] sm:$0xff]  ;;  %v8832_v15 = vcombine.high %v1041_v59, %v1049_v60  ;;  %v8831_v47 = vcombine.low %v1041_v59, %v1049_v60 }
 0x60b   : > { %v8834_v16 = vcombine.high %v1042_v1, %v1050_v61  ;;  %v8833_v34 = vcombine.low %v1042_v1, %v1050_v61  ;;  %v1195_v1 = vld [vmem:[%s9608_s26 + $0x1b00] sm:$0xff] }
 0x60c   : > { %v1203_v61 = vld [vmem:[%s9608_s26 + $0x1b40] sm:$0xff] }
 0x610   : > { %7446 = vmatpush1.bf16.xpose.msra.mxu0 %v8655_v22  ;;  %7487 = vmatpush1.bf16.xpose.msra.mxu1 %v8657_v26  ;;  %v1025_v22 = vld [vmem:[%s9608_s26 + $0x15b0] sm:$0xff] }
 0x611   : > { %7447 = vmatprep.subr.bf16.mxu0 %v8640_v29  ;;  %7488 = vmatprep.subr.bf16.mxu1 %v8642_v30  ;;  %v1033_v26 = vld [vmem:[%s9608_s26 + $0x15f0] sm:$0xff]  ;;  %v1026_v29 = vld [vmem:[%s9608_s26 + $0x15b8] sm:$0xff] }
 0x612   : > { %v1034_v30 = vld [vmem:[%s9608_s26 + $0x15f8] sm:$0xff]  ;;  %v8816_v24 = vcombine.high %v1025_v22, %v1033_v26  ;;  %v8815_v42 = vcombine.low %v1025_v22, %v1033_v26  ;;  %v8980_v22 = vcombine.high %v1195_v1, %v1203_v61 }
 0x613   : > { %v8818_v37 = vcombine.high %v1026_v29, %v1034_v30  ;;  %v8817_v43 = vcombine.low %v1026_v29, %v1034_v30  ;;  %v1179_v29 = vld [vmem:[%s9608_s26 + $0x1a80] sm:$0xff] }
 0x614   : > { %v1187_v30 = vld [vmem:[%s9608_s26 + $0x1ac0] sm:$0xff] }
 0x618   : > { %7448 = vmatpush1.bf16.xpose.msra.mxu0 %v8639_v32  ;;  %7489 = vmatpush1.bf16.xpose.msra.mxu1 %v8641_v38  ;;  %v1009_v32 = vld [vmem:[%s9608_s26 + $0x1530] sm:$0xff] }
 0x619   : > { %7449 = vmatprep.subr.bf16.mxu0 %v8880_v39  ;;  %7490 = vmatprep.subr.bf16.mxu1 %v8882_v40  ;;  %v1017_v38 = vld [vmem:[%s9608_s26 + $0x1570] sm:$0xff]  ;;  %v1010_v39 = vld [vmem:[%s9608_s26 + $0x1538] sm:$0xff] }
 0x61a   : > { %v1018_v40 = vld [vmem:[%s9608_s26 + $0x1578] sm:$0xff]  ;;  %v8800_v46 = vcombine.high %v1009_v32, %v1017_v38 }
 0x61b   : > { %v8802_v48 = vcombine.high %v1010_v39, %v1018_v40 }
 0x61f   : > { %v7303_v53 = vpop.f32.mrf.mxu0  ;;  %v7344_v55 = vpop.f32.mrf.mxu1 }
 0x620   : > { %v7304_v54 = vadd.f32 %v7303_v53, %v10497_v57  ;;  %7450 = vmatpush2.bf16.xpose.msra.mxu0 %v8879_v49  ;;  %7491 = vmatpush2.bf16.xpose.msra.mxu1 %v8881_v50  ;;  %v993_v49 = vld [vmem:[%s9608_s26 + $0x14b0] sm:$0xff]  ;;  %v8799_v53 = vcombine.low %v1009_v32, %v1017_v38  ;;  %v8964_v32 = vcombine.high %v1179_v29, %v1187_v30 }
 0x621   : > { %v7305_v56 = vpop.f32.mrf.mxu0  ;;  %7451 = vmatprep.subr.bf16.mxu0 %v8864_v23  ;;  %v7346_v2 = vpop.f32.mrf.mxu1  ;;  %7492 = vmatprep.subr.bf16.mxu1 %v8866_v52  ;;  %v1001_v50 = vld [vmem:[%s9608_s26 + $0x14f0] sm:$0xff]  ;;  %v994_v23 = vld [vmem:[%s9608_s26 + $0x14b8] sm:$0xff] }
 0x622   : > { %v10570_v58 = vadd.f32 %v7344_v55, %v7304_v54  ;;  %v7306_v0 = vadd.f32 %v7305_v56, %v10501_v5  ;;  %v8850_v5 = vcombine.high %v1058_v9, %v1066_v62  ;;  %v1002_v52 = vld [vmem:[%s9608_s26 + $0x14f8] sm:$0xff]  ;;  %v8801_v54 = vcombine.low %v1010_v39, %v1018_v40  ;;  %v1163_v39 = vld [vmem:[%s9608_s26 + $0x1a00] sm:$0xff] }
 0x623   : > { %v7307_v8 = vpop.f32.mrf.mxu0  ;;  %v7348_v10 = vpop.f32.mrf.mxu1  ;;  %v8784_v55 = vcombine.high %v993_v49, %v1001_v50  ;;  %v8786_v56 = vcombine.high %v994_v23, %v1002_v52  ;;  %v8785_v9 = vcombine.low %v994_v23, %v1002_v52  ;;  %v1171_v40 = vld [vmem:[%s9608_s26 + $0x1a40] sm:$0xff]  ;;  %v1148_v23 = vld [vmem:[%s9608_s26 + $0x1988] sm:$0xff] }
 0x624   : > { %v10577_v57 = vadd.f32 %v7346_v2, %v7306_v0  ;;  %v977_v0 = vld [vmem:[%s9608_s26 + $0x1430] sm:$0xff]  ;;  %v8783_v8 = vcombine.low %v993_v49, %v1001_v50  ;;  %v8770_v10 = vcombine.high %v978_v4, %v986_v7  ;;  %v1147_v49 = vld [vmem:[%s9608_s26 + $0x1980] sm:$0xff]  ;;  %v1156_v52 = vld [vmem:[%s9608_s26 + $0x19c8] sm:$0xff] }
 0x625   : > { %v7308_v11 = vpop.f32.mrf.mxu0  ;;  %v7349_v3 = vpop.f32.mrf.mxu1  ;;  %v985_v2 = vld [vmem:[%s9608_s26 + $0x1470] sm:$0xff]  ;;  %v1155_v50 = vld [vmem:[%s9608_s26 + $0x19c0] sm:$0xff] }
 0x626   : > { %v8768_v62 = vcombine.high %v977_v0, %v985_v2  ;;  %v1219_v11 = vld [vmem:[%s9608_s26 + $0x1bc0] sm:$0xff]  ;;  %v8767_v3 = vcombine.low %v977_v0, %v985_v2 }
 0x627   : > { %v1131_v0 = vld [vmem:[%s9608_s26 + $0x1900] sm:$0xff] }
 0x628   : > { %7452 = vmatpush2.bf16.xpose.msra.mxu0 %v8863_v63  ;;  %7493 = vmatpush2.bf16.xpose.msra.mxu1 %v8865_v12  ;;  %v1211_v63 = vld [vmem:[%s9608_s26 + $0x1b80] sm:$0xff]  ;;  %v1212_v12 = vld [vmem:[%s9608_s26 + $0x1b88] sm:$0xff] }
 0x629   : > { %7453 = vmatprep.subr.bf16.mxu0 %v8848_v6  ;;  %7494 = vmatprep.subr.bf16.mxu1 %v8850_v5  ;;  %v1220_v6 = vld [vmem:[%s9608_s26 + $0x1bc8] sm:$0xff]  ;;  %v8769_v5 = vcombine.low %v978_v4, %v986_v7  ;;  %v8996_v59 = vcombine.high %v1211_v63, %v1219_v11  ;;  %v1139_v2 = vld [vmem:[%s9608_s26 + $0x1940] sm:$0xff] }
 0x62a   : > { %v8998_v60 = vcombine.high %v1212_v12, %v1220_v6  ;;  %v1132_v4 = vld [vmem:[%s9608_s26 + $0x1908] sm:$0xff] }
 0x62b   : > { %v1140_v7 = vld [vmem:[%s9608_s26 + $0x1948] sm:$0xff] }
 0x630   : > { %7454 = vmatpush2.bf16.xpose.msra.mxu0 %v8847_v13  ;;  %7495 = vmatpush2.bf16.xpose.msra.mxu1 %v8849_v14  ;;  %v1196_v13 = vld [vmem:[%s9608_s26 + $0x1b08] sm:$0xff] }
 0x631   : > { %7455 = vmatprep.subr.bf16.mxu0 %v8832_v15  ;;  %7496 = vmatprep.subr.bf16.mxu1 %v8834_v16  ;;  %v1204_v14 = vld [vmem:[%s9608_s26 + $0x1b48] sm:$0xff]  ;;  %v8995_v15 = vcombine.low %v1211_v63, %v1219_v11  ;;  %v8997_v16 = vcombine.low %v1212_v12, %v1220_v6  ;;  %v1115_v63 = vld [vmem:[%s9608_s26 + $0x1880] sm:$0xff] }
 0x632   : > { %v8982_v26 = vcombine.high %v1196_v13, %v1204_v14  ;;  %v1123_v11 = vld [vmem:[%s9608_s26 + $0x18c0] sm:$0xff]  ;;  %v1116_v12 = vld [vmem:[%s9608_s26 + $0x1888] sm:$0xff] }
 0x633   : > { %v1124_v6 = vld [vmem:[%s9608_s26 + $0x18c8] sm:$0xff] }
 0x638   : > { %7456 = vmatpush2.bf16.xpose.msra.mxu0 %v8831_v47  ;;  %7497 = vmatpush2.bf16.xpose.msra.mxu1 %v8833_v34  ;;  %v1180_v47 = vld [vmem:[%s9608_s26 + $0x1a88] sm:$0xff] }
 0x639   : > { %7457 = vmatprep.subr.bf16.mxu0 %v8816_v24  ;;  %7498 = vmatprep.subr.bf16.mxu1 %v8818_v37  ;;  %v1188_v34 = vld [vmem:[%s9608_s26 + $0x1ac8] sm:$0xff]  ;;  %v8979_v24 = vcombine.low %v1195_v1, %v1203_v61  ;;  %v8981_v37 = vcombine.low %v1196_v13, %v1204_v14  ;;  %v1099_v1 = vld [vmem:[%s9608_s26 + $0x1800] sm:$0xff] }
 0x63a   : > { %v8966_v38 = vcombine.high %v1180_v47, %v1188_v34  ;;  %v1107_v61 = vld [vmem:[%s9608_s26 + $0x1840] sm:$0xff]  ;;  %v1100_v13 = vld [vmem:[%s9608_s26 + $0x1808] sm:$0xff] }
 0x63b   : > { %v1108_v14 = vld [vmem:[%s9608_s26 + $0x1848] sm:$0xff] }
 0x640   : > { %7458 = vmatpush2.bf16.xpose.msra.mxu0 %v8815_v42  ;;  %7499 = vmatpush2.bf16.xpose.msra.mxu1 %v8817_v43  ;;  %v1164_v42 = vld [vmem:[%s9608_s26 + $0x1a08] sm:$0xff]  ;;  %v8963_v43 = vcombine.low %v1179_v29, %v1187_v30  ;;  %v1339_v29 = vld [vmem:[%s9608_s26 + $0x1f80] sm:$0xff] }
 0x641   : > { %7459 = vmatprep.subr.bf16.mxu0 %v8800_v46  ;;  %7500 = vmatprep.subr.bf16.mxu1 %v8802_v48  ;;  %v8965_v46 = vcombine.low %v1180_v47, %v1188_v34  ;;  %v8948_v48 = vcombine.high %v1163_v39, %v1171_v40  ;;  %v1347_v30 = vld [vmem:[%s9608_s26 + $0x1fc0] sm:$0xff]  ;;  %v1340_v47 = vld [vmem:[%s9608_s26 + $0x1f88] sm:$0xff] }
 0x642   : > { %v1348_v34 = vld [vmem:[%s9608_s26 + $0x1fc8] sm:$0xff] }
 0x648   : > { %7460 = vmatpush2.bf16.xpose.msra.mxu0 %v8799_v53  ;;  %7501 = vmatpush2.bf16.xpose.msra.mxu1 %v8801_v54  ;;  %v8947_v53 = vcombine.low %v1163_v39, %v1171_v40  ;;  %v1323_v39 = vld [vmem:[%s9608_s26 + $0x1f00] sm:$0xff] }
 0x649   : > { %7461 = vmatprep.subr.bf16.mxu0 %v8784_v55  ;;  %7502 = vmatprep.subr.bf16.mxu1 %v8786_v56  ;;  %v8932_v55 = vcombine.high %v1147_v49, %v1155_v50  ;;  %v8934_v56 = vcombine.high %v1148_v23, %v1156_v52  ;;  %v1331_v40 = vld [vmem:[%s9608_s26 + $0x1f40] sm:$0xff] }
 0x650   : > { %7462 = vmatpush2.bf16.xpose.msra.mxu0 %v8783_v8  ;;  %7503 = vmatpush2.bf16.xpose.msra.mxu1 %v8785_v9  ;;  %v8931_v8 = vcombine.low %v1147_v49, %v1155_v50  ;;  %v8933_v9 = vcombine.low %v1148_v23, %v1156_v52 }
 0x651   : > { %7463 = vmatprep.subr.bf16.mxu0 %v8768_v62  ;;  %7504 = vmatprep.subr.bf16.mxu1 %v8770_v10  ;;  %v8916_v62 = vcombine.high %v1131_v0, %v1139_v2  ;;  %v8918_v10 = vcombine.high %v1132_v4, %v1140_v7 }
 0x658   : > { %7464 = vmatpush2.bf16.xpose.msra.mxu0 %v8767_v3  ;;  %7505 = vmatpush2.bf16.xpose.msra.mxu1 %v8769_v5  ;;  %v8915_v3 = vcombine.low %v1131_v0, %v1139_v2  ;;  %v8917_v5 = vcombine.low %v1132_v4, %v1140_v7  ;;  %v1315_v0 = vld [vmem:[%s9608_s26 + $0x1ec0] sm:$0xff]  ;;  %v1308_v4 = vld [vmem:[%s9608_s26 + $0x1e88] sm:$0xff] }
 0x659   : > { %7515 = vmatprep.subr.bf16.mxu0 %v8996_v59  ;;  %7556 = vmatprep.subr.bf16.mxu1 %v8998_v60  ;;  %v8900_v59 = vcombine.high %v1115_v63, %v1123_v11  ;;  %v8902_v60 = vcombine.high %v1116_v12, %v1124_v6  ;;  %v1316_v7 = vld [vmem:[%s9608_s26 + $0x1ec8] sm:$0xff] }
 0x65f   : > { %7466 = vmatmul.mubr.bf16.vlgmr.msra.gmra.mxu0 %v10011_v19  ;;  %7507 = vmatmul.mubr.bf16.vlgmr.msra.gmra.mxu1 %v10017_v28 }
 0x660   : > { %7516 = vmatpush1.bf16.xpose.msra.mxu0 %v8995_v15  ;;  %7557 = vmatpush1.bf16.xpose.msra.mxu1 %v8997_v16  ;;  %v8899_v15 = vcombine.low %v1115_v63, %v1123_v11  ;;  %v8901_v16 = vcombine.low %v1116_v12, %v1124_v6  ;;  %v1291_v12 = vld [vmem:[%s9608_s26 + $0x1e00] sm:$0xff] }
 0x661   : > { %7517 = vmatprep.subr.bf16.mxu0 %v8980_v22  ;;  %7558 = vmatprep.subr.bf16.mxu1 %v8982_v26  ;;  %v8884_v22 = vcombine.high %v1099_v1, %v1107_v61  ;;  %v8886_v26 = vcombine.high %v1100_v13, %v1108_v14  ;;  %v1299_v6 = vld [vmem:[%s9608_s26 + $0x1e40] sm:$0xff] }
 0x662   : > { %7547 = vmatprep.mubr.bf16.mxu0 %v9669_v35  ;;  %7588 = vmatprep.mubr.bf16.mxu1 %v9673_v36  ;;  %v1172_v35 = vld [vmem:[%s9608_s26 + $0x1a48] sm:$0xff] }
 0x663   : > { %v8950_v36 = vcombine.high %v1164_v42, %v1172_v35  ;;  %v8949_v54 = vcombine.low %v1164_v42, %v1172_v35  ;;  %v1324_v42 = vld [vmem:[%s9608_s26 + $0x1f08] sm:$0xff] }
 0x664   : > { %v1332_v35 = vld [vmem:[%s9608_s26 + $0x1f48] sm:$0xff] }
 0x668   : > { %7518 = vmatpush1.bf16.xpose.msra.mxu0 %v8979_v24  ;;  %7559 = vmatpush1.bf16.xpose.msra.mxu1 %v8981_v37  ;;  %v8883_v24 = vcombine.low %v1099_v1, %v1107_v61  ;;  %v8885_v37 = vcombine.low %v1100_v13, %v1108_v14  ;;  %v9076_v1 = vcombine.high %v1291_v12, %v1299_v6  ;;  %v1275_v13 = vld [vmem:[%s9608_s26 + $0x1d80] sm:$0xff] }
 0x669   : > { %7519 = vmatprep.subr.bf16.mxu0 %v8964_v32  ;;  %7560 = vmatprep.subr.bf16.mxu1 %v8966_v38  ;;  %v9124_v32 = vcombine.high %v1339_v29, %v1347_v30  ;;  %v9126_v38 = vcombine.high %v1340_v47, %v1348_v34  ;;  %v1283_v14 = vld [vmem:[%s9608_s26 + $0x1dc0] sm:$0xff] }
 0x670   : > { %7520 = vmatpush1.bf16.xpose.msra.mxu0 %v8963_v43  ;;  %7561 = vmatpush1.bf16.xpose.msra.mxu1 %v8965_v46  ;;  %v9123_v43 = vcombine.low %v1339_v29, %v1347_v30  ;;  %v9125_v46 = vcombine.low %v1340_v47, %v1348_v34  ;;  %v9060_v29 = vcombine.high %v1275_v13, %v1283_v14  ;;  %v1259_v47 = vld [vmem:[%s9608_s26 + $0x1d00] sm:$0xff] }
 0x671   : > { %7521 = vmatprep.subr.bf16.mxu0 %v8948_v48  ;;  %7562 = vmatprep.subr.bf16.mxu1 %v8950_v36  ;;  %v9108_v48 = vcombine.high %v1323_v39, %v1331_v40  ;;  %v9110_v36 = vcombine.high %v1324_v42, %v1332_v35  ;;  %v1267_v34 = vld [vmem:[%s9608_s26 + $0x1d40] sm:$0xff] }
 0x678   : > { %7522 = vmatpush1.bf16.xpose.msra.mxu0 %v8947_v53  ;;  %7563 = vmatpush1.bf16.xpose.msra.mxu1 %v8949_v54 }
 0x679   : > { %7523 = vmatprep.subr.bf16.mxu0 %v8932_v55  ;;  %7564 = vmatprep.subr.bf16.mxu1 %v8934_v56  ;;  %v1307_v56 = vld [vmem:[%s9608_s26 + $0x1e80] sm:$0xff] }
 0x67a   : > { %v9092_v63 = vcombine.high %v1307_v56, %v1315_v0 }
 0x680   : > { %7524 = vmatpush1.bf16.xpose.msra.mxu0 %v8931_v8  ;;  %7565 = vmatpush1.bf16.xpose.msra.mxu1 %v8933_v9  ;;  %v9107_v9 = vcombine.low %v1323_v39, %v1331_v40  ;;  %v9044_v39 = vcombine.high %v1259_v47, %v1267_v34 }
 0x681   : > { %7525 = vmatprep.subr.bf16.mxu0 %v8916_v62  ;;  %7566 = vmatprep.subr.bf16.mxu1 %v8918_v10  ;;  %v9109_v10 = vcombine.low %v1324_v42, %v1332_v35  ;;  %v1243_v42 = vld [vmem:[%s9608_s26 + $0x1c80] sm:$0xff] }
 0x682   : > { %v1251_v35 = vld [vmem:[%s9608_s26 + $0x1cc0] sm:$0xff] }
 0x688   : > { %7526 = vmatpush1.bf16.xpose.msra.mxu0 %v8915_v3  ;;  %7567 = vmatpush1.bf16.xpose.msra.mxu1 %v8917_v5  ;;  %v1292_v3 = vld [vmem:[%s9608_s26 + $0x1e08] sm:$0xff] }
 0x689   : > { %7527 = vmatprep.subr.bf16.mxu0 %v8900_v59  ;;  %7568 = vmatprep.subr.bf16.mxu1 %v8902_v60  ;;  %v1300_v5 = vld [vmem:[%s9608_s26 + $0x1e48] sm:$0xff]  ;;  %v9091_v59 = vcombine.low %v1307_v56, %v1315_v0  ;;  %v9093_v60 = vcombine.low %v1308_v4, %v1316_v7  ;;  %v9027_v56 = vcombine.low %v1243_v42, %v1251_v35 }
 0x68a   : > { %v9078_v61 = vcombine.high %v1292_v3, %v1300_v5 }
 0x690   : > { %7528 = vmatpush1.bf16.xpose.msra.mxu0 %v8899_v15  ;;  %7569 = vmatpush1.bf16.xpose.msra.mxu1 %v8901_v16  ;;  %v1276_v15 = vld [vmem:[%s9608_s26 + $0x1d88] sm:$0xff] }
 0x691   : > { %7529 = vmatprep.subr.bf16.mxu0 %v8884_v22  ;;  %7570 = vmatprep.subr.bf16.mxu1 %v8886_v26  ;;  %v1284_v16 = vld [vmem:[%s9608_s26 + $0x1dc8] sm:$0xff]  ;;  %v9075_v22 = vcombine.low %v1291_v12, %v1299_v6  ;;  %v9077_v26 = vcombine.low %v1292_v3, %v1300_v5  ;;  %v1197_v12 = vld [vmem:[%s9608_s26 + $0x1b10] sm:$0xff]  ;;  %v1198_v3 = vld [vmem:[%s9608_s26 + $0x1b18] sm:$0xff] }
 0x692   : > { %v9062_v30 = vcombine.high %v1276_v15, %v1284_v16  ;;  %v1205_v6 = vld [vmem:[%s9608_s26 + $0x1b50] sm:$0xff]  ;;  %v1206_v5 = vld [vmem:[%s9608_s26 + $0x1b58] sm:$0xff] }
 0x698   : > { %7530 = vmatpush1.bf16.xpose.msra.mxu0 %v8883_v24  ;;  %7571 = vmatpush1.bf16.xpose.msra.mxu1 %v8885_v37  ;;  %v1260_v24 = vld [vmem:[%s9608_s26 + $0x1d08] sm:$0xff] }
 0x699   : > { %7531 = vmatprep.subr.bf16.mxu0 %v9124_v32  ;;  %7572 = vmatprep.subr.bf16.mxu1 %v9126_v38  ;;  %v1268_v37 = vld [vmem:[%s9608_s26 + $0x1d48] sm:$0xff]  ;;  %v9059_v32 = vcombine.low %v1275_v13, %v1283_v14  ;;  %v9061_v38 = vcombine.low %v1276_v15, %v1284_v16  ;;  %v1181_v13 = vld [vmem:[%s9608_s26 + $0x1a90] sm:$0xff]  ;;  %v1182_v15 = vld [vmem:[%s9608_s26 + $0x1a98] sm:$0xff] }
 0x69a   : > { %v9046_v40 = vcombine.high %v1260_v24, %v1268_v37  ;;  %v1189_v14 = vld [vmem:[%s9608_s26 + $0x1ad0] sm:$0xff]  ;;  %v1190_v16 = vld [vmem:[%s9608_s26 + $0x1ad8] sm:$0xff] }
 0x69f   : > { %v7385_v49 = vpop.f32.mrf.mxu0  ;;  %v7426_v23 = vpop.f32.mrf.mxu1 }
 0x6a0   : > { %v7386_v50 = vadd.f32 %v7385_v49, %v10570_v58  ;;  %7532 = vmatpush2.bf16.xpose.msra.mxu0 %v9123_v43  ;;  %7573 = vmatpush2.bf16.xpose.msra.mxu1 %v9125_v46  ;;  %v1244_v43 = vld [vmem:[%s9608_s26 + $0x1c88] sm:$0xff]  ;;  %v9028_v49 = vcombine.high %v1243_v42, %v1251_v35 }
 0x6a1   : > { %v7387_v52 = vpop.f32.mrf.mxu0  ;;  %7533 = vmatprep.subr.bf16.mxu0 %v9108_v48  ;;  %v7428_v55 = vpop.f32.mrf.mxu1  ;;  %7574 = vmatprep.subr.bf16.mxu1 %v9110_v36  ;;  %v1252_v46 = vld [vmem:[%s9608_s26 + $0x1cc8] sm:$0xff]  ;;  %v9043_v48 = vcombine.low %v1259_v47, %v1267_v34  ;;  %v9045_v36 = vcombine.low %v1260_v24, %v1268_v37  ;;  %v1166_v47 = vld [vmem:[%s9608_s26 + $0x1a18] sm:$0xff]  ;;  %v8967_v34 = vcombine.low %v1181_v13, %v1189_v14 }
 0x6a2   : > { %v10644_v53 = vadd.f32 %v7426_v23, %v7386_v50  ;;  %v7388_v54 = vadd.f32 %v7387_v52, %v10577_v57  ;;  %v9094_v57 = vcombine.high %v1308_v4, %v1316_v7  ;;  %v9030_v50 = vcombine.high %v1244_v43, %v1252_v46  ;;  %v1227_v23 = vld [vmem:[%s9608_s26 + $0x1c00] sm:$0xff]  ;;  %v1213_v7 = vld [vmem:[%s9608_s26 + $0x1b90] sm:$0xff] }
 0x6a3   : > { %v7389_v2 = vpop.f32.mrf.mxu0  ;;  %v7430_v8 = vpop.f32.mrf.mxu1  ;;  %v1235_v52 = vld [vmem:[%s9608_s26 + $0x1c40] sm:$0xff]  ;;  %v9029_v0 = vcombine.low %v1244_v43, %v1252_v46  ;;  %v8969_v24 = vcombine.low %v1182_v15, %v1190_v16 }
 0x6a4   : > { %v10651_v58 = vadd.f32 %v7428_v55, %v7388_v54  ;;  %v1228_v54 = vld [vmem:[%s9608_s26 + $0x1c08] sm:$0xff]  ;;  %v9012_v2 = vcombine.high %v1227_v23, %v1235_v52  ;;  %v1221_v8 = vld [vmem:[%s9608_s26 + $0x1bd0] sm:$0xff] }
 0x6a5   : > { %v7390_v62 = vpop.f32.mrf.mxu0  ;;  %v7431_v11 = vpop.f32.mrf.mxu1  ;;  %v1236_v55 = vld [vmem:[%s9608_s26 + $0x1c48] sm:$0xff] }
 0x6a6   : > { %v9014_v4 = vcombine.high %v1228_v54, %v1236_v55  ;;  %v1222_v62 = vld [vmem:[%s9608_s26 + $0x1bd8] sm:$0xff]  ;;  %v9000_v11 = vcombine.high %v1213_v7, %v1221_v8 }
 0x6a8   : > { %7534 = vmatpush2.bf16.xpose.msra.mxu0 %v9107_v9  ;;  %7575 = vmatpush2.bf16.xpose.msra.mxu1 %v9109_v10  ;;  %v1214_v9 = vld [vmem:[%s9608_s26 + $0x1b98] sm:$0xff]  ;;  %v9011_v10 = vcombine.low %v1227_v23, %v1235_v52 }
 0x6a9   : > { %7535 = vmatprep.subr.bf16.mxu0 %v9092_v63  ;;  %7576 = vmatprep.subr.bf16.mxu1 %v9094_v57  ;;  %v9013_v63 = vcombine.low %v1228_v54, %v1236_v55  ;;  %v9002_v57 = vcombine.high %v1214_v9, %v1222_v62 }
 0x6b0   : > { %7536 = vmatpush2.bf16.xpose.msra.mxu0 %v9091_v59  ;;  %7577 = vmatpush2.bf16.xpose.msra.mxu1 %v9093_v60  ;;  %v8999_v59 = vcombine.low %v1213_v7, %v1221_v8  ;;  %v9001_v60 = vcombine.low %v1214_v9, %v1222_v62 }
 0x6b1   : > { %7537 = vmatprep.subr.bf16.mxu0 %v9076_v1  ;;  %7578 = vmatprep.subr.bf16.mxu1 %v9078_v61  ;;  %v8984_v1 = vcombine.high %v1197_v12, %v1205_v6  ;;  %v8986_v61 = vcombine.high %v1198_v3, %v1206_v5 }
 0x6b8   : > { %7538 = vmatpush2.bf16.xpose.msra.mxu0 %v9075_v22  ;;  %7579 = vmatpush2.bf16.xpose.msra.mxu1 %v9077_v26  ;;  %v8983_v22 = vcombine.low %v1197_v12, %v1205_v6  ;;  %v8968_v26 = vcombine.high %v1181_v13, %v1189_v14 }
 0x6b9   : > { %7539 = vmatprep.subr.bf16.mxu0 %v9060_v29  ;;  %7580 = vmatprep.subr.bf16.mxu1 %v9062_v30  ;;  %v1165_v29 = vld [vmem:[%s9608_s26 + $0x1a10] sm:$0xff] }
 0x6ba   : > { %v1173_v30 = vld [vmem:[%s9608_s26 + $0x1a50] sm:$0xff] }
 0x6bb   : > { %v8952_v37 = vcombine.high %v1165_v29, %v1173_v30  ;;  %v8951_v42 = vcombine.low %v1165_v29, %v1173_v30 }
 0x6c0   : > { %7540 = vmatpush2.bf16.xpose.msra.mxu0 %v9059_v32  ;;  %7581 = vmatpush2.bf16.xpose.msra.mxu1 %v9061_v38  ;;  %v1149_v32 = vld [vmem:[%s9608_s26 + $0x1990] sm:$0xff] }
 0x6c1   : > { %7541 = vmatprep.subr.bf16.mxu0 %v9044_v39  ;;  %7582 = vmatprep.subr.bf16.mxu1 %v9046_v40  ;;  %v1157_v38 = vld [vmem:[%s9608_s26 + $0x19d0] sm:$0xff]  ;;  %v1150_v39 = vld [vmem:[%s9608_s26 + $0x1998] sm:$0xff] }
 0x6c2   : > { %v1158_v40 = vld [vmem:[%s9608_s26 + $0x19d8] sm:$0xff]  ;;  %v8936_v43 = vcombine.high %v1149_v32, %v1157_v38  ;;  %v8935_v23 = vcombine.low %v1149_v32, %v1157_v38 }
 0x6c3   : > { %v8938_v46 = vcombine.high %v1150_v39, %v1158_v40  ;;  %v8937_v52 = vcombine.low %v1150_v39, %v1158_v40 }
 0x6c8   : > { %7542 = vmatpush2.bf16.xpose.msra.mxu0 %v9043_v48  ;;  %7583 = vmatpush2.bf16.xpose.msra.mxu1 %v9045_v36  ;;  %v1133_v48 = vld [vmem:[%s9608_s26 + $0x1910] sm:$0xff] }
 0x6c9   : > { %7543 = vmatprep.subr.bf16.mxu0 %v9028_v49  ;;  %7584 = vmatprep.subr.bf16.mxu1 %v9030_v50  ;;  %v1141_v36 = vld [vmem:[%s9608_s26 + $0x1950] sm:$0xff]  ;;  %v1134_v49 = vld [vmem:[%s9608_s26 + $0x1918] sm:$0xff] }
 0x6ca   : > { %v1142_v50 = vld [vmem:[%s9608_s26 + $0x1958] sm:$0xff]  ;;  %v8920_v54 = vcombine.high %v1133_v48, %v1141_v36  ;;  %v8919_v7 = vcombine.low %v1133_v48, %v1141_v36 }
 0x6cb   : > { %v8922_v55 = vcombine.high %v1134_v49, %v1142_v50  ;;  %v8921_v8 = vcombine.low %v1134_v49, %v1142_v50  ;;  %v1310_v48 = vld [vmem:[%s9608_s26 + $0x1e98] sm:$0xff] }
 0x6d0   : > { %7544 = vmatpush2.bf16.xpose.msra.mxu0 %v9027_v56  ;;  %7585 = vmatpush2.bf16.xpose.msra.mxu1 %v9029_v0  ;;  %v1117_v56 = vld [vmem:[%s9608_s26 + $0x1890] sm:$0xff] }
 0x6d1   : > { %7545 = vmatprep.subr.bf16.mxu0 %v9012_v2  ;;  %7586 = vmatprep.subr.bf16.mxu1 %v9014_v4  ;;  %v1125_v0 = vld [vmem:[%s9608_s26 + $0x18d0] sm:$0xff]  ;;  %v1118_v2 = vld [vmem:[%s9608_s26 + $0x1898] sm:$0xff] }
 0x6d2   : > { %v1126_v4 = vld [vmem:[%s9608_s26 + $0x18d8] sm:$0xff]  ;;  %v8904_v9 = vcombine.high %v1117_v56, %v1125_v0  ;;  %v8903_v12 = vcombine.low %v1117_v56, %v1125_v0 }
 0x6d3   : > { %v8906_v62 = vcombine.high %v1118_v2, %v1126_v4  ;;  %v8905_v6 = vcombine.low %v1118_v2, %v1126_v4  ;;  %v1293_v2 = vld [vmem:[%s9608_s26 + $0x1e10] sm:$0xff] }
 0x6d4   : > { %v1301_v4 = vld [vmem:[%s9608_s26 + $0x1e50] sm:$0xff] }
 0x6d8   : > { %7546 = vmatpush2.bf16.xpose.msra.mxu0 %v9011_v10  ;;  %7587 = vmatpush2.bf16.xpose.msra.mxu1 %v9013_v63  ;;  %v1101_v10 = vld [vmem:[%s9608_s26 + $0x1810] sm:$0xff] }
 0x6d9   : > { %7597 = vmatprep.subr.bf16.mxu0 %v9000_v11  ;;  %7638 = vmatprep.subr.bf16.mxu1 %v9002_v57  ;;  %v1109_v63 = vld [vmem:[%s9608_s26 + $0x1850] sm:$0xff]  ;;  %v1102_v11 = vld [vmem:[%s9608_s26 + $0x1818] sm:$0xff] }
 0x6da   : > { %v1110_v57 = vld [vmem:[%s9608_s26 + $0x1858] sm:$0xff]  ;;  %v8887_v13 = vcombine.low %v1101_v10, %v1109_v63 }
 0x6db   : > { %v8889_v14 = vcombine.low %v1102_v11, %v1110_v57 }
 0x6df   : > { %7548 = vmatmul.mubr.bf16.vlgmr.msra.gmra.mxu0 %v9731_v17  ;;  %7589 = vmatmul.mubr.bf16.vlgmr.msra.gmra.mxu1 %v9740_v21  ;;  %v8985_v17 = vcombine.low %v1198_v3, %v1206_v5  ;;  %v8970_v21 = vcombine.high %v1182_v15, %v1190_v16  ;;  %v8888_v3 = vcombine.high %v1101_v10, %v1109_v63 }
 0x6e0   : > { %7598 = vmatpush1.bf16.xpose.msra.mxu0 %v8999_v59  ;;  %7639 = vmatpush1.bf16.xpose.msra.mxu1 %v9001_v60  ;;  %v8890_v5 = vcombine.high %v1102_v11, %v1110_v57  ;;  %v1341_v59 = vld [vmem:[%s9608_s26 + $0x1f90] sm:$0xff]  ;;  %v9080_v10 = vcombine.high %v1293_v2, %v1301_v4 }
 0x6e1   : > { %7599 = vmatprep.subr.bf16.mxu0 %v8984_v1  ;;  %7640 = vmatprep.subr.bf16.mxu1 %v8986_v61  ;;  %v1349_v60 = vld [vmem:[%s9608_s26 + $0x1fd0] sm:$0xff]  ;;  %v1342_v1 = vld [vmem:[%s9608_s26 + $0x1f98] sm:$0xff] }
 0x6e2   : > { %7629 = vmatprep.mubr.bf16.mxu0 %v9747_v31  ;;  %7670 = vmatprep.mubr.bf16.mxu1 %v9752_v27  ;;  %v1174_v31 = vld [vmem:[%s9608_s26 + $0x1a58] sm:$0xff]  ;;  %v9128_v15 = vcombine.high %v1341_v59, %v1349_v60  ;;  %v9127_v29 = vcombine.low %v1341_v59, %v1349_v60  ;;  %v1277_v11 = vld [vmem:[%s9608_s26 + $0x1d90] sm:$0xff] }
 0x6e3   : > { %v8954_v27 = vcombine.high %v1166_v47, %v1174_v31  ;;  %v8953_v35 = vcombine.low %v1166_v47, %v1174_v31  ;;  %v1350_v61 = vld [vmem:[%s9608_s26 + $0x1fd8] sm:$0xff]  ;;  %v1285_v57 = vld [vmem:[%s9608_s26 + $0x1dd0] sm:$0xff] }
 0x6e4   : > { %v9130_v16 = vcombine.high %v1342_v1, %v1350_v61  ;;  %v9129_v30 = vcombine.low %v1342_v1, %v1350_v61  ;;  %v9064_v59 = vcombine.high %v1277_v11, %v1285_v57  ;;  %v1261_v1 = vld [vmem:[%s9608_s26 + $0x1d10] sm:$0xff] }
 0x6e5   : > { %v1269_v61 = vld [vmem:[%s9608_s26 + $0x1d50] sm:$0xff] }
 0x6e8   : > { %7600 = vmatpush1.bf16.xpose.msra.mxu0 %v8983_v22  ;;  %7641 = vmatpush1.bf16.xpose.msra.mxu1 %v8985_v17  ;;  %v1325_v22 = vld [vmem:[%s9608_s26 + $0x1f10] sm:$0xff] }
 0x6e9   : > { %7601 = vmatprep.subr.bf16.mxu0 %v8968_v26  ;;  %7642 = vmatprep.subr.bf16.mxu1 %v8970_v21  ;;  %v1333_v17 = vld [vmem:[%s9608_s26 + $0x1f50] sm:$0xff]  ;;  %v1326_v26 = vld [vmem:[%s9608_s26 + $0x1f18] sm:$0xff] }
 0x6ea   : > { %v1334_v21 = vld [vmem:[%s9608_s26 + $0x1f58] sm:$0xff]  ;;  %v9112_v47 = vcombine.high %v1325_v22, %v1333_v17 }
 0x6eb   : > { %v9114_v31 = vcombine.high %v1326_v26, %v1334_v21 }
 0x6f0   : > { %7602 = vmatpush1.bf16.xpose.msra.mxu0 %v8967_v34  ;;  %7643 = vmatpush1.bf16.xpose.msra.mxu1 %v8969_v24 }
 0x6f1   : > { %7603 = vmatprep.subr.bf16.mxu0 %v8952_v37  ;;  %7644 = vmatprep.subr.bf16.mxu1 %v8954_v27  ;;  %v319_v27 = vld [vmem:[%s9632_s29 + $0x20] sm:$0xff] }
 0x6f8   : > { %7604 = vmatpush1.bf16.xpose.msra.mxu0 %v8951_v42  ;;  %7645 = vmatpush1.bf16.xpose.msra.mxu1 %v8953_v35  ;;  %v1309_v42 = vld [vmem:[%s9608_s26 + $0x1e90] sm:$0xff] }
 0x6f9   : > { %7605 = vmatprep.subr.bf16.mxu0 %v8936_v43  ;;  %7646 = vmatprep.subr.bf16.mxu1 %v8938_v46  ;;  %v1317_v35 = vld [vmem:[%s9608_s26 + $0x1ed0] sm:$0xff]  ;;  %v320_v43 = vld [vmem:[%s9632_s29 + $0x28] sm:$0xff] }
 0x700   : > { %7606 = vmatpush1.bf16.xpose.msra.mxu0 %v8935_v23  ;;  %7647 = vmatpush1.bf16.xpose.msra.mxu1 %v8937_v52  ;;  %v9111_v23 = vcombine.low %v1325_v22, %v1333_v17  ;;  %v9048_v22 = vcombine.high %v1261_v1, %v1269_v61 }
 0x701   : > { %7607 = vmatprep.subr.bf16.mxu0 %v8920_v54  ;;  %7648 = vmatprep.subr.bf16.mxu1 %v8922_v55  ;;  %v9096_v54 = vcombine.high %v1309_v42, %v1317_v35 }
 0x708   : > { %7608 = vmatpush1.bf16.xpose.msra.mxu0 %v8919_v7  ;;  %7649 = vmatpush1.bf16.xpose.msra.mxu1 %v8921_v8  ;;  %v1294_v7 = vld [vmem:[%s9608_s26 + $0x1e18] sm:$0xff] }
 0x709   : > { %7609 = vmatprep.subr.bf16.mxu0 %v8904_v9  ;;  %7650 = vmatprep.subr.bf16.mxu1 %v8906_v62  ;;  %v1302_v8 = vld [vmem:[%s9608_s26 + $0x1e58] sm:$0xff]  ;;  %v9095_v9 = vcombine.low %v1309_v42, %v1317_v35 }
 0x70a   : > { %v9082_v63 = vcombine.high %v1294_v7, %v1302_v8 }
 0x710   : > { %7610 = vmatpush1.bf16.xpose.msra.mxu0 %v8903_v12  ;;  %7651 = vmatpush1.bf16.xpose.msra.mxu1 %v8905_v6  ;;  %v1278_v12 = vld [vmem:[%s9608_s26 + $0x1d98] sm:$0xff] }
 0x711   : > { %7611 = vmatprep.subr.bf16.mxu0 %v8888_v3  ;;  %7652 = vmatprep.subr.bf16.mxu1 %v8890_v5  ;;  %v1286_v6 = vld [vmem:[%s9608_s26 + $0x1dd8] sm:$0xff]  ;;  %v9079_v3 = vcombine.low %v1293_v2, %v1301_v4  ;;  %v9081_v5 = vcombine.low %v1294_v7, %v1302_v8  ;;  %v1183_v7 = vld [vmem:[%s9608_s26 + $0x1aa0] sm:$0xff] }
 0x712   : > { %v9066_v60 = vcombine.high %v1278_v12, %v1286_v6  ;;  %v1191_v8 = vld [vmem:[%s9608_s26 + $0x1ae0] sm:$0xff] }
 0x718   : > { %7612 = vmatpush1.bf16.xpose.msra.mxu0 %v8887_v13  ;;  %7653 = vmatpush1.bf16.xpose.msra.mxu1 %v8889_v14  ;;  %v1262_v13 = vld [vmem:[%s9608_s26 + $0x1d18] sm:$0xff] }
 0x719   : > { %7613 = vmatprep.subr.bf16.mxu0 %v9128_v15  ;;  %7654 = vmatprep.subr.bf16.mxu1 %v9130_v16  ;;  %v1270_v14 = vld [vmem:[%s9608_s26 + $0x1d58] sm:$0xff]  ;;  %v9063_v15 = vcombine.low %v1277_v11, %v1285_v57  ;;  %v9065_v16 = vcombine.low %v1278_v12, %v1286_v6  ;;  %v1167_v11 = vld [vmem:[%s9608_s26 + $0x1a20] sm:$0xff]  ;;  %v1168_v12 = vld [vmem:[%s9608_s26 + $0x1a28] sm:$0xff]  ;;  %v8971_v6 = vcombine.low %v1183_v7, %v1191_v8 }
 0x71a   : > { %v9050_v17 = vcombine.high %v1262_v13, %v1270_v14  ;;  %v1175_v57 = vld [vmem:[%s9608_s26 + $0x1a60] sm:$0xff] }
 0x71f   : > { %v7467_v34 = vpop.f32.mrf.mxu0  ;;  %v7508_v37 = vpop.f32.mrf.mxu1 }
 0x720   : > { %v7468_v24 = vadd.f32 %v7467_v34, %v10644_v53  ;;  %7614 = vmatpush2.bf16.xpose.msra.mxu0 %v9127_v29  ;;  %7655 = vmatpush2.bf16.xpose.msra.mxu1 %v9129_v30  ;;  %v1318_v53 = vld [vmem:[%s9608_s26 + $0x1ed8] sm:$0xff] }
 0x721   : > { %v7469_v32 = vpop.f32.mrf.mxu0  ;;  %7615 = vmatprep.subr.bf16.mxu0 %v9112_v47  ;;  %v7510_v40 = vpop.f32.mrf.mxu1  ;;  %7656 = vmatprep.subr.bf16.mxu1 %v9114_v31  ;;  %v9098_v0 = vcombine.high %v1310_v48, %v1318_v53  ;;  %v9097_v62 = vcombine.low %v1310_v48, %v1318_v53  ;;  %v1246_v29 = vld [vmem:[%s9608_s26 + $0x1c98] sm:$0xff]  ;;  %v9047_v47 = vcombine.low %v1261_v1, %v1269_v61  ;;  %v1216_v48 = vld [vmem:[%s9608_s26 + $0x1ba8] sm:$0xff] }
 0x722   : > { %v7509_v38 = vadd.f32 %v7508_v37, %v7468_v24  ;;  %v7470_v39 = vadd.f32 %v7469_v32, %v10651_v58  ;;  %v9113_v58 = vcombine.low %v1326_v26, %v1334_v21  ;;  %v1245_v26 = vld [vmem:[%s9608_s26 + $0x1c90] sm:$0xff]  ;;  %v1254_v30 = vld [vmem:[%s9608_s26 + $0x1cd8] sm:$0xff]  ;;  %v9049_v31 = vcombine.low %v1262_v13, %v1270_v14  ;;  %v1224_v53 = vld [vmem:[%s9608_s26 + $0x1be8] sm:$0xff] }
 0x723   : > { %v7471_v46 = vpop.f32.mrf.mxu0  ;;  %v7512_v50 = vpop.f32.mrf.mxu1  ;;  %v1253_v21 = vld [vmem:[%s9608_s26 + $0x1cd0] sm:$0xff]  ;;  %v9034_v24 = vcombine.high %v1246_v29, %v1254_v30  ;;  %v1230_v32 = vld [vmem:[%s9608_s26 + $0x1c18] sm:$0xff]  ;;  %v1152_v1 = vld [vmem:[%s9608_s26 + $0x19a8] sm:$0xff]  ;;  %v8955_v13 = vcombine.low %v1167_v11, %v1175_v57 }
 0x724   : > { %v7847_v36 = vadd.f32 %v7509_v38, %v319_v27  ;;  %v7511_v49 = vadd.f32 %v7510_v40, %v7470_v39  ;;  %v9032_v34 = vcombine.high %v1245_v26, %v1253_v21  ;;  %v1229_v37 = vld [vmem:[%s9608_s26 + $0x1c10] sm:$0xff]  ;;  %v1238_v38 = vld [vmem:[%s9608_s26 + $0x1c58] sm:$0xff]  ;;  %v9031_v39 = vcombine.low %v1245_v26, %v1253_v21  ;;  %v1223_v46 = vld [vmem:[%s9608_s26 + $0x1be0] sm:$0xff] }
 0x725   : > { %v7472_v52 = vpop.f32.mrf.mxu0  ;;  %v7513_v56 = vpop.f32.mrf.mxu1  ;;  %v1237_v27 = vld [vmem:[%s9608_s26 + $0x1c50] sm:$0xff]  ;;  %v9033_v40 = vcombine.low %v1246_v29, %v1254_v30  ;;  %v9018_v35 = vcombine.high %v1230_v32, %v1238_v38  ;;  %v1160_v61 = vld [vmem:[%s9608_s26 + $0x19e8] sm:$0xff] }
 0x726   : > { %7855 = vst [vmem:[%s9632_s29 + $0x20] sm:$0xff] %v7847_v36  ;;  %v7848_v55 = vadd.f32 %v7511_v49, %v320_v43  ;;  %v9016_v42 = vcombine.high %v1229_v37, %v1237_v27  ;;  %v1215_v43 = vld [vmem:[%s9608_s26 + $0x1ba0] sm:$0xff]  ;;  %v9015_v36 = vcombine.low %v1229_v37, %v1237_v27  ;;  %v9017_v49 = vcombine.low %v1230_v32, %v1238_v38  ;;  %v1136_v26 = vld [vmem:[%s9608_s26 + $0x1928] sm:$0xff] }
 0x727   : > { %v9004_v50 = vcombine.high %v1215_v43, %v1223_v46  ;;  %v1199_v52 = vld [vmem:[%s9608_s26 + $0x1b20] sm:$0xff]  ;;  %v9003_v56 = vcombine.low %v1215_v43, %v1223_v46  ;;  %v1144_v21 = vld [vmem:[%s9608_s26 + $0x1968] sm:$0xff]  ;;  %v8941_v30 = vcombine.low %v1152_v1, %v1160_v61 }
 0x728   : > { %7856 = vst [vmem:[%s9632_s29 + $0x28] sm:$0xff] %v7848_v55  ;;  %7616 = vmatpush2.bf16.xpose.msra.mxu0 %v9111_v23  ;;  %7657 = vmatpush2.bf16.xpose.msra.mxu1 %v9113_v58  ;;  %v9006_v23 = vcombine.high %v1216_v48, %v1224_v53  ;;  %v1207_v58 = vld [vmem:[%s9608_s26 + $0x1b60] sm:$0xff]  ;;  %v1208_v55 = vld [vmem:[%s9608_s26 + $0x1b68] sm:$0xff]  ;;  %v8925_v38 = vcombine.low %v1136_v26, %v1144_v21 }
 0x729   : > { %7617 = vmatprep.subr.bf16.mxu0 %v9096_v54  ;;  %7658 = vmatprep.subr.bf16.mxu1 %v9098_v0  ;;  %v1200_v54 = vld [vmem:[%s9608_s26 + $0x1b28] sm:$0xff]  ;;  %v9005_v0 = vcombine.low %v1216_v48, %v1224_v53  ;;  %v8988_v2 = vcombine.high %v1199_v52, %v1207_v58 }
 0x72a   : > { %v8990_v4 = vcombine.high %v1200_v54, %v1208_v55  ;;  %v1120_v37 = vld [vmem:[%s9608_s26 + $0x18a8] sm:$0xff] }
 0x72b   : > { %v1128_v27 = vld [vmem:[%s9608_s26 + $0x18e8] sm:$0xff] }
 0x72c   : > { %v1104_v43 = vld [vmem:[%s9608_s26 + $0x1828] sm:$0xff]  ;;  %v8909_v53 = vcombine.low %v1120_v37, %v1128_v27 }
 0x72d   : > { %v1112_v46 = vld [vmem:[%s9608_s26 + $0x1868] sm:$0xff] }
 0x730   : > { %7618 = vmatpush2.bf16.xpose.msra.mxu0 %v9095_v9  ;;  %7659 = vmatpush2.bf16.xpose.msra.mxu1 %v9097_v62  ;;  %v1184_v9 = vld [vmem:[%s9608_s26 + $0x1aa8] sm:$0xff] }
 0x731   : > { %7619 = vmatprep.subr.bf16.mxu0 %v9080_v10  ;;  %7660 = vmatprep.subr.bf16.mxu1 %v9082_v63  ;;  %v1192_v62 = vld [vmem:[%s9608_s26 + $0x1ae8] sm:$0xff]  ;;  %v8987_v10 = vcombine.low %v1199_v52, %v1207_v58  ;;  %v8972_v63 = vcombine.high %v1183_v7, %v1191_v8 }
 0x732   : > { %v1344_v52 = vld [vmem:[%s9608_s26 + $0x1fa8] sm:$0xff] }
 0x733   : > { %v1352_v58 = vld [vmem:[%s9608_s26 + $0x1fe8] sm:$0xff] }
 0x734   : > { %v1328_v7 = vld [vmem:[%s9608_s26 + $0x1f28] sm:$0xff] }
 0x735   : > { %v1336_v8 = vld [vmem:[%s9608_s26 + $0x1f68] sm:$0xff] }
 0x738   : > { %7620 = vmatpush2.bf16.xpose.msra.mxu0 %v9079_v3  ;;  %7661 = vmatpush2.bf16.xpose.msra.mxu1 %v9081_v5  ;;  %v8973_v3 = vcombine.low %v1184_v9, %v1192_v62  ;;  %v8956_v5 = vcombine.high %v1167_v11, %v1175_v57 }
 0x739   : > { %7621 = vmatprep.subr.bf16.mxu0 %v9064_v59  ;;  %7662 = vmatprep.subr.bf16.mxu1 %v9066_v60  ;;  %v1151_v59 = vld [vmem:[%s9608_s26 + $0x19a0] sm:$0xff] }
 0x73a   : > { %v1159_v60 = vld [vmem:[%s9608_s26 + $0x19e0] sm:$0xff] }
 0x73b   : > { %v8939_v29 = vcombine.low %v1151_v59, %v1159_v60 }
 0x740   : > { %7622 = vmatpush2.bf16.xpose.msra.mxu0 %v9063_v15  ;;  %7663 = vmatpush2.bf16.xpose.msra.mxu1 %v9065_v16  ;;  %v8940_v15 = vcombine.high %v1151_v59, %v1159_v60  ;;  %v8942_v16 = vcombine.high %v1152_v1, %v1160_v61  ;;  %v1320_v59 = vld [vmem:[%s9608_s26 + $0x1ee8] sm:$0xff] }
 0x741   : > { %7623 = vmatprep.subr.bf16.mxu0 %v9048_v22  ;;  %7664 = vmatprep.subr.bf16.mxu1 %v9050_v17  ;;  %v1135_v22 = vld [vmem:[%s9608_s26 + $0x1920] sm:$0xff] }
 0x742   : > { %v1143_v17 = vld [vmem:[%s9608_s26 + $0x1960] sm:$0xff] }
 0x743   : > { %v8923_v32 = vcombine.low %v1135_v22, %v1143_v17 }
 0x748   : > { %7624 = vmatpush2.bf16.xpose.msra.mxu0 %v9047_v47  ;;  %7665 = vmatpush2.bf16.xpose.msra.mxu1 %v9049_v31  ;;  %v8924_v47 = vcombine.high %v1135_v22, %v1143_v17  ;;  %v8926_v31 = vcombine.high %v1136_v26, %v1144_v21  ;;  %v1295_v22 = vld [vmem:[%s9608_s26 + $0x1e20] sm:$0xff]  ;;  %v1296_v26 = vld [vmem:[%s9608_s26 + $0x1e28] sm:$0xff] }
 0x749   : > { %7625 = vmatprep.subr.bf16.mxu0 %v9032_v34  ;;  %7666 = vmatprep.subr.bf16.mxu1 %v9034_v24  ;;  %v1119_v34 = vld [vmem:[%s9608_s26 + $0x18a0] sm:$0xff]  ;;  %v1304_v21 = vld [vmem:[%s9608_s26 + $0x1e68] sm:$0xff] }
 0x74a   : > { %v1127_v24 = vld [vmem:[%s9608_s26 + $0x18e0] sm:$0xff] }
 0x74b   : > { %v8907_v48 = vcombine.low %v1119_v34, %v1127_v24  ;;  %v1303_v17 = vld [vmem:[%s9608_s26 + $0x1e60] sm:$0xff] }
 0x750   : > { %7626 = vmatpush2.bf16.xpose.msra.mxu0 %v9031_v39  ;;  %7667 = vmatpush2.bf16.xpose.msra.mxu1 %v9033_v40  ;;  %v8908_v39 = vcombine.high %v1119_v34, %v1127_v24  ;;  %v8910_v40 = vcombine.high %v1120_v37, %v1128_v27  ;;  %v1279_v34 = vld [vmem:[%s9608_s26 + $0x1da0] sm:$0xff]  ;;  %v1280_v37 = vld [vmem:[%s9608_s26 + $0x1da8] sm:$0xff] }
 0x751   : > { %7627 = vmatprep.subr.bf16.mxu0 %v9016_v42  ;;  %7668 = vmatprep.subr.bf16.mxu1 %v9018_v35  ;;  %v1103_v42 = vld [vmem:[%s9608_s26 + $0x1820] sm:$0xff]  ;;  %v1288_v27 = vld [vmem:[%s9608_s26 + $0x1de8] sm:$0xff] }
 0x752   : > { %v1111_v35 = vld [vmem:[%s9608_s26 + $0x1860] sm:$0xff] }
 0x753   : > { %v1287_v24 = vld [vmem:[%s9608_s26 + $0x1de0] sm:$0xff] }
 0x758   : > { %7628 = vmatpush2.bf16.xpose.msra.mxu0 %v9015_v36  ;;  %7669 = vmatpush2.bf16.xpose.msra.mxu1 %v9017_v49  ;;  %v8892_v36 = vcombine.high %v1103_v42, %v1111_v35  ;;  %v8894_v49 = vcombine.high %v1104_v43, %v1112_v46 }
 0x759   : > { %7679 = vmatprep.subr.bf16.mxu0 %v9004_v50  ;;  %7720 = vmatprep.subr.bf16.mxu1 %v9006_v23  ;;  %v1343_v50 = vld [vmem:[%s9608_s26 + $0x1fa0] sm:$0xff] }
 0x75a   : > { %v1351_v23 = vld [vmem:[%s9608_s26 + $0x1fe0] sm:$0xff] }
 0x75f   : > { %7630 = vmatmul.mubr.bf16.vlgmr.msra.gmra.mxu0 %v9821_v41  ;;  %7671 = vmatmul.mubr.bf16.vlgmr.msra.gmra.mxu1 %v9830_v45  ;;  %v8989_v41 = vcombine.low %v1200_v54, %v1208_v55  ;;  %v8974_v45 = vcombine.high %v1184_v9, %v1192_v62  ;;  %v8891_v54 = vcombine.low %v1103_v42, %v1111_v35  ;;  %v1263_v42 = vld [vmem:[%s9608_s26 + $0x1d20] sm:$0xff] }
 0x760   : > { %7680 = vmatpush1.bf16.xpose.msra.mxu0 %v9003_v56  ;;  %7721 = vmatpush1.bf16.xpose.msra.mxu1 %v9005_v0  ;;  %v8893_v55 = vcombine.low %v1104_v43, %v1112_v46  ;;  %v9132_v56 = vcombine.high %v1343_v50, %v1351_v23  ;;  %v9134_v0 = vcombine.high %v1344_v52, %v1352_v58  ;;  %v1271_v35 = vld [vmem:[%s9608_s26 + $0x1d60] sm:$0xff]  ;;  %v1264_v43 = vld [vmem:[%s9608_s26 + $0x1d28] sm:$0xff] }
 0x761   : > { %7681 = vmatprep.subr.bf16.mxu0 %v8988_v2  ;;  %7722 = vmatprep.subr.bf16.mxu1 %v8990_v4  ;;  %v1327_v2 = vld [vmem:[%s9608_s26 + $0x1f20] sm:$0xff]  ;;  %v9131_v9 = vcombine.low %v1343_v50, %v1351_v23  ;;  %v9133_v62 = vcombine.low %v1344_v52, %v1352_v58  ;;  %v1272_v46 = vld [vmem:[%s9608_s26 + $0x1d68] sm:$0xff] }
 0x762   : > { %7711 = vmatprep.mubr.bf16.mxu0 %v9837_v20  ;;  %7752 = vmatprep.mubr.bf16.mxu1 %v9842_v51  ;;  %v1176_v20 = vld [vmem:[%s9608_s26 + $0x1a68] sm:$0xff]  ;;  %v1335_v4 = vld [vmem:[%s9608_s26 + $0x1f60] sm:$0xff] }
 0x763   : > { %v8958_v51 = vcombine.high %v1168_v12, %v1176_v20  ;;  %v8957_v14 = vcombine.low %v1168_v12, %v1176_v20  ;;  %v1311_v20 = vld [vmem:[%s9608_s26 + $0x1ea0] sm:$0xff]  ;;  %v9115_v1 = vcombine.low %v1327_v2, %v1335_v4  ;;  %v1248_v52 = vld [vmem:[%s9608_s26 + $0x1ca8] sm:$0xff] }
 0x764   : > { %v1247_v50 = vld [vmem:[%s9608_s26 + $0x1ca0] sm:$0xff]  ;;  %v1256_v58 = vld [vmem:[%s9608_s26 + $0x1ce8] sm:$0xff] }
 0x765   : > { %v1255_v23 = vld [vmem:[%s9608_s26 + $0x1ce0] sm:$0xff] }
 0x768   : > { %7682 = vmatpush1.bf16.xpose.msra.mxu0 %v8987_v10  ;;  %7723 = vmatpush1.bf16.xpose.msra.mxu1 %v8989_v41  ;;  %v9116_v10 = vcombine.high %v1327_v2, %v1335_v4  ;;  %v9118_v41 = vcombine.high %v1328_v7, %v1336_v8  ;;  %v1231_v2 = vld [vmem:[%s9608_s26 + $0x1c20] sm:$0xff] }
 0x769   : > { %7683 = vmatprep.subr.bf16.mxu0 %v8972_v63  ;;  %7724 = vmatprep.subr.bf16.mxu1 %v8974_v45  ;;  %v1239_v4 = vld [vmem:[%s9608_s26 + $0x1c60] sm:$0xff] }
 0x770   : > { %7684 = vmatpush1.bf16.xpose.msra.mxu0 %v8971_v6  ;;  %7725 = vmatpush1.bf16.xpose.msra.mxu1 %v8973_v3  ;;  %v1319_v6 = vld [vmem:[%s9608_s26 + $0x1ee0] sm:$0xff] }
 0x771   : > { %7685 = vmatprep.subr.bf16.mxu0 %v8956_v5  ;;  %7726 = vmatprep.subr.bf16.mxu1 %v8958_v51  ;;  %v1312_v51 = vld [vmem:[%s9608_s26 + $0x1ea8] sm:$0xff] }
 0x778   : > { %7686 = vmatpush1.bf16.xpose.msra.mxu0 %v8955_v13  ;;  %7727 = vmatpush1.bf16.xpose.msra.mxu1 %v8957_v14  ;;  %v9117_v13 = vcombine.low %v1328_v7, %v1336_v8  ;;  %v9100_v14 = vcombine.high %v1311_v20, %v1319_v6  ;;  %v1232_v7 = vld [vmem:[%s9608_s26 + $0x1c28] sm:$0xff] }
 0x779   : > { %7687 = vmatprep.subr.bf16.mxu0 %v8940_v15  ;;  %7728 = vmatprep.subr.bf16.mxu1 %v8942_v16  ;;  %v9102_v16 = vcombine.high %v1312_v51, %v1320_v59  ;;  %v1240_v8 = vld [vmem:[%s9608_s26 + $0x1c68] sm:$0xff] }
 0x780   : > { %7688 = vmatpush1.bf16.xpose.msra.mxu0 %v8939_v29  ;;  %7729 = vmatpush1.bf16.xpose.msra.mxu1 %v8941_v30  ;;  %v9099_v29 = vcombine.low %v1311_v20, %v1319_v6  ;;  %v9101_v30 = vcombine.low %v1312_v51, %v1320_v59  ;;  %v9019_v20 = vcombine.low %v1231_v2, %v1239_v4  ;;  %v1201_v59 = vld [vmem:[%s9608_s26 + $0x1b30] sm:$0xff] }
 0x781   : > { %7689 = vmatprep.subr.bf16.mxu0 %v8924_v47  ;;  %7730 = vmatprep.subr.bf16.mxu1 %v8926_v31  ;;  %v9084_v47 = vcombine.high %v1295_v22, %v1303_v17  ;;  %v9086_v31 = vcombine.high %v1296_v26, %v1304_v21  ;;  %v9021_v6 = vcombine.low %v1232_v7, %v1240_v8 }
 0x788   : > { %7690 = vmatpush1.bf16.xpose.msra.mxu0 %v8923_v32  ;;  %7731 = vmatpush1.bf16.xpose.msra.mxu1 %v8925_v38  ;;  %v9083_v32 = vcombine.low %v1295_v22, %v1303_v17  ;;  %v9085_v38 = vcombine.low %v1296_v26, %v1304_v21  ;;  %v1185_v22 = vld [vmem:[%s9608_s26 + $0x1ab0] sm:$0xff]  ;;  %v1186_v26 = vld [vmem:[%s9608_s26 + $0x1ab8] sm:$0xff] }
 0x789   : > { %7691 = vmatprep.subr.bf16.mxu0 %v8908_v39  ;;  %7732 = vmatprep.subr.bf16.mxu1 %v8910_v40  ;;  %v9068_v39 = vcombine.high %v1279_v34, %v1287_v24  ;;  %v9070_v40 = vcombine.high %v1280_v37, %v1288_v27  ;;  %v1193_v17 = vld [vmem:[%s9608_s26 + $0x1af0] sm:$0xff]  ;;  %v1194_v21 = vld [vmem:[%s9608_s26 + $0x1af8] sm:$0xff] }
 0x790   : > { %7692 = vmatpush1.bf16.xpose.msra.mxu0 %v8907_v48  ;;  %7733 = vmatpush1.bf16.xpose.msra.mxu1 %v8909_v53  ;;  %v9067_v48 = vcombine.low %v1279_v34, %v1287_v24  ;;  %v9069_v53 = vcombine.low %v1280_v37, %v1288_v27  ;;  %v1170_v34 = vld [vmem:[%s9608_s26 + $0x1a38] sm:$0xff]  ;;  %v8975_v24 = vcombine.low %v1185_v22, %v1193_v17 }
 0x791   : > { %7693 = vmatprep.subr.bf16.mxu0 %v8892_v36  ;;  %7734 = vmatprep.subr.bf16.mxu1 %v8894_v49  ;;  %v9052_v36 = vcombine.high %v1263_v42, %v1271_v35  ;;  %v9054_v49 = vcombine.high %v1264_v43, %v1272_v46  ;;  %v8977_v37 = vcombine.low %v1186_v26, %v1194_v21 }
 0x798   : > { %7694 = vmatpush1.bf16.xpose.msra.mxu0 %v8891_v54  ;;  %7735 = vmatpush1.bf16.xpose.msra.mxu1 %v8893_v55  ;;  %v9051_v54 = vcombine.low %v1263_v42, %v1271_v35  ;;  %v9053_v55 = vcombine.low %v1264_v43, %v1272_v46 }
 0x799   : > { %7695 = vmatprep.subr.bf16.mxu0 %v9132_v56  ;;  %7736 = vmatprep.subr.bf16.mxu1 %v9134_v0  ;;  %v9036_v56 = vcombine.high %v1247_v50, %v1255_v23  ;;  %v9038_v0 = vcombine.high %v1248_v52, %v1256_v58 }
 0x79f   : > { %v7549_v63 = vpop.f32.mrf.mxu0  ;;  %v7590_v45 = vpop.f32.mrf.mxu1 }
 0x7a0   : > { %7696 = vmatpush2.bf16.xpose.msra.mxu0 %v9131_v9  ;;  %v10791_v11 = vadd.f32 %v7590_v45, %v7549_v63  ;;  %7737 = vmatpush2.bf16.xpose.msra.mxu1 %v9133_v62  ;;  %v9035_v9 = vcombine.low %v1247_v50, %v1255_v23  ;;  %v9037_v62 = vcombine.low %v1248_v52, %v1256_v58  ;;  %v1217_v63 = vld [vmem:[%s9608_s26 + $0x1bb0] sm:$0xff] }
 0x7a1   : > { %v7551_v57 = vpop.f32.mrf.mxu0  ;;  %7697 = vmatprep.subr.bf16.mxu0 %v9116_v10  ;;  %v7592_v12 = vpop.f32.mrf.mxu1  ;;  %7738 = vmatprep.subr.bf16.mxu1 %v9118_v41  ;;  %v9020_v10 = vcombine.high %v1231_v2, %v1239_v4  ;;  %v9022_v41 = vcombine.high %v1232_v7, %v1240_v8  ;;  %v1225_v45 = vld [vmem:[%s9608_s26 + $0x1bf0] sm:$0xff] }
 0x7a2   : > { %v10795_v3 = vadd.f32 %v7592_v12, %v7551_v57  ;;  %v1218_v57 = vld [vmem:[%s9608_s26 + $0x1bb8] sm:$0xff] }
 0x7a3   : > { %v7553_v5 = vpop.f32.mrf.mxu0  ;;  %v7594_v60 = vpop.f32.mrf.mxu1  ;;  %v1226_v12 = vld [vmem:[%s9608_s26 + $0x1bf8] sm:$0xff] }
 0x7a4   : > { %v9008_v5 = vcombine.high %v1217_v63, %v1225_v45  ;;  %v9010_v51 = vcombine.high %v1218_v57, %v1226_v12  ;;  %v1209_v60 = vld [vmem:[%s9608_s26 + $0x1b70] sm:$0xff] }
 0x7a5   : > { %v7554_v61 = vpop.f32.mrf.mxu0  ;;  %v7595_v15 = vpop.f32.mrf.mxu1 }
 0x7a6   : > { %v1210_v61 = vld [vmem:[%s9608_s26 + $0x1b78] sm:$0xff]  ;;  %v8992_v15 = vcombine.high %v1201_v59, %v1209_v60 }
 0x7a8   : > { %7698 = vmatpush2.bf16.xpose.msra.mxu0 %v9115_v1  ;;  %7739 = vmatpush2.bf16.xpose.msra.mxu1 %v9117_v13  ;;  %v1202_v1 = vld [vmem:[%s9608_s26 + $0x1b38] sm:$0xff]  ;;  %v9007_v13 = vcombine.low %v1217_v63, %v1225_v45 }
 0x7a9   : > { %7699 = vmatprep.subr.bf16.mxu0 %v9100_v14  ;;  %7740 = vmatprep.subr.bf16.mxu1 %v9102_v16  ;;  %v9009_v14 = vcombine.low %v1218_v57, %v1226_v12  ;;  %v8994_v16 = vcombine.high %v1202_v1, %v1210_v61 }
 0x7b0   : > { %7700 = vmatpush2.bf16.xpose.msra.mxu0 %v9099_v29  ;;  %7741 = vmatpush2.bf16.xpose.msra.mxu1 %v9101_v30  ;;  %v8991_v29 = vcombine.low %v1201_v59, %v1209_v60  ;;  %v8976_v30 = vcombine.high %v1185_v22, %v1193_v17 }
 0x7b1   : > { %7701 = vmatprep.subr.bf16.mxu0 %v9084_v47  ;;  %7742 = vmatprep.subr.bf16.mxu1 %v9086_v31  ;;  %v1169_v47 = vld [vmem:[%s9608_s26 + $0x1a30] sm:$0xff] }
 0x7b2   : > { %v1177_v31 = vld [vmem:[%s9608_s26 + $0x1a70] sm:$0xff] }
 0x7b3   : > { %v8960_v27 = vcombine.high %v1169_v47, %v1177_v31  ;;  %v8959_v42 = vcombine.low %v1169_v47, %v1177_v31 }
 0x7b8   : > { %7702 = vmatpush2.bf16.xpose.msra.mxu0 %v9083_v32  ;;  %7743 = vmatpush2.bf16.xpose.msra.mxu1 %v9085_v38  ;;  %v1153_v32 = vld [vmem:[%s9608_s26 + $0x19b0] sm:$0xff] }
 0x7b9   : > { %7703 = vmatprep.subr.bf16.mxu0 %v9068_v39  ;;  %7744 = vmatprep.subr.bf16.mxu1 %v9070_v40  ;;  %v1161_v38 = vld [vmem:[%s9608_s26 + $0x19f0] sm:$0xff]  ;;  %v1154_v39 = vld [vmem:[%s9608_s26 + $0x19b8] sm:$0xff] }
 0x7ba   : > { %v1162_v40 = vld [vmem:[%s9608_s26 + $0x19f8] sm:$0xff]  ;;  %v8944_v43 = vcombine.high %v1153_v32, %v1161_v38  ;;  %v8943_v50 = vcombine.low %v1153_v32, %v1161_v38 }
 0x7bb   : > { %v8946_v46 = vcombine.high %v1154_v39, %v1162_v40  ;;  %v8945_v23 = vcombine.low %v1154_v39, %v1162_v40 }
 0x7c0   : > { %7704 = vmatpush2.bf16.xpose.msra.mxu0 %v9067_v48  ;;  %7745 = vmatpush2.bf16.xpose.msra.mxu1 %v9069_v53  ;;  %v1137_v48 = vld [vmem:[%s9608_s26 + $0x1930] sm:$0xff] }
 0x7c1   : > { %7705 = vmatprep.subr.bf16.mxu0 %v9052_v36  ;;  %7746 = vmatprep.subr.bf16.mxu1 %v9054_v49  ;;  %v1145_v53 = vld [vmem:[%s9608_s26 + $0x1970] sm:$0xff]  ;;  %v1138_v36 = vld [vmem:[%s9608_s26 + $0x1938] sm:$0xff] }
 0x7c2   : > { %v1146_v49 = vld [vmem:[%s9608_s26 + $0x1978] sm:$0xff]  ;;  %v8928_v52 = vcombine.high %v1137_v48, %v1145_v53  ;;  %v8927_v2 = vcombine.low %v1137_v48, %v1145_v53 }
 0x7c3   : > { %v8930_v58 = vcombine.high %v1138_v36, %v1146_v49  ;;  %v8929_v4 = vcombine.low %v1138_v36, %v1146_v49  ;;  %v1298_v48 = vld [vmem:[%s9608_s26 + $0x1e38] sm:$0xff] }
 0x7c4   : > { %v1306_v53 = vld [vmem:[%s9608_s26 + $0x1e78] sm:$0xff] }
 0x7c8   : > { %7706 = vmatpush2.bf16.xpose.msra.mxu0 %v9051_v54  ;;  %7747 = vmatpush2.bf16.xpose.msra.mxu1 %v9053_v55  ;;  %v1121_v54 = vld [vmem:[%s9608_s26 + $0x18b0] sm:$0xff] }
 0x7c9   : > { %7707 = vmatprep.subr.bf16.mxu0 %v9036_v56  ;;  %7748 = vmatprep.subr.bf16.mxu1 %v9038_v0  ;;  %v1129_v55 = vld [vmem:[%s9608_s26 + $0x18f0] sm:$0xff]  ;;  %v1122_v56 = vld [vmem:[%s9608_s26 + $0x18b8] sm:$0xff] }
 0x7ca   : > { %v1130_v0 = vld [vmem:[%s9608_s26 + $0x18f8] sm:$0xff]  ;;  %v8912_v7 = vcombine.high %v1121_v54, %v1129_v55  ;;  %v8911_v63 = vcombine.low %v1121_v54, %v1129_v55 }
 0x7cb   : > { %v8914_v8 = vcombine.high %v1122_v56, %v1130_v0  ;;  %v8913_v45 = vcombine.low %v1122_v56, %v1130_v0  ;;  %v1282_v54 = vld [vmem:[%s9608_s26 + $0x1db8] sm:$0xff]  ;;  %v9089_v0 = vcombine.low %v1298_v48, %v1306_v53 }
 0x7cc   : > { %v1290_v55 = vld [vmem:[%s9608_s26 + $0x1df8] sm:$0xff] }
 0x7d0   : > { %7708 = vmatpush2.bf16.xpose.msra.mxu0 %v9035_v9  ;;  %7749 = vmatpush2.bf16.xpose.msra.mxu1 %v9037_v62  ;;  %v1105_v9 = vld [vmem:[%s9608_s26 + $0x1830] sm:$0xff] }
 0x7d1   : > { %7709 = vmatprep.subr.bf16.mxu0 %v9020_v10  ;;  %7750 = vmatprep.subr.bf16.mxu1 %v9022_v41  ;;  %v1113_v62 = vld [vmem:[%s9608_s26 + $0x1870] sm:$0xff]  ;;  %v1106_v10 = vld [vmem:[%s9608_s26 + $0x1838] sm:$0xff] }
 0x7d2   : > { %v1114_v41 = vld [vmem:[%s9608_s26 + $0x1878] sm:$0xff]  ;;  %v8896_v57 = vcombine.high %v1105_v9, %v1113_v62  ;;  %v8895_v59 = vcombine.low %v1105_v9, %v1113_v62 }
 0x7d3   : > { %v8898_v12 = vcombine.high %v1106_v10, %v1114_v41  ;;  %v8897_v60 = vcombine.low %v1106_v10, %v1114_v41  ;;  %v1266_v9 = vld [vmem:[%s9608_s26 + $0x1d38] sm:$0xff]  ;;  %v9073_v41 = vcombine.low %v1282_v54, %v1290_v55 }
 0x7d4   : > { %v1274_v62 = vld [vmem:[%s9608_s26 + $0x1d78] sm:$0xff] }
 0x7d8   : > { %7710 = vmatpush2.bf16.xpose.msra.mxu0 %v9019_v20  ;;  %7751 = vmatpush2.bf16.xpose.msra.mxu1 %v9021_v6  ;;  %v1345_v20 = vld [vmem:[%s9608_s26 + $0x1fb0] sm:$0xff] }
 0x7d9   : > { %7761 = vmatprep.subr.bf16.mxu0 %v9008_v5  ;;  %7802 = vmatprep.subr.bf16.mxu1 %v9010_v51  ;;  %v1353_v6 = vld [vmem:[%s9608_s26 + $0x1ff0] sm:$0xff]  ;;  %v1346_v5 = vld [vmem:[%s9608_s26 + $0x1fb8] sm:$0xff] }
 0x7da   : > { %v1354_v51 = vld [vmem:[%s9608_s26 + $0x1ff8] sm:$0xff]  ;;  %v9135_v22 = vcombine.low %v1345_v20, %v1353_v6 }
 0x7db   : > { %v9137_v17 = vcombine.low %v1346_v5, %v1354_v51 }
 0x7df   : > { %7712 = vmatmul.mubr.bf16.vlgmr.msra.gmra.mxu0 %v9915_v18  ;;  %7753 = vmatmul.mubr.bf16.vlgmr.msra.gmra.mxu1 %v9924_v25  ;;  %v8993_v18 = vcombine.low %v1202_v1, %v1210_v61  ;;  %v8978_v25 = vcombine.high %v1186_v26, %v1194_v21  ;;  %v9136_v1 = vcombine.high %v1345_v20, %v1353_v6  ;;  %v1250_v20 = vld [vmem:[%s9608_s26 + $0x1cb8] sm:$0xff] }
 0x7e0   : > { %7762 = vmatpush1.bf16.xpose.msra.mxu0 %v9007_v13  ;;  %7803 = vmatpush1.bf16.xpose.msra.mxu1 %v9009_v14  ;;  %v9138_v61 = vcombine.high %v1346_v5, %v1354_v51  ;;  %v1329_v13 = vld [vmem:[%s9608_s26 + $0x1f30] sm:$0xff]  ;;  %v1258_v6 = vld [vmem:[%s9608_s26 + $0x1cf8] sm:$0xff]  ;;  %v9057_v51 = vcombine.low %v1266_v9, %v1274_v62 }
 0x7e1   : > { %7763 = vmatprep.subr.bf16.mxu0 %v8992_v15  ;;  %7804 = vmatprep.subr.bf16.mxu1 %v8994_v16  ;;  %v1337_v14 = vld [vmem:[%s9608_s26 + $0x1f70] sm:$0xff]  ;;  %v1330_v15 = vld [vmem:[%s9608_s26 + $0x1f38] sm:$0xff] }
 0x7e2   : > { %7793 = vmatprep.mubr.bf16.mxu0 %v9931_v44  ;;  %7834 = vmatprep.mubr.bf16.mxu1 %v9936_v33  ;;  %v1178_v44 = vld [vmem:[%s9608_s26 + $0x1a78] sm:$0xff]  ;;  %v9120_v26 = vcombine.high %v1329_v13, %v1337_v14  ;;  %v9119_v38 = vcombine.low %v1329_v13, %v1337_v14 }
 0x7e3   : > { %v8962_v33 = vcombine.high %v1170_v34, %v1178_v44  ;;  %v8961_v35 = vcombine.low %v1170_v34, %v1178_v44  ;;  %v1338_v16 = vld [vmem:[%s9608_s26 + $0x1f78] sm:$0xff]  ;;  %v1313_v44 = vld [vmem:[%s9608_s26 + $0x1eb0] sm:$0xff] }
 0x7e4   : > { %v9122_v21 = vcombine.high %v1330_v15, %v1338_v16  ;;  %v9121_v40 = vcombine.low %v1330_v15, %v1338_v16  ;;  %v1234_v13 = vld [vmem:[%s9608_s26 + $0x1c38] sm:$0xff]  ;;  %v9041_v16 = vcombine.low %v1250_v20, %v1258_v6 }
 0x7e5   : > { %v1242_v14 = vld [vmem:[%s9608_s26 + $0x1c78] sm:$0xff] }
 0x7e8   : > { %7764 = vmatpush1.bf16.xpose.msra.mxu0 %v8991_v29  ;;  %7805 = vmatpush1.bf16.xpose.msra.mxu1 %v8993_v18 }
 0x7e9   : > { %7765 = vmatprep.subr.bf16.mxu0 %v8976_v30  ;;  %7806 = vmatprep.subr.bf16.mxu1 %v8978_v25 }
 0x7f0   : > { %7766 = vmatpush1.bf16.xpose.msra.mxu0 %v8975_v24  ;;  %7807 = vmatpush1.bf16.xpose.msra.mxu1 %v8977_v37  ;;  %v1321_v24 = vld [vmem:[%s9608_s26 + $0x1ef0] sm:$0xff] }
 0x7f1   : > { %7767 = vmatprep.subr.bf16.mxu0 %v8960_v27  ;;  %7808 = vmatprep.subr.bf16.mxu1 %v8962_v33  ;;  %v1314_v27 = vld [vmem:[%s9608_s26 + $0x1eb8] sm:$0xff]  ;;  %v9103_v36 = vcombine.low %v1313_v44, %v1321_v24 }
 0x7f2   : > { %v1322_v33 = vld [vmem:[%s9608_s26 + $0x1ef8] sm:$0xff] }
 0x7f3   : > { %v9105_v49 = vcombine.low %v1314_v27, %v1322_v33 }
 0x7f8   : > { %7768 = vmatpush1.bf16.xpose.msra.mxu0 %v8959_v42  ;;  %7809 = vmatpush1.bf16.xpose.msra.mxu1 %v8961_v35  ;;  %v9104_v42 = vcombine.high %v1313_v44, %v1321_v24 }
 0x7f9   : > { %7769 = vmatprep.subr.bf16.mxu0 %v8944_v43  ;;  %7810 = vmatprep.subr.bf16.mxu1 %v8946_v46  ;;  %v1297_v43 = vld [vmem:[%s9608_s26 + $0x1e30] sm:$0xff] }
 0x7fa   : > { %v1305_v46 = vld [vmem:[%s9608_s26 + $0x1e70] sm:$0xff] }
 0x7fb   : > { %v9087_v56 = vcombine.low %v1297_v43, %v1305_v46 }
 0x800   : > { %7770 = vmatpush1.bf16.xpose.msra.mxu0 %v8943_v50  ;;  %7811 = vmatpush1.bf16.xpose.msra.mxu1 %v8945_v23  ;;  %v9088_v50 = vcombine.high %v1297_v43, %v1305_v46  ;;  %v9090_v23 = vcombine.high %v1298_v48, %v1306_v53 }
 0x801   : > { %7771 = vmatprep.subr.bf16.mxu0 %v8928_v52  ;;  %7812 = vmatprep.subr.bf16.mxu1 %v8930_v58  ;;  %v1281_v52 = vld [vmem:[%s9608_s26 + $0x1db0] sm:$0xff] }
 0x802   : > { %v1289_v58 = vld [vmem:[%s9608_s26 + $0x1df0] sm:$0xff] }
 0x803   : > { %v9071_v10 = vcombine.low %v1281_v52, %v1289_v58 }
 0x808   : > { %7772 = vmatpush1.bf16.xpose.msra.mxu0 %v8927_v2  ;;  %7813 = vmatpush1.bf16.xpose.msra.mxu1 %v8929_v4  ;;  %v9072_v2 = vcombine.high %v1281_v52, %v1289_v58  ;;  %v9074_v4 = vcombine.high %v1282_v54, %v1290_v55 }
 0x809   : > { %7773 = vmatprep.subr.bf16.mxu0 %v8912_v7  ;;  %7814 = vmatprep.subr.bf16.mxu1 %v8914_v8  ;;  %v1265_v7 = vld [vmem:[%s9608_s26 + $0x1d30] sm:$0xff] }
 0x80a   : > { %v1273_v8 = vld [vmem:[%s9608_s26 + $0x1d70] sm:$0xff] }
 0x80b   : > { %v9055_v5 = vcombine.low %v1265_v7, %v1273_v8 }
 0x810   : > { %7774 = vmatpush1.bf16.xpose.msra.mxu0 %v8911_v63  ;;  %7815 = vmatpush1.bf16.xpose.msra.mxu1 %v8913_v45  ;;  %v9056_v63 = vcombine.high %v1265_v7, %v1273_v8  ;;  %v9058_v45 = vcombine.high %v1266_v9, %v1274_v62 }
 0x811   : > { %7775 = vmatprep.subr.bf16.mxu0 %v8896_v57  ;;  %7816 = vmatprep.subr.bf16.mxu1 %v8898_v12  ;;  %v1249_v57 = vld [vmem:[%s9608_s26 + $0x1cb0] sm:$0xff] }
 0x812   : > { %v1257_v12 = vld [vmem:[%s9608_s26 + $0x1cf0] sm:$0xff] }
 0x813   : > { %v9039_v15 = vcombine.low %v1249_v57, %v1257_v12 }
 0x818   : > { %7776 = vmatpush1.bf16.xpose.msra.mxu0 %v8895_v59  ;;  %7817 = vmatpush1.bf16.xpose.msra.mxu1 %v8897_v60  ;;  %v9040_v59 = vcombine.high %v1249_v57, %v1257_v12  ;;  %v9042_v60 = vcombine.high %v1250_v20, %v1258_v6 }
 0x819   : > { %7777 = vmatprep.subr.bf16.mxu0 %v9136_v1  ;;  %7818 = vmatprep.subr.bf16.mxu1 %v9138_v61  ;;  %v1233_v1 = vld [vmem:[%s9608_s26 + $0x1c30] sm:$0xff] }
 0x81a   : > { %v1241_v61 = vld [vmem:[%s9608_s26 + $0x1c70] sm:$0xff] }
 0x81f   : > { %v7631_v29 = vpop.f32.mrf.mxu0  ;;  %v7672_v30 = vpop.f32.mrf.mxu1 }
 0x820   : > { %v7632_v18 = vadd.f32 %v7631_v29, %v10791_v11  ;;  %7778 = vmatpush2.bf16.xpose.msra.mxu0 %v9135_v22  ;;  %7819 = vmatpush2.bf16.xpose.msra.mxu1 %v9137_v17  ;;  %v9024_v22 = vcombine.high %v1233_v1, %v1241_v61  ;;  %v9026_v17 = vcombine.high %v1234_v13, %v1242_v14 }
 0x821   : > { %v7633_v25 = vpop.f32.mrf.mxu0  ;;  %7779 = vmatprep.subr.bf16.mxu0 %v9120_v26  ;;  %v7674_v34 = vpop.f32.mrf.mxu1  ;;  %7820 = vmatprep.subr.bf16.mxu1 %v9122_v21  ;;  %v9023_v26 = vcombine.low %v1233_v1, %v1241_v61  ;;  %v9025_v21 = vcombine.low %v1234_v13, %v1242_v14 }
 0x822   : > { %v10864_v47 = vadd.f32 %v7672_v30, %v7632_v18  ;;  %v7634_v31 = vadd.f32 %v7633_v25, %v10795_v3  ;;  %v9106_v3 = vcombine.high %v1314_v27, %v1322_v33 }
 0x823   : > { %v7635_v37 = vpop.f32.mrf.mxu0  ;;  %v7676_v32 = vpop.f32.mrf.mxu1 }
 0x824   : > { %v10871_v11 = vadd.f32 %v7674_v34, %v7634_v31 }
 0x825   : > { %v7636_v39 = vpop.f32.mrf.mxu0  ;;  %v7677_v35 = vpop.f32.mrf.mxu1 }
 0x826   : > { %v321_v39 = vld [vmem:[%s9632_s29 + $0x30] sm:$0xff] }
 0x828   : > { %7780 = vmatpush2.bf16.xpose.msra.mxu0 %v9119_v38  ;;  %7821 = vmatpush2.bf16.xpose.msra.mxu1 %v9121_v40 }
 0x829   : > { %7781 = vmatprep.subr.bf16.mxu0 %v9104_v42  ;;  %7822 = vmatprep.subr.bf16.mxu1 %v9106_v3  ;;  %v322_v3 = vld [vmem:[%s9632_s29 + $0x38] sm:$0xff] }
 0x830   : > { %7782 = vmatpush2.bf16.xpose.msra.mxu0 %v9103_v36  ;;  %7823 = vmatpush2.bf16.xpose.msra.mxu1 %v9105_v49 }
 0x831   : > { %7783 = vmatprep.subr.bf16.mxu0 %v9088_v50  ;;  %7824 = vmatprep.subr.bf16.mxu1 %v9090_v23 }
 0x838   : > { %7784 = vmatpush2.bf16.xpose.msra.mxu0 %v9087_v56  ;;  %7825 = vmatpush2.bf16.xpose.msra.mxu1 %v9089_v0 }
 0x839   : > { %7785 = vmatprep.subr.bf16.mxu0 %v9072_v2  ;;  %7826 = vmatprep.subr.bf16.mxu1 %v9074_v4 }
 0x840   : > { %7786 = vmatpush2.bf16.xpose.msra.mxu0 %v9071_v10  ;;  %7827 = vmatpush2.bf16.xpose.msra.mxu1 %v9073_v41 }
 0x841   : > { %7787 = vmatprep.subr.bf16.mxu0 %v9056_v63  ;;  %7828 = vmatprep.subr.bf16.mxu1 %v9058_v45 }
 0x848   : > { %7788 = vmatpush2.bf16.xpose.msra.mxu0 %v9055_v5  ;;  %7829 = vmatpush2.bf16.xpose.msra.mxu1 %v9057_v51 }
 0x849   : > { %7789 = vmatprep.subr.bf16.mxu0 %v9040_v59  ;;  %7830 = vmatprep.subr.bf16.mxu1 %v9042_v60 }
 0x850   : > { %7790 = vmatpush2.bf16.xpose.msra.mxu0 %v9039_v15  ;;  %7831 = vmatpush2.bf16.xpose.msra.mxu1 %v9041_v16 }
 0x851   : > { %7791 = vmatprep.subr.bf16.mxu0 %v9024_v22  ;;  %7832 = vmatprep.subr.bf16.mxu1 %v9026_v17 }
 0x858   : > { %7792 = vmatpush2.bf16.xpose.msra.mxu0 %v9023_v26  ;;  %7833 = vmatpush2.bf16.xpose.msra.mxu1 %v9025_v21 }
 0x85f   : > { %7794 = vmatmul.mubr.bf16.vlgmr.msra.gmra.mxu0 %v10011_v19  ;;  %7835 = vmatmul.mubr.bf16.vlgmr.msra.gmra.mxu1 %v10017_v28 }
 0x89f   : > { %v7713_v29 = vpop.f32.mrf.mxu0  ;;  %v7754_v30 = vpop.f32.mrf.mxu1 }
 0x8a0   : > { %v7714_v18 = vadd.f32 %v7713_v29, %v10864_v47 }
 0x8a1   : > { %v7715_v25 = vpop.f32.mrf.mxu0  ;;  %v7756_v44 = vpop.f32.mrf.mxu1 }
 0x8a2   : > { %v7755_v31 = vadd.f32 %v7754_v30, %v7714_v18  ;;  %v7716_v34 = vadd.f32 %v7715_v25, %v10871_v11 }
 0x8a3   : > { %v7717_v24 = vpop.f32.mrf.mxu0  ;;  %v7758_v27 = vpop.f32.mrf.mxu1 }
 0x8a4   : > { %v7757_v37 = vadd.f32 %v7756_v44, %v7716_v34 }
 0x8a5   : > { %v7718_v33 = vpop.f32.mrf.mxu0  ;;  %v7759_v32 = vpop.f32.mrf.mxu1 }
 0x91f   : > { %v7795_v19 = vpop.f32.mrf.mxu0  ;;  %v7836_v28 = vpop.f32.mrf.mxu1 }
 0x920   : > { %v7796_v38 = vadd.f32 %v7795_v19, %v7755_v31 }
 0x921   : > { %v7797_v40 = vpop.f32.mrf.mxu0  ;;  %v7838_v35 = vpop.f32.mrf.mxu1 }
 0x922   : > { %v7837_v47 = vadd.f32 %v7836_v28, %v7796_v38  ;;  %v7798_v42 = vadd.f32 %v7797_v40, %v7757_v37 }
 0x923   : > { %v7799_v43 = vpop.f32.mrf.mxu0  ;;  %v7840_v48 = vpop.f32.mrf.mxu1 }
 0x924   : > { %v7849_v46 = vadd.f32 %v7837_v47, %v321_v39  ;;  %v7839_v11 = vadd.f32 %v7838_v35, %v7798_v42  ;;  %7862 = sbr.rel (%p9139_p0) target bundleno = 2361 (0x939), region = 48 }
 0x925   : > { %v7800_v53 = vpop.f32.mrf.mxu0  ;;  %v7841_v49 = vpop.f32.mrf.mxu1 }
 0x926   : > { %7857 = vst [vmem:[%s9632_s29 + $0x30] sm:$0xff] %v7849_v46  ;;  %v7850_v36 = vadd.f32 %v7839_v11, %v322_v3 }
 0x928   : > { %7858 = vst [vmem:[%s9632_s29 + $0x38] sm:$0xff] %v7850_v36 }
 0x929   : > { %v7873_v50 = vlaneseq  ;;  %v7863_v52 = vld [vmem:[%s9632_s29] sm:$0xff]  ;;  %v7864_v55 = vld [vmem:[%s9632_s29 + $0x8] sm:$0xff]  ;;  %v7865_v0 = vld [vmem:[%s9632_s29 + $0x10] sm:$0xff] }
 0x92a   : > { %v7871_v58 = vld [vmem:[%s239_s9] sm:$0xff]  ;;  %v7866_v7 = vld [vmem:[%s9632_s29 + $0x18] sm:$0xff] }
 0x92b   : > { %v7874_v23 = vshrl.u32 %v7873_v50, 7  ;;  %v7867_v8 = vld [vmem:[%s9632_s29 + $0x20] sm:$0xff]  ;;  %v7868_v20 = vld [vmem:[%s9632_s29 + $0x28] sm:$0xff] }
 0x92d   : > { %v7875_v54 = vsub.s32 0, %v7874_v23  ;;  %v7879_v56 = vsub.s32 1, %v7874_v23  ;;  %v7883_v2 = vsub.s32 2, %v7874_v23  ;;  %v7887_v4 = vsub.s32 3, %v7874_v23  ;;  %v7869_v6 = vld [vmem:[%s9632_s29 + $0x30] sm:$0xff] }
 0x92e   : > { %v7891_v9 = vsub.s32 4, %v7874_v23  ;;  %v7895_v62 = vsub.s32 5, %v7874_v23  ;;  %v7899_v10 = vsub.s32 6, %v7874_v23  ;;  %v7903_v41 = vsub.s32 7, %v7874_v23 }
 0x92f   : > { %v7876_v63 = vrot.slane %v7871_v58, %v7875_v54  ;;  %v7880_v45 = vrot.slane %v7871_v58, %v7879_v56  ;;  %v7884_v57 = vrot.slane %v7871_v58, %v7883_v2  ;;  %v7888_v12 = vrot.slane %v7871_v58, %v7887_v4  ;;  %v7870_v5 = vld [vmem:[%s9632_s29 + $0x38] sm:$0xff] }
 0x930   : > { %v7892_v51 = vrot.slane %v7871_v58, %v7891_v9  ;;  %v7896_v59 = vrot.slane %v7871_v58, %v7895_v62  ;;  %v7900_v60 = vrot.slane %v7871_v58, %v7899_v10  ;;  %v7904_v1 = vrot.slane %v7871_v58, %v7903_v41 }
 0x931   : > { %v7913_v61 = vadd.f32 %v7876_v63, %v7863_v52  ;;  %v7914_v13 = vadd.f32 %v7880_v45, %v7864_v55  ;;  %v7915_v14 = vadd.f32 %v7884_v57, %v7865_v0  ;;  %v7916_v15 = vadd.f32 %v7888_v12, %v7866_v7 }
 0x932   : > { %v7917_v16 = vadd.f32 %v7892_v51, %v7867_v8  ;;  %v7918_v22 = vadd.f32 %v7896_v59, %v7868_v20  ;;  %v7919_v17 = vadd.f32 %v7900_v60, %v7869_v6  ;;  %v7920_v26 = vadd.f32 %v7904_v1, %v7870_v5 }
 0x933   : > { %v7921_v21 = vmax.f32 %v7913_v61, 0.0  ;;  %v7922_v29 = vmax.f32 %v7914_v13, 0.0  ;;  %v7923_v18 = vmax.f32 %v7915_v14, 0.0  ;;  %v7924_v30 = vmax.f32 %v7916_v15, 0.0 }
 0x934   : > { %v7925_v25 = vmax.f32 %v7917_v16, 0.0  ;;  %v7926_v31 = vmax.f32 %v7918_v22, 0.0  ;;  %v7927_v34 = vmax.f32 %v7919_v17, 0.0  ;;  %v7928_v44 = vmax.f32 %v7920_v26, 0.0 }
 0x935   : > { %7929 = vst [vmem:[%s9632_s29] sm:$0xff] %v7921_v21  ;;  %7930 = vst [vmem:[%s9632_s29 + $0x8] sm:$0xff] %v7922_v29 }
 0x936   : > { %7931 = vst [vmem:[%s9632_s29 + $0x10] sm:$0xff] %v7923_v18  ;;  %7932 = vst [vmem:[%s9632_s29 + $0x18] sm:$0xff] %v7924_v30 }
 0x937   : > { %7933 = vst [vmem:[%s9632_s29 + $0x20] sm:$0xff] %v7925_v25  ;;  %7934 = vst [vmem:[%s9632_s29 + $0x28] sm:$0xff] %v7926_v31 }
 0x938   : > { %7935 = vst [vmem:[%s9632_s29 + $0x30] sm:$0xff] %v7927_v34  ;;  %7936 = vst [vmem:[%s9632_s29 + $0x38] sm:$0xff] %v7928_v44 }
 0x939 PF: > { %s19_s22 = sadd.s32 1, %s9414_s22   ;;  %s10973_s10 = sld [smem:[#allocation8_spill]] }
 0x93a   : > { %p16_p1 = scmp.ge.s32.totalorder %s19_s22, 10   ;;  %s10974_s26 = sld [smem:[#allocation9_spill]] }
 0x93b   : > { %s10975_s12 = smov %s9378_s13  ;;  %s10976_s13 = smov %s9382_s14 }
 0x93c   : > { %s10977_s14 = smov %s9582_s30  ;;  %s10978_s15 = smov %s9390_s16 }
 0x93d   : > { %s10979_s16 = smov %s9394_s17  ;;  %s10980_s17 = smov %s9587_s27 }
 0x93e   : > { %s10981_s18 = smov %s9406_s20  ;;  %s10982_s19 = smov %s9410_s21 }
 0x93f   : > { %s10983_s20 = smov %s10973_s10  ;;  %18 = sbr.rel (!%p16_p1) target bundleno = 11 (0xb), region = 96 }
 0x940   : > { %s10984_s21 = smov %s10974_s26 }
 0x944   :  { %7967 = vsyncpa [#allocation3], 1 }
 0x945   :  { %7969 = vsyncpa [#allocation3 + $0x1], 1 }
 0x946   :  { %7970 = vsyncpa [#allocation5], 1 }
 0x947   :  { %7972 = vsyncpa [#allocation5 + $0x1], 1 }

</bundles_post_ra>
